<compile_context>
chip_gen: v7x
topology: tpu7x:2x2x1
jax: 0.10.0
libtpu: 0.0.40
codegen_flags: <defaults>
</compile_context>

<pallas_src>
import functools

import jax
import jax.numpy as jnp
from jax.experimental import pallas as pl
from jax.experimental.pallas import tpu as pltpu


def _ceil_to(x, m):
    return (x + m - 1) // m * m


def _device_kind():
    try:
        return jax.devices()[0].device_kind.lower()
    except Exception:
        return ""


_BUFFERED1_OK = None


def _single_buffer_supported():
    """Probe (once) whether pl.Buffered(1) single-buffering lowers/compiles here.

    Constant-index weight BlockSpecs never change blocks, so single-buffering
    them halves weight VMEM (key on v7x).  If the installed JAX/Mosaic rejects
    buffer_count=1 we silently fall back to default double-buffering.
    """
    global _BUFFERED1_OK
    if _BUFFERED1_OK is None:
        try:
            def _k(x_ref, o_ref):
                o_ref[...] = x_ref[...] + 1.0
            fn = pl.pallas_call(
                _k,
                out_shape=jax.ShapeDtypeStruct((16, 128), jnp.float32),
                grid=(2,),
                in_specs=[pl.BlockSpec((8, 128), lambda i: (0, 0),
                                       pipeline_mode=pl.Buffered(1))],
                out_specs=pl.BlockSpec((8, 128), lambda i: (i, 0)),
            )
            jax.jit(fn).lower(jnp.zeros((8, 128), jnp.float32)).compile()
            _BUFFERED1_OK = True
        except Exception:
            _BUFFERED1_OK = False
    return _BUFFERED1_OK


def san_kernel(x_ref, u_ref,
               cvw_ref, cvb_ref, tew_ref, teb_ref,
               wiaw_ref, wqaw_ref, wqab_ref, wpw_ref, wpb_ref,
               fcw_ref, fcb_ref,
               out_ref, *, elem_dtype, approx_recip):
    """Processes a block of Bt batch elements per grid step.

    x_ref   : (Bt, HW, C)  token-major visual features
    u_ref   : (Bt, TE)     text features
    cvw_ref : (C, Kp)   cv_fc weight (in,out),     cvb_ref : (1, Kp)
    tew_ref : (TE, Kp)  te_fc weight (in,out),     teb_ref : (1, Kp)
    wiaw_ref: (L, Kp, Kp)  per-layer wia (in,out), no bias
    wqaw_ref: (L, Kp, Kp)  per-layer wqa (in,out), wqab_ref: (L, 1, Kp)
    wpw_ref : (L, 1, Kp)   per-layer wp row,       wpb_ref : (L, 1, 1)
    fcw_ref : (Kp, Ap)  classifier weight,         fcb_ref : (1, Ap)
    out_ref : (Bt, Ap)  lane+sublane-dense logits
    """
    Bt, HW, C = x_ref.shape
    Kp = cvw_ref.shape[1]
    L = wiaw_ref.shape[0]
    cd = cvw_ref.dtype               # MXU-input dtype (bf16 fast path / f32)
    ed = elem_dtype                  # elementwise (tanh) dtype
    f32 = jnp.float32

    # ---- cv_fc: one big (Bt*HW, C) x (C, Kp) MXU matmul ---------------------
    x2 = x_ref[...].reshape(Bt * HW, C)            # merge leading dims (layout-free)
    xk = jnp.dot(x2, cvw_ref[...], preferred_element_type=f32) + cvb_ref[...]
    xk = xk.astype(cd)                             # SINGLE resident copy of the slab
    xk3 = xk.reshape(Bt, HW, Kp)                   # leading-dim split of the same data

    # ---- te_fc --------------------------------------------------------------
    u = jnp.dot(u_ref[...], tew_ref[...], preferred_element_type=f32) + teb_ref[...]

    wpw_e = wpw_ref[...].astype(ed)                # (L, 1, Kp), hoisted out of loop

    # ---- SAN blocks (L is small -> static unroll) ---------------------------
    for l in range(L):
        # wi = wia(i.transpose(2,1)) : (Bt*HW, Kp) x (Kp, Kp)
        wi = jnp.dot(xk, wiaw_ref[l], preferred_element_type=f32)
        # wq = wqa(q).unsqueeze(1)
        wq = jnp.dot(u.astype(cd), wqaw_ref[l],
                     preferred_element_type=f32) + wqab_ref[l]          # (Bt, Kp)
        # tanh + wp-row multiply in the elementwise dtype (bf16 on v6e/v7x).
        ha = jnp.tanh((wi.reshape(Bt, HW, Kp) + wq[:, None, :]).astype(ed))
        # wp(ha): degenerate (Kp,1) matmul -> VPU multiply + f32 lane reduction;
        # scores laid out (Bt, HW) so the softmax reduces along the lane axis.
        s = jnp.sum((ha * wpw_e[l]).astype(f32), axis=-1) + wpb_ref[l]  # (Bt, HW)
        s = s - jnp.max(s, axis=-1, keepdims=True)
        e = jnp.exp(s)
        pi = e * pl.reciprocal(jnp.sum(e, axis=-1, keepdims=True),
                               approx=approx_recip)
        # u = matmul(i, pi).squeeze(2) + q : attention pooling over positions,
        # f32 accumulation (pi is f32, xk3 promotes on the fly).
        u = jnp.sum(pi[:, :, None] * xk3, axis=1) + u                   # (Bt, Kp)

    # ---- classifier ---------------------------------------------------------
    logits = jnp.dot(u.astype(cd), fcw_ref[...],
                     preferred_element_type=f32) + fcb_ref[...]         # (Bt, Ap)
    out_ref[...] = logits


def san_forward(x_feat, u_text, params, *, block_b=None,
                compute_dtype=jnp.bfloat16):
    """x_feat: (B, C, H, W) visual-encoder output; u_text: (B, TE) text encoding."""
    B, C, H, W = x_feat.shape
    HW = H * W
    TE = u_text.shape[1]
    K = params["cv_w"].shape[0]
    A = params["fc_w"].shape[0]
    L = params["wia_w"].shape[0]

    LANE = 128
    Kp = _ceil_to(K, LANE)           # lane-dense hidden width
    Ap = _ceil_to(A, LANE)           # lane-dense output width

    cd = jnp.dtype(compute_dtype)
    f32 = jnp.float32
    kind = _device_kind()
    is_v7 = ("v7" in kind) or ("7x" in kind)

    # Elementwise (tanh / wp multiply) dtype: bf16 only on chips with a bf16
    # VPU/EUP (v6e and newer); v5e and older stay f32 (correct either way).
    if cd == jnp.dtype(f32) or any(t in kind for t in ("v2", "v3", "v4", "v5")):
        ed = jnp.dtype(f32)
    else:
        ed = cd

    use_sb = _single_buffer_supported()
    wbuf = 1 if use_sb else 2

    # Scoped-VMEM budget: raise toward the 128 MiB physical on v5e/v6e
    # (single TC); stay conservative on v7x's 64 MiB physical.
    vmem_limit = (32 << 20) if is_v7 else (64 << 20)

    # ---- generation-aware batch block size ----------------------------------
    isz = cd.itemsize
    weight_bytes = wbuf * isz * (2 * L * Kp * Kp + C * Kp + TE * Kp + Kp * Ap)
    # Per-batch-element activations: double-buffered x block, the xk slab (cd)
    # and ~3 f32 transient slabs (wi / ha / score product).
    per_b = 2 * HW * C * isz + HW * Kp * (isz + 3 * 4) + 4 * Ap * 4
    budget = max(per_b, int(0.8 * vmem_limit) - weight_bytes)
    if block_b is None:
        bt = max(1, min(B, budget // per_b))     # whole batch if it fits (v5e/v6e)
        if is_v7 and bt >= B:
            bt = pl.cdiv(B, 2)                   # >=2 parallel steps for megacore
    else:
        bt = max(1, min(int(block_b), B))
    Bt = min(bt, _ceil_to(B, 8))
    if Bt < B:
        Bt = _ceil_to(Bt, 8)     # 2-D u/out blocks: sublane dim must be 8-aligned
    Bp = Bt if Bt >= B else _ceil_to(B, Bt)

    def pad_last2(a, r, c):
        cfg = [(0, 0)] * (a.ndim - 2) + [(0, r - a.shape[-2]), (0, c - a.shape[-1])]
        return jnp.pad(a, cfg)

    # Weights pre-transposed to (in, out) for the in-kernel matmuls, zero-padded
    # so K/A fill whole 128-lane tiles (exact: padded lanes stay zero everywhere).
    cvW = pad_last2(params["cv_w"].T, C, Kp).astype(cd)
    cvB = pad_last2(params["cv_b"][None, :], 1, Kp).astype(f32)
    teW = pad_last2(params["te_w"].T, TE, Kp).astype(cd)
    teB = pad_last2(params["te_b"][None, :], 1, Kp).astype(f32)
    wiaW = pad_last2(jnp.transpose(params["wia_w"], (0, 2, 1)), Kp, Kp).astype(cd)
    wqaW = pad_last2(jnp.transpose(params["wqa_w"], (0, 2, 1)), Kp, Kp).astype(cd)
    wqaB = pad_last2(params["wqa_b"][:, None, :], 1, Kp).astype(f32)
    wpW = pad_last2(params["wp_w"], 1, Kp).astype(f32)           # (L, 1, Kp)
    wpB = params["wp_b"][:, :, None].astype(f32)                 # (L, 1, 1)
    fcW = pad_last2(params["fc_w"].T, Kp, Ap).astype(cd)
    fcB = pad_last2(params["fc_b"][None, :], 1, Ap).astype(f32)

    # One XLA transpose pass to token-major (B, HW, C): lets cv_fc be a single
    # (Bt*HW, C) x (C, Kp) MXU matmul with M = Bt*HW inside the kernel
    # (amortized over the whole forward; no per-batch loop / concatenate).
    x = jnp.transpose(x_feat.reshape(B, C, HW), (0, 2, 1)).astype(cd)
    u = u_text.astype(cd)
    if Bp != B:
        x = jnp.pad(x, ((0, Bp - B), (0, 0), (0, 0)))
        u = jnp.pad(u, ((0, Bp - B), (0, 0)))

    def const_spec(shape):
        idx = lambda i: (0,) * len(shape)
        if use_sb:
            # Constant block index -> single-buffer the weight (halves its VMEM).
            return pl.BlockSpec(shape, idx, pipeline_mode=pl.Buffered(1))
        return pl.BlockSpec(shape, idx)

    kernel = functools.partial(
        san_kernel, elem_dtype=ed, approx_recip=(cd != jnp.dtype(f32)))

    out = pl.pallas_call(
        kernel,
        out_shape=jax.ShapeDtypeStruct((Bp, Ap), jnp.float32),
        grid_spec=pltpu.PrefetchScalarGridSpec(
            num_scalar_prefetch=0,
            grid=(Bp // Bt,),
            in_specs=[
                pl.BlockSpec((Bt, HW, C), lambda i: (i, 0, 0)),   # x (token-major)
                pl.BlockSpec((Bt, TE), lambda i: (i, 0)),         # u (2-D)
                const_spec((C, Kp)), const_spec((1, Kp)),         # cv_fc
                const_spec((TE, Kp)), const_spec((1, Kp)),        # te_fc
                const_spec((L, Kp, Kp)),                          # wia
                const_spec((L, Kp, Kp)), const_spec((L, 1, Kp)),  # wqa
                const_spec((L, 1, Kp)), const_spec((L, 1, 1)),    # wp
                const_spec((Kp, Ap)), const_spec((1, Ap)),        # fc
            ],
            out_specs=pl.BlockSpec((Bt, Ap), lambda i: (i, 0)),   # lane+sublane dense
        ),
        compiler_params=pltpu.CompilerParams(
            dimension_semantics=("parallel",),    # megacore-shards batch blocks on v7x
            vmem_limit_bytes=vmem_limit,
        ),
    )(x, u, cvW, cvB, teW, teB, wiaW, wqaW, wqaB, wpW, wpB, fcW, fcB)

    return out[:B, :A]


def san_reference(x_feat, u_text, p):
    """Pure-JAX reference with the exact PyTorch `San.forward` semantics."""
    B, C, H, W = x_feat.shape
    x = jnp.transpose(x_feat.reshape(B, C, -1), (0, 2, 1))       # (B, HW, C)
    xk = x @ p["cv_w"].T + p["cv_b"]                             # cv_fc(x): (B, HW, K)
    u = u_text @ p["te_w"].T + p["te_b"]                         # te_fc(u): (B, K)
    for l in range(p["wia_w"].shape[0]):
        wi = xk @ p["wia_w"][l].T                                # wia(i.transpose(2,1))
        wq = (u @ p["wqa_w"][l].T + p["wqa_b"][l])[:, None, :]   # wqa(q).unsqueeze(1)
        ha = jnp.tanh(wi + wq)
        s = ha @ p["wp_w"][l].T + p["wp_b"][l]                   # (B, HW, 1)
        pi = jax.nn.softmax(s, axis=1)
        u = jnp.sum(pi * xk, axis=1) + u                         # matmul(i,pi).squeeze(2)+q
    return u @ p["fc_w"].T + p["fc_b"]                           # fc(u): (B, A)


def init_params(key, *, cv_filter, te_hidden, san_k, san_layer, a_size):
    """Parameters stored in PyTorch nn.Linear layout (out, in)."""
    ks = jax.random.split(key, 11)
    s = 0.1
    p = {
        "cv_w": s * jax.random.normal(ks[0], (san_k, cv_filter)),
        "cv_b": s * jax.random.normal(ks[1], (san_k,)),
        "te_w": s * jax.random.normal(ks[2], (san_k, te_hidden)),
        "te_b": s * jax.random.normal(ks[3], (san_k,)),
        "wia_w": s * jax.random.normal(ks[4], (san_layer, san_k, san_k)),
        "wqa_w": s * jax.random.normal(ks[5], (san_layer, san_k, san_k)),
        "wqa_b": s * jax.random.normal(ks[6], (san_layer, san_k)),
        "wp_w": s * jax.random.normal(ks[7], (san_layer, 1, san_k)),
        "wp_b": s * jax.random.normal(ks[8], (san_layer, 1)),
        "fc_w": s * jax.random.normal(ks[9], (a_size, san_k)),
        "fc_b": s * jax.random.normal(ks[10], (a_size,)),
    }
    return jax.tree_util.tree_map(lambda a: a.astype(jnp.float32), p)


if __name__ == "__main__":
    B, cv_filter, Hs, Ws = 16, 32, 8, 8
    te_hidden, san_k, san_layer, a_size = 32, 32, 2, 16

    key = jax.random.PRNGKey(0)
    k_x, k_u, k_p = jax.random.split(key, 3)
    x_feat = jax.random.normal(k_x, (B, cv_filter, Hs, Ws), dtype=jnp.float32)
    u_text = jax.random.normal(k_u, (B, te_hidden), dtype=jnp.float32)
    params = init_params(k_p, cv_filter=cv_filter, te_hidden=te_hidden,
                         san_k=san_k, san_layer=san_layer, a_size=a_size)

    ref = san_reference(x_feat, u_text, params)

    # Prime the Buffered(1) capability probe outside of any jit trace.
    _single_buffer_supported()

    # f32 compute path, explicit 2-step batch grid (Bt=8): exercises the
    # multi-block pipeline and the exact (non-approx) softmax reciprocal.
    # Tolerance covers default-precision MXU f32 matmuls (bf16 input passes).
    fwd_f32 = jax.jit(functools.partial(
        san_forward, block_b=8, compute_dtype=jnp.float32))
    logits_f32 = jax.block_until_ready(fwd_f32(x_feat, u_text, params))
    assert logits_f32.shape == (B, a_size)
    err_f32 = float(jnp.max(jnp.abs(logits_f32 - ref)))
    assert jnp.allclose(logits_f32, ref, atol=1e-2, rtol=1e-2), ("f32 err", err_f32)

    # bf16 MXU-input fast path with generation-aware auto block size
    # (whole batch in one step on v5e/v6e, two parallel blocks on v7x).
    fwd_bf16 = jax.jit(functools.partial(
        san_forward, block_b=None, compute_dtype=jnp.bfloat16))
    logits_bf16 = jax.block_until_ready(fwd_bf16(x_feat, u_text, params))
    assert logits_bf16.shape == (B, a_size)
    err_bf16 = float(jnp.max(jnp.abs(logits_bf16 - ref)))
    assert jnp.allclose(logits_bf16, ref, atol=1e-1, rtol=1e-1), ("bf16 err", err_bf16)

    print("KERNEL_OK")
</pallas_src>

<mosaic_0001>
module attributes {stable_mosaic.version = 11 : i64} {
  func.func @san_kernel(%arg0: i32, %arg1: memref<8x64x32xf32, #tpu.memory_space<vmem>>, %arg2: memref<8x32xf32, #tpu.memory_space<vmem>>, %arg3: memref<32x128xf32, #tpu.memory_space<vmem>>, %arg4: memref<1x128xf32, #tpu.memory_space<vmem>>, %arg5: memref<32x128xf32, #tpu.memory_space<vmem>>, %arg6: memref<1x128xf32, #tpu.memory_space<vmem>>, %arg7: memref<2x128x128xf32, #tpu.memory_space<vmem>>, %arg8: memref<2x128x128xf32, #tpu.memory_space<vmem>>, %arg9: memref<2x1x128xf32, #tpu.memory_space<vmem>>, %arg10: memref<2x1x128xf32, #tpu.memory_space<vmem>>, %arg11: memref<2x1x1xf32, #tpu.memory_space<vmem>>, %arg12: memref<128x128xf32, #tpu.memory_space<vmem>>, %arg13: memref<1x128xf32, #tpu.memory_space<vmem>>, %arg14: memref<8x128xf32, #tpu.memory_space<vmem>>) attributes {dimension_semantics = [#tpu.dimension_semantics<parallel>], iteration_bounds = array<i64: 2>, scalar_prefetch = 0 : i64, scratch_operands = 0 : i64, tpu.core_type = #tpu.core_type<tc>, window_params = [{transform_indices = @transform_0, window_bounds = array<i64: 8, 64, 32>}, {transform_indices = @transform_1, window_bounds = array<i64: 8, 32>}, {pipeline_mode = #tpu.pipeline_mode<synchronous>, transform_indices = @transform_2, window_bounds = array<i64: 32, 128>}, {pipeline_mode = #tpu.pipeline_mode<synchronous>, transform_indices = @transform_3, window_bounds = array<i64: 1, 128>}, {pipeline_mode = #tpu.pipeline_mode<synchronous>, transform_indices = @transform_4, window_bounds = array<i64: 32, 128>}, {pipeline_mode = #tpu.pipeline_mode<synchronous>, transform_indices = @transform_5, window_bounds = array<i64: 1, 128>}, {pipeline_mode = #tpu.pipeline_mode<synchronous>, transform_indices = @transform_6, window_bounds = array<i64: 2, 128, 128>}, {pipeline_mode = #tpu.pipeline_mode<synchronous>, transform_indices = @transform_7, window_bounds = array<i64: 2, 128, 128>}, {pipeline_mode = #tpu.pipeline_mode<synchronous>, transform_indices = @transform_8, window_bounds = array<i64: 2, 1, 128>}, {pipeline_mode = #tpu.pipeline_mode<synchronous>, transform_indices = @transform_9, window_bounds = array<i64: 2, 1, 128>}, {pipeline_mode = #tpu.pipeline_mode<synchronous>, transform_indices = @transform_10, window_bounds = array<i64: 2, 1, 1>}, {pipeline_mode = #tpu.pipeline_mode<synchronous>, transform_indices = @transform_11, window_bounds = array<i64: 128, 128>}, {pipeline_mode = #tpu.pipeline_mode<synchronous>, transform_indices = @transform_12, window_bounds = array<i64: 1, 128>}, {transform_indices = @transform_13, window_bounds = array<i64: 8, 128>}]} {
    %c0 = arith.constant 0 : index
    %c0_0 = arith.constant 0 : index
    %c0_1 = arith.constant 0 : index
    %0 = vector.load %arg1[%c0, %c0_0, %c0_1] : memref<8x64x32xf32, #tpu.memory_space<vmem>>, vector<8x64x32xf32>
    %1 = vector.shape_cast %0 : vector<8x64x32xf32> to vector<512x32xf32>
    %c0_2 = arith.constant 0 : index
    %c0_3 = arith.constant 0 : index
    %2 = vector.load %arg3[%c0_2, %c0_3] : memref<32x128xf32, #tpu.memory_space<vmem>>, vector<32x128xf32>
    %cst = arith.constant dense<0.000000e+00> : vector<512x128xf32>
    %3 = tpu.matmul %1, %2, %cst {dimension_numbers = #tpu.dot_dimension_numbers<[1], [0], [0], [1], [0, 0, 1, 1], [], []>} : vector<512x32xf32>, vector<32x128xf32>, vector<512x128xf32> -> vector<512x128xf32>
    %c0_4 = arith.constant 0 : index
    %c0_5 = arith.constant 0 : index
    %4 = vector.load %arg4[%c0_4, %c0_5] : memref<1x128xf32, #tpu.memory_space<vmem>>, vector<1x128xf32>
    %5 = vector.broadcast %4 : vector<1x128xf32> to vector<512x128xf32>
    %6 = arith.addf %3, %5 : vector<512x128xf32>
    %7 = vector.shape_cast %6 : vector<512x128xf32> to vector<8x64x128xf32>
    %c0_6 = arith.constant 0 : index
    %c0_7 = arith.constant 0 : index
    %8 = vector.load %arg2[%c0_6, %c0_7] : memref<8x32xf32, #tpu.memory_space<vmem>>, vector<8x32xf32>
    %c0_8 = arith.constant 0 : index
    %c0_9 = arith.constant 0 : index
    %9 = vector.load %arg5[%c0_8, %c0_9] : memref<32x128xf32, #tpu.memory_space<vmem>>, vector<32x128xf32>
    %cst_10 = arith.constant dense<0.000000e+00> : vector<8x128xf32>
    %10 = tpu.matmul %8, %9, %cst_10 {dimension_numbers = #tpu.dot_dimension_numbers<[1], [0], [0], [1], [0, 0, 1, 1], [], []>} : vector<8x32xf32>, vector<32x128xf32>, vector<8x128xf32> -> vector<8x128xf32>
    %c0_11 = arith.constant 0 : index
    %c0_12 = arith.constant 0 : index
    %11 = vector.load %arg6[%c0_11, %c0_12] : memref<1x128xf32, #tpu.memory_space<vmem>>, vector<1x128xf32>
    %12 = vector.broadcast %11 : vector<1x128xf32> to vector<8x128xf32>
    %13 = arith.addf %10, %12 : vector<8x128xf32>
    %c0_13 = arith.constant 0 : index
    %c0_14 = arith.constant 0 : index
    %c0_15 = arith.constant 0 : index
    %14 = vector.load %arg10[%c0_13, %c0_14, %c0_15] : memref<2x1x128xf32, #tpu.memory_space<vmem>>, vector<2x1x128xf32>
    %c0_16 = arith.constant 0 : index
    %c0_17 = arith.constant 0 : index
    %c0_18 = arith.constant 0 : index
    %15 = vector.load %arg7[%c0_16, %c0_17, %c0_18] : memref<2x128x128xf32, #tpu.memory_space<vmem>>, vector<1x128x128xf32>
    %16 = vector.shape_cast %15 : vector<1x128x128xf32> to vector<128x128xf32>
    %cst_19 = arith.constant dense<0.000000e+00> : vector<512x128xf32>
    %17 = tpu.matmul %6, %16, %cst_19 {dimension_numbers = #tpu.dot_dimension_numbers<[1], [0], [0], [1], [0, 0, 1, 1], [], []>} : vector<512x128xf32>, vector<128x128xf32>, vector<512x128xf32> -> vector<512x128xf32>
    %c0_20 = arith.constant 0 : index
    %c0_21 = arith.constant 0 : index
    %c0_22 = arith.constant 0 : index
    %18 = vector.load %arg8[%c0_20, %c0_21, %c0_22] : memref<2x128x128xf32, #tpu.memory_space<vmem>>, vector<1x128x128xf32>
    %19 = vector.shape_cast %18 : vector<1x128x128xf32> to vector<128x128xf32>
    %cst_23 = arith.constant dense<0.000000e+00> : vector<8x128xf32>
    %20 = tpu.matmul %13, %19, %cst_23 {dimension_numbers = #tpu.dot_dimension_numbers<[1], [0], [0], [1], [0, 0, 1, 1], [], []>} : vector<8x128xf32>, vector<128x128xf32>, vector<8x128xf32> -> vector<8x128xf32>
    %c0_24 = arith.constant 0 : index
    %c0_25 = arith.constant 0 : index
    %c0_26 = arith.constant 0 : index
    %21 = vector.load %arg9[%c0_24, %c0_25, %c0_26] : memref<2x1x128xf32, #tpu.memory_space<vmem>>, vector<1x1x128xf32>
    %22 = vector.shape_cast %21 : vector<1x1x128xf32> to vector<1x128xf32>
    %23 = vector.broadcast %22 : vector<1x128xf32> to vector<8x128xf32>
    %24 = arith.addf %20, %23 : vector<8x128xf32>
    %25 = vector.shape_cast %17 : vector<512x128xf32> to vector<8x64x128xf32>
    %26 = vector.shape_cast %24 : vector<8x128xf32> to vector<8x1x128xf32>
    %27 = vector.broadcast %26 : vector<8x1x128xf32> to vector<8x64x128xf32>
    %28 = arith.addf %25, %27 : vector<8x64x128xf32>
    %29 = math.tanh %28 : vector<8x64x128xf32>
    %30 = vector.extract_strided_slice %14 {offsets = [0, 0, 0], sizes = [1, 1, 128], strides = [1, 1, 1]} : vector<2x1x128xf32> to vector<1x1x128xf32>
    %31 = vector.shape_cast %30 : vector<1x1x128xf32> to vector<1x128xf32>
    %32 = vector.shape_cast %31 : vector<1x128xf32> to vector<1x1x128xf32>
    %33 = vector.broadcast %32 : vector<1x1x128xf32> to vector<8x64x128xf32>
    %34 = arith.mulf %29, %33 : vector<8x64x128xf32>
    %cst_27 = arith.constant dense<0.000000e+00> : vector<8x64xf32>
    %35 = vector.multi_reduction <add>, %34, %cst_27 [2] : vector<8x64x128xf32> to vector<8x64xf32>
    %c0_28 = arith.constant 0 : index
    %c0_29 = arith.constant 0 : index
    %c0_30 = arith.constant 0 : index
    %36 = vector.load %arg11[%c0_28, %c0_29, %c0_30] : memref<2x1x1xf32, #tpu.memory_space<vmem>>, vector<1x1x1xf32>
    %37 = vector.shape_cast %36 : vector<1x1x1xf32> to vector<1x1xf32>
    %38 = vector.broadcast %37 : vector<1x1xf32> to vector<8x64xf32>
    %39 = arith.addf %35, %38 : vector<8x64xf32>
    %cst_31 = arith.constant dense<0xFF800000> : vector<8xf32>
    %40 = vector.multi_reduction <maximumf>, %39, %cst_31 [1] : vector<8x64xf32> to vector<8xf32>
    %41 = vector.shape_cast %40 : vector<8xf32> to vector<8x1xf32>
    %42 = vector.broadcast %41 : vector<8x1xf32> to vector<8x64xf32>
    %43 = arith.subf %39, %42 : vector<8x64xf32>
    %44 = math.exp %43 : vector<8x64xf32>
    %cst_32 = arith.constant dense<0.000000e+00> : vector<8xf32>
    %45 = vector.multi_reduction <add>, %44, %cst_32 [1] : vector<8x64xf32> to vector<8xf32>
    %46 = vector.shape_cast %45 : vector<8xf32> to vector<8x1xf32>
    %47 = tpu.reciprocal %46 : vector<8x1xf32> -> vector<8x1xf32>
    %48 = vector.broadcast %47 : vector<8x1xf32> to vector<8x64xf32>
    %49 = arith.mulf %44, %48 : vector<8x64xf32>
    %50 = vector.shape_cast %49 : vector<8x64xf32> to vector<8x64x1xf32>
    %51 = vector.broadcast %50 : vector<8x64x1xf32> to vector<8x64x128xf32>
    %52 = arith.mulf %51, %7 : vector<8x64x128xf32>
    %cst_33 = arith.constant dense<0.000000e+00> : vector<8x128xf32>
    %53 = vector.multi_reduction <add>, %52, %cst_33 [1] : vector<8x64x128xf32> to vector<8x128xf32>
    %54 = arith.addf %53, %13 : vector<8x128xf32>
    %c1 = arith.constant 1 : index
    %c0_34 = arith.constant 0 : index
    %c0_35 = arith.constant 0 : index
    %55 = vector.load %arg7[%c1, %c0_34, %c0_35] : memref<2x128x128xf32, #tpu.memory_space<vmem>>, vector<1x128x128xf32>
    %56 = vector.shape_cast %55 : vector<1x128x128xf32> to vector<128x128xf32>
    %cst_36 = arith.constant dense<0.000000e+00> : vector<512x128xf32>
    %57 = tpu.matmul %6, %56, %cst_36 {dimension_numbers = #tpu.dot_dimension_numbers<[1], [0], [0], [1], [0, 0, 1, 1], [], []>} : vector<512x128xf32>, vector<128x128xf32>, vector<512x128xf32> -> vector<512x128xf32>
    %c1_37 = arith.constant 1 : index
    %c0_38 = arith.constant 0 : index
    %c0_39 = arith.constant 0 : index
    %58 = vector.load %arg8[%c1_37, %c0_38, %c0_39] : memref<2x128x128xf32, #tpu.memory_space<vmem>>, vector<1x128x128xf32>
    %59 = vector.shape_cast %58 : vector<1x128x128xf32> to vector<128x128xf32>
    %cst_40 = arith.constant dense<0.000000e+00> : vector<8x128xf32>
    %60 = tpu.matmul %54, %59, %cst_40 {dimension_numbers = #tpu.dot_dimension_numbers<[1], [0], [0], [1], [0, 0, 1, 1], [], []>} : vector<8x128xf32>, vector<128x128xf32>, vector<8x128xf32> -> vector<8x128xf32>
    %c1_41 = arith.constant 1 : index
    %c0_42 = arith.constant 0 : index
    %c0_43 = arith.constant 0 : index
    %61 = vector.load %arg9[%c1_41, %c0_42, %c0_43] : memref<2x1x128xf32, #tpu.memory_space<vmem>>, vector<1x1x128xf32>
    %62 = vector.shape_cast %61 : vector<1x1x128xf32> to vector<1x128xf32>
    %63 = vector.broadcast %62 : vector<1x128xf32> to vector<8x128xf32>
    %64 = arith.addf %60, %63 : vector<8x128xf32>
    %65 = vector.shape_cast %57 : vector<512x128xf32> to vector<8x64x128xf32>
    %66 = vector.shape_cast %64 : vector<8x128xf32> to vector<8x1x128xf32>
    %67 = vector.broadcast %66 : vector<8x1x128xf32> to vector<8x64x128xf32>
    %68 = arith.addf %65, %67 : vector<8x64x128xf32>
    %69 = math.tanh %68 : vector<8x64x128xf32>
    %70 = vector.extract_strided_slice %14 {offsets = [1, 0, 0], sizes = [1, 1, 128], strides = [1, 1, 1]} : vector<2x1x128xf32> to vector<1x1x128xf32>
    %71 = vector.shape_cast %70 : vector<1x1x128xf32> to vector<1x128xf32>
    %72 = vector.shape_cast %71 : vector<1x128xf32> to vector<1x1x128xf32>
    %73 = vector.broadcast %72 : vector<1x1x128xf32> to vector<8x64x128xf32>
    %74 = arith.mulf %69, %73 : vector<8x64x128xf32>
    %cst_44 = arith.constant dense<0.000000e+00> : vector<8x64xf32>
    %75 = vector.multi_reduction <add>, %74, %cst_44 [2] : vector<8x64x128xf32> to vector<8x64xf32>
    %c1_45 = arith.constant 1 : index
    %c0_46 = arith.constant 0 : index
    %c0_47 = arith.constant 0 : index
    %76 = vector.load %arg11[%c1_45, %c0_46, %c0_47] : memref<2x1x1xf32, #tpu.memory_space<vmem>>, vector<1x1x1xf32>
    %77 = vector.shape_cast %76 : vector<1x1x1xf32> to vector<1x1xf32>
    %78 = vector.broadcast %77 : vector<1x1xf32> to vector<8x64xf32>
    %79 = arith.addf %75, %78 : vector<8x64xf32>
    %cst_48 = arith.constant dense<0xFF800000> : vector<8xf32>
    %80 = vector.multi_reduction <maximumf>, %79, %cst_48 [1] : vector<8x64xf32> to vector<8xf32>
    %81 = vector.shape_cast %80 : vector<8xf32> to vector<8x1xf32>
    %82 = vector.broadcast %81 : vector<8x1xf32> to vector<8x64xf32>
    %83 = arith.subf %79, %82 : vector<8x64xf32>
    %84 = math.exp %83 : vector<8x64xf32>
    %cst_49 = arith.constant dense<0.000000e+00> : vector<8xf32>
    %85 = vector.multi_reduction <add>, %84, %cst_49 [1] : vector<8x64xf32> to vector<8xf32>
    %86 = vector.shape_cast %85 : vector<8xf32> to vector<8x1xf32>
    %87 = tpu.reciprocal %86 : vector<8x1xf32> -> vector<8x1xf32>
    %88 = vector.broadcast %87 : vector<8x1xf32> to vector<8x64xf32>
    %89 = arith.mulf %84, %88 : vector<8x64xf32>
    %90 = vector.shape_cast %89 : vector<8x64xf32> to vector<8x64x1xf32>
    %91 = vector.broadcast %90 : vector<8x64x1xf32> to vector<8x64x128xf32>
    %92 = arith.mulf %91, %7 : vector<8x64x128xf32>
    %cst_50 = arith.constant dense<0.000000e+00> : vector<8x128xf32>
    %93 = vector.multi_reduction <add>, %92, %cst_50 [1] : vector<8x64x128xf32> to vector<8x128xf32>
    %94 = arith.addf %93, %54 : vector<8x128xf32>
    %c0_51 = arith.constant 0 : index
    %c0_52 = arith.constant 0 : index
    %95 = vector.load %arg12[%c0_51, %c0_52] : memref<128x128xf32, #tpu.memory_space<vmem>>, vector<128x128xf32>
    %cst_53 = arith.constant dense<0.000000e+00> : vector<8x128xf32>
    %96 = tpu.matmul %94, %95, %cst_53 {dimension_numbers = #tpu.dot_dimension_numbers<[1], [0], [0], [1], [0, 0, 1, 1], [], []>} : vector<8x128xf32>, vector<128x128xf32>, vector<8x128xf32> -> vector<8x128xf32>
    %c0_54 = arith.constant 0 : index
    %c0_55 = arith.constant 0 : index
    %97 = vector.load %arg13[%c0_54, %c0_55] : memref<1x128xf32, #tpu.memory_space<vmem>>, vector<1x128xf32>
    %98 = vector.broadcast %97 : vector<1x128xf32> to vector<8x128xf32>
    %99 = arith.addf %96, %98 : vector<8x128xf32>
    %c0_56 = arith.constant 0 : index
    %c0_57 = arith.constant 0 : index
    %100 = vector.load %arg14[%c0_56, %c0_57] : memref<8x128xf32, #tpu.memory_space<vmem>>, vector<8x128xf32>
    tpu.vector_store %arg14[%c0_56, %c0_57], %99 {strides = array<i32>} : memref<8x128xf32, #tpu.memory_space<vmem>>, vector<8x128xf32>,
    return
  }
  func.func @transform_0(%arg0: i32) -> (i32, i32, i32) {
    %c0_i32 = arith.constant 0 : i32
    %c0_i32_0 = arith.constant 0 : i32
    %c0_i32_1 = arith.constant 0 : i32
    return %arg0, %c0_i32, %c0_i32_0 : i32, i32, i32
  }
  func.func @transform_1(%arg0: i32) -> (i32, i32) {
    %c0_i32 = arith.constant 0 : i32
    %c0_i32_0 = arith.constant 0 : i32
    return %arg0, %c0_i32 : i32, i32
  }
  func.func @transform_2(%arg0: i32) -> (i32, i32) {
    %c0_i32 = arith.constant 0 : i32
    %c0_i32_0 = arith.constant 0 : i32
    %c0_i32_1 = arith.constant 0 : i32
    return %c0_i32, %c0_i32_0 : i32, i32
  }
  func.func @transform_3(%arg0: i32) -> (i32, i32) {
    %c0_i32 = arith.constant 0 : i32
    %c0_i32_0 = arith.constant 0 : i32
    %c0_i32_1 = arith.constant 0 : i32
    return %c0_i32, %c0_i32_0 : i32, i32
  }
  func.func @transform_4(%arg0: i32) -> (i32, i32) {
    %c0_i32 = arith.constant 0 : i32
    %c0_i32_0 = arith.constant 0 : i32
    %c0_i32_1 = arith.constant 0 : i32
    return %c0_i32, %c0_i32_0 : i32, i32
  }
  func.func @transform_5(%arg0: i32) -> (i32, i32) {
    %c0_i32 = arith.constant 0 : i32
    %c0_i32_0 = arith.constant 0 : i32
    %c0_i32_1 = arith.constant 0 : i32
    return %c0_i32, %c0_i32_0 : i32, i32
  }
  func.func @transform_6(%arg0: i32) -> (i32, i32, i32) {
    %c0_i32 = arith.constant 0 : i32
    %c0_i32_0 = arith.constant 0 : i32
    %c0_i32_1 = arith.constant 0 : i32
    %c0_i32_2 = arith.constant 0 : i32
    return %c0_i32, %c0_i32_0, %c0_i32_1 : i32, i32, i32
  }
  func.func @transform_7(%arg0: i32) -> (i32, i32, i32) {
    %c0_i32 = arith.constant 0 : i32
    %c0_i32_0 = arith.constant 0 : i32
    %c0_i32_1 = arith.constant 0 : i32
    %c0_i32_2 = arith.constant 0 : i32
    return %c0_i32, %c0_i32_0, %c0_i32_1 : i32, i32, i32
  }
  func.func @transform_8(%arg0: i32) -> (i32, i32, i32) {
    %c0_i32 = arith.constant 0 : i32
    %c0_i32_0 = arith.constant 0 : i32
    %c0_i32_1 = arith.constant 0 : i32
    %c0_i32_2 = arith.constant 0 : i32
    return %c0_i32, %c0_i32_0, %c0_i32_1 : i32, i32, i32
  }
  func.func @transform_9(%arg0: i32) -> (i32, i32, i32) {
    %c0_i32 = arith.constant 0 : i32
    %c0_i32_0 = arith.constant 0 : i32
    %c0_i32_1 = arith.constant 0 : i32
    %c0_i32_2 = arith.constant 0 : i32
    return %c0_i32, %c0_i32_0, %c0_i32_1 : i32, i32, i32
  }
  func.func @transform_10(%arg0: i32) -> (i32, i32, i32) {
    %c0_i32 = arith.constant 0 : i32
    %c0_i32_0 = arith.constant 0 : i32
    %c0_i32_1 = arith.constant 0 : i32
    %c0_i32_2 = arith.constant 0 : i32
    return %c0_i32, %c0_i32_0, %c0_i32_1 : i32, i32, i32
  }
  func.func @transform_11(%arg0: i32) -> (i32, i32) {
    %c0_i32 = arith.constant 0 : i32
    %c0_i32_0 = arith.constant 0 : i32
    %c0_i32_1 = arith.constant 0 : i32
    return %c0_i32, %c0_i32_0 : i32, i32
  }
  func.func @transform_12(%arg0: i32) -> (i32, i32) {
    %c0_i32 = arith.constant 0 : i32
    %c0_i32_0 = arith.constant 0 : i32
    %c0_i32_1 = arith.constant 0 : i32
    return %c0_i32, %c0_i32_0 : i32, i32
  }
  func.func @transform_13(%arg0: i32) -> (i32, i32) {
    %c0_i32 = arith.constant 0 : i32
    %c0_i32_0 = arith.constant 0 : i32
    return %arg0, %c0_i32 : i32, i32
  }
}

</mosaic_0001>

<bundles_post_ra>
// kernel: san_forward.1
= control target key start
LH: loop header
LB: loop body
LE: loop exit
PB: predicated region body
PF: predicated region fallthrough
CT: control target
= control target key end

     0   :  { %s14536_s0 = inlined_call_operand.hbm [shape: f32[16,64,32], index: 0, kind: input, shape index: {}]   ;;  %s14537_s1 = inlined_call_operand.hbm [shape: f32[16,32], index: 1, kind: input, shape index: {}]   ;;  %s14538_s2 = inlined_call_operand.hbm [shape: f32[32,128], index: 2, kind: input, shape index: {}]   ;;  %s14539_s3 = inlined_call_operand.hbm [shape: f32[1,128], index: 3, kind: input, shape index: {}]   ;;  %s14540_s4 = inlined_call_operand.hbm [shape: f32[32,128], index: 4, kind: input, shape index: {}]   ;;  %s14541_s5 = inlined_call_operand.hbm [shape: f32[1,128], index: 5, kind: input, shape index: {}]   ;;  %s14542_s6 = inlined_call_operand.hbm [shape: f32[2,128,128], index: 6, kind: input, shape index: {}]   ;;  %s14543_s7 = inlined_call_operand.hbm [shape: f32[2,128,128], index: 7, kind: input, shape index: {}]   ;;  %s14544_s8 = inlined_call_operand.hbm [shape: f32[2,1,128], index: 8, kind: input, shape index: {}]   ;;  %s14545_s9 = inlined_call_operand.hbm [shape: f32[2,1,128], index: 9, kind: input, shape index: {}]   ;;  %s14546_s10 = inlined_call_operand.hbm [shape: f32[2,1,1], index: 10, kind: input, shape index: {}]   ;;  %s14547_s11 = inlined_call_operand.hbm [shape: f32[128,128], index: 11, kind: input, shape index: {}]   ;;  %s14548_s12 = inlined_call_operand.hbm [shape: f32[1,128], index: 12, kind: input, shape index: {}]   ;;  %s14549_s13 = inlined_call_operand.hbm [shape: f32[16,128], index: 13, kind: output, shape index: {}]  }
   0x1   :  { %14946 = sst [smem:[#allocation250_spill]] %s14536_s0 }
   0x2   :  { %14947 = sst [smem:[#allocation251_spill]] %s14537_s1 }
   0x3   :  { %14948 = sst [smem:[#allocation252_spill]] %s14538_s2 }
   0x4   :  { %14949 = sst [smem:[#allocation253_spill]] %s14539_s3 }
   0x5   :  { %14950 = sst [smem:[#allocation254_spill]] %s14540_s4 }
   0x6   :  { %14951 = sst [smem:[#allocation255_spill]] %s14541_s5 }
   0x7   :  { %14952 = sst [smem:[#allocation256_spill]] %s14542_s6 }
   0x8   :  { %14953 = sst [smem:[#allocation257_spill]] %s14543_s7 }
   0x9   :  { %14954 = sst [smem:[#allocation258_spill]] %s14544_s8 }
   0xa   :  { %14955 = sst [smem:[#allocation259_spill]] %s14545_s9 }
   0xb   :  { %14956 = sst [smem:[#allocation260_spill]] %s14549_s13 }
   0xc   :  { %18 = vsyncpa [#allocation3], 0 }
   0xd   :  { %20 = vsyncpa [#allocation3 + $0x1], 0 }
   0xe   :  { %21 = vsyncpa [#allocation6], 0 }
   0xf   :  { %23 = vsyncpa [#allocation6 + $0x1], 0 }
  0x10   :  { %24 = vsyncpa [#allocation9], 0 }
  0x11   :  { %25 = vsyncpa [#allocation12], 0 }
  0x12   :  { %26 = vsyncpa [#allocation15], 0 }
  0x13   :  { %27 = vsyncpa [#allocation18], 0 }
  0x14   :  { %28 = vsyncpa [#allocation21], 0 }
  0x15   :  { %29 = vsyncpa [#allocation4], 0 }
  0x16   :  { %31 = vsyncpa [#allocation4 + $0x1], 0  ;;  %s9631_s25 = smov 0   ;;  %s9633_s26 = smov 0  }
  0x17   :  { %s9635_s27 = smov 0   ;;  %s9637_s28 = smov 0  }
  0x18 LB: > { %s9538_s29 = smov [#allocation7]   ;;  %s9652_s14 = sadd.s32 4294967295, %s9536_s28   ;;  %s9536_s28 = sphi %s9637_s28, %s15848_s28   ;;  %s9532_s27 = sphi %s9635_s27, %s15847_s27   ;;  %s9528_s26 = sphi %s9633_s26, %s15846_s26   ;;  %s9524_s25 = sphi %s9631_s25, %s15845_s25  }
  0x19   : > { %s363_s30 = sshll.u32 %s9538_s29, 4  ;;  %14957 = sst [smem:[#allocation33_spill]] %s9652_s14  ;;  %s9657_s30 = int_to_ptr.vmem [resolvable:$true] %s363_s30 }
  0x1a   : > { %p7357_p0 = scmp.ge.s32.totalorder %s9536_s28, 1  ;;  %p14557_p1 = scmp.eq.s32.totalorder %s9652_s14, 0 }
  0x1b   : > { %p351_p2 = scmp.lt.s32.totalorder %s9536_s28, 3  ;;  %s9539_s16 = smov [#allocation8]  }
  0x1c   : > { %s377_s17 = sshll.u32 %s9539_s16, 4  ;;  %s9540_s19 = smov [#allocation11]   ;;  %s9672_s17 = int_to_ptr.vmem [resolvable:$true] %s377_s17 }
  0x1d   : > { %p9659_p3 = pnand %p7357_p0, %p351_p2  ;;  %s401_s20 = sshll.u32 %s9540_s19, 4  ;;  %s9674_s20 = int_to_ptr.vmem [resolvable:$true] %s401_s20 }
  0x1e   : > { %s14961_s2 = sld [smem:[#allocation252_spill]] }
  0x1f   : > { %s14958_s15 = scalar_select %p9659_p3, 1, 0 }
  0x20   : > { %p8435_p5 = pneg %p9659_p3 }
  0x21   : > { %14959 = sst [smem:[#allocation34_spill]] %s14958_s15 }
  0x22   : > { %p9668_p6 = pnand %p8435_p5, %p14557_p1 }
  0x24   : > { %s9074_s23 = scalar_lea.hbm %s14961_s2, 512  ;;  %p9684_p8 = pneg %p9668_p6 }
  0x25   : > { %p9075_p7 = scmp.ne.s32.totalorder %s14961_s2, %s9074_s23  ;;  %p9081_p11 = scmp.lt.u32.totalorder %s9074_s23, %s14961_s2 }
  0x27   : > { %p9077_p9 = pnand %p9684_p8, %p9075_p7 }
  0x29   : > { %p9078_p10 = pneg %p9077_p9 }
  0x2b   : > { %p9083_p12 = pnand %p9081_p11, %p9078_p10 }
  0x2d   : > { %9086 = shalt.err (!%p9083_p12)
}
  0x2e   : > { %s9087_s21 = scalar_lea.vmem %s9657_s30, 512  ;;  %p9095_p5 = scmp.lt.s32.totalorder %s9657_s30, %s9657_s30 }
  0x2f   : > { %p9088_p13 = scmp.ne.s32.totalorder %s9657_s30, %s9087_s21  ;;  %p9096_p4 = scmp.lt.s32.totalorder %s9087_s21, %s9087_s21 }
  0x31   : > { %p9090_p0 = pnand %p9088_p13, %p9684_p8  ;;  %p9097_p7 = por %p9096_p4, %p9095_p5 }
  0x33   : > { %p9091_p2 = pneg %p9090_p0 }
  0x35   : > { %p9098_p9 = pnand %p9097_p7, %p9091_p2 }
  0x37   : > { %9101 = shalt.err (!%p9098_p9)
}
  0x38   : > { %s14559_s22 = smov 128   ;;  %s14565_s13 = smov 8  }
  0x39   : > { %8438 = dma.hbm_to_vmem [thread:$0]  (!%p9668_p6), %s14961_s2, 512, %s9657_s30, [#allocation6], %s14559_s22, %s14559_s22, %s14565_s13  }
  0x3a   : > { %s14963_s3 = sld [smem:[#allocation253_spill]] }
  0x40   : > { %s9102_s21 = scalar_lea.hbm %s14963_s3, 16 }
  0x41   : > { %p9103_p4 = scmp.ne.s32.totalorder %s14963_s3, %s9102_s21  ;;  %p9109_p12 = scmp.lt.u32.totalorder %s9102_s21, %s14963_s3 }
  0x43   : > { %p9105_p10 = pnand %p9103_p4, %p9684_p8 }
  0x45   : > { %p9106_p11 = pneg %p9105_p10 }
  0x47   : > { %p9111_p13 = pnand %p9109_p12, %p9106_p11 }
  0x49   : > { %9114 = shalt.err (!%p9111_p13)
}
  0x4a   : > { %s9115_s30 = scalar_lea.vmem %s9672_s17, 16  ;;  %s9122_s1 = scalar_lea.vmem %s9672_s17, 32 }
  0x4b   : > { %p9116_p0 = scmp.ne.s32.totalorder %s9672_s17, %s9115_s30  ;;  %p9123_p7 = scmp.lt.s32.totalorder %s9672_s17, %s9672_s17 }
  0x4c   : > { %p9124_p9 = scmp.lt.s32.totalorder %s9122_s1, %s9115_s30 }
  0x4d   : > { %p9118_p2 = pnand %p9116_p0, %p9684_p8 }
  0x4e   : > { %p9125_p4 = por %p9124_p9, %p9123_p7 }
  0x4f   : > { %p9119_p5 = pneg %p9118_p2 }
  0x51   : > { %p9126_p10 = pnand %p9125_p4, %p9119_p5 }
  0x53   : > { %9129 = shalt.err (!%p9126_p10)
}
  0x54   : > { %8441 = dma.hbm_to_vmem [thread:$0]  (!%p9668_p6), %s14963_s3, 16, %s9672_s17, [#allocation9]  }
  0x55   : > { %s14964_s5 = sld [smem:[#allocation255_spill]] }
  0x5b   : > { %s9130_s24 = scalar_lea.hbm %s14964_s5, 16 }
  0x5c   : > { %p9131_p11 = scmp.ne.s32.totalorder %s14964_s5, %s9130_s24  ;;  %p9137_p0 = scmp.lt.u32.totalorder %s9130_s24, %s14964_s5 }
  0x5e   : > { %p9133_p12 = pnand %p9131_p11, %p9684_p8 }
  0x60   : > { %p9134_p13 = pneg %p9133_p12 }
  0x62   : > { %p9139_p2 = pnand %p9137_p0, %p9134_p13 }
  0x64   : > { %9142 = shalt.err (!%p9139_p2)
}
  0x65   : > { %s9143_s17 = scalar_lea.vmem %s9674_s20, 16  ;;  %s9150_s1 = scalar_lea.vmem %s9674_s20, 32 }
  0x66   : > { %p9144_p5 = scmp.ne.s32.totalorder %s9674_s20, %s9143_s17  ;;  %p9151_p4 = scmp.lt.s32.totalorder %s9674_s20, %s9674_s20 }
  0x67   : > { %p9152_p10 = scmp.lt.s32.totalorder %s9150_s1, %s9143_s17 }
  0x68   : > { %p9146_p7 = pnand %p9144_p5, %p9684_p8 }
  0x69   : > { %p9153_p11 = por %p9152_p10, %p9151_p4 }
  0x6a   : > { %p9147_p9 = pneg %p9146_p7 }
  0x6c   : > { %p9154_p12 = pnand %p9153_p11, %p9147_p9 }
  0x6e   : > { %9157 = shalt.err (!%p9154_p12)
}
  0x6f   : > { %8447 = dma.hbm_to_vmem [thread:$0]  (!%p9668_p6), %s14964_s5, 16, %s9674_s20, [#allocation12]  }
  0x70   : > { %s9543_s15 = smov [#allocation14]   ;;  %s14965_s7 = sld [smem:[#allocation257_spill]] }
  0x71   : > { %s424_s23 = sshll.u32 %s9543_s15, 4  ;;  %s425_s23 = int_to_ptr.vmem [resolvable:$true] %s424_s23 }
  0x76   : > { %s9158_s19 = scalar_lea.hbm %s14965_s7, 4096 }
  0x77   : > { %p9159_p13 = scmp.ne.s32.totalorder %s14965_s7, %s9158_s19  ;;  %p9165_p5 = scmp.lt.u32.totalorder %s9158_s19, %s14965_s7 }
  0x79   : > { %p9161_p0 = pnand %p9159_p13, %p9684_p8 }
  0x7b   : > { %p9162_p2 = pneg %p9161_p0 }
  0x7d   : > { %p9167_p7 = pnand %p9165_p5, %p9162_p2 }
  0x7f   : > { %9170 = shalt.err (!%p9167_p7)
}
  0x80   : > { %s9171_s20 = scalar_lea.vmem %s425_s23, 4096  ;;  %p9179_p11 = scmp.lt.s32.totalorder %s425_s23, %s425_s23 }
  0x81   : > { %p9172_p9 = scmp.ne.s32.totalorder %s425_s23, %s9171_s20  ;;  %p9180_p12 = scmp.lt.s32.totalorder %s9171_s20, %s9171_s20 }
  0x83   : > { %p9174_p4 = pnand %p9172_p9, %p9684_p8  ;;  %p9181_p1 = por %p9180_p12, %p9179_p11 }
  0x85   : > { %p9175_p10 = pneg %p9174_p4 }
  0x87   : > { %p9182_p3 = pnand %p9181_p1, %p9175_p10 }
  0x89   : > { %9185 = shalt.err (!%p9182_p3)
}
  0x8a   : > { %8453 = dma.hbm_to_vmem [thread:$0]  (!%p9668_p6), %s14965_s7, 4096, %s425_s23, [#allocation15], %s14559_s22, %s14559_s22, %s14565_s13  }
  0x8b   : > { %s9544_s15 = smov [#allocation17]   ;;  %s9545_s29 = smov [#allocation20]  }
  0x8c   : > { %s450_s24 = sshll.u32 %s9544_s15, 4  ;;  %s476_s19 = sshll.u32 %s9545_s29, 4  ;;  %s451_s24 = int_to_ptr.vmem [resolvable:$true] %s450_s24  ;;  %s9777_s19 = int_to_ptr.vmem [resolvable:$true] %s476_s19 }
  0x8d   : > { %s14966_s9 = sld [smem:[#allocation259_spill]] }
  0x93   : > { %s9186_s17 = scalar_lea.hbm %s14966_s9, 32 }
  0x94   : > { %p9187_p1 = scmp.ne.s32.totalorder %s14966_s9, %s9186_s17  ;;  %p9193_p0 = scmp.lt.u32.totalorder %s9186_s17, %s14966_s9 }
  0x96   : > { %p9189_p3 = pnand %p9187_p1, %p9684_p8 }
  0x98   : > { %p9190_p13 = pneg %p9189_p3 }
  0x9a   : > { %p9195_p2 = pnand %p9193_p0, %p9190_p13 }
  0x9c   : > { %9198 = shalt.err (!%p9195_p2)
}
  0x9d   : > { %s9199_s14 = scalar_lea.vmem %s451_s24, 32  ;;  %p9207_p4 = scmp.lt.s32.totalorder %s451_s24, %s451_s24 }
  0x9e   : > { %p9200_p5 = scmp.ne.s32.totalorder %s451_s24, %s9199_s14  ;;  %p9208_p10 = scmp.lt.s32.totalorder %s9199_s14, %s9199_s14 }
  0xa0   : > { %p9202_p7 = pnand %p9200_p5, %p9684_p8  ;;  %p9209_p11 = por %p9208_p10, %p9207_p4 }
  0xa2   : > { %p9203_p9 = pneg %p9202_p7 }
  0xa4   : > { %p9210_p12 = pnand %p9209_p11, %p9203_p9 }
  0xa6   : > { %9213 = shalt.err (!%p9210_p12)
}
  0xa7   : > { %s14561_s15 = smov 16   ;;  %s14563_s29 = smov 1  }
  0xa8   : > { %8459 = dma.hbm_to_vmem [thread:$0]  (!%p9668_p6), %s14966_s9, 32, %s451_s24, [#allocation18], %s14561_s15, %s14561_s15, %s14563_s29  }
  0xa9   : > { %s9214_s20 = scalar_lea.hbm %s14547_s11, 2048 }
  0xaa   : > { %p9215_p1 = scmp.ne.s32.totalorder %s14547_s11, %s9214_s20  ;;  %p9221_p0 = scmp.lt.u32.totalorder %s9214_s20, %s14547_s11 }
  0xac   : > { %p9217_p3 = pnand %p9215_p1, %p9684_p8 }
  0xae   : > { %p9218_p13 = pneg %p9217_p3 }
  0xb0   : > { %p9223_p2 = pnand %p9221_p0, %p9218_p13 }
  0xb2   : > { %9226 = shalt.err (!%p9223_p2)
}
  0xb3   : > { %s9227_s24 = scalar_lea.vmem %s9777_s19, 2048  ;;  %p9235_p4 = scmp.lt.s32.totalorder %s9777_s19, %s9777_s19 }
  0xb4   : > { %p9228_p5 = scmp.ne.s32.totalorder %s9777_s19, %s9227_s24  ;;  %p9236_p10 = scmp.lt.s32.totalorder %s9227_s24, %s9227_s24 }
  0xb6   : > { %p9230_p7 = pnand %p9228_p5, %p9684_p8  ;;  %p9237_p11 = por %p9236_p10, %p9235_p4 }
  0xb8   : > { %p9231_p9 = pneg %p9230_p7 }
  0xba   : > { %p9238_p12 = pnand %p9237_p11, %p9231_p9 }
  0xbc   : > { %9241 = shalt.err (!%p9238_p12)
}
  0xbd   : > { %s14967_s22 = smov 128   ;;  %s9548_s17 = smov [#allocation10]  }
  0xbe   : > { %8465 = dma.hbm_to_vmem [thread:$0]  (!%p9668_p6), %s14547_s11, 2048, %s9777_s19, [#allocation21], %s14967_s22, %s14967_s22, %s14565_s13  }
  0xbf   : > { %s387_s1 = sshll.u32 %s9548_s17, 4  ;;  %s9549_s20 = smov [#allocation13]   ;;  %s388_s1 = int_to_ptr.vmem [resolvable:$true] %s387_s1 }
  0xc0   : > { %s411_s0 = sshll.u32 %s9549_s20, 4  ;;  %s14968_s4 = sld [smem:[#allocation254_spill]]  ;;  %s9826_s0 = int_to_ptr.vmem [resolvable:$true] %s411_s0 }
  0xc6   : > { %s9242_s24 = scalar_lea.hbm %s14968_s4, 512 }
  0xc7   : > { %p9243_p1 = scmp.ne.s32.totalorder %s14968_s4, %s9242_s24  ;;  %p9249_p0 = scmp.lt.u32.totalorder %s9242_s24, %s14968_s4 }
  0xc9   : > { %p9245_p3 = pnand %p9243_p1, %p9684_p8 }
  0xcb   : > { %p9246_p13 = pneg %p9245_p3 }
  0xcd   : > { %p9251_p2 = pnand %p9249_p0, %p9246_p13 }
  0xcf   : > { %9254 = shalt.err (!%p9251_p2)
}
  0xd0   : > { %s9255_s30 = scalar_lea.vmem %s388_s1, 512  ;;  %p9263_p4 = scmp.lt.s32.totalorder %s388_s1, %s388_s1 }
  0xd1   : > { %p9256_p5 = scmp.ne.s32.totalorder %s388_s1, %s9255_s30  ;;  %p9264_p10 = scmp.lt.s32.totalorder %s9255_s30, %s9255_s30 }
  0xd3   : > { %p9258_p7 = pnand %p9256_p5, %p9684_p8  ;;  %p9265_p11 = por %p9264_p10, %p9263_p4 }
  0xd5   : > { %p9259_p9 = pneg %p9258_p7 }
  0xd7   : > { %p9266_p12 = pnand %p9265_p11, %p9259_p9 }
  0xd9   : > { %9269 = shalt.err (!%p9266_p12)
}
  0xda   : > { %8444 = dma.hbm_to_vmem [thread:$0]  (!%p9668_p6), %s14968_s4, 512, %s388_s1, [#allocation9], %s14967_s22, %s14967_s22, %s14565_s13  }
  0xdb   : > { %s14969_s6 = sld [smem:[#allocation256_spill]] }
  0xe1   : > { %s9270_s23 = scalar_lea.hbm %s14969_s6, 4096 }
  0xe2   : > { %p9271_p1 = scmp.ne.s32.totalorder %s14969_s6, %s9270_s23  ;;  %p9277_p0 = scmp.lt.u32.totalorder %s9270_s23, %s14969_s6 }
  0xe4   : > { %p9273_p3 = pnand %p9271_p1, %p9684_p8 }
  0xe6   : > { %p9274_p13 = pneg %p9273_p3 }
  0xe8   : > { %p9279_p2 = pnand %p9277_p0, %p9274_p13 }
  0xea   : > { %9282 = shalt.err (!%p9279_p2)
}
  0xeb   : > { %s9283_s1 = scalar_lea.vmem %s9826_s0, 4096  ;;  %p9291_p4 = scmp.lt.s32.totalorder %s9826_s0, %s9826_s0 }
  0xec   : > { %p9284_p5 = scmp.ne.s32.totalorder %s9826_s0, %s9283_s1  ;;  %p9292_p10 = scmp.lt.s32.totalorder %s9283_s1, %s9283_s1 }
  0xee   : > { %p9286_p7 = pnand %p9284_p5, %p9684_p8  ;;  %p9293_p11 = por %p9292_p10, %p9291_p4 }
  0xf0   : > { %p9287_p9 = pneg %p9286_p7 }
  0xf2   : > { %p9294_p12 = pnand %p9293_p11, %p9287_p9 }
  0xf4   : > { %9297 = shalt.err (!%p9294_p12)
}
  0xf5   : > { %8450 = dma.hbm_to_vmem [thread:$0]  (!%p9668_p6), %s14969_s6, 4096, %s9826_s0, [#allocation12], %s14967_s22, %s14967_s22, %s14565_s13  }
  0xf6   : > { %s9550_s29 = smov [#allocation16]   ;;  %s9551_s20 = smov [#allocation19]  }
  0xf7   : > { %s437_s17 = sshll.u32 %s9550_s29, 4  ;;  %s463_s23 = sshll.u32 %s9551_s20, 4  ;;  %s438_s17 = int_to_ptr.vmem [resolvable:$true] %s437_s17  ;;  %s9875_s23 = int_to_ptr.vmem [resolvable:$true] %s463_s23 }
  0xf8   : > { %s14970_s8 = sld [smem:[#allocation258_spill]] }
  0xfe   : > { %s9298_s21 = scalar_lea.hbm %s14970_s8, 32 }
  0xff   : > { %p9299_p1 = scmp.ne.s32.totalorder %s14970_s8, %s9298_s21  ;;  %p9305_p0 = scmp.lt.u32.totalorder %s9298_s21, %s14970_s8 }
 0x101   : > { %p9301_p3 = pnand %p9299_p1, %p9684_p8 }
 0x103   : > { %p9302_p13 = pneg %p9301_p3 }
 0x105   : > { %p9307_p2 = pnand %p9305_p0, %p9302_p13 }
 0x107   : > { %9310 = shalt.err (!%p9307_p2)
}
 0x108   : > { %s9311_s15 = scalar_lea.vmem %s438_s17, 32  ;;  %p9319_p4 = scmp.lt.s32.totalorder %s438_s17, %s438_s17 }
 0x109   : > { %p9312_p5 = scmp.ne.s32.totalorder %s438_s17, %s9311_s15  ;;  %p9320_p10 = scmp.lt.s32.totalorder %s9311_s15, %s9311_s15 }
 0x10b   : > { %p9314_p7 = pnand %p9312_p5, %p9684_p8  ;;  %p9321_p11 = por %p9320_p10, %p9319_p4 }
 0x10d   : > { %p9315_p9 = pneg %p9314_p7 }
 0x10f   : > { %p9322_p12 = pnand %p9321_p11, %p9315_p9 }
 0x111   : > { %9325 = shalt.err (!%p9322_p12)
}
 0x112   : > { %s14971_s29 = smov 1   ;;  %s14972_s20 = smov 16  }
 0x113   : > { %8456 = dma.hbm_to_vmem [thread:$0]  (!%p9668_p6), %s14970_s8, 32, %s438_s17, [#allocation15], %s14972_s20, %s14972_s20, %s14971_s29  }
 0x114   : > { %s9326_s1 = scalar_lea.hbm %s14546_s10, 32 }
 0x115   : > { %p9327_p1 = scmp.ne.s32.totalorder %s14546_s10, %s9326_s1  ;;  %p9333_p0 = scmp.lt.u32.totalorder %s9326_s1, %s14546_s10 }
 0x117   : > { %p9329_p3 = pnand %p9327_p1, %p9684_p8 }
 0x119   : > { %p9330_p13 = pneg %p9329_p3 }
 0x11b   : > { %p9335_p2 = pnand %p9333_p0, %p9330_p13 }
 0x11d   : > { %9338 = shalt.err (!%p9335_p2)
}
 0x11e   : > { %s9339_s17 = scalar_lea.vmem %s9875_s23, 32  ;;  %p9347_p4 = scmp.lt.s32.totalorder %s9875_s23, %s9875_s23 }
 0x11f   : > { %p9340_p5 = scmp.ne.s32.totalorder %s9875_s23, %s9339_s17  ;;  %p9348_p10 = scmp.lt.s32.totalorder %s9339_s17, %s9339_s17 }
 0x121   : > { %p9342_p7 = pnand %p9340_p5, %p9684_p8  ;;  %p9349_p11 = por %p9348_p10, %p9347_p4 }
 0x123   : > { %p9343_p9 = pneg %p9342_p7 }
 0x125   : > { %p9350_p12 = pnand %p9349_p11, %p9343_p9 }
 0x127   : > { %9353 = shalt.err (!%p9350_p12)
}
 0x128   : > { %8462 = dma.hbm_to_vmem [thread:$0]  (!%p9668_p6), %s14546_s10, 32, %s9875_s23, [#allocation18], %s14972_s20, %s14972_s20, %s14971_s29  }
 0x129   : > { %s9552_s24 = smov [#allocation22]   ;;  %s9354_s30 = scalar_lea.hbm %s14548_s12, 16 }
 0x12a   : > { %s490_s21 = sshll.u32 %s9552_s24, 4  ;;  %p9355_p1 = scmp.ne.s32.totalorder %s14548_s12, %s9354_s30  ;;  %s491_s21 = int_to_ptr.vmem [resolvable:$true] %s490_s21 }
 0x12b   : > { %p9361_p0 = scmp.lt.u32.totalorder %s9354_s30, %s14548_s12 }
 0x12c   : > { %p9357_p3 = pnand %p9355_p1, %p9684_p8 }
 0x12e   : > { %p9358_p13 = pneg %p9357_p3 }
 0x130   : > { %p9363_p2 = pnand %p9361_p0, %p9358_p13 }
 0x132   : > { %9366 = shalt.err (!%p9363_p2)
}
 0x133   : > { %s9367_s23 = scalar_lea.vmem %s491_s21, 16  ;;  %s9374_s29 = scalar_lea.vmem %s491_s21, 32 }
 0x134   : > { %p9368_p5 = scmp.ne.s32.totalorder %s491_s21, %s9367_s23  ;;  %p9375_p4 = scmp.lt.s32.totalorder %s491_s21, %s491_s21 }
 0x135   : > { %p9376_p10 = scmp.lt.s32.totalorder %s9374_s29, %s9367_s23 }
 0x136   : > { %p9370_p7 = pnand %p9368_p5, %p9684_p8 }
 0x137   : > { %p9377_p11 = por %p9376_p10, %p9375_p4 }
 0x138   : > { %p9371_p9 = pneg %p9370_p7 }
 0x13a   : > { %p9378_p12 = pnand %p9377_p11, %p9371_p9 }
 0x13c   : > { %9381 = shalt.err (!%p9378_p12)
}
 0x13d   : > { %s14973_s2 = sld [smem:[#allocation33_spill]]  ;;  %s7356_s16 = sadd.s32 4294967294, %s9536_s28  }
 0x13e   : > { %8468 = dma.hbm_to_vmem [thread:$0]  (!%p9668_p6), %s14548_s12, 16, %s491_s21, [#allocation21]  }
 0x13f   : > { %s9944_s18 = sadd.s32 1, %s9536_s28   ;;  %s44_s14 = sadd.s32 1, %s9532_s27 }
 0x140   : > { %s41_s24 = ssub.s32 %s9536_s28, %s9944_s18  ;;  %p51_p8 = scmp.ne.s32.totalorder %s9532_s27, %s9528_s26 }
 0x141   : > { %p42_p1 = scmp.eq.s32.totalorder %s41_s24, 0  ;;  %p52_p3 = scmp.eq.s32.totalorder %s9536_s28, 0 }
 0x142   : > { %p57_p13 = scmp.ne.s32.totalorder %s9528_s26, %s9524_s25  ;;  %p344_p9 = scmp.eq.s32.totalorder %s7356_s16, 1 }
 0x143   : > { %p338_p0 = scmp.eq.s32.totalorder %s14973_s2, 1  ;;  %p53_p2 = por %p52_p3, %p51_p8 }
 0x144   : > { %s9956_s19 = scalar_select %p42_p1, %s9532_s27, %s44_s14  }
 0x145   : > { %p14974_p5 = scmp.eq.s32.totalorder %s14973_s2, 0  ;;  %p9964_p6 = por %p338_p0, %p51_p8 }
 0x146   : > { %p8491_p4 = scmp.lt.s32.totalorder %s9536_s28, 2  ;;  %s9970_s30 = sand.u32 1, %s9532_s27  }
 0x147   : > { %p9960_p7 = por %p14974_p5, %p57_p13  ;;  %p9972_p10 = por %p344_p9, %p57_p13 }
 0x148   : > { %s14976_s1 = scalar_select %p9964_p6, 1, 0 }
 0x149   : > { %s14975_s21 = scalar_select %p9960_p7, 1, 0 }
 0x14a   : > { %s14977_s0 = scalar_select %p9972_p10, 1, 0 }
 0x14b   : > { %s7370_s15 = sshll.u32 %s9970_s30, 9  ;;  %s7470_s17 = sshll.u32 %s9536_s28, 13 }
 0x14c   : > { %s14978_s20 = sld [smem:[#allocation250_spill]]  ;;  %s505_s2 = scalar_lea.vmem [#allocation2], %s7370_s15 }
 0x14d   : > { %s513_s16 = sshll.u32 %s505_s2, 4  ;;  %p9983_p11 = pnand %p8491_p4, %p53_p2  ;;  %s9987_s16 = int_to_ptr.vmem [resolvable:$true] %s513_s16 }
 0x14e   : > { %s502_s3 = scalar_lea.sflag [#allocation3], %s9970_s30 }
 0x14f   : > { %p9384_p8 = pneg %p9983_p11 }
 0x152   : > { %s9981_s13 = scalar_lea.hbm %s14978_s20, %s7470_s17  ;;  %s9387_s23 = scalar_lea.hbm %s14978_s20, 16384 }
 0x153   : > { %s9382_s4 = scalar_lea.hbm %s9981_s13, 8192  ;;  %p9388_p13 = scmp.lt.u32.totalorder %s9981_s13, %s14978_s20 }
 0x154   : > { %p9383_p12 = scmp.ne.s32.totalorder %s9981_s13, %s9382_s4  ;;  %p9389_p0 = scmp.lt.u32.totalorder %s9387_s23, %s9382_s4 }
 0x155   : > { %p9391_p5 = scmp.lt.u32.totalorder %s9382_s4, %s9981_s13 }
 0x156   : > { %p9385_p1 = pnand %p9384_p8, %p9383_p12  ;;  %p9390_p2 = por %p9389_p0, %p9388_p13 }
 0x158   : > { %p9386_p3 = pneg %p9385_p1  ;;  %p9392_p9 = por %p9391_p5, %p9390_p2 }
 0x15a   : > { %p9393_p4 = pnand %p9392_p9, %p9386_p3 }
 0x15c   : > { %9396 = shalt.err (!%p9393_p4)
}
 0x15d   : > { %s9397_s24 = scalar_lea.vmem %s9987_s16, 8192  ;;  %s9553_s15 = smov [#allocation2]  }
 0x15e   : > { %p9398_p12 = scmp.ne.s32.totalorder %s9987_s16, %s9397_s24  ;;  %s9402_s17 = sshll.u32 %s9553_s15, 4  ;;  %s9403_s17 = int_to_ptr.vmem [resolvable:$false] %s9402_s17 }
 0x15f   : > { %s9404_s29 = scalar_lea.vmem %s9403_s17, 16384  ;;  %p9405_p6 = scmp.lt.s32.totalorder %s9987_s16, %s9403_s17 }
 0x160   : > { %p9400_p1 = pnand %p9398_p12, %p9384_p8  ;;  %p9406_p13 = scmp.lt.s32.totalorder %s9404_s29, %s9397_s24 }
 0x162   : > { %p9401_p10 = pneg %p9400_p1  ;;  %p9407_p0 = por %p9406_p13, %p9405_p6 }
 0x164   : > { %p9408_p2 = pnand %p9407_p0, %p9401_p10 }
 0x166   : > { %9411 = shalt.err (!%p9408_p2)
}
 0x167   : > { %s14980_s4 = smov 8   ;;  %s7374_s23 = sshll.u32 %s9970_s30, 3 }
 0x168   : > { %8472 = dma.hbm_to_vmem [thread:$0]  (!%p9983_p11), %s9981_s13, 8192, %s9987_s16, %s502_s3, %s14967_s22, %s14967_s22, %s14980_s4  }
 0x169   : > { %s7375_s2 = sshll.u32 %s9536_s28, 7  ;;  %s14981_s17 = sld [smem:[#allocation251_spill]] }
 0x16a   : > { %s527_s5 = scalar_lea.vmem [#allocation5], %s7374_s23  ;;  %s14982_s7 = sand.u32 1, %s9536_s28  }
 0x16b   : > { %s534_s6 = sshll.u32 %s527_s5, 4  ;;  %s524_s8 = scalar_lea.sflag [#allocation6], %s14982_s7  ;;  %s535_s6 = int_to_ptr.vmem [resolvable:$true] %s534_s6 }
 0x16f   : > { %s10026_s29 = scalar_lea.hbm %s14981_s17, %s7375_s2  ;;  %s9417_s30 = scalar_lea.hbm %s14981_s17, 256 }
 0x170   : > { %s9412_s9 = scalar_lea.hbm %s10026_s29, 128  ;;  %p9418_p5 = scmp.lt.u32.totalorder %s10026_s29, %s14981_s17 }
 0x171   : > { %p9413_p6 = scmp.ne.s32.totalorder %s10026_s29, %s9412_s9  ;;  %p9419_p9 = scmp.lt.u32.totalorder %s9417_s30, %s9412_s9 }
 0x172   : > { %p9421_p12 = scmp.lt.u32.totalorder %s9412_s9, %s10026_s29 }
 0x173   : > { %p9415_p10 = pnand %p9413_p6, %p9384_p8  ;;  %p9420_p4 = por %p9419_p9, %p9418_p5 }
 0x175   : > { %p9416_p3 = pneg %p9415_p10  ;;  %p9422_p1 = por %p9421_p12, %p9420_p4 }
 0x177   : > { %p9423_p13 = pnand %p9422_p1, %p9416_p3 }
 0x179   : > { %9426 = shalt.err (!%p9423_p13)
}
 0x17a   : > { %s9427_s5 = scalar_lea.vmem %s535_s6, 128  ;;  %s9554_s7 = smov [#allocation5]  }
 0x17b   : > { %p9428_p0 = scmp.ne.s32.totalorder %s535_s6, %s9427_s5  ;;  %s9432_s4 = sshll.u32 %s9554_s7, 4  ;;  %s9433_s4 = int_to_ptr.vmem [resolvable:$false] %s9432_s4 }
 0x17c   : > { %s9434_s23 = scalar_lea.vmem %s9433_s4, 256  ;;  %p9435_p10 = scmp.lt.s32.totalorder %s535_s6, %s9433_s4 }
 0x17d   : > { %p9430_p2 = pnand %p9428_p0, %p9384_p8  ;;  %p9436_p7 = scmp.lt.s32.totalorder %s9434_s23, %s9427_s5 }
 0x17f   : > { %p9431_p6 = pneg %p9430_p2  ;;  %p9437_p5 = por %p9436_p7, %p9435_p10 }
 0x181   : > { %p9438_p9 = pnand %p9437_p5, %p9431_p6 }
 0x183   : > { %9441 = shalt.err (!%p9438_p9)
}
 0x184   : > { %8475 = dma.hbm_to_vmem [thread:$0]  (!%p9983_p11), %s10026_s29, 128, %s535_s6, %s524_s8  }
 0x185   : > { %s14983_s9 = sld [smem:[#allocation34_spill]] }
 0x18b   : > { %p14984_p3 = scmp.ne.s32.totalorder %s14983_s9, 0 }
 0x18d   : > { %543 = sbr.rel (%p14984_p3) target bundleno = 3803 (0xedb), region = 72 }
 0x194   : > { %s10052_s2 = sand.u32 1, %s9528_s26   ;;  %p14985_p7 = scmp.ne.s32.totalorder %s14975_s21, 0 }
 0x195   : > { %s7377_s24 = sshll.u32 %s10052_s2, 9  ;;  %s546_s15 = scalar_lea.sflag [#allocation3], %s10052_s2 }
 0x196   : > { %s10056_s3 = scalar_lea.vmem [#allocation2], %s7377_s24 }
 0x197   : > { %9487 = dma.done.wait (%p14985_p7), %s546_s15, 8192  }
 0x198   : > { %9489 = vsyncadd (%p14985_p7), %s546_s15, 4294959104  ;;  %s14986_s14 = sld [smem:[#allocation33_spill]]  ;;  %s7378_s8 = sshll.u32 %s10052_s2, 3 }
 0x199   : > { %s10066_s22 = scalar_lea.vmem [#allocation5], %s7378_s8 }
 0x19e   : > { %s554_s6 = sand.u32 1, %s14986_s14  }
 0x19f   : > { %s555_s29 = scalar_lea.sflag [#allocation6], %s554_s6 }
 0x1a0   : > { %9491 = dma.done.wait (%p14985_p7), %s555_s29, 128  }
 0x1a1   : > { %9493 = vsyncadd (%p14985_p7), %s555_s29, 4294967168  ;;  %p14987_p11 = scmp.eq.s32.totalorder %s14986_s14, 0 }
 0x1a3   : > { %9495 = dma.done.wait (%p14987_p11), [#allocation6], 512   ;;  %p14988_p8 = pmov %p14987_p11 }
 0x1a5   : > { %9497 = vsyncadd (%p14988_p8), [#allocation6], 4294966784  ;;  %p14989_p4 = pmov %p14988_p8 }
 0x1a7   : > { %9499 = dma.done.wait (%p14989_p4), [#allocation9], 528   ;;  %p14990_p12 = pmov %p14989_p4 }
 0x1a8   : > { %p14991_p1 = pmov %p14989_p4 }
 0x1a9   : > { %9501 = vsyncadd (%p14990_p12), [#allocation9], 4294966768 }
 0x1aa   : > { %9503 = dma.done.wait (%p14991_p1), [#allocation12], 4112   ;;  %p14992_p13 = pmov %p14991_p1 }
 0x1ab   : > { %p14993_p0 = pmov %p14991_p1 }
 0x1ac   : > { %9505 = vsyncadd (%p14992_p13), [#allocation12], 4294963184 }
 0x1ad   : > { %9507 = dma.done.wait (%p14993_p0), [#allocation15], 4128   ;;  %p14994_p2 = pmov %p14993_p0 }
 0x1ae   : > { %p14995_p6 = pmov %p14993_p0 }
 0x1af   : > { %9509 = vsyncadd (%p14994_p2), [#allocation15], 4294963168 }
 0x1b0   : > { %9511 = dma.done.wait (%p14995_p6), [#allocation18], 64   ;;  %p14996_p10 = pmov %p14993_p0 }
 0x1b1   : > { %p14997_p5 = pmov %p14993_p0 }
 0x1b2   : > { %9513 = vsyncadd (%p14996_p10), [#allocation18], 4294967232 }
 0x1b3   : > { %9515 = dma.done.wait (%p14997_p5), [#allocation21], 2064   ;;  %p14998_p9 = pmov %p14993_p0 }
 0x1b4   : > { %vm726_vm0 = vcmask 261120   ;;  %v715_v0 = vld [vmem:[#allocation7] sm:$0xff]  ;;  %v716_v1 = vld [vmem:[#allocation7 + $0x8] sm:$0xff]  ;;  %v717_v2 = vld [vmem:[#allocation7 + $0x10] sm:$0xff]  ;;  %v14568_v13 = vmov 0.0|0.0   ;;  %vm9556_vm1 = vmmov 0  }
 0x1b5   : > { %9517 = vsyncadd (%p14998_p9), [#allocation21], 4294965232  ;;  %v8231_v3 = vpack.c.bf16 %v716_v1, %v715_v0  ;;  %v718_v4 = vld [vmem:[#allocation7 + $0x18] sm:$0xff]  ;;  %v651_v5 = vld [vmem:[%s10056_s3] sm:$0xff]  ;;  %vm2450_vm2 = vcmask 130112   ;;  %vm2457_vm3 = vcmask 195712  }
 0x1b6   : > { %v693_v6 = vld [vmem:[%s10056_s3 + $0x150] sm:$0xff]  ;;  %v8235_v7 = vpack.c.bf16 %v718_v4, %v717_v2  ;;  %7763 = vmatprep.mubr.msk.f32.mxu0 %vm726_vm0, %v651_v5  ;;  %v1306_v9 = vld [vmem:[#allocation10 + $0x8] sm:$0xff]  ;;  %v652_v10 = vld [vmem:[%s10056_s3 + $0x8] sm:$0xff]  ;;  %vm2464_vm4 = vcmask 261312   ;;  %vm2471_vm5 = vcmask 326912   ;;  %vm2478_vm6 = vcmask 392512  }
 0x1b7   : > { %7826 = vmatprep.mubr.msk.f32.mxu1 %vm726_vm0, %v693_v6  ;;  %8232 = vmatprep.subr.bf16.mxu0 %v8231_v3  ;;  %v1305_v8 = vld [vmem:[#allocation10] sm:$0xff]  ;;  %v695_v15 = vld [vmem:[%s10056_s3 + $0x160] sm:$0xff]  ;;  %v1308_v17 = vld [vmem:[#allocation10 + $0x18] sm:$0xff]  ;;  %vm2485_vm7 = vcmask 458112   ;;  %vm2492_vm8 = vcmask 523712   ;;  %vm2767_vm9 = vcmask 1041409  }
 0x1b8   : > { %8381 = vmatprep.subr.bf16.mxu1 %v8231_v3  ;;  %8234 = vmatpush3.bf16.msra.mxu0 %v8231_v3  ;;  %v694_v11 = vld [vmem:[%s10056_s3 + $0x158] sm:$0xff]  ;;  %v8240_v12 = vpack.c.bf16 %v1306_v9, %v1305_v8  ;;  %v653_v14 = vld [vmem:[%s10056_s3 + $0x10] sm:$0xff]  ;;  %v1307_v16 = vld [vmem:[#allocation10 + $0x10] sm:$0xff]  ;;  %vm2769_vm10 = vcmask 1042434   ;;  %vm2771_vm11 = vcmask 1043459   ;;  %vm2773_vm12 = vcmask 1044484  }
 0x1b9   : > { %8383 = vmatpush3.bf16.msra.mxu1 %v8231_v3  ;;  %8236 = vmatprep.subr.bf16.mxu0 %v8235_v7  ;;  %v654_v18 = vld [vmem:[%s10056_s3 + $0x18] sm:$0xff]  ;;  %v696_v19 = vld [vmem:[%s10056_s3 + $0x168] sm:$0xff]  ;;  %v655_v20 = vld [vmem:[%s10056_s3 + $0x20] sm:$0xff]  ;;  %v8243_v22 = vpack.c.bf16 %v1308_v17, %v1307_v16  ;;  %vm2775_vm13 = vcmask 1045509   ;;  %vm2777_vm14 = vcmask 1046534   ;;  %vm2779_vm15 = vcmask 1047559  }
 0x1ba   : > { %8382 = vmatprep.subr.bf16.mxu1 %v8235_v7  ;;  %v697_v21 = vld [vmem:[%s10056_s3 + $0x170] sm:$0xff]  ;;  %v656_v23 = vld [vmem:[%s10056_s3 + $0x28] sm:$0xff]  ;;  %v698_v24 = vld [vmem:[%s10056_s3 + $0x178] sm:$0xff]  ;;  %s7466_s21 = sshll.u32 %s14986_s14, 7  ;;  %s649_s30 = scalar_lea.vmem [#allocation23], %s7378_s8 }
 0x1bb   : > { %v657_v25 = vld [vmem:[%s10056_s3 + $0x30] sm:$0xff]  ;;  %v699_v26 = vld [vmem:[%s10056_s3 + $0x180] sm:$0xff]  ;;  %v658_v27 = vld [vmem:[%s10056_s3 + $0x38] sm:$0xff]  ;;  %s7159_s13 = sshll.u32 %s649_s30, 4  ;;  %s15841_s7 = sld [smem:[#allocation260_spill]]  ;;  %s14494_s13 = int_to_ptr.vmem [resolvable:$true] %s7159_s13 }
 0x1bc   : > { %8238 = vmatpush3.bf16.msra.mxu0 %v8235_v7  ;;  %v700_v28 = vld [vmem:[%s10056_s3 + $0x188] sm:$0xff]  ;;  %v659_v29 = vld [vmem:[%s10056_s3 + $0x40] sm:$0xff]  ;;  %v701_v30 = vld [vmem:[%s10056_s3 + $0x190] sm:$0xff]  ;;  %s7146_s23 = scalar_lea.sflag [#allocation4], %s10052_s2  ;;  %s9442_s9 = scalar_lea.vmem %s14494_s13, 128 }
 0x1bd   : > { %8384 = vmatpush3.bf16.msra.mxu1 %v8235_v7  ;;  %8277 = vmatprep.subr.bf16.mxu0 %v14568_v13  ;;  %v660_v31 = vld [vmem:[%s10056_s3 + $0x48] sm:$0xff]  ;;  %v702_v32 = vld [vmem:[%s10056_s3 + $0x198] sm:$0xff]  ;;  %v661_v33 = vld [vmem:[%s10056_s3 + $0x50] sm:$0xff]  ;;  %p9443_p3 = scmp.ne.s32.totalorder %s14494_s13, %s9442_s9  ;;  %p15842_p7 = scmp.ne.s32.totalorder %s14976_s1, 0 }
 0x1be   : > { %8239 = vmatprep.subr.bf16.mxu1 %v14568_v13  ;;  %v1792_v34 = vld [vmem:[#allocation14] sm:$0xff]  ;;  %v1793_v35 = vld [vmem:[#allocation14 + $0x8] sm:$0xff]  ;;  %v1794_v41 = vld [vmem:[#allocation14 + $0x10] sm:$0xff]  ;;  %s9560_s24 = smov [#allocation23]  }
 0x1bf   : > { %7764 = vmatmul.mubr.msk.f32.vlgmr.msra.gmra.mrb[0].mxu0 %vm726_vm0, %v652_v10  ;;  %v703_v36 = vld [vmem:[%s10056_s3 + $0x1a0] sm:$0xff]  ;;  %v8278_v37 = vpack.c.bf16 %v1793_v35, %v1792_v34  ;;  %v1391_v38 = vld [vmem:[#allocation13] sm:$0xff]  ;;  %v1795_v42 = vld [vmem:[#allocation14 + $0x18] sm:$0xff]  ;;  %p9444_p11 = pnand %p9443_p3, %p15842_p7  ;;  %s9446_s15 = sshll.u32 %s9560_s24, 4  ;;  %s9447_s15 = int_to_ptr.vmem [resolvable:$false] %s9446_s15 }
 0x1c0   : > { %7827 = vmatmul.mubr.msk.f32.vlgmr.msra.gmra.mrb[0].mxu1 %vm726_vm0, %v694_v11  ;;  %7766 = vmatprep.mubr.msk.f32.mxu0 %vm726_vm0, %v653_v14  ;;  %v1392_v39 = vld [vmem:[#allocation13 + $0x8] sm:$0xff]  ;;  %v704_v44 = vld [vmem:[%s10056_s3 + $0x1a8] sm:$0xff]  ;;  %v705_v46 = vld [vmem:[%s10056_s3 + $0x1b0] sm:$0xff]  ;;  %v8281_v47 = vpack.c.bf16 %v1795_v42, %v1794_v41  ;;  %v14570_v11 = vmov 0.0   ;;  %p9449_p4 = scmp.lt.s32.totalorder %s14494_s13, %s9447_s15 }
 0x1c1   : > { %8241 = vmatpush3.bf16.msra.mxu1 %v8240_v12  ;;  %7829 = vmatprep.mubr.msk.f32.mxu1 %vm726_vm0, %v695_v15  ;;  %v10139_v40 = vpack.c.bf16 %v1392_v39, %v1391_v38  ;;  %v662_v43 = vld [vmem:[%s10056_s3 + $0x58] sm:$0xff]  ;;  %v663_v45 = vld [vmem:[%s10056_s3 + $0x60] sm:$0xff]  ;;  %v664_v50 = vld [vmem:[%s10056_s3 + $0x68] sm:$0xff]  ;;  %s14492_s4 = scalar_lea.hbm %s15841_s7, %s7466_s21  ;;  %p9445_p8 = pneg %p9444_p11 }
 0x1c2   : > { %8242 = vmatprep.subr.bf16.mxu1 %v14568_v13  ;;  %8279 = vmatpush3.bf16.msra.mxu0 %v8278_v37  ;;  %v1796_v48 = vld [vmem:[#allocation14 + $0x20] sm:$0xff]  ;;  %v1797_v49 = vld [vmem:[#allocation14 + $0x28] sm:$0xff]  ;;  %v1798_v55 = vld [vmem:[#allocation14 + $0x30] sm:$0xff] }
 0x1c3   : > { %7767 = vmatmul.mubr.msk.f32.gmra.mrb[2].mxu0 %vm726_vm0, %v654_v18  ;;  %8280 = vmatprep.subr.bf16.mxu0 %v14568_v13  ;;  %v706_v51 = vld [vmem:[%s10056_s3 + $0x1b8] sm:$0xff]  ;;  %v665_v52 = vld [vmem:[%s10056_s3 + $0x70] sm:$0xff]  ;;  %v707_v53 = vld [vmem:[%s10056_s3 + $0x1c0] sm:$0xff]  ;;  %v8284_v54 = vpack.c.bf16 %v1797_v49, %v1796_v48 }
 0x1c4   : > { %7830 = vmatmul.mubr.msk.f32.gmra.mrb[2].mxu1 %vm726_vm0, %v696_v19  ;;  %7769 = vmatprep.mubr.msk.f32.mxu0 %vm726_vm0, %v655_v20  ;;  %v1799_v56 = vld [vmem:[#allocation14 + $0x38] sm:$0xff]  ;;  %v666_v57 = vld [vmem:[%s10056_s3 + $0x78] sm:$0xff]  ;;  %v667_v59 = vld [vmem:[%s10056_s3 + $0x80] sm:$0xff] }
 0x1c5   : > { %7832 = vmatprep.mubr.msk.f32.mxu1 %vm726_vm0, %v697_v21  ;;  %8244 = vmatpush3.bf16.msra.mxu1 %v8243_v22  ;;  %v708_v58 = vld [vmem:[%s10056_s3 + $0x1c8] sm:$0xff]  ;;  %v709_v60 = vld [vmem:[%s10056_s3 + $0x1d0] sm:$0xff]  ;;  %v8287_v61 = vpack.c.bf16 %v1799_v56, %v1798_v55  ;;  %v710_v63 = vld [vmem:[%s10056_s3 + $0x1d8] sm:$0xff] }
 0x1c6   : > { %8246 = vmatprep.subr.bf16.mxu1 %v10139_v40  ;;  %8282 = vmatpush3.bf16.msra.mxu0 %v8281_v47  ;;  %v668_v62 = vld [vmem:[%s10056_s3 + $0x88] sm:$0xff]  ;;  %v669_v0 = vld [vmem:[%s10056_s3 + $0x90] sm:$0xff]  ;;  %v711_v1 = vld [vmem:[%s10056_s3 + $0x1e0] sm:$0xff] }
 0x1c7   : > { %7770 = vmatmul.mubr.msk.f32.gmra.mrb[4].mxu0 %vm726_vm0, %v656_v23  ;;  %8283 = vmatprep.subr.bf16.mxu0 %v14568_v13  ;;  %v670_v2 = vld [vmem:[%s10056_s3 + $0x98] sm:$0xff]  ;;  %v712_v3 = vld [vmem:[%s10056_s3 + $0x1e8] sm:$0xff]  ;;  %v671_v4 = vld [vmem:[%s10056_s3 + $0xa0] sm:$0xff] }
 0x1c8   : > { %7833 = vmatmul.mubr.msk.f32.gmra.mrb[4].mxu1 %vm726_vm0, %v698_v24  ;;  %7772 = vmatprep.mubr.msk.f32.mxu0 %vm726_vm0, %v657_v25  ;;  %v713_v5 = vld [vmem:[%s10056_s3 + $0x1f0] sm:$0xff]  ;;  %v672_v6 = vld [vmem:[%s10056_s3 + $0xa8] sm:$0xff]  ;;  %v714_v7 = vld [vmem:[%s10056_s3 + $0x1f8] sm:$0xff] }
 0x1c9   : > { %7835 = vmatprep.mubr.msk.f32.mxu1 %vm726_vm0, %v699_v26  ;;  %v673_v8 = vld [vmem:[%s10056_s3 + $0xb0] sm:$0xff]  ;;  %v1393_v9 = vld [vmem:[#allocation13 + $0x10] sm:$0xff]  ;;  %v674_v12 = vld [vmem:[%s10056_s3 + $0xb8] sm:$0xff] }
 0x1ca   : > { %8285 = vmatpush3.bf16.msra.mxu0 %v8284_v54  ;;  %v1394_v10 = vld [vmem:[#allocation13 + $0x18] sm:$0xff]  ;;  %v675_v15 = vld [vmem:[%s10056_s3 + $0xc0] sm:$0xff]  ;;  %v1395_v17 = vld [vmem:[#allocation13 + $0x20] sm:$0xff] }
 0x1cb   : > { %7773 = vmatmul.mubr.msk.f32.gmra.mrb[6].mxu0 %vm726_vm0, %v658_v27  ;;  %8286 = vmatprep.subr.bf16.mxu0 %v14568_v13  ;;  %v1304_v14 = vld [vmem:[%s10066_s22] sm:$0xff]  ;;  %v8249_v16 = vpack.c.bf16 %v1394_v10, %v1393_v9  ;;  %v677_v20 = vld [vmem:[%s10056_s3 + $0xd0] sm:$0xff]  ;;  %v678_v24 = vld [vmem:[%s10056_s3 + $0xd8] sm:$0xff] }
 0x1cc   : > { %7836 = vmatmul.mubr.msk.f32.gmra.mrb[6].mxu1 %vm726_vm0, %v700_v28  ;;  %7775 = vmatprep.mubr.msk.f32.mxu0 %vm726_vm0, %v659_v29  ;;  %v1396_v18 = vld [vmem:[#allocation13 + $0x28] sm:$0xff]  ;;  %v676_v19 = vld [vmem:[%s10056_s3 + $0xc8] sm:$0xff]  ;;  %v1399_v27 = vld [vmem:[#allocation13 + $0x40] sm:$0xff] }
 0x1cd   : > { %7838 = vmatprep.mubr.msk.f32.mxu1 %vm726_vm0, %v701_v30  ;;  %v8253_v21 = vpack.c.bf16 %v1396_v18, %v1395_v17  ;;  %v1397_v22 = vld [vmem:[#allocation13 + $0x30] sm:$0xff]  ;;  %v1398_v23 = vld [vmem:[#allocation13 + $0x38] sm:$0xff]  ;;  %v1400_v28 = vld [vmem:[#allocation13 + $0x48] sm:$0xff] }
 0x1ce   : > { %8288 = vmatpush3.bf16.msra.mxu0 %v8287_v61  ;;  %v679_v25 = vld [vmem:[%s10056_s3 + $0xe0] sm:$0xff]  ;;  %v8257_v26 = vpack.c.bf16 %v1398_v23, %v1397_v22  ;;  %v680_v29 = vld [vmem:[%s10056_s3 + $0xe8] sm:$0xff]  ;;  %v681_v30 = vld [vmem:[%s10056_s3 + $0xf0] sm:$0xff] }
 0x1cf   : > { %7776 = vmatmul.mubr.msk.f32.gmra.mrb[8].mxu0 %vm726_vm0, %v660_v31  ;;  %8289 = vmatprep.subr.bf16.mxu0 %v14568_v13  ;;  %v8261_v31 = vpack.c.bf16 %v1400_v28, %v1399_v27  ;;  %v682_v34 = vld [vmem:[%s10056_s3 + $0xf8] sm:$0xff]  ;;  %v683_v35 = vld [vmem:[%s10056_s3 + $0x100] sm:$0xff]  ;;  %v684_v39 = vld [vmem:[%s10056_s3 + $0x108] sm:$0xff] }
 0x1d0   : > { %7839 = vmatmul.mubr.msk.f32.gmra.mrb[8].mxu1 %vm726_vm0, %v702_v32  ;;  %7778 = vmatprep.mubr.msk.f32.mxu0 %vm726_vm0, %v661_v33  ;;  %v1401_v32 = vld [vmem:[#allocation13 + $0x50] sm:$0xff]  ;;  %v1402_v33 = vld [vmem:[#allocation13 + $0x58] sm:$0xff]  ;;  %v1403_v37 = vld [vmem:[#allocation13 + $0x60] sm:$0xff] }
 0x1d1   : > { %7841 = vmatprep.mubr.msk.f32.mxu1 %vm726_vm0, %v703_v36  ;;  %v8265_v36 = vpack.c.bf16 %v1402_v33, %v1401_v32  ;;  %v1404_v38 = vld [vmem:[#allocation13 + $0x68] sm:$0xff]  ;;  %v692_v48 = vld [vmem:[%s10056_s3 + $0x148] sm:$0xff] }
 0x1d2   : > { %v8269_v41 = vpack.c.bf16 %v1404_v38, %v1403_v37  ;;  %v686_v42 = vld [vmem:[%s10056_s3 + $0x118] sm:$0xff]  ;;  %v691_v47 = vld [vmem:[%s10056_s3 + $0x140] sm:$0xff]  ;;  %v1803_v56 = vld [vmem:[#allocation14 + $0x58] sm:$0xff] }
 0x1d3   : > { %7779 = vmatmul.mubr.msk.f32.gmra.mrb[10].mxu0 %vm726_vm0, %v662_v43  ;;  %v687_v43 = vld [vmem:[%s10056_s3 + $0x120] sm:$0xff] }
 0x1d4   : > { %7842 = vmatmul.mubr.msk.f32.gmra.mrb[10].mxu1 %vm726_vm0, %v704_v44  ;;  %7781 = vmatprep.mubr.msk.f32.mxu0 %vm726_vm0, %v663_v45  ;;  %v688_v44 = vld [vmem:[%s10056_s3 + $0x128] sm:$0xff]  ;;  %v689_v45 = vld [vmem:[%s10056_s3 + $0x130] sm:$0xff] }
 0x1d5   : > { %7844 = vmatprep.mubr.msk.f32.mxu1 %vm726_vm0, %v705_v46  ;;  %v690_v46 = vld [vmem:[%s10056_s3 + $0x138] sm:$0xff]  ;;  %v1405_v49 = vld [vmem:[#allocation13 + $0x70] sm:$0xff] }
 0x1d6   : > { %v1802_v55 = vld [vmem:[#allocation14 + $0x50] sm:$0xff] }
 0x1d7   : > { %7782 = vmatmul.mubr.msk.f32.gmra.mrb[12].mxu0 %vm726_vm0, %v664_v50  ;;  %v1406_v50 = vld [vmem:[#allocation13 + $0x78] sm:$0xff]  ;;  %v1806_v61 = vld [vmem:[#allocation14 + $0x70] sm:$0xff] }
 0x1d8   : > { %7845 = vmatmul.mubr.msk.f32.gmra.mrb[12].mxu1 %vm726_vm0, %v706_v51  ;;  %7784 = vmatprep.mubr.msk.f32.mxu0 %vm726_vm0, %v665_v52  ;;  %v8273_v51 = vpack.c.bf16 %v1406_v50, %v1405_v49  ;;  %v1800_v52 = vld [vmem:[#allocation14 + $0x40] sm:$0xff] }
 0x1d9   : > { %7847 = vmatprep.mubr.msk.f32.mxu1 %vm726_vm0, %v707_v53  ;;  %v1801_v53 = vld [vmem:[#allocation14 + $0x48] sm:$0xff] }
 0x1da   : > { %v8290_v54 = vpack.c.bf16 %v1801_v53, %v1800_v52 }
 0x1db   : > { %7785 = vmatmul.mubr.msk.f32.gmra.mrb[14].mxu0 %vm726_vm0, %v666_v57  ;;  %v8293_v57 = vpack.c.bf16 %v1803_v56, %v1802_v55 }
 0x1dc   : > { %7848 = vmatmul.mubr.msk.f32.gmra.mrb[14].mxu1 %vm726_vm0, %v708_v58  ;;  %7787 = vmatprep.mubr.msk.f32.mxu0 %vm726_vm0, %v667_v59  ;;  %v1804_v58 = vld [vmem:[#allocation14 + $0x60] sm:$0xff]  ;;  %v1805_v59 = vld [vmem:[#allocation14 + $0x68] sm:$0xff] }
 0x1dd   : > { %7850 = vmatprep.mubr.msk.f32.mxu1 %vm726_vm0, %v709_v60  ;;  %8291 = vmatpush3.bf16.msra.mxu0 %v8290_v54  ;;  %v8296_v60 = vpack.c.bf16 %v1805_v59, %v1804_v58 }
 0x1de   : > { %8292 = vmatprep.subr.bf16.mxu0 %v14568_v13 }
 0x1df   : > { %7788 = vmatmul.mubr.msk.f32.gmra.mrb[16].mxu0 %vm726_vm0, %v668_v62  ;;  %v1807_v62 = vld [vmem:[#allocation14 + $0x78] sm:$0xff] }
 0x1e0   : > { %7851 = vmatmul.mubr.msk.f32.gmra.mrb[16].mxu1 %vm726_vm0, %v710_v63  ;;  %7790 = vmatprep.mubr.msk.f32.mxu0 %vm726_vm0, %v669_v0  ;;  %v8299_v63 = vpack.c.bf16 %v1807_v62, %v1806_v61  ;;  %v4217_v0 = vld [vmem:[#allocation13 + $0x80] sm:$0xff] }
 0x1e1   : > { %7853 = vmatprep.mubr.msk.f32.mxu1 %vm726_vm0, %v711_v1  ;;  %8294 = vmatpush3.bf16.msra.mxu0 %v8293_v57  ;;  %v4218_v1 = vld [vmem:[#allocation13 + $0x88] sm:$0xff] }
 0x1e2   : > { %8295 = vmatprep.subr.bf16.mxu0 %v14568_v13 }
 0x1e3   : > { %7791 = vmatmul.mubr.msk.f32.gmra.mrb[18].mxu0 %vm726_vm0, %v670_v2  ;;  %v10245_v2 = vpack.c.bf16 %v4218_v1, %v4217_v0 }
 0x1e4   : > { %7854 = vmatmul.mubr.msk.f32.gmra.mrb[18].mxu1 %vm726_vm0, %v712_v3  ;;  %7793 = vmatprep.mubr.msk.f32.mxu0 %vm726_vm0, %v671_v4  ;;  %v10248_v3 = vld [vmem:[#allocation8] ss:$0 sm:$0xff] }
 0x1e5   : > { %7856 = vmatprep.mubr.msk.f32.mxu1 %vm726_vm0, %v713_v5  ;;  %8297 = vmatpush3.bf16.msra.mxu0 %v8296_v60 }
 0x1e6   : > { %8298 = vmatprep.subr.bf16.mxu0 %v14568_v13 }
 0x1e7   : > { %7794 = vmatmul.mubr.msk.f32.gmra.mrb[20].mxu0 %vm726_vm0, %v672_v6 }
 0x1e8   : > { %7857 = vmatmul.mubr.msk.f32.gmra.mrb[20].mxu1 %vm726_vm0, %v714_v7  ;;  %7796 = vmatprep.mubr.msk.f32.mxu0 %vm726_vm0, %v673_v8 }
 0x1e9   : > { %7867 = vmatprep.mubr.msk.f32.mxu1 %vm9556_vm1, %v14570_v11  ;;  %8300 = vmatpush3.bf16.msra.mxu0 %v8299_v63 }
 0x1ea   : > { %8302 = vmatprep.subr.bf16.mxu0 %v10245_v2 }
 0x1eb   : > { %7797 = vmatmul.mubr.msk.f32.gmra.mrb[22].mxu0 %vm726_vm0, %v674_v12 }
 0x1ec   : > { %7868 = vmatmul.mubr.msk.f32.vlgmr.msra.gmra.mrb[22].mxu1 %vm726_vm0, %v1304_v14  ;;  %7799 = vmatprep.mubr.msk.f32.mxu0 %vm726_vm0, %v675_v15 }
 0x1ed   : > { %8248 = vmatpush3.bf16.msra.mxu1 %v10139_v40  ;;  %v685_v40 = vld [vmem:[%s10056_s3 + $0x110] sm:$0xff]  ;;  %s9448_s3 = scalar_lea.vmem %s9447_s15, 256 }
 0x1ee   : > { %8250 = vmatprep.subr.bf16.mxu1 %v8249_v16  ;;  %p9450_p12 = scmp.lt.s32.totalorder %s9448_s3, %s9442_s9 }
 0x1ef   : > { %7800 = vmatmul.mubr.msk.f32.gmra.mrb[24].mxu0 %vm726_vm0, %v676_v19 }
 0x1f0   : > { %7802 = vmatprep.mubr.msk.f32.mxu0 %vm726_vm0, %v677_v20  ;;  %p9451_p1 = por %p9450_p12, %p9449_p4 }
 0x1f1   : > { %8252 = vmatpush3.bf16.msra.mxu1 %v8249_v16 }
 0x1f2   : > { %8254 = vmatprep.subr.bf16.mxu1 %v8253_v21  ;;  %p9452_p13 = pnand %p9451_p1, %p9445_p8 }
 0x1f3   : > { %7803 = vmatmul.mubr.msk.f32.gmra.mrb[26].mxu0 %vm726_vm0, %v678_v24 }
 0x1f4   : > { %7805 = vmatprep.mubr.msk.f32.mxu0 %vm726_vm0, %v679_v25 }
 0x1f5   : > { %8256 = vmatpush3.bf16.msra.mxu1 %v8253_v21 }
 0x1f6   : > { %8258 = vmatprep.subr.bf16.mxu1 %v8257_v26 }
 0x1f7   : > { %7806 = vmatmul.mubr.msk.f32.gmra.mrb[28].mxu0 %vm726_vm0, %v680_v29 }
 0x1f8   : > { %7808 = vmatprep.mubr.msk.f32.mxu0 %vm726_vm0, %v681_v30 }
 0x1f9   : > { %8260 = vmatpush3.bf16.msra.mxu1 %v8257_v26 }
 0x1fa   : > { %8262 = vmatprep.subr.bf16.mxu1 %v8261_v31 }
 0x1fb   : > { %7809 = vmatmul.mubr.msk.f32.gmra.mrb[30].mxu0 %vm726_vm0, %v682_v34 }
 0x1fc   : > { %7811 = vmatprep.mubr.msk.f32.mxu0 %vm726_vm0, %v683_v35 }
 0x1fd   : > { %8264 = vmatpush3.bf16.msra.mxu1 %v8261_v31 }
 0x1fe   : > { %8266 = vmatprep.subr.bf16.mxu1 %v8265_v36 }
 0x1ff   : > { %7812 = vmatmul.mubr.msk.f32.gmra.mrb[32].mxu0 %vm726_vm0, %v684_v39 }
 0x200   : > { %7814 = vmatprep.mubr.msk.f32.mxu0 %vm726_vm0, %v685_v40 }
 0x201   : > { %8268 = vmatpush3.bf16.msra.mxu1 %v8265_v36 }
 0x202   : > { %8270 = vmatprep.subr.bf16.mxu1 %v8269_v41 }
 0x203   : > { %7815 = vmatmul.mubr.msk.f32.gmra.mrb[34].mxu0 %vm726_vm0, %v686_v42 }
 0x204   : > { %7817 = vmatprep.mubr.msk.f32.mxu0 %vm726_vm0, %v687_v43 }
 0x205   : > { %8272 = vmatpush3.bf16.msra.mxu1 %v8269_v41 }
 0x206   : > { %8274 = vmatprep.subr.bf16.mxu1 %v8273_v51 }
 0x207   : > { %7818 = vmatmul.mubr.msk.f32.gmra.mrb[36].mxu0 %vm726_vm0, %v688_v44 }
 0x208   : > { %7820 = vmatprep.mubr.msk.f32.mxu0 %vm726_vm0, %v689_v45 }
 0x209   : > { %8276 = vmatpush3.bf16.msra.mxu1 %v8273_v51 }
 0x20a   : > { %8333 = vmatprep.subr.bf16.mxu1 %v14568_v13 }
 0x20b   : > { %7821 = vmatmul.mubr.msk.f32.gmra.mrb[38].mxu0 %vm726_vm0, %v690_v46 }
 0x20c   : > { %7823 = vmatprep.mubr.msk.f32.mxu0 %vm726_vm0, %v691_v47 }
 0x20f   : > { %7824 = vmatmul.mubr.msk.f32.gmra.mrb[40].mxu0 %vm726_vm0, %v692_v48  ;;  %vm2782_vm0 = vcmask 523264  }
 0x210   : > { %8030 = vmatprep.mubr.msk.f32.mxu0 %vm9556_vm1, %v14570_v11 }
 0x292   : > { %v7765_v4 = vpop.f32.mrb[0].mxu0 }
 0x293   : > { %v10250_v5 = vpop.f32.mrb[0].mxu1  ;;  %v10253_v6 = vadd.f32 %v7765_v4, %v10248_v3  ;;  %v985_v7 = vpop.f32.mrb[1].mxu0 }
 0x294   : > { %v10255_v8 = vpop.f32.mrb[1].mxu1  ;;  %v10258_v9 = vadd.f32 %v10248_v3, %v985_v7 }
 0x295   : > { %14999 = vst [vmem:[#allocation35_spill] sm:$0xff] %v10253_v6 }
 0x296   : > { %15000 = vst [vmem:[#allocation36_spill] sm:$0xff] %v10258_v9  ;;  %v7768_v10 = vpop.f32.mrb[2].mxu0  ;;  %7902 = vmatprep.mubr.f32.mxu1 %v10258_v9 }
 0x297   : > { %v10260_v12 = vpop.f32.mrb[2].mxu1  ;;  %v10264_v14 = vadd.f32 %v7768_v10, %v10248_v3  ;;  %v995_v15 = vpop.f32.mrb[3].mxu0  ;;  %7903 = vmatmul.mubr.f32.vlgmr.msra.gmra.mrb[24].mxu1 %v10253_v6 }
 0x298   : > { %v10266_v16 = vpop.f32.mrb[3].mxu1  ;;  %v10270_v17 = vadd.f32 %v10248_v3, %v995_v15 }
 0x299   : > { %15001 = vst [vmem:[#allocation37_spill] sm:$0xff] %v10264_v14 }
 0x29a   : > { %15002 = vst [vmem:[#allocation38_spill] sm:$0xff] %v10270_v17  ;;  %v7771_v18 = vpop.f32.mrb[4].mxu0  ;;  %7905 = vmatprep.mubr.f32.mxu1 %v10270_v17 }
 0x29b   : > { %v10272_v19 = vpop.f32.mrb[4].mxu1  ;;  %v10276_v20 = vadd.f32 %v7771_v18, %v10248_v3  ;;  %v1005_v21 = vpop.f32.mrb[5].mxu0  ;;  %7906 = vmatmul.mubr.f32.gmra.mrb[26].mxu1 %v10264_v14 }
 0x29c   : > { %v10278_v22 = vpop.f32.mrb[5].mxu1  ;;  %v10282_v23 = vadd.f32 %v10248_v3, %v1005_v21 }
 0x29d   : > { %15003 = vst [vmem:[#allocation39_spill] sm:$0xff] %v10276_v20 }
 0x29e   : > { %15004 = vst [vmem:[#allocation40_spill] sm:$0xff] %v10282_v23  ;;  %v7774_v24 = vpop.f32.mrb[6].mxu0  ;;  %7908 = vmatprep.mubr.f32.mxu1 %v10282_v23 }
 0x29f   : > { %v10284_v25 = vpop.f32.mrb[6].mxu1  ;;  %v10288_v26 = vadd.f32 %v7774_v24, %v10248_v3  ;;  %v1015_v27 = vpop.f32.mrb[7].mxu0  ;;  %7909 = vmatmul.mubr.f32.gmra.mrb[28].mxu1 %v10276_v20  ;;  %v7456_v24 = vld [vmem:[#allocation11] ss:$0 sm:$0xff] }
 0x2a0   : > { %v10290_v28 = vpop.f32.mrb[7].mxu1  ;;  %v10294_v29 = vadd.f32 %v10248_v3, %v1015_v27  ;;  %v4219_v27 = vld [vmem:[#allocation13 + $0x90] sm:$0xff] }
 0x2a1   : > { %15005 = vst [vmem:[#allocation41_spill] sm:$0xff] %v10288_v26 }
 0x2a2   : > { %15006 = vst [vmem:[#allocation42_spill] sm:$0xff] %v10294_v29  ;;  %v7777_v30 = vpop.f32.mrb[8].mxu0  ;;  %7911 = vmatprep.mubr.f32.mxu1 %v10294_v29 }
 0x2a3   : > { %v10296_v31 = vpop.f32.mrb[8].mxu1  ;;  %v10300_v32 = vadd.f32 %v7777_v30, %v10248_v3  ;;  %v1025_v33 = vpop.f32.mrb[9].mxu0  ;;  %7912 = vmatmul.mubr.f32.gmra.mrb[30].mxu1 %v10288_v26  ;;  %v4220_v30 = vld [vmem:[#allocation13 + $0x98] sm:$0xff] }
 0x2a4   : > { %v10302_v34 = vpop.f32.mrb[9].mxu1  ;;  %v10306_v35 = vadd.f32 %v10248_v3, %v1025_v33 }
 0x2a5   : > { %15007 = vst [vmem:[#allocation43_spill] sm:$0xff] %v10300_v32 }
 0x2a6   : > { %15008 = vst [vmem:[#allocation44_spill] sm:$0xff] %v10306_v35  ;;  %v7780_v36 = vpop.f32.mrb[10].mxu0  ;;  %7914 = vmatprep.mubr.f32.mxu1 %v10306_v35 }
 0x2a7   : > { %v10308_v37 = vpop.f32.mrb[10].mxu1  ;;  %v10312_v38 = vadd.f32 %v7780_v36, %v10248_v3  ;;  %v1035_v39 = vpop.f32.mrb[11].mxu0  ;;  %7915 = vmatmul.mubr.f32.gmra.mrb[32].mxu1 %v10300_v32 }
 0x2a8   : > { %v10314_v40 = vpop.f32.mrb[11].mxu1  ;;  %v10318_v41 = vadd.f32 %v10248_v3, %v1035_v39 }
 0x2a9   : > { %15009 = vst [vmem:[#allocation45_spill] sm:$0xff] %v10312_v38 }
 0x2aa   : > { %15010 = vst [vmem:[#allocation46_spill] sm:$0xff] %v10318_v41  ;;  %v7783_v42 = vpop.f32.mrb[12].mxu0  ;;  %7917 = vmatprep.mubr.f32.mxu1 %v10318_v41 }
 0x2ab   : > { %v10320_v43 = vpop.f32.mrb[12].mxu1  ;;  %v10324_v44 = vadd.f32 %v7783_v42, %v10248_v3  ;;  %v1045_v45 = vpop.f32.mrb[13].mxu0  ;;  %7918 = vmatmul.mubr.f32.gmra.mrb[34].mxu1 %v10312_v38 }
 0x2ac   : > { %v10326_v46 = vpop.f32.mrb[13].mxu1  ;;  %v10330_v47 = vadd.f32 %v10248_v3, %v1045_v45 }
 0x2ad   : > { %15011 = vst [vmem:[#allocation47_spill] sm:$0xff] %v10324_v44 }
 0x2ae   : > { %15012 = vst [vmem:[#allocation48_spill] sm:$0xff] %v10330_v47  ;;  %v7786_v48 = vpop.f32.mrb[14].mxu0  ;;  %7920 = vmatprep.mubr.f32.mxu1 %v10330_v47 }
 0x2af   : > { %v10332_v49 = vpop.f32.mrb[14].mxu1  ;;  %v10336_v50 = vadd.f32 %v7786_v48, %v10248_v3  ;;  %v1055_v51 = vpop.f32.mrb[15].mxu0  ;;  %7921 = vmatmul.mubr.f32.gmra.mrb[36].mxu1 %v10324_v44 }
 0x2b0   : > { %v10338_v52 = vpop.f32.mrb[15].mxu1  ;;  %v10342_v53 = vadd.f32 %v10248_v3, %v1055_v51  ;;  %v8305_v51 = vpack.c.bf16 %v4220_v30, %v4219_v27  ;;  %v4223_v30 = vld [vmem:[#allocation13 + $0xb0] sm:$0xff] }
 0x2b1   : > { %15013 = vst [vmem:[#allocation49_spill] sm:$0xff] %v10336_v50 }
 0x2b2   : > { %15014 = vst [vmem:[#allocation50_spill] sm:$0xff] %v10342_v53  ;;  %v7789_v54 = vpop.f32.mrb[16].mxu0  ;;  %7923 = vmatprep.mubr.f32.mxu1 %v10342_v53 }
 0x2b3   : > { %v10344_v55 = vpop.f32.mrb[16].mxu1  ;;  %v10348_v56 = vadd.f32 %v7789_v54, %v10248_v3  ;;  %v1065_v57 = vpop.f32.mrb[17].mxu0  ;;  %7924 = vmatmul.mubr.f32.gmra.mrb[38].mxu1 %v10336_v50 }
 0x2b4   : > { %v10350_v58 = vpop.f32.mrb[17].mxu1  ;;  %v10354_v59 = vadd.f32 %v10248_v3, %v1065_v57  ;;  %v4221_v57 = vld [vmem:[#allocation13 + $0xa0] sm:$0xff] }
 0x2b5   : > { %15015 = vst [vmem:[#allocation51_spill] sm:$0xff] %v10348_v56 }
 0x2b6   : > { %15016 = vst [vmem:[#allocation52_spill] sm:$0xff] %v10354_v59  ;;  %v7792_v60 = vpop.f32.mrb[18].mxu0  ;;  %7926 = vmatprep.mubr.f32.mxu1 %v10354_v59 }
 0x2b7   : > { %v10356_v61 = vpop.f32.mrb[18].mxu1  ;;  %v10360_v62 = vadd.f32 %v7792_v60, %v10248_v3  ;;  %v1075_v63 = vpop.f32.mrb[19].mxu0  ;;  %7927 = vmatmul.mubr.f32.gmra.mrb[40].mxu1 %v10348_v56  ;;  %v4222_v60 = vld [vmem:[#allocation13 + $0xa8] sm:$0xff] }
 0x2b8   : > { %v10362_v0 = vpop.f32.mrb[19].mxu1  ;;  %v10366_v1 = vadd.f32 %v10248_v3, %v1075_v63 }
 0x2b9   : > { %15017 = vst [vmem:[#allocation53_spill] sm:$0xff] %v10360_v62 }
 0x2ba   : > { %15018 = vst [vmem:[#allocation54_spill] sm:$0xff] %v10366_v1  ;;  %v7795_v4 = vpop.f32.mrb[20].mxu0  ;;  %7929 = vmatprep.mubr.f32.mxu1 %v10366_v1 }
 0x2bb   : > { %v10368_v7 = vpop.f32.mrb[20].mxu1  ;;  %v10372_v10 = vadd.f32 %v7795_v4, %v10248_v3  ;;  %v1085_v15 = vpop.f32.mrb[21].mxu0  ;;  %7930 = vmatmul.mubr.f32.gmra.mrb[42].mxu1 %v10360_v62 }
 0x2bc   : > { %v10374_v18 = vpop.f32.mrb[21].mxu1  ;;  %v10378_v21 = vadd.f32 %v10248_v3, %v1085_v15 }
 0x2bd   : > { %15019 = vst [vmem:[#allocation55_spill] sm:$0xff] %v10372_v10 }
 0x2be   : > { %15020 = vst [vmem:[#allocation56_spill] sm:$0xff] %v10378_v21  ;;  %v7798_v33 = vpop.f32.mrb[22].mxu0  ;;  %7932 = vmatprep.mubr.f32.mxu1 %v10378_v21 }
 0x2bf   : > { %v1385_v36 = vpop.f32.mrb[22].mxu1  ;;  %v10382_v39 = vadd.f32 %v7798_v33, %v10248_v3  ;;  %v1095_v45 = vpop.f32.mrb[23].mxu0  ;;  %7933 = vmatmul.mubr.f32.gmra.mrb[44].mxu1 %v10372_v10  ;;  %v4224_v33 = vld [vmem:[#allocation13 + $0xb8] sm:$0xff] }
 0x2c0   : > { %v10384_v42 = vadd.f32 %v7456_v24, %v1385_v36  ;;  %v7869_v48 = vpop.f32.mrb[23].mxu1  ;;  %v10388_v54 = vadd.f32 %v10248_v3, %v1095_v45  ;;  %v8309_v24 = vpack.c.bf16 %v4222_v60, %v4221_v57  ;;  %v4225_v60 = vld [vmem:[#allocation13 + $0xc0] sm:$0xff] }
 0x2c1   : > { %15021 = vst [vmem:[#allocation57_spill] sm:$0xff] %v10382_v39  ;;  %v8313_v48 = vpack.c.bf16 %v4224_v33, %v4223_v30  ;;  %v4227_v30 = vld [vmem:[#allocation13 + $0xd0] sm:$0xff]  ;;  %v4228_v33 = vld [vmem:[#allocation13 + $0xd8] sm:$0xff] }
 0x2c2   : > { %15022 = vst [vmem:[#allocation58_spill] sm:$0xff] %v10384_v42  ;;  %15023 = vst [vmem:[#allocation59_spill] sm:$0xff] %v10388_v54  ;;  %8031 = vmatmul.mubr.f32.vlgmr.msra.gmra.mrb[42].mxu0 %v10384_v42  ;;  %v7801_v63 = vpop.f32.mrb[24].mxu0  ;;  %7935 = vmatprep.mubr.f32.mxu1 %v10388_v54 }
 0x2c3   : > { %8304 = vmatpush3.bf16.msra.mxu0 %v10245_v2  ;;  %v10394_v4 = vadd.f32 %v7801_v63, %v10248_v3  ;;  %v1105_v15 = vpop.f32.mrb[25].mxu0  ;;  %7936 = vmatmul.mubr.f32.gmra.mrb[46].mxu1 %v10382_v39  ;;  %v4226_v63 = vld [vmem:[#allocation13 + $0xc8] sm:$0xff] }
 0x2c4   : > { %8306 = vmatprep.subr.bf16.mxu0 %v8305_v51  ;;  %v10398_v27 = vadd.f32 %v10248_v3, %v1105_v15  ;;  %8065 = vmatprep.mubr.f32.mxu0 %v10258_v9 }
 0x2c5   : > { %15024 = vst [vmem:[#allocation60_spill] sm:$0xff] %v10394_v4 }
 0x2c6   : > { %15025 = vst [vmem:[#allocation61_spill] sm:$0xff] %v10398_v27  ;;  %v7804_v2 = vpop.f32.mrb[26].mxu0  ;;  %7938 = vmatprep.mubr.f32.mxu1 %v10398_v27 }
 0x2c7   : > { %8308 = vmatpush3.bf16.msra.mxu0 %v8305_v51  ;;  %v10403_v36 = vadd.f32 %v7804_v2, %v10248_v3  ;;  %v1115_v45 = vpop.f32.mrb[27].mxu0  ;;  %7939 = vmatmul.mubr.f32.gmra.mrb[48].mxu1 %v10394_v4  ;;  %v8317_v2 = vpack.c.bf16 %v4226_v63, %v4225_v60  ;;  %v4229_v60 = vld [vmem:[#allocation13 + $0xe0] sm:$0xff] }
 0x2c8   : > { %8310 = vmatprep.subr.bf16.mxu0 %v8309_v24  ;;  %v10407_v57 = vadd.f32 %v10248_v3, %v1115_v45 }
 0x2c9   : > { %15026 = vst [vmem:[#allocation62_spill] sm:$0xff] %v10403_v36 }
 0x2ca   : > { %15027 = vst [vmem:[#allocation63_spill] sm:$0xff] %v10407_v57  ;;  %v7807_v15 = vpop.f32.mrb[28].mxu0  ;;  %7941 = vmatprep.mubr.f32.mxu1 %v10407_v57 }
 0x2cb   : > { %8312 = vmatpush3.bf16.msra.mxu0 %v8309_v24  ;;  %v10411_v51 = vadd.f32 %v7807_v15, %v10248_v3  ;;  %v1125_v13 = vpop.f32.mrb[29].mxu0  ;;  %7942 = vmatmul.mubr.f32.gmra.mrb[50].mxu1 %v10403_v36  ;;  %v8321_v15 = vpack.c.bf16 %v4228_v33, %v4227_v30  ;;  %v4231_v30 = vld [vmem:[#allocation13 + $0xf0] sm:$0xff] }
 0x2cc   : > { %8314 = vmatprep.subr.bf16.mxu0 %v8313_v48  ;;  %v10415_v11 = vadd.f32 %v10248_v3, %v1125_v13  ;;  %v4230_v13 = vld [vmem:[#allocation13 + $0xe8] sm:$0xff] }
 0x2cd   : > { %15028 = vst [vmem:[#allocation64_spill] sm:$0xff] %v10411_v51 }
 0x2ce   : > { %15029 = vst [vmem:[#allocation65_spill] sm:$0xff] %v10415_v11  ;;  %v7810_v45 = vpop.f32.mrb[30].mxu0  ;;  %7944 = vmatprep.mubr.f32.mxu1 %v10415_v11 }
 0x2cf   : > { %8316 = vmatpush3.bf16.msra.mxu0 %v8313_v48  ;;  %v10419_v24 = vadd.f32 %v7810_v45, %v10248_v3  ;;  %v1135_v42 = vpop.f32.mrb[31].mxu0  ;;  %7945 = vmatmul.mubr.f32.gmra.mrb[52].mxu1 %v10411_v51  ;;  %v8325_v45 = vpack.c.bf16 %v4230_v13, %v4229_v60 }
 0x2d0   : > { %8318 = vmatprep.subr.bf16.mxu0 %v8317_v2  ;;  %v10423_v9 = vadd.f32 %v10248_v3, %v1135_v42  ;;  %v4232_v42 = vld [vmem:[#allocation13 + $0xf8] sm:$0xff] }
 0x2d1   : > { %15030 = vst [vmem:[#allocation66_spill] sm:$0xff] %v10419_v24 }
 0x2d2   : > { %15031 = vst [vmem:[#allocation67_spill] sm:$0xff] %v10423_v9  ;;  %v7813_v63 = vpop.f32.mrb[32].mxu0  ;;  %7947 = vmatprep.mubr.f32.mxu1 %v10423_v9 }
 0x2d3   : > { %8320 = vmatpush3.bf16.msra.mxu0 %v8317_v2  ;;  %v10427_v48 = vadd.f32 %v7813_v63, %v10248_v3  ;;  %v1145_v11 = vpop.f32.mrb[33].mxu0  ;;  %7948 = vmatmul.mubr.f32.gmra.mrb[54].mxu1 %v10419_v24  ;;  %v8329_v63 = vpack.c.bf16 %v4232_v42, %v4231_v30 }
 0x2d4   : > { %8322 = vmatprep.subr.bf16.mxu0 %v8321_v15  ;;  %v10431_v51 = vadd.f32 %v10248_v3, %v1145_v11 }
 0x2d5   : > { %15032 = vst [vmem:[#allocation68_spill] sm:$0xff] %v10427_v48 }
 0x2d6   : > { %15033 = vst [vmem:[#allocation69_spill] sm:$0xff] %v10431_v51  ;;  %v7816_v33 = vpop.f32.mrb[34].mxu0  ;;  %7950 = vmatprep.mubr.f32.mxu1 %v10431_v51 }
 0x2d7   : > { %8324 = vmatpush3.bf16.msra.mxu0 %v8321_v15  ;;  %v10435_v2 = vadd.f32 %v7816_v33, %v10248_v3  ;;  %v1155_v9 = vpop.f32.mrb[35].mxu0  ;;  %7951 = vmatmul.mubr.f32.gmra.mrb[56].mxu1 %v10427_v48 }
 0x2d8   : > { %8326 = vmatprep.subr.bf16.mxu0 %v8325_v45  ;;  %v10439_v24 = vadd.f32 %v10248_v3, %v1155_v9 }
 0x2d9   : > { %15034 = vst [vmem:[#allocation70_spill] sm:$0xff] %v10435_v2 }
 0x2da   : > { %15035 = vst [vmem:[#allocation71_spill] sm:$0xff] %v10439_v24  ;;  %v7819_v11 = vpop.f32.mrb[36].mxu0  ;;  %7953 = vmatprep.mubr.f32.mxu1 %v10439_v24 }
 0x2db   : > { %8328 = vmatpush3.bf16.msra.mxu0 %v8325_v45  ;;  %v10443_v15 = vadd.f32 %v7819_v11, %v10248_v3  ;;  %v1165_v60 = vpop.f32.mrb[37].mxu0  ;;  %7954 = vmatmul.mubr.f32.gmra.mrb[58].mxu1 %v10435_v2 }
 0x2dc   : > { %8330 = vmatprep.subr.bf16.mxu0 %v8329_v63  ;;  %v10447_v13 = vadd.f32 %v10248_v3, %v1165_v60 }
 0x2dd   : > { %15036 = vst [vmem:[#allocation72_spill] sm:$0xff] %v10443_v15 }
 0x2de   : > { %15037 = vst [vmem:[#allocation73_spill] sm:$0xff] %v10447_v13  ;;  %v7822_v33 = vpop.f32.mrb[38].mxu0  ;;  %7956 = vmatprep.mubr.f32.mxu1 %v10447_v13 }
 0x2df   : > { %8332 = vmatpush3.bf16.msra.mxu0 %v8329_v63  ;;  %v10451_v9 = vadd.f32 %v7822_v33, %v10248_v3  ;;  %v1175_v45 = vpop.f32.mrb[39].mxu0  ;;  %7957 = vmatmul.mubr.f32.gmra.mrb[60].mxu1 %v10443_v15  ;;  %v10470_v33 = vadd.f32 %v10248_v3, %v10255_v8  ;;  %v10490_v8 = vadd.f32 %v10260_v12, %v10248_v3 }
 0x2e0   : > { %v10455_v30 = vadd.f32 %v10248_v3, %v1175_v45  ;;  %v10478_v45 = vadd.f32 %v10250_v5, %v10248_v3  ;;  %v10495_v5 = vadd.f32 %v10248_v3, %v10278_v22  ;;  %v10507_v12 = vadd.f32 %v10248_v3, %v10290_v28 }
 0x2e1   : > { %15038 = vst [vmem:[#allocation74_spill] sm:$0xff] %v10451_v9  ;;  %15042 = vst [vmem:[#allocation78_spill] sm:$0xff] %v10470_v33  ;;  %v10514_v22 = vadd.f32 %v10284_v25, %v10248_v3  ;;  %v10526_v28 = vadd.f32 %v10296_v31, %v10248_v3  ;;  %v10531_v25 = vadd.f32 %v10248_v3, %v10314_v40 }
 0x2e2   : > { %15039 = vst [vmem:[#allocation75_spill] sm:$0xff] %v10455_v30  ;;  %8066 = vmatmul.mubr.f32.vlgmr.msra.gmra.mrb[44].mxu0 %v10253_v6  ;;  %v7825_v42 = vpop.f32.mrb[40].mxu0  ;;  %7959 = vmatprep.mubr.f32.mxu1 %v10455_v30  ;;  %15043 = vst [vmem:[#allocation79_spill] sm:$0xff] %v10478_v45  ;;  %v10543_v31 = vadd.f32 %v10248_v3, %v10326_v46  ;;  %v10550_v40 = vadd.f32 %v10320_v43, %v10248_v3 }
 0x2e3   : > { %8068 = vmatprep.mubr.f32.mxu0 %v10270_v17  ;;  %v10461_v63 = vadd.f32 %v7825_v42, %v10248_v3  ;;  %v1185_v11 = vpop.f32.mrb[41].mxu0  ;;  %7960 = vmatmul.mubr.f32.gmra.mrb[62].mxu1 %v10451_v9  ;;  %v10483_v42 = vadd.f32 %v10248_v3, %v10266_v16  ;;  %15045 = vst [vmem:[#allocation81_spill] sm:$0xff] %v10490_v8  ;;  %15046 = vst [vmem:[#allocation82_spill] sm:$0xff] %v10495_v5 }
 0x2e4   : > { %v10465_v60 = vadd.f32 %v10248_v3, %v1185_v11  ;;  %v10502_v16 = vadd.f32 %v10272_v19, %v10248_v3  ;;  %15048 = vst [vmem:[#allocation84_spill] sm:$0xff] %v10507_v12  ;;  %15049 = vst [vmem:[#allocation85_spill] sm:$0xff] %v10514_v22  ;;  %v10519_v19 = vadd.f32 %v10248_v3, %v10302_v34  ;;  %v15066_v11 = vld [vmem:[#allocation64_spill] sm:$0xff] }
 0x2e5   : > { %15040 = vst [vmem:[#allocation76_spill] sm:$0xff] %v10461_v63  ;;  %15044 = vst [vmem:[#allocation80_spill] sm:$0xff] %v10483_v42  ;;  %v10538_v34 = vadd.f32 %v10308_v37, %v10248_v3  ;;  %v10555_v37 = vadd.f32 %v10248_v3, %v10338_v52  ;;  %v10562_v46 = vadd.f32 %v10332_v49, %v10248_v3 }
 0x2e6   : > { %15041 = vst [vmem:[#allocation77_spill] sm:$0xff] %v10465_v60  ;;  %8069 = vmatmul.mubr.f32.gmra.mrb[46].mxu0 %v10264_v14  ;;  %7962 = vmatprep.mubr.f32.mxu1 %v10465_v60  ;;  %15047 = vst [vmem:[#allocation83_spill] sm:$0xff] %v10502_v16  ;;  %v10567_v43 = vadd.f32 %v10248_v3, %v10350_v58  ;;  %v10574_v52 = vadd.f32 %v10344_v55, %v10248_v3 }
 0x2e7   : > { %8071 = vmatprep.mubr.f32.mxu0 %v10282_v23  ;;  %7963 = vmatmul.mubr.f32.gmra.mrb[64].mxu1 %v10461_v63  ;;  %15050 = vst [vmem:[#allocation86_spill] sm:$0xff] %v10519_v19  ;;  %15051 = vst [vmem:[#allocation87_spill] sm:$0xff] %v10526_v28  ;;  %v10579_v49 = vadd.f32 %v10248_v3, %v10362_v0  ;;  %v10586_v58 = vadd.f32 %v10356_v61, %v10248_v3  ;;  %v15064_v61 = vmov 0.0  }
 0x2e8   : > { %7965 = vmatprep.mubr.f32.mxu1 %v10470_v33  ;;  %15052 = vst [vmem:[#allocation88_spill] sm:$0xff] %v10531_v25  ;;  %15053 = vst [vmem:[#allocation89_spill] sm:$0xff] %v10538_v34  ;;  %v10591_v55 = vadd.f32 %v10248_v3, %v10374_v18  ;;  %v10598_v0 = vadd.f32 %v10368_v7, %v10248_v3  ;;  %v15065_v18 = vld [vmem:[#allocation65_spill] sm:$0xff] }
 0x2e9   : > { %15054 = vst [vmem:[#allocation90_spill] sm:$0xff] %v10543_v31  ;;  %15055 = vst [vmem:[#allocation91_spill] sm:$0xff] %v10550_v40 }
 0x2ea   : > { %8072 = vmatmul.mubr.f32.gmra.mrb[48].mxu0 %v10276_v20  ;;  %15056 = vst [vmem:[#allocation92_spill] sm:$0xff] %v10555_v37  ;;  %15057 = vst [vmem:[#allocation93_spill] sm:$0xff] %v10562_v46 }
 0x2eb   : > { %8074 = vmatprep.mubr.f32.mxu0 %v10294_v29  ;;  %7966 = vmatmul.mubr.f32.gmra.mrb[66].mxu1 %v10478_v45  ;;  %15058 = vst [vmem:[#allocation94_spill] sm:$0xff] %v10567_v43  ;;  %15059 = vst [vmem:[#allocation95_spill] sm:$0xff] %v10574_v52 }
 0x2ec   : > { %7968 = vmatprep.mubr.f32.mxu1 %v10483_v42  ;;  %15060 = vst [vmem:[#allocation96_spill] sm:$0xff] %v10579_v49  ;;  %15061 = vst [vmem:[#allocation97_spill] sm:$0xff] %v10586_v58 }
 0x2ed   : > { %15062 = vst [vmem:[#allocation98_spill] sm:$0xff] %v10591_v55  ;;  %15063 = vst [vmem:[#allocation99_spill] sm:$0xff] %v10598_v0 }
 0x2ee   : > { %8075 = vmatmul.mubr.f32.gmra.mrb[50].mxu0 %v10288_v26  ;;  %v15068_v26 = vld [vmem:[#allocation66_spill] sm:$0xff] }
 0x2ef   : > { %8077 = vmatprep.mubr.f32.mxu0 %v10306_v35  ;;  %7969 = vmatmul.mubr.f32.gmra.mrb[68].mxu1 %v10490_v8 }
 0x2f0   : > { %7971 = vmatprep.mubr.f32.mxu1 %v10495_v5 }
 0x2f2   : > { %8078 = vmatmul.mubr.f32.gmra.mrb[52].mxu0 %v10300_v32  ;;  %v15150_v32 = vlaneseq }
 0x2f3   : > { %8080 = vmatprep.mubr.f32.mxu0 %v10318_v41  ;;  %7972 = vmatmul.mubr.f32.gmra.mrb[70].mxu1 %v10502_v16 }
 0x2f4   : > { %7974 = vmatprep.mubr.f32.mxu1 %v10507_v12 }
 0x2f6   : > { %8081 = vmatmul.mubr.f32.gmra.mrb[54].mxu0 %v10312_v38 }
 0x2f7   : > { %8083 = vmatprep.mubr.f32.mxu0 %v10330_v47  ;;  %7975 = vmatmul.mubr.f32.gmra.mrb[72].mxu1 %v10514_v22 }
 0x2f8   : > { %7977 = vmatprep.mubr.f32.mxu1 %v10519_v19 }
 0x2fa   : > { %8084 = vmatmul.mubr.f32.gmra.mrb[56].mxu0 %v10324_v44 }
 0x2fb   : > { %8086 = vmatprep.mubr.f32.mxu0 %v10342_v53  ;;  %7978 = vmatmul.mubr.f32.gmra.mrb[74].mxu1 %v10526_v28 }
 0x2fc   : > { %7980 = vmatprep.mubr.f32.mxu1 %v10531_v25 }
 0x2fe   : > { %8087 = vmatmul.mubr.f32.gmra.mrb[58].mxu0 %v10336_v50 }
 0x2ff   : > { %8089 = vmatprep.mubr.f32.mxu0 %v10354_v59  ;;  %7981 = vmatmul.mubr.f32.gmra.mrb[76].mxu1 %v10538_v34 }
 0x300   : > { %7983 = vmatprep.mubr.f32.mxu1 %v10543_v31 }
 0x302   : > { %8090 = vmatmul.mubr.f32.gmra.mrb[60].mxu0 %v10348_v56 }
 0x303   : > { %8092 = vmatprep.mubr.f32.mxu0 %v10366_v1  ;;  %7984 = vmatmul.mubr.f32.gmra.mrb[78].mxu1 %v10550_v40 }
 0x304   : > { %7986 = vmatprep.mubr.f32.mxu1 %v10555_v37 }
 0x306   : > { %8093 = vmatmul.mubr.f32.gmra.mrb[62].mxu0 %v10360_v62 }
 0x307   : > { %8095 = vmatprep.mubr.f32.mxu0 %v10378_v21  ;;  %7987 = vmatmul.mubr.f32.gmra.mrb[80].mxu1 %v10562_v46 }
 0x308   : > { %7989 = vmatprep.mubr.f32.mxu1 %v10567_v43 }
 0x30a   : > { %8096 = vmatmul.mubr.f32.gmra.mrb[64].mxu0 %v10372_v10 }
 0x30b   : > { %8098 = vmatprep.mubr.f32.mxu0 %v10388_v54  ;;  %7990 = vmatmul.mubr.f32.gmra.mrb[82].mxu1 %v10574_v52 }
 0x30c   : > { %7992 = vmatprep.mubr.f32.mxu1 %v10579_v49 }
 0x30e   : > { %8099 = vmatmul.mubr.f32.gmra.mrb[66].mxu0 %v10382_v39  ;;  %v15067_v39 = vld [vmem:[#allocation67_spill] sm:$0xff] }
 0x30f   : > { %8101 = vmatprep.mubr.f32.mxu0 %v10398_v27  ;;  %7993 = vmatmul.mubr.f32.gmra.mrb[84].mxu1 %v10586_v58 }
 0x310   : > { %7995 = vmatprep.mubr.f32.mxu1 %v10591_v55 }
 0x312   : > { %8102 = vmatmul.mubr.f32.gmra.mrb[68].mxu0 %v10394_v4 }
 0x313   : > { %8104 = vmatprep.mubr.f32.mxu0 %v10407_v57  ;;  %7996 = vmatmul.mubr.f32.gmra.mrb[86].mxu1 %v10598_v0 }
 0x314   : > { %8193 = vmatprep.mubr.msk.f32.mxu1 %vm9556_vm1, %v15064_v61 }
 0x316   : > { %8105 = vmatmul.mubr.f32.gmra.mrb[70].mxu0 %v10403_v36 }
 0x317   : > { %8107 = vmatprep.mubr.f32.mxu0 %v15065_v18 }
 0x31a   : > { %8108 = vmatmul.mubr.f32.gmra.mrb[72].mxu0 %v15066_v11 }
 0x31b   : > { %8110 = vmatprep.mubr.f32.mxu0 %v15067_v39 }
 0x31e   : > { %8111 = vmatmul.mubr.f32.gmra.mrb[74].mxu0 %v15068_v26 }
 0x31f   : > { %8113 = vmatprep.mubr.f32.mxu0 %v10431_v51 }
 0x322   : > { %8114 = vmatmul.mubr.f32.gmra.mrb[76].mxu0 %v10427_v48 }
 0x323   : > { %8116 = vmatprep.mubr.f32.mxu0 %v10439_v24 }
 0x326   : > { %8117 = vmatmul.mubr.f32.gmra.mrb[78].mxu0 %v10435_v2 }
 0x327   : > { %8119 = vmatprep.mubr.f32.mxu0 %v10447_v13 }
 0x32a   : > { %8120 = vmatmul.mubr.f32.gmra.mrb[80].mxu0 %v10443_v15 }
 0x32b   : > { %8122 = vmatprep.mubr.f32.mxu0 %v10455_v30  ;;  %v7458_v30 = vld [vmem:[#allocation16] ss:$0 sm:$0xff] }
 0x32e   : > { %8123 = vmatmul.mubr.f32.gmra.mrb[82].mxu0 %v10451_v9 }
 0x32f   : > { %8125 = vmatprep.mubr.f32.mxu0 %v10465_v60 }
 0x332   : > { %8126 = vmatmul.mubr.f32.gmra.mrb[84].mxu0 %v10461_v63 }
 0x333   : > { %8128 = vmatprep.mubr.f32.mxu0 %v10470_v33 }
 0x336   : > { %8129 = vmatmul.mubr.f32.gmra.mrb[86].mxu0 %v10478_v45 }
 0x337   : > { %8131 = vmatprep.mubr.f32.mxu0 %v10483_v42 }
 0x33a   : > { %8132 = vmatmul.mubr.f32.gmra.mrb[88].mxu0 %v10490_v8 }
 0x33b   : > { %8134 = vmatprep.mubr.f32.mxu0 %v10495_v5 }
 0x33e   : > { %8135 = vmatmul.mubr.f32.gmra.mrb[90].mxu0 %v10502_v16 }
 0x33f   : > { %8137 = vmatprep.mubr.f32.mxu0 %v10507_v12 }
 0x342   : > { %8138 = vmatmul.mubr.f32.gmra.mrb[92].mxu0 %v10514_v22  ;;  %v14644_v22 = vlaneseq }
 0x343   : > { %8140 = vmatprep.mubr.f32.mxu0 %v10519_v19 }
 0x344   : > { %v10669_v9 = vshrl.u32 %v14644_v22, 7 }
 0x346   : > { %8141 = vmatmul.mubr.f32.gmra.mrb[94].mxu0 %v10526_v28  ;;  %15069 = vst [vmem:[#allocation100_spill] sm:$0xff] %v10669_v9  ;;  %v10676_v42 = vsub.s32 0, %v10669_v9 }
 0x347   : > { %8143 = vmatprep.mubr.f32.mxu0 %v10531_v25 }
 0x348   : > { %15071 = vst [vmem:[#allocation102_spill] sm:$0xff] %v10676_v42 }
 0x34a   : > { %8144 = vmatmul.mubr.f32.gmra.mrb[96].mxu0 %v10538_v34 }
 0x34b   : > { %8146 = vmatprep.mubr.f32.mxu0 %v10543_v31 }
 0x34e   : > { %8147 = vmatmul.mubr.f32.gmra.mrb[98].mxu0 %v10550_v40 }
 0x34f   : > { %8149 = vmatprep.mubr.f32.mxu0 %v10555_v37 }
 0x352   : > { %8150 = vmatmul.mubr.f32.gmra.mrb[100].mxu0 %v10562_v46  ;;  %v9558_v46 = vmov 1966171168  }
 0x353   : > { %8152 = vmatprep.mubr.f32.mxu0 %v10567_v43  ;;  %v1888_v16 = vunpack.c.l.s4 %v9558_v46 }
 0x355   : > { %v1889_v11 = vunpack.c.0.s8 %v1888_v16 }
 0x356   : > { %8153 = vmatmul.mubr.f32.gmra.mrb[102].mxu0 %v10574_v52 }
 0x357   : > { %8155 = vmatprep.mubr.f32.mxu0 %v10579_v49  ;;  %v10672_v18 = vsub.s32 %v1889_v11, %v10669_v9 }
 0x359   : > { %15070 = vst [vmem:[#allocation101_spill] sm:$0xff] %v10672_v18 }
 0x35a   : > { %8156 = vmatmul.mubr.f32.gmra.mrb[104].mxu0 %v10586_v58 }
 0x35b   : > { %8158 = vmatprep.mubr.f32.mxu0 %v10591_v55 }
 0x35e   : > { %8159 = vmatmul.mubr.f32.gmra.mrb[106].mxu0 %v10598_v0 }
 0x36a   : > { %v10642_v3 = vpop.f32.mrb[24].mxu1 }
 0x36b   : > { %v1473_v7 = vpop.f32.mrb[25].mxu1 }
 0x36e   : > { %v10644_v61 = vpop.f32.mrb[26].mxu1 }
 0x36f   : > { %v1483_v40 = vpop.f32.mrb[27].mxu1 }
 0x372   : > { %v10646_v31 = vpop.f32.mrb[28].mxu1 }
 0x373   : > { %v10648_v34 = vpop.f32.mrb[29].mxu1 }
 0x376   : > { %v10650_v25 = vpop.f32.mrb[30].mxu1 }
 0x377   : > { %v10652_v52 = vpop.f32.mrb[31].mxu1 }
 0x37a   : > { %v10654_v49 = vpop.f32.mrb[32].mxu1 }
 0x37b   : > { %v10656_v58 = vpop.f32.mrb[33].mxu1 }
 0x37e   : > { %v10658_v55 = vpop.f32.mrb[34].mxu1 }
 0x37f   : > { %v10660_v0 = vpop.f32.mrb[35].mxu1 }
 0x382   : > { %v10662_v43 = vpop.f32.mrb[36].mxu1 }
 0x383   : > { %v10664_v26 = vpop.f32.mrb[37].mxu1 }
 0x386   : > { %v10666_v28 = vpop.f32.mrb[38].mxu1 }
 0x387   : > { %v1543_v19 = vpop.f32.mrb[39].mxu1 }
 0x38a   : > { %v7928_v39 = vpop.f32.mrb[40].mxu1 }
 0x38b   : > { %v1553_v37 = vpop.f32.mrb[41].mxu1 }
 0x38e   : > { %v7931_v12 = vpop.f32.mrb[42].mxu1 }
 0x38f   : > { %v1563_v5 = vpop.f32.mrb[43].mxu1 }
 0x392   : > { %v7934_v29 = vpop.f32.mrb[44].mxu1 }
 0x393   : > { %v1573_v15 = vpop.f32.mrb[45].mxu1 }
 0x395   : > { %v1881_v8 = vpop.f32.mrb[42].mxu0 }
 0x396   : > { %v1882_v54 = vadd.f32 %v7458_v30, %v1881_v8  ;;  %v8032_v20 = vpop.f32.mrb[43].mxu0  ;;  %v7937_v50 = vpop.f32.mrb[46].mxu1 }
 0x397   : > { %v1583_v10 = vpop.f32.mrb[47].mxu1 }
 0x398   : > { %v1893_v46 = vrot.slane %v1882_v54, %v10672_v18  ;;  %v1886_v36 = vcombine.high %v1882_v54, %v1882_v54 }
 0x39a   : > { %v1901_v16 = vcombine.high %v1893_v46, %v1893_v46  ;;  %v1909_v22 = vrot.slane %v1893_v46, %v10672_v18  ;;  %v7940_v13 = vpop.f32.mrb[48].mxu1  ;;  %v1900_v54 = vrot.slane %v1886_v36, %v10672_v18 }
 0x39b   : > { %v1593_v11 = vpop.f32.mrb[49].mxu1 }
 0x39c   : > { %v1923_v53 = vrot.slane %v1901_v16, %v10672_v18  ;;  %v1931_v21 = vcombine.high %v1909_v22, %v1909_v22  ;;  %v1938_v45 = vrot.slane %v1909_v22, %v10676_v42  ;;  %v1902_v1 = vcombine.high %v1900_v54, %v1900_v54 }
 0x39e   : > { %v1933_v30 = vcombine.high %v1923_v53, %v1923_v53  ;;  %v1942_v20 = vrot.slane %v1923_v53, %v10676_v42  ;;  %v1946_v8 = vrot.slane %v1931_v21, %v10676_v42  ;;  %v7943_v23 = vpop.f32.mrb[50].mxu1  ;;  %v1975_v44 = vadd.f32 %v1938_v45, %v1473_v7 }
 0x39f   : > { %v1977_v62 = vadd.f32 %v1938_v45, %v1483_v40  ;;  %v1603_v33 = vpop.f32.mrb[51].mxu1 }
 0x3a0   : > { %v1950_v2 = vrot.slane %v1933_v30, %v10676_v42  ;;  %v10684_v46 = vadd.f32 %v1942_v20, %v1543_v19  ;;  %v10686_v47 = vadd.f32 %v7928_v39, %v1946_v8  ;;  %v10688_v16 = vadd.f32 %v1946_v8, %v1553_v37 }
 0x3a1   : > { %v10690_v24 = vadd.f32 %v7931_v12, %v1946_v8  ;;  %v10693_v22 = vadd.f32 %v1946_v8, %v1563_v5  ;;  %v10695_v53 = vadd.f32 %v7934_v29, %v1946_v8  ;;  %v10697_v21 = vadd.f32 %v1946_v8, %v1573_v15 }
 0x3a2   : > { %v10699_v40 = vadd.f32 %v7937_v50, %v1946_v8  ;;  %v10701_v7 = vadd.f32 %v1946_v8, %v1583_v10  ;;  %v10703_v19 = vadd.f32 %v7940_v13, %v1950_v2  ;;  %v7946_v39 = vpop.f32.mrb[52].mxu1  ;;  %v10705_v30 = vadd.f32 %v1950_v2, %v1593_v11 }
 0x3a3   : > { %v10707_v37 = vadd.f32 %v7943_v23, %v1950_v2  ;;  %v10709_v12 = vadd.f32 %v1950_v2, %v1603_v33  ;;  %v1613_v36 = vpop.f32.mrb[53].mxu1  ;;  %v10711_v5 = vadd.f32 %v7946_v39, %v1950_v2  ;;  %v1976_v15 = vadd.f32 %v10642_v3, %v1938_v45 }
 0x3a4   : > { %v10713_v29 = vadd.f32 %v1950_v2, %v1613_v36  ;;  %v10717_v50 = vrot.slane %v1900_v54, %v10672_v18  ;;  %v1978_v10 = vadd.f32 %v10644_v61, %v1938_v45  ;;  %v1980_v13 = vadd.f32 %v10646_v31, %v1938_v45 }
 0x3a5   : > { %v1979_v11 = vadd.f32 %v1938_v45, %v10648_v34  ;;  %v1982_v33 = vadd.f32 %v10650_v25, %v1938_v45  ;;  %v1981_v8 = vadd.f32 %v1938_v45, %v10652_v52  ;;  %v10725_v39 = vadd.f32 %v10654_v49, %v1942_v20 }
 0x3a6   : > { %v7949_v23 = vpop.f32.mrb[54].mxu1  ;;  %v10730_v57 = vadd.f32 %v1942_v20, %v10656_v58  ;;  %v10733_v61 = vadd.f32 %v10658_v55, %v1942_v20  ;;  %v10738_v34 = vadd.f32 %v1942_v20, %v10660_v0  ;;  %v10741_v25 = vadd.f32 %v10662_v43, %v1942_v20 }
 0x3a7   : > { %v10727_v36 = vadd.f32 %v7949_v23, %v1950_v2  ;;  %v1623_v3 = vpop.f32.mrb[55].mxu1  ;;  %v1954_v45 = vrot.slane %v10717_v50, %v10676_v42  ;;  %v10746_v52 = vadd.f32 %v1942_v20, %v10664_v26  ;;  %v10749_v49 = vadd.f32 %v10666_v28, %v1942_v20 }
 0x3a8   : > { %v10735_v31 = vadd.f32 %v1950_v2, %v1623_v3  ;;  %v10766_v20 = vrot.slane %v1902_v1, %v10672_v18  ;;  %8558 = vtanh.f32 %v1975_v44  ;;  %v10786_v18 = vld [vmem:[#allocation17] ss:$0 sm:$0xff] }
 0x3a9   : > { %8560 = vtanh.f32 %v1977_v62 }
 0x3aa   : > { %v7952_v58 = vpop.f32.mrb[56].mxu1  ;;  %8562 = vtanh.f32 %v1976_v15 }
 0x3ab   : > { %v10751_v55 = vadd.f32 %v7952_v58, %v1954_v45  ;;  %v1633_v2 = vpop.f32.mrb[57].mxu1  ;;  %8564 = vtanh.f32 %v1978_v10 }
 0x3ac   : > { %v10753_v23 = vadd.f32 %v1954_v45, %v1633_v2  ;;  %8566 = vtanh.f32 %v1980_v13 }
 0x3ad   : > { %8568 = vtanh.f32 %v1979_v11 }
 0x3ae   : > { %v7955_v0 = vpop.f32.mrb[58].mxu1  ;;  %8570 = vtanh.f32 %v1982_v33  ;;  %v1932_v33 = vcombine.high %v10717_v50, %v10717_v50 }
 0x3af   : > { %v10755_v3 = vadd.f32 %v7955_v0, %v1954_v45  ;;  %v1643_v43 = vpop.f32.mrb[59].mxu1  ;;  %8572 = vtanh.f32 %v1981_v8 }
 0x3b0   : > { %v10757_v63 = vadd.f32 %v1954_v45, %v1643_v43  ;;  %8574 = vtanh.f32 %v10725_v39 }
 0x3b1   : > { %8576 = vtanh.f32 %v10730_v57 }
 0x3b2   : > { %v7958_v27 = vpop.f32.mrb[60].mxu1  ;;  %8578 = vtanh.f32 %v10733_v61 }
 0x3b3   : > { %v10759_v14 = vadd.f32 %v7958_v27, %v1954_v45  ;;  %v1653_v26 = vpop.f32.mrb[61].mxu1  ;;  %8580 = vtanh.f32 %v10738_v34 }
 0x3b4   : > { %v10761_v60 = vadd.f32 %v1954_v45, %v1653_v26  ;;  %v1958_v26 = vrot.slane %v10766_v20, %v10676_v42  ;;  %8582 = vtanh.f32 %v10741_v25 }
 0x3b5   : > { %v10763_v28 = vpop.f32.mrb[44].mxu0  ;;  %8584 = vtanh.f32 %v10746_v52 }
 0x3b6   : > { %15072 = vst [vmem:[#allocation103_spill] sm:$0xff] %v10763_v28  ;;  %v10768_v58 = vpop.f32.mrb[45].mxu0  ;;  %v7961_v2 = vpop.f32.mrb[62].mxu1  ;;  %8586 = vtanh.f32 %v10684_v46 }
 0x3b7   : > { %15073 = vst [vmem:[#allocation104_spill] sm:$0xff] %v10768_v58  ;;  %v10770_v0 = vadd.f32 %v7961_v2, %v1954_v45  ;;  %v1663_v43 = vpop.f32.mrb[63].mxu1  ;;  %8588 = vtanh.f32 %v10749_v49  ;;  %v1934_v49 = vcombine.high %v10766_v20, %v10766_v20 }
 0x3b8   : > { %v10772_v54 = vadd.f32 %v1954_v45, %v1663_v43 }
 0x3b9   : > { %v10774_v27 = vpop.f32.mrb[46].mxu0 }
 0x3ba   : > { %15074 = vst [vmem:[#allocation105_spill] sm:$0xff] %v10774_v27  ;;  %v10778_v28 = vpop.f32.mrb[47].mxu0  ;;  %v7964_v1 = vpop.f32.mrb[64].mxu1 }
 0x3bb   : > { %15075 = vst [vmem:[#allocation106_spill] sm:$0xff] %v10778_v28  ;;  %v10780_v44 = vadd.f32 %v7964_v1, %v1958_v26  ;;  %v1673_v58 = vpop.f32.mrb[65].mxu1  ;;  %v8559_v27 = vpop.eup %8558  ;;  %8590 = vtanh.f32 %v10686_v47 }
 0x3bc   : > { %v10782_v62 = vadd.f32 %v1958_v26, %v1673_v58  ;;  %v8561_v10 = vpop.eup %8560  ;;  %v2109_v1 = vmul.f32 %v8559_v27, %v10786_v18  ;;  %8592 = vtanh.f32 %v10688_v16 }
 0x3bd   : > { %v10784_v2 = vpop.f32.mrb[48].mxu0  ;;  %v8563_v11 = vpop.eup %8562  ;;  %8594 = vtanh.f32 %v10690_v24 }
 0x3be   : > { %15076 = vst [vmem:[#allocation107_spill] sm:$0xff] %v10784_v2  ;;  %v10788_v45 = vpop.f32.mrb[49].mxu0  ;;  %v7967_v43 = vpop.f32.mrb[66].mxu1  ;;  %v2111_v2 = vmul.f32 %v8561_v10, %v10786_v18  ;;  %2173 = vadd.xlane.f32.xlu0 %v2109_v1  ;;  %v2110_v27 = vmul.f32 %v8563_v11, %v10786_v18 }
 0x3bf   : > { %15077 = vst [vmem:[#allocation108_spill] sm:$0xff] %v10788_v45  ;;  %v10790_v15 = vadd.f32 %v7967_v43, %v1958_v26  ;;  %v1683_v28 = vpop.f32.mrb[67].mxu1  ;;  %v8565_v4 = vpop.eup %8564  ;;  %8596 = vtanh.f32 %v10693_v22 }
 0x3c0   : > { %v10793_v51 = vadd.f32 %v1958_v26, %v1683_v28  ;;  %2177 = vadd.xlane.f32.xlu1 %v2111_v2  ;;  %v2112_v8 = vmul.f32 %v8565_v4, %v10786_v18  ;;  %v1962_v4 = vrot.slane %v1932_v33, %v10676_v42 }
 0x3c1   : > { %v10795_v58 = vpop.f32.mrb[50].mxu0 }
 0x3c2   : > { %15078 = vst [vmem:[#allocation109_spill] sm:$0xff] %v10795_v58  ;;  %v10798_v38 = vpop.f32.mrb[51].mxu0  ;;  %v7970_v13 = vpop.f32.mrb[68].mxu1  ;;  %v9559_v58 = vmov 0   ;;  %2175 = vadd.xlane.f32.xlu0 %v2110_v27 }
 0x3c3   : > { %15079 = vst [vmem:[#allocation110_spill] sm:$0xff] %v10798_v38  ;;  %v10800_v43 = vadd.f32 %v7970_v13, %v1958_v26  ;;  %v1693_v45 = vpop.f32.mrb[69].mxu1  ;;  %8556 = vset.pattern.permute.xlu0 %v9559_v58  ;;  %8557 = vset.pattern.permute.xlu1 %v9559_v58 }
 0x3c4   : > { %v10803_v28 = vadd.f32 %v1958_v26, %v1693_v45  ;;  %v8567_v45 = vpop.eup %8566  ;;  %2179 = vadd.xlane.f32.xlu1 %v2112_v8  ;;  %8598 = vtanh.f32 %v10695_v53 }
 0x3c5   : > { %v10805_v17 = vpop.f32.mrb[52].mxu0  ;;  %v8569_v11 = vpop.eup %8568  ;;  %v2114_v50 = vmul.f32 %v8567_v45, %v10786_v18  ;;  %8600 = vtanh.f32 %v10697_v21 }
 0x3c6   : > { %15080 = vst [vmem:[#allocation111_spill] sm:$0xff] %v10805_v17  ;;  %v10811_v2 = vpop.f32.mrb[53].mxu0  ;;  %v7973_v10 = vpop.f32.mrb[70].mxu1  ;;  %v2113_v39 = vmul.f32 %v8569_v11, %v10786_v18 }
 0x3c7   : > { %15081 = vst [vmem:[#allocation112_spill] sm:$0xff] %v10811_v2  ;;  %v10814_v1 = vadd.f32 %v7973_v10, %v1958_v26  ;;  %v1703_v13 = vpop.f32.mrb[71].mxu1  ;;  %v8571_v8 = vpop.eup %8570  ;;  %8602 = vtanh.f32 %v10699_v40 }
 0x3c8   : > { %v10816_v58 = vadd.f32 %v1958_v26, %v1703_v13  ;;  %2183 = vadd.xlane.f32.xlu1 %v2114_v50  ;;  %2181 = vadd.xlane.f32.xlu0 %v2113_v39  ;;  %v8573_v13 = vpop.eup %8572  ;;  %v2116_v45 = vmul.f32 %v8571_v8, %v10786_v18  ;;  %8604 = vtanh.f32 %v10701_v7 }
 0x3c9   : > { %v10818_v17 = vpop.f32.mrb[54].mxu0  ;;  %v2115_v61 = vmul.f32 %v8573_v13, %v10786_v18  ;;  %v8575_v50 = vpop.eup %8574  ;;  %8606 = vtanh.f32 %v10703_v19 }
 0x3ca   : > { %15082 = vst [vmem:[#allocation113_spill] sm:$0xff] %v10818_v17  ;;  %v10824_v57 = vpop.f32.mrb[55].mxu0  ;;  %v7976_v27 = vpop.f32.mrb[72].mxu1  ;;  %v2118_v25 = vmul.f32 %v8575_v50, %v10786_v18 }
 0x3cb   : > { %15083 = vst [vmem:[#allocation114_spill] sm:$0xff] %v10824_v57  ;;  %v10827_v26 = vadd.f32 %v7976_v27, %v1962_v4  ;;  %v1713_v10 = vpop.f32.mrb[73].mxu1 }
 0x3cc   : > { %v10829_v17 = vadd.f32 %v1962_v4, %v1713_v10  ;;  %2187 = vadd.xlane.f32.xlu1 %v2116_v45  ;;  %2185 = vadd.xlane.f32.xlu0 %v2115_v61  ;;  %v8577_v10 = vpop.eup %8576  ;;  %8608 = vtanh.f32 %v10705_v30 }
 0x3cd   : > { %v10831_v33 = vpop.f32.mrb[56].mxu0  ;;  %v2117_v13 = vmul.f32 %v8577_v10, %v10786_v18  ;;  %v8579_v61 = vpop.eup %8578  ;;  %8610 = vtanh.f32 %v10707_v37 }
 0x3ce   : > { %15084 = vst [vmem:[#allocation115_spill] sm:$0xff] %v10831_v33  ;;  %v10836_v11 = vpop.f32.mrb[57].mxu0  ;;  %v7979_v34 = vpop.f32.mrb[74].mxu1  ;;  %v2120_v10 = vmul.f32 %v8579_v61, %v10786_v18  ;;  %v1966_v61 = vrot.slane %v1934_v49, %v10676_v42  ;;  %v2440_v42 = vand.u32 127, %v15150_v32 }
 0x3cf   : > { %15085 = vst [vmem:[#allocation116_spill] sm:$0xff] %v10836_v11  ;;  %v10839_v39 = vadd.f32 %v7979_v34, %v1962_v4  ;;  %v1723_v27 = vpop.f32.mrb[75].mxu1 }
 0x3d0   : > { %v10842_v33 = vadd.f32 %v1962_v4, %v1723_v27  ;;  %2191 = vadd.xlane.f32.xlu1 %v2118_v25  ;;  %2189 = vadd.xlane.f32.xlu0 %v2117_v13  ;;  %v8581_v27 = vpop.eup %8580  ;;  %8612 = vtanh.f32 %v10709_v12 }
 0x3d1   : > { %v10844_v8 = vpop.f32.mrb[58].mxu0  ;;  %v8583_v13 = vpop.eup %8582  ;;  %8614 = vtanh.f32 %v10711_v5 }
 0x3d2   : > { %15086 = vst [vmem:[#allocation117_spill] sm:$0xff] %v10844_v8  ;;  %v10849_v52 = vpop.f32.mrb[59].mxu0  ;;  %v7982_v45 = vpop.f32.mrb[76].mxu1 }
 0x3d3   : > { %15087 = vst [vmem:[#allocation118_spill] sm:$0xff] %v10849_v52  ;;  %v10852_v34 = vadd.f32 %v7982_v45, %v1962_v4  ;;  %v1733_v46 = vpop.f32.mrb[77].mxu1  ;;  %v2119_v52 = vmul.f32 %v8581_v27, %v10786_v18  ;;  %v2122_v27 = vmul.f32 %v8583_v13, %v10786_v18 }
 0x3d4   : > { %v10855_v8 = vadd.f32 %v1962_v4, %v1733_v46  ;;  %2195 = vadd.xlane.f32.xlu1 %v2120_v10  ;;  %v8585_v46 = vpop.eup %8584  ;;  %8616 = vtanh.f32 %v10713_v29 }
 0x3d5   : > { %v10857_v50 = vpop.f32.mrb[60].mxu0  ;;  %2193 = vadd.xlane.f32.xlu0 %v2119_v52  ;;  %v8587_v24 = vpop.eup %8586  ;;  %8618 = vtanh.f32 %v10727_v36 }
 0x3d6   : > { %15088 = vst [vmem:[#allocation119_spill] sm:$0xff] %v10857_v50  ;;  %v10863_v47 = vpop.f32.mrb[61].mxu0  ;;  %v7985_v25 = vpop.f32.mrb[78].mxu1 }
 0x3d7   : > { %15089 = vst [vmem:[#allocation120_spill] sm:$0xff] %v10863_v47  ;;  %v10866_v16 = vadd.f32 %v7985_v25, %v1962_v4  ;;  %v1743_v45 = vpop.f32.mrb[79].mxu1  ;;  %v2121_v47 = vmul.f32 %v8585_v46, %v10786_v18  ;;  %v8589_v10 = vpop.eup %8588  ;;  %v2123_v46 = vmul.f32 %v8587_v24, %v10786_v18  ;;  %8620 = vtanh.f32 %v10735_v31 }
 0x3d8   : > { %v10869_v50 = vadd.f32 %v1962_v4, %v1743_v45  ;;  %2199 = vadd.xlane.f32.xlu1 %v2122_v27  ;;  %v8591_v13 = vpop.eup %8590  ;;  %v2124_v45 = vmul.f32 %v8589_v10, %v10786_v18  ;;  %8622 = vtanh.f32 %v10751_v55 }
 0x3d9   : > { %v10871_v20 = vpop.f32.mrb[62].mxu0  ;;  %2197 = vadd.xlane.f32.xlu0 %v2121_v47  ;;  %v2126_v24 = vmul.f32 %v8591_v13, %v10786_v18 }
 0x3da   : > { %15090 = vst [vmem:[#allocation121_spill] sm:$0xff] %v10871_v20  ;;  %v10876_v11 = vpop.f32.mrb[63].mxu0  ;;  %v7988_v52 = vpop.f32.mrb[80].mxu1 }
 0x3db   : > { %15091 = vst [vmem:[#allocation122_spill] sm:$0xff] %v10876_v11  ;;  %v10879_v22 = vadd.f32 %v7988_v52, %v1966_v61  ;;  %v1753_v4 = vpop.f32.mrb[81].mxu1  ;;  %v8593_v20 = vpop.eup %8592  ;;  %8624 = vtanh.f32 %v10753_v23 }
 0x3dc   : > { %v10882_v25 = vadd.f32 %v1966_v61, %v1753_v4  ;;  %2203 = vadd.xlane.f32.xlu1 %v2124_v45  ;;  %v8595_v10 = vpop.eup %8594  ;;  %v2125_v4 = vmul.f32 %v8593_v20, %v10786_v18  ;;  %8626 = vtanh.f32 %v10755_v3 }
 0x3dd   : > { %v10884_v49 = vpop.f32.mrb[64].mxu0  ;;  %2201 = vadd.xlane.f32.xlu0 %v2123_v46  ;;  %v2128_v20 = vmul.f32 %v8595_v10, %v10786_v18 }
 0x3de   : > { %15092 = vst [vmem:[#allocation123_spill] sm:$0xff] %v10884_v49  ;;  %v10888_v11 = vpop.f32.mrb[65].mxu0  ;;  %v7991_v53 = vpop.f32.mrb[82].mxu1 }
 0x3df   : > { %15093 = vst [vmem:[#allocation124_spill] sm:$0xff] %v10888_v11  ;;  %v10891_v47 = vadd.f32 %v7991_v53, %v1966_v61  ;;  %v1763_v21 = vpop.f32.mrb[83].mxu1  ;;  %v8597_v49 = vpop.eup %8596  ;;  %8628 = vtanh.f32 %v10757_v63 }
 0x3e0   : > { %v10894_v27 = vadd.f32 %v1966_v61, %v1763_v21  ;;  %2207 = vadd.xlane.f32.xlu1 %v2126_v24  ;;  %v8599_v13 = vpop.eup %8598  ;;  %v2127_v21 = vmul.f32 %v8597_v49, %v10786_v18  ;;  %8630 = vtanh.f32 %v10759_v14 }
 0x3e1   : > { %v10896_v52 = vpop.f32.mrb[66].mxu0  ;;  %2205 = vadd.xlane.f32.xlu0 %v2125_v4  ;;  %v2130_v49 = vmul.f32 %v8599_v13, %v10786_v18 }
 0x3e2   : > { %15094 = vst [vmem:[#allocation125_spill] sm:$0xff] %v10896_v52  ;;  %v10900_v11 = vpop.f32.mrb[67].mxu0  ;;  %v7994_v40 = vpop.f32.mrb[84].mxu1 }
 0x3e3   : > { %15095 = vst [vmem:[#allocation126_spill] sm:$0xff] %v10900_v11  ;;  %v10903_v45 = vadd.f32 %v7994_v40, %v1966_v61  ;;  %v1773_v7 = vpop.f32.mrb[85].mxu1  ;;  %v8601_v52 = vpop.eup %8600  ;;  %8632 = vtanh.f32 %v10761_v60 }
 0x3e4   : > { %v10906_v46 = vadd.f32 %v1966_v61, %v1773_v7  ;;  %2211 = vadd.xlane.f32.xlu1 %v2128_v20  ;;  %v8603_v10 = vpop.eup %8602  ;;  %v2129_v7 = vmul.f32 %v8601_v52, %v10786_v18  ;;  %8634 = vtanh.f32 %v10770_v0 }
 0x3e5   : > { %v10908_v53 = vpop.f32.mrb[68].mxu0  ;;  %2209 = vadd.xlane.f32.xlu0 %v2127_v21 }
 0x3e6   : > { %15096 = vst [vmem:[#allocation127_spill] sm:$0xff] %v10908_v53  ;;  %v10912_v11 = vpop.f32.mrb[69].mxu0  ;;  %v7997_v19 = vpop.f32.mrb[86].mxu1 }
 0x3e7   : > { %15097 = vst [vmem:[#allocation128_spill] sm:$0xff] %v10912_v11  ;;  %v10915_v24 = vadd.f32 %v7997_v19, %v1966_v61  ;;  %v1783_v30 = vpop.f32.mrb[87].mxu1  ;;  %v8605_v11 = vpop.eup %8604  ;;  %8636 = vtanh.f32 %v10772_v54 }
 0x3e8   : > { %v10918_v4 = vadd.f32 %v1966_v61, %v1783_v30  ;;  %2215 = vadd.xlane.f32.xlu1 %v2130_v49  ;;  %v8607_v12 = vpop.eup %8606  ;;  %v2132_v61 = vmul.f32 %v8603_v10, %v10786_v18  ;;  %v2131_v20 = vmul.f32 %v8605_v11, %v10786_v18  ;;  %8638 = vtanh.f32 %v10780_v44 }
 0x3e9   : > { %v10920_v40 = vpop.f32.mrb[70].mxu0  ;;  %2213 = vadd.xlane.f32.xlu0 %v2129_v7  ;;  %v8609_v13 = vpop.eup %8608  ;;  %v2134_v29 = vmul.f32 %v8607_v12, %v10786_v18  ;;  %8640 = vtanh.f32 %v10782_v62 }
 0x3ea   : > { %15098 = vst [vmem:[#allocation129_spill] sm:$0xff] %v10920_v40  ;;  %v10924_v53 = vpop.f32.mrb[71].mxu0  ;;  %v8611_v52 = vpop.eup %8610  ;;  %v2133_v19 = vmul.f32 %v8609_v13, %v10786_v18  ;;  %8642 = vtanh.f32 %v10790_v15 }
 0x3eb   : > { %15099 = vst [vmem:[#allocation130_spill] sm:$0xff] %v10924_v53  ;;  %v8613_v10 = vpop.eup %8612  ;;  %v2136_v31 = vmul.f32 %v8611_v52, %v10786_v18  ;;  %8644 = vtanh.f32 %v10793_v51 }
 0x3ec   : > { %2219 = vadd.xlane.f32.xlu1 %v2132_v61  ;;  %v8615_v11 = vpop.eup %8614  ;;  %v2135_v49 = vmul.f32 %v8613_v10, %v10786_v18  ;;  %8646 = vtanh.f32 %v10800_v43 }
 0x3ed   : > { %v10928_v37 = vpop.f32.mrb[72].mxu0  ;;  %2217 = vadd.xlane.f32.xlu0 %v2131_v20  ;;  %v8617_v12 = vpop.eup %8616  ;;  %v2138_v23 = vmul.f32 %v8615_v11, %v10786_v18  ;;  %8648 = vtanh.f32 %v10803_v28 }
 0x3ee   : > { %15100 = vst [vmem:[#allocation131_spill] sm:$0xff] %v10928_v37  ;;  %v10932_v21 = vpop.f32.mrb[73].mxu0  ;;  %v8619_v61 = vpop.eup %8618  ;;  %v2137_v20 = vmul.f32 %v8617_v12, %v10786_v18  ;;  %8650 = vtanh.f32 %v10814_v1 }
 0x3ef   : > { %15101 = vst [vmem:[#allocation132_spill] sm:$0xff] %v10932_v21  ;;  %v8621_v52 = vpop.eup %8620  ;;  %v2140_v63 = vmul.f32 %v8619_v61, %v10786_v18  ;;  %8652 = vtanh.f32 %v10816_v58 }
 0x3f0   : > { %2223 = vadd.xlane.f32.xlu1 %v2134_v29  ;;  %v8623_v29 = vpop.eup %8622  ;;  %8654 = vtanh.f32 %v10827_v26 }
 0x3f1   : > { %v10936_v5 = vpop.f32.mrb[74].mxu0  ;;  %2221 = vadd.xlane.f32.xlu0 %v2133_v19  ;;  %v2139_v19 = vmul.f32 %v8621_v52, %v10786_v18  ;;  %v8625_v11 = vpop.eup %8624  ;;  %v2142_v60 = vmul.f32 %v8623_v29, %v10786_v18  ;;  %8656 = vtanh.f32 %v10829_v17 }
 0x3f2   : > { %15102 = vst [vmem:[#allocation133_spill] sm:$0xff] %v10936_v5  ;;  %v10940_v30 = vpop.f32.mrb[75].mxu0 }
 0x3f3   : > { %15103 = vst [vmem:[#allocation134_spill] sm:$0xff] %v10940_v30 }
 0x3f4   : > { %2227 = vadd.xlane.f32.xlu1 %v2136_v31  ;;  %v8627_v31 = vpop.eup %8626  ;;  %8658 = vtanh.f32 %v10839_v39 }
 0x3f5   : > { %v10944_v36 = vpop.f32.mrb[76].mxu0  ;;  %2225 = vadd.xlane.f32.xlu0 %v2135_v49  ;;  %v2141_v49 = vmul.f32 %v8625_v11, %v10786_v18  ;;  %v8629_v61 = vpop.eup %8628  ;;  %v2144_v54 = vmul.f32 %v8627_v31, %v10786_v18  ;;  %8660 = vtanh.f32 %v10842_v33 }
 0x3f6   : > { %15104 = vst [vmem:[#allocation135_spill] sm:$0xff] %v10944_v36  ;;  %v10948_v7 = vpop.f32.mrb[77].mxu0 }
 0x3f7   : > { %15105 = vst [vmem:[#allocation136_spill] sm:$0xff] %v10948_v7 }
 0x3f8   : > { %2231 = vadd.xlane.f32.xlu1 %v2138_v23  ;;  %v8631_v23 = vpop.eup %8630  ;;  %8662 = vtanh.f32 %v10852_v34 }
 0x3f9   : > { %v10952_v55 = vpop.f32.mrb[78].mxu0  ;;  %2229 = vadd.xlane.f32.xlu0 %v2137_v20  ;;  %v2143_v20 = vmul.f32 %v8629_v61, %v10786_v18  ;;  %v8633_v29 = vpop.eup %8632  ;;  %v2146_v62 = vmul.f32 %v8631_v23, %v10786_v18  ;;  %8664 = vtanh.f32 %v10855_v8 }
 0x3fa   : > { %15106 = vst [vmem:[#allocation137_spill] sm:$0xff] %v10952_v55  ;;  %v10956_v13 = vpop.f32.mrb[79].mxu0 }
 0x3fb   : > { %15107 = vst [vmem:[#allocation138_spill] sm:$0xff] %v10956_v13 }
 0x3fc   : > { %2235 = vadd.xlane.f32.xlu1 %v2140_v63  ;;  %v8635_v63 = vpop.eup %8634  ;;  %8666 = vtanh.f32 %v10866_v16 }
 0x3fd   : > { %v10960_v3 = vpop.f32.mrb[80].mxu0  ;;  %2233 = vadd.xlane.f32.xlu0 %v2139_v19  ;;  %v2145_v19 = vmul.f32 %v8633_v29, %v10786_v18  ;;  %v8637_v31 = vpop.eup %8636  ;;  %v2148_v51 = vmul.f32 %v8635_v63, %v10786_v18  ;;  %8668 = vtanh.f32 %v10869_v50 }
 0x3fe   : > { %15108 = vst [vmem:[#allocation139_spill] sm:$0xff] %v10960_v3  ;;  %v10964_v10 = vpop.f32.mrb[81].mxu0 }
 0x3ff   : > { %15109 = vst [vmem:[#allocation140_spill] sm:$0xff] %v10964_v10 }
 0x400   : > { %2239 = vadd.xlane.f32.xlu1 %v2142_v60  ;;  %v8639_v60 = vpop.eup %8638  ;;  %8670 = vtanh.f32 %v10879_v22 }
 0x401   : > { %v10968_v14 = vpop.f32.mrb[82].mxu0  ;;  %2237 = vadd.xlane.f32.xlu0 %v2141_v49  ;;  %v2147_v49 = vmul.f32 %v8637_v31, %v10786_v18  ;;  %v8641_v23 = vpop.eup %8640  ;;  %v2150_v28 = vmul.f32 %v8639_v60, %v10786_v18  ;;  %8672 = vtanh.f32 %v10882_v25 }
 0x402   : > { %15110 = vst [vmem:[#allocation141_spill] sm:$0xff] %v10968_v14  ;;  %v10972_v12 = vpop.f32.mrb[83].mxu0 }
 0x403   : > { %15111 = vst [vmem:[#allocation142_spill] sm:$0xff] %v10972_v12 }
 0x404   : > { %2243 = vadd.xlane.f32.xlu1 %v2144_v54  ;;  %v8643_v54 = vpop.eup %8642  ;;  %8674 = vtanh.f32 %v10891_v47 }
 0x405   : > { %v10976_v0 = vpop.f32.mrb[84].mxu0  ;;  %2241 = vadd.xlane.f32.xlu0 %v2143_v20  ;;  %v2149_v20 = vmul.f32 %v8641_v23, %v10786_v18  ;;  %v8645_v63 = vpop.eup %8644  ;;  %v2152_v58 = vmul.f32 %v8643_v54, %v10786_v18  ;;  %8676 = vtanh.f32 %v10894_v27 }
 0x406   : > { %15112 = vst [vmem:[#allocation143_spill] sm:$0xff] %v10976_v0  ;;  %v10980_v52 = vpop.f32.mrb[85].mxu0 }
 0x407   : > { %15113 = vst [vmem:[#allocation144_spill] sm:$0xff] %v10980_v52 }
 0x408   : > { %2247 = vadd.xlane.f32.xlu1 %v2146_v62  ;;  %v8647_v62 = vpop.eup %8646  ;;  %8678 = vtanh.f32 %v10903_v45 }
 0x409   : > { %v10984_v44 = vpop.f32.mrb[86].mxu0  ;;  %2245 = vadd.xlane.f32.xlu0 %v2145_v19  ;;  %v2151_v19 = vmul.f32 %v8645_v63, %v10786_v18  ;;  %v8649_v60 = vpop.eup %8648  ;;  %v2154_v17 = vmul.f32 %v8647_v62, %v10786_v18  ;;  %8680 = vtanh.f32 %v10906_v46 }
 0x40a   : > { %15114 = vst [vmem:[#allocation145_spill] sm:$0xff] %v10984_v44  ;;  %v10988_v11 = vpop.f32.mrb[87].mxu0 }
 0x40b   : > { %15115 = vst [vmem:[#allocation146_spill] sm:$0xff] %v10988_v11 }
 0x40c   : > { %2251 = vadd.xlane.f32.xlu1 %v2148_v51  ;;  %v8651_v51 = vpop.eup %8650  ;;  %8682 = vtanh.f32 %v10918_v4 }
 0x40d   : > { %v10992_v15 = vpop.f32.mrb[88].mxu0  ;;  %2249 = vadd.xlane.f32.xlu0 %v2147_v49  ;;  %v2153_v49 = vmul.f32 %v8649_v60, %v10786_v18  ;;  %v8653_v54 = vpop.eup %8652  ;;  %v2156_v33 = vmul.f32 %v8651_v51, %v10786_v18  ;;  %8684 = vtanh.f32 %v10915_v24 }
 0x40e   : > { %15116 = vst [vmem:[#allocation147_spill] sm:$0xff] %v10992_v15  ;;  %v10996_v61 = vpop.f32.mrb[89].mxu0 }
 0x40f   : > { %15117 = vst [vmem:[#allocation148_spill] sm:$0xff] %v10996_v61 }
 0x410   : > { %2255 = vadd.xlane.f32.xlu1 %v2150_v28  ;;  %v8655_v28 = vpop.eup %8654 }
 0x411   : > { %v11000_v43 = vpop.f32.mrb[90].mxu0  ;;  %2253 = vadd.xlane.f32.xlu0 %v2149_v20  ;;  %v2155_v20 = vmul.f32 %v8653_v54, %v10786_v18  ;;  %v8657_v62 = vpop.eup %8656  ;;  %v2158_v8 = vmul.f32 %v8655_v28, %v10786_v18 }
 0x412   : > { %15118 = vst [vmem:[#allocation149_spill] sm:$0xff] %v11000_v43  ;;  %v11004_v29 = vpop.f32.mrb[91].mxu0 }
 0x413   : > { %15119 = vst [vmem:[#allocation150_spill] sm:$0xff] %v11004_v29 }
 0x414   : > { %2259 = vadd.xlane.f32.xlu1 %v2152_v58  ;;  %v8659_v58 = vpop.eup %8658 }
 0x415   : > { %v11008_v1 = vpop.f32.mrb[92].mxu0  ;;  %2257 = vadd.xlane.f32.xlu0 %v2151_v19  ;;  %v2157_v19 = vmul.f32 %v8657_v62, %v10786_v18  ;;  %v8661_v51 = vpop.eup %8660  ;;  %v2160_v50 = vmul.f32 %v8659_v58, %v10786_v18 }
 0x416   : > { %15120 = vst [vmem:[#allocation151_spill] sm:$0xff] %v11008_v1  ;;  %v11012_v31 = vpop.f32.mrb[93].mxu0 }
 0x417   : > { %15121 = vst [vmem:[#allocation152_spill] sm:$0xff] %v11012_v31 }
 0x418   : > { %2263 = vadd.xlane.f32.xlu1 %v2154_v17  ;;  %v8663_v17 = vpop.eup %8662 }
 0x419   : > { %v11016_v26 = vpop.f32.mrb[94].mxu0  ;;  %2261 = vadd.xlane.f32.xlu0 %v2153_v49  ;;  %v2159_v49 = vmul.f32 %v8661_v51, %v10786_v18  ;;  %v8665_v28 = vpop.eup %8664  ;;  %v2162_v25 = vmul.f32 %v8663_v17, %v10786_v18 }
 0x41a   : > { %15122 = vst [vmem:[#allocation153_spill] sm:$0xff] %v11016_v26  ;;  %v11020_v23 = vpop.f32.mrb[95].mxu0 }
 0x41b   : > { %15123 = vst [vmem:[#allocation154_spill] sm:$0xff] %v11020_v23 }
 0x41c   : > { %2267 = vadd.xlane.f32.xlu1 %v2156_v33  ;;  %v8667_v33 = vpop.eup %8666 }
 0x41d   : > { %v11024_v39 = vpop.f32.mrb[96].mxu0  ;;  %2265 = vadd.xlane.f32.xlu0 %v2155_v20  ;;  %v2161_v20 = vmul.f32 %v8665_v28, %v10786_v18  ;;  %v8669_v58 = vpop.eup %8668  ;;  %v2164_v27 = vmul.f32 %v8667_v33, %v10786_v18 }
 0x41e   : > { %15124 = vst [vmem:[#allocation155_spill] sm:$0xff] %v11024_v39  ;;  %v11028_v63 = vpop.f32.mrb[97].mxu0 }
 0x41f   : > { %15125 = vst [vmem:[#allocation156_spill] sm:$0xff] %v11028_v63 }
 0x420   : > { %2271 = vadd.xlane.f32.xlu1 %v2158_v8  ;;  %v8671_v8 = vpop.eup %8670 }
 0x421   : > { %v11032_v34 = vpop.f32.mrb[98].mxu0  ;;  %2269 = vadd.xlane.f32.xlu0 %v2157_v19  ;;  %v2163_v19 = vmul.f32 %v8669_v58, %v10786_v18  ;;  %v8673_v17 = vpop.eup %8672 }
 0x422   : > { %15126 = vst [vmem:[#allocation157_spill] sm:$0xff] %v11032_v34  ;;  %v11036_v60 = vpop.f32.mrb[99].mxu0  ;;  %v8675_v45 = vpop.eup %8674  ;;  %v2165_v46 = vmul.f32 %v8673_v17, %v10786_v18 }
 0x423   : > { %15127 = vst [vmem:[#allocation158_spill] sm:$0xff] %v11036_v60 }
 0x424   : > { %2275 = vadd.xlane.f32.xlu1 %v2160_v50 }
 0x425   : > { %v11040_v16 = vpop.f32.mrb[100].mxu0  ;;  %2273 = vadd.xlane.f32.xlu0 %v2159_v49  ;;  %v2166_v49 = vmul.f32 %v8671_v8, %v10786_v18 }
 0x426   : > { %15128 = vst [vmem:[#allocation159_spill] sm:$0xff] %v11040_v16  ;;  %v11044_v54 = vpop.f32.mrb[101].mxu0 }
 0x427   : > { %15129 = vst [vmem:[#allocation160_spill] sm:$0xff] %v11044_v54 }
 0x428   : > { %2279 = vadd.xlane.f32.xlu1 %v2162_v25  ;;  %v8677_v25 = vpop.eup %8676 }
 0x429   : > { %v11048_v22 = vpop.f32.mrb[102].mxu0  ;;  %2277 = vadd.xlane.f32.xlu0 %v2161_v20  ;;  %v8679_v33 = vpop.eup %8678  ;;  %v2168_v20 = vmul.f32 %v8675_v45, %v10786_v18  ;;  %v2167_v58 = vmul.f32 %v8677_v25, %v10786_v18  ;;  %v7460_v45 = vld [vmem:[#allocation19] ss:$0 sm:$0xff] }
 0x42a   : > { %15130 = vst [vmem:[#allocation161_spill] sm:$0xff] %v11048_v22  ;;  %v11052_v62 = vpop.f32.mrb[103].mxu0  ;;  %v8681_v4 = vpop.eup %8680 }
 0x42b   : > { %15131 = vst [vmem:[#allocation162_spill] sm:$0xff] %v11052_v62  ;;  %v2169_v8 = vmul.f32 %v8681_v4, %v10786_v18 }
 0x42c   : > { %2283 = vadd.xlane.f32.xlu1 %v2164_v27  ;;  %v2170_v27 = vmul.f32 %v8679_v33, %v10786_v18 }
 0x42d   : > { %v11056_v47 = vpop.f32.mrb[104].mxu0  ;;  %2281 = vadd.xlane.f32.xlu0 %v2163_v19  ;;  %v8683_v19 = vpop.eup %8682 }
 0x42e   : > { %15132 = vst [vmem:[#allocation163_spill] sm:$0xff] %v11056_v47  ;;  %v11060_v51 = vpop.f32.mrb[105].mxu0  ;;  %v2171_v17 = vmul.f32 %v8683_v19, %v10786_v18 }
 0x42f   : > { %15133 = vst [vmem:[#allocation164_spill] sm:$0xff] %v11060_v51 }
 0x430   : > { %2287 = vadd.xlane.f32.xlu1 %v2166_v49  ;;  %v8685_v49 = vpop.eup %8684 }
 0x431   : > { %v11063_v50 = vpop.f32.mrb[106].mxu0  ;;  %2285 = vadd.xlane.f32.xlu0 %v2165_v46  ;;  %v2172_v24 = vmul.f32 %v8685_v49, %v10786_v18 }
 0x432   : > { %15134 = vst [vmem:[#allocation165_spill] sm:$0xff] %v11063_v50  ;;  %v11067_v28 = vpop.f32.mrb[107].mxu0 }
 0x433   : > { %15135 = vst [vmem:[#allocation166_spill] sm:$0xff] %v11067_v28 }
 0x434   : > { %2291 = vadd.xlane.f32.xlu1 %v2168_v20 }
 0x435   : > { %2289 = vadd.xlane.f32.xlu0 %v2167_v58 }
 0x438   : > { %2295 = vadd.xlane.f32.xlu1 %v2170_v27 }
 0x439   : > { %2293 = vadd.xlane.f32.xlu0 %v2169_v8 }
 0x43c   : > { %2297 = vadd.xlane.f32.xlu1 %v2171_v17 }
 0x440   : > { %2299 = vadd.xlane.f32.xlu1 %v2172_v24 }
 0x44b   : > { %v11076_v46 = vpop.xlane.xlu0 %2173 }
 0x44d   : > { %v11078_v25 = vpop.xlane.xlu1 %2177 }
 0x44f   : > { %2308 = vperm.xlu0 %8556, %v7460_v45   ;;  %v11080_v20 = vpop.xlane.xlu0 %2175 }
 0x451   : > { %v11082_v33 = vpop.xlane.xlu1 %2179 }
 0x455   : > { %v11084_v58 = vpop.xlane.xlu1 %2183  ;;  %v11086_v4 = vpop.xlane.xlu0 %2181 }
 0x459   : > { %v11088_v27 = vpop.xlane.xlu1 %2187  ;;  %v11090_v8 = vpop.xlane.xlu0 %2185 }
 0x45d   : > { %v11092_v18 = vpop.xlane.xlu1 %2191  ;;  %v11094_v19 = vpop.xlane.xlu0 %2189 }
 0x461   : > { %v11096_v17 = vpop.xlane.xlu1 %2195 }
 0x462   : > { %v11098_v49 = vpop.xlane.xlu0 %2193 }
 0x465   : > { %v11100_v24 = vpop.xlane.xlu1 %2199 }
 0x466   : > { %v11102_v45 = vpop.xlane.xlu0 %2197 }
 0x469   : > { %v11104_v50 = vpop.xlane.xlu1 %2203 }
 0x46a   : > { %v11106_v28 = vpop.xlane.xlu0 %2201 }
 0x46d   : > { %v11108_v47 = vpop.xlane.xlu1 %2207 }
 0x46e   : > { %v11110_v51 = vpop.xlane.xlu0 %2205 }
 0x471   : > { %v11112_v22 = vpop.xlane.xlu1 %2211 }
 0x472   : > { %v11114_v62 = vpop.xlane.xlu0 %2209 }
 0x475   : > { %v11116_v16 = vpop.xlane.xlu1 %2215 }
 0x476   : > { %v11118_v34 = vpop.xlane.xlu0 %2213 }
 0x479   : > { %v11120_v60 = vpop.xlane.xlu1 %2219 }
 0x47a   : > { %v11122_v43 = vpop.xlane.xlu0 %2217 }
 0x47d   : > { %v11124_v39 = vpop.xlane.xlu1 %2223 }
 0x47e   : > { %v11126_v63 = vpop.xlane.xlu0 %2221 }
 0x481   : > { %v11128_v29 = vpop.xlane.xlu1 %2227 }
 0x482   : > { %v11130_v15 = vpop.xlane.xlu0 %2225 }
 0x485   : > { %v11132_v54 = vpop.xlane.xlu1 %2231 }
 0x486   : > { %v11134_v61 = vpop.xlane.xlu0 %2229 }
 0x489   : > { %v11136_v23 = vpop.xlane.xlu1 %2235 }
 0x48a   : > { %v11138_v26 = vpop.xlane.xlu0 %2233 }
 0x48d   : > { %v11140_v31 = vpop.xlane.xlu1 %2239 }
 0x48e   : > { %v11142_v44 = vpop.xlane.xlu0 %2237 }
 0x491   : > { %v11144_v52 = vpop.xlane.xlu1 %2243 }
 0x492   : > { %v11146_v1 = vpop.xlane.xlu0 %2241 }
 0x495   : > { %v11148_v11 = vpop.xlane.xlu1 %2247 }
 0x496   : > { %v11150_v5 = vpop.xlane.xlu0 %2245 }
 0x499   : > { %v11152_v0 = vpop.xlane.xlu1 %2251 }
 0x49a   : > { %v11154_v37 = vpop.xlane.xlu0 %2249 }
 0x49d   : > { %v11156_v30 = vpop.xlane.xlu1 %2255 }
 0x49e   : > { %v11158_v40 = vpop.xlane.xlu0 %2253 }
 0x4a1   : > { %v11160_v21 = vpop.xlane.xlu1 %2259 }
 0x4a2   : > { %v11162_v53 = vpop.xlane.xlu0 %2257 }
 0x4a5   : > { %v11164_v14 = vpop.xlane.xlu1 %2263 }
 0x4a6   : > { %v11166_v12 = vpop.xlane.xlu0 %2261 }
 0x4a9   : > { %v11168_v3 = vpop.xlane.xlu1 %2267 }
 0x4aa   : > { %15136 = vst [vmem:[#allocation167_spill] sm:$0xff] %v11168_v3  ;;  %v11170_v10 = vpop.xlane.xlu0 %2265 }
 0x4ad   : > { %v11172_v13 = vpop.xlane.xlu1 %2271 }
 0x4ae   : > { %15137 = vst [vmem:[#allocation168_spill] sm:$0xff] %v11172_v13  ;;  %v11174_v55 = vpop.xlane.xlu0 %2269  ;;  %v2473_v13 = vadd.s32 4294967256, %v2440_v42 }
 0x4af   : > { %15138 = vst [vmem:[#allocation169_spill] sm:$0xff] %v11174_v55  ;;  %v2487_v55 = vadd.s32 4294967240, %v2440_v42 }
 0x4b0   : > { %v11221_v3 = vsub.s32 %v2473_v13, %v10669_v9 }
 0x4b1   : > { %v11176_v7 = vpop.xlane.xlu1 %2275 }
 0x4b2   : > { %15139 = vst [vmem:[#allocation170_spill] sm:$0xff] %v11176_v7  ;;  %v11178_v36 = vpop.xlane.xlu0 %2273  ;;  %15158 = vst [vmem:[#allocation188_spill] sm:$0xff] %v11221_v3 }
 0x4b3   : > { %15140 = vst [vmem:[#allocation171_spill] sm:$0xff] %v11178_v36  ;;  %v2459_v36 = vadd.s32 4294967272, %v2440_v42 }
 0x4b5   : > { %v11180_v57 = vpop.xlane.xlu1 %2279 }
 0x4b6   : > { %15141 = vst [vmem:[#allocation172_spill] sm:$0xff] %v11180_v57  ;;  %v11182_v2 = vpop.xlane.xlu0 %2277 }
 0x4b7   : > { %15142 = vst [vmem:[#allocation173_spill] sm:$0xff] %v11182_v2  ;;  %v2445_v2 = vadd.s32 4294967288, %v2440_v42 }
 0x4b9   : > { %v11184_v38 = vpop.xlane.xlu1 %2283 }
 0x4ba   : > { %15143 = vst [vmem:[#allocation174_spill] sm:$0xff] %v11184_v38  ;;  %v11186_v48 = vpop.xlane.xlu0 %2281  ;;  %v2452_v38 = vadd.s32 4294967280, %v2440_v42 }
 0x4bb   : > { %15144 = vst [vmem:[#allocation175_spill] sm:$0xff] %v11186_v48  ;;  %v2466_v48 = vadd.s32 4294967264, %v2440_v42 }
 0x4bc   : > { %v11212_v32 = vsub.s32 %v2452_v38, %v10669_v9 }
 0x4bd   : > { %v11188_v41 = vpop.xlane.xlu1 %2287 }
 0x4be   : > { %15145 = vst [vmem:[#allocation176_spill] sm:$0xff] %v11188_v41  ;;  %v11190_v59 = vpop.xlane.xlu0 %2285  ;;  %v2480_v41 = vadd.s32 4294967248, %v2440_v42  ;;  %15155 = vst [vmem:[#allocation185_spill] sm:$0xff] %v11212_v32 }
 0x4bf   : > { %15146 = vst [vmem:[#allocation177_spill] sm:$0xff] %v11190_v59  ;;  %v11204_v59 = vsub.s32 %v2440_v42, %v10669_v9 }
 0x4c0   : > { %v11224_v42 = vsub.s32 %v2480_v41, %v10669_v9 }
 0x4c1   : > { %v11192_v35 = vpop.xlane.xlu1 %2291  ;;  %15153 = vst [vmem:[#allocation183_spill] sm:$0xff] %v11204_v59  ;;  %v11227_v59 = vsub.s32 %v2487_v55, %v10669_v9 }
 0x4c2   : > { %15147 = vst [vmem:[#allocation178_spill] sm:$0xff] %v11192_v35  ;;  %v11194_v6 = vpop.xlane.xlu0 %2289  ;;  %15159 = vst [vmem:[#allocation189_spill] sm:$0xff] %v11224_v42 }
 0x4c3   : > { %15148 = vst [vmem:[#allocation179_spill] sm:$0xff] %v11194_v6  ;;  %15160 = vst [vmem:[#allocation190_spill] sm:$0xff] %v11227_v59 }
 0x4c5   : > { %v11196_v56 = vpop.xlane.xlu1 %2295 }
 0x4c6   : > { %15149 = vst [vmem:[#allocation180_spill] sm:$0xff] %v11196_v56  ;;  %v11199_v7 = vpop.xlane.xlu0 %2293  ;;  %v11209_v56 = vsub.s32 %v2445_v2, %v10669_v9 }
 0x4c7   : > { %15151 = vst [vmem:[#allocation181_spill] sm:$0xff] %v11199_v7  ;;  %v11218_v7 = vsub.s32 %v2466_v48, %v10669_v9 }
 0x4c8   : > { %15154 = vst [vmem:[#allocation184_spill] sm:$0xff] %v11209_v56 }
 0x4c9   : > { %v11201_v57 = vpop.xlane.xlu1 %2297  ;;  %15157 = vst [vmem:[#allocation187_spill] sm:$0xff] %v11218_v7 }
 0x4ca   : > { %15152 = vst [vmem:[#allocation182_spill] sm:$0xff] %v11201_v57  ;;  %v11215_v57 = vsub.s32 %v2459_v36, %v10669_v9  ;;  %v15188_v9 = vld [vmem:[#allocation168_spill] sm:$0xff] }
 0x4cc   : > { %15156 = vst [vmem:[#allocation186_spill] sm:$0xff] %v11215_v57 }
 0x4cd   : > { %v2300_v6 = vpop.xlane.xlu1 %2299 }
 0x4ce   : > { %v11206_v35 = vpop.permute.xlu0 %2308 }
 0x4cf   : > { %v11230_v2 = vadd.f32 %v11206_v35, %v2300_v6  ;;  %v11234_v38 = vadd.f32 %v11206_v35, %v11076_v46  ;;  %v11238_v48 = vadd.f32 %v11206_v35, %v11080_v20  ;;  %v11242_v36 = vadd.f32 %v11206_v35, %v11078_v25 }
 0x4d0   : > { %v11246_v41 = vadd.f32 %v11206_v35, %v11082_v33  ;;  %v11250_v6 = vadd.f32 %v11206_v35, %v11086_v4  ;;  %v11254_v55 = vadd.f32 %v11206_v35, %v11084_v58  ;;  %v11258_v13 = vadd.f32 %v11206_v35, %v11090_v8 }
 0x4d1   : > { %15161 = vst [vmem:[#allocation191_spill] sm:$0xff] %v11230_v2  ;;  %15162 = vst [vmem:[#allocation192_spill] sm:$0xff] %v11234_v38  ;;  %v11262_v46 = vadd.f32 %v11206_v35, %v11088_v27  ;;  %v11266_v25 = vadd.f32 %v11206_v35, %v11094_v19  ;;  %v11270_v20 = vadd.f32 %v11206_v35, %v11092_v18  ;;  %v15190_v2 = vld [vmem:[#allocation171_spill] sm:$0xff] }
 0x4d2   : > { %15163 = vst [vmem:[#allocation193_spill] sm:$0xff] %v11238_v48  ;;  %15164 = vst [vmem:[#allocation194_spill] sm:$0xff] %v11242_v36  ;;  %v11274_v33 = vadd.f32 %v11206_v35, %v11098_v49  ;;  %v11278_v58 = vadd.f32 %v11206_v35, %v11096_v17  ;;  %v11282_v4 = vadd.f32 %v11206_v35, %v11102_v45  ;;  %v15186_v45 = vld [vmem:[#allocation169_spill] sm:$0xff] }
 0x4d3   : > { %15165 = vst [vmem:[#allocation195_spill] sm:$0xff] %v11246_v41  ;;  %15166 = vst [vmem:[#allocation196_spill] sm:$0xff] %v11250_v6  ;;  %v11286_v27 = vadd.f32 %v11206_v35, %v11100_v24  ;;  %v11290_v8 = vadd.f32 %v11206_v35, %v11106_v28  ;;  %v11294_v18 = vadd.f32 %v11206_v35, %v11104_v50  ;;  %v15184_v24 = vld [vmem:[#allocation167_spill] sm:$0xff] }
 0x4d4   : > { %15167 = vst [vmem:[#allocation197_spill] sm:$0xff] %v11258_v13  ;;  %15168 = vst [vmem:[#allocation198_spill] sm:$0xff] %v11266_v25  ;;  %v11298_v19 = vadd.f32 %v11206_v35, %v11110_v51  ;;  %v11302_v17 = vadd.f32 %v11206_v35, %v11108_v47  ;;  %v11306_v49 = vadd.f32 %v11206_v35, %v11114_v62 }
 0x4d5   : > { %15169 = vst [vmem:[#allocation199_spill] sm:$0xff] %v11270_v20  ;;  %15170 = vst [vmem:[#allocation200_spill] sm:$0xff] %v11274_v33  ;;  %v11310_v28 = vadd.f32 %v11206_v35, %v11112_v22  ;;  %v11314_v50 = vadd.f32 %v11206_v35, %v11118_v34  ;;  %v11318_v51 = vadd.f32 %v11206_v35, %v11116_v16 }
 0x4d6   : > { %15171 = vst [vmem:[#allocation201_spill] sm:$0xff] %v11306_v49  ;;  %v11322_v47 = vadd.f32 %v11206_v35, %v11122_v43  ;;  %v11326_v62 = vadd.f32 %v11206_v35, %v11120_v60  ;;  %v11330_v22 = vadd.f32 %v11206_v35, %v11126_v63  ;;  %v11334_v34 = vadd.f32 %v11206_v35, %v11124_v39 }
 0x4d7   : > { %v11338_v16 = vadd.f32 %v11206_v35, %v11130_v15  ;;  %v11342_v43 = vadd.f32 %v11206_v35, %v11128_v29  ;;  %v11346_v60 = vadd.f32 %v11206_v35, %v11134_v61  ;;  %v11350_v63 = vadd.f32 %v11206_v35, %v11132_v54 }
 0x4d8   : > { %15172 = vst [vmem:[#allocation202_spill] sm:$0xff] %v11330_v22  ;;  %v11354_v39 = vadd.f32 %v11206_v35, %v11138_v26  ;;  %v11358_v15 = vadd.f32 %v11206_v35, %v11136_v23  ;;  %v11362_v29 = vadd.f32 %v11206_v35, %v11142_v44  ;;  %v11366_v61 = vadd.f32 %v11206_v35, %v11140_v31 }
 0x4d9   : > { %15173 = vst [vmem:[#allocation203_spill] sm:$0xff] %v11346_v60  ;;  %15174 = vst [vmem:[#allocation204_spill] sm:$0xff] %v11350_v63  ;;  %v11370_v54 = vadd.f32 %v11206_v35, %v11146_v1  ;;  %v11374_v26 = vadd.f32 %v11206_v35, %v11144_v52  ;;  %v11378_v23 = vadd.f32 %v11206_v35, %v11150_v5 }
 0x4da   : > { %15175 = vst [vmem:[#allocation205_spill] sm:$0xff] %v11354_v39  ;;  %15176 = vst [vmem:[#allocation206_spill] sm:$0xff] %v11358_v15  ;;  %v11382_v44 = vadd.f32 %v11206_v35, %v11148_v11  ;;  %v11386_v31 = vadd.f32 %v11206_v35, %v11154_v37  ;;  %v11390_v1 = vadd.f32 %v11206_v35, %v11152_v0 }
 0x4db   : > { %15177 = vst [vmem:[#allocation207_spill] sm:$0xff] %v11366_v61  ;;  %v11394_v52 = vadd.f32 %v11206_v35, %v11158_v40  ;;  %v11398_v5 = vadd.f32 %v11206_v35, %v11156_v30  ;;  %v11402_v11 = vadd.f32 %v11206_v35, %v11162_v53  ;;  %v11406_v37 = vadd.f32 %v11206_v35, %v11160_v21 }
 0x4dc   : > { %15178 = vst [vmem:[#allocation208_spill] sm:$0xff] %v11386_v31  ;;  %15179 = vst [vmem:[#allocation209_spill] sm:$0xff] %v11390_v1  ;;  %v11410_v0 = vadd.f32 %v11206_v35, %v11166_v12  ;;  %v11414_v40 = vadd.f32 %v11206_v35, %v11164_v14  ;;  %v11418_v30 = vadd.f32 %v11206_v35, %v11170_v10  ;;  %v15198_v1 = vld [vmem:[#allocation175_spill] sm:$0xff] }
 0x4dd   : > { %15180 = vst [vmem:[#allocation210_spill] sm:$0xff] %v11406_v37  ;;  %v11422_v53 = vadd.f32 %v11206_v35, %v15184_v24  ;;  %v11426_v21 = vadd.f32 %v11206_v35, %v15186_v45  ;;  %v11430_v12 = vadd.f32 %v11206_v35, %v15188_v9  ;;  %v11434_v14 = vadd.f32 %v11206_v35, %v15190_v2 }
 0x4de   : > { %15181 = vst [vmem:[#allocation211_spill] sm:$0xff] %v11410_v0  ;;  %15182 = vst [vmem:[#allocation212_spill] sm:$0xff] %v11414_v40  ;;  %v15192_v40 = vld [vmem:[#allocation170_spill] sm:$0xff]  ;;  %v11450_v9 = vadd.f32 %v11206_v35, %v15198_v1  ;;  %v15205_v1 = vld [vmem:[#allocation176_spill] sm:$0xff] }
 0x4df   : > { %15183 = vst [vmem:[#allocation213_spill] sm:$0xff] %v11418_v30  ;;  %15185 = vst [vmem:[#allocation167_spill] sm:$0xff] %v11422_v53  ;;  %v11438_v10 = vadd.f32 %v11206_v35, %v15192_v40  ;;  %v15194_v30 = vld [vmem:[#allocation173_spill] sm:$0xff]  ;;  %v15196_v53 = vld [vmem:[#allocation172_spill] sm:$0xff] }
 0x4e0   : > { %15187 = vst [vmem:[#allocation169_spill] sm:$0xff] %v11426_v21  ;;  %15189 = vst [vmem:[#allocation168_spill] sm:$0xff] %v11430_v12  ;;  %v11442_v24 = vadd.f32 %v11206_v35, %v15194_v30  ;;  %v11446_v45 = vadd.f32 %v11206_v35, %v15196_v53  ;;  %v15200_v12 = vld [vmem:[#allocation174_spill] sm:$0xff]  ;;  %v2456_v53 = vrot.slane %v11242_v36, %v11212_v32 }
 0x4e1   : > { %15191 = vst [vmem:[#allocation171_spill] sm:$0xff] %v11434_v14  ;;  %15193 = vst [vmem:[#allocation170_spill] sm:$0xff] %v11438_v10  ;;  %v11454_v2 = vadd.f32 %v11206_v35, %v15200_v12  ;;  %v15202_v14 = vld [vmem:[#allocation177_spill] sm:$0xff]  ;;  %v15204_v10 = vld [vmem:[#allocation183_spill] sm:$0xff]  ;;  %v2463_v36 = vrot.slane %v11246_v41, %v11215_v57  ;;  %v2484_v41 = vrot.slane %v11258_v13, %v11224_v42 }
 0x4e2   : > { %15195 = vst [vmem:[#allocation173_spill] sm:$0xff] %v11442_v24  ;;  %15197 = vst [vmem:[#allocation172_spill] sm:$0xff] %v11446_v45  ;;  %v11458_v40 = vadd.f32 %v11206_v35, %v15202_v14  ;;  %v2444_v30 = vrot.slane %v11234_v38, %v15204_v10  ;;  %v2449_v24 = vrot.slane %v11238_v48, %v11209_v56  ;;  %v15206_v12 = vld [vmem:[#allocation179_spill] sm:$0xff]  ;;  %v15208_v14 = vld [vmem:[#allocation178_spill] sm:$0xff] }
 0x4e3   : > { %15199 = vst [vmem:[#allocation175_spill] sm:$0xff] %v11450_v9  ;;  %15201 = vst [vmem:[#allocation174_spill] sm:$0xff] %v11454_v2  ;;  %v11468_v9 = vadd.f32 %v11206_v35, %v15205_v1  ;;  %v11472_v2 = vadd.f32 %v11206_v35, %v15206_v12  ;;  %v15209_v38 = vld [vmem:[#allocation181_spill] sm:$0xff]  ;;  %v2497_v1 = vrot.slane %v11266_v25, %v15204_v10  ;;  %v15210_v13 = vld [vmem:[#allocation180_spill] sm:$0xff] }
 0x4e4   : > { %15203 = vst [vmem:[#allocation177_spill] sm:$0xff] %v11458_v40  ;;  %v11476_v40 = vadd.f32 %v11206_v35, %v15208_v14  ;;  %v11480_v45 = vadd.f32 %v11206_v35, %v15209_v38  ;;  %v2451_v48 = vsel %vm2450_vm2, %v2449_v24, %v2444_v30  ;;  %v2501_v12 = vrot.slane %v11270_v20, %v11209_v56 }
 0x4e5   : > { %15207 = vst [vmem:[#allocation176_spill] sm:$0xff] %v11472_v2  ;;  %v2458_v2 = vsel %vm2457_vm3, %v2456_v53, %v2451_v48  ;;  %v2470_v14 = vrot.slane %v11250_v6, %v11218_v7  ;;  %v2477_v38 = vrot.slane %v11254_v55, %v11221_v3  ;;  %v2506_v24 = vrot.slane %v11274_v33, %v11212_v32 }
 0x4e6   : > { %v2465_v30 = vsel %vm2464_vm4, %v2463_v36, %v2458_v2  ;;  %v2502_v25 = vsel %vm2450_vm2, %v2501_v12, %v2497_v1  ;;  %v2511_v20 = vrot.slane %v11278_v58, %v11215_v57  ;;  %v2516_v6 = vrot.slane %v11282_v4, %v11218_v7 }
 0x4e7   : > { %v2472_v48 = vsel %vm2471_vm5, %v2470_v14, %v2465_v30  ;;  %v2507_v53 = vsel %vm2457_vm3, %v2506_v24, %v2502_v25  ;;  %v2536_v33 = vrot.slane %v11298_v19, %v15204_v10  ;;  %v2540_v1 = vrot.slane %v11302_v17, %v11209_v56  ;;  %v15211_v25 = vld [vmem:[#allocation182_spill] sm:$0xff] }
 0x4e8   : > { %v2479_v36 = vsel %vm2478_vm6, %v2477_v38, %v2472_v48  ;;  %v2512_v2 = vsel %vm2464_vm4, %v2511_v20, %v2507_v53  ;;  %v2545_v12 = vrot.slane %v11306_v49, %v11212_v32  ;;  %v11516_v14 = vadd.f32 %v11206_v35, %v15210_v13 }
 0x4e9   : > { %v11520_v24 = vadd.f32 %v11206_v35, %v15211_v25  ;;  %v2517_v30 = vsel %vm2471_vm5, %v2516_v6, %v2512_v2  ;;  %v2521_v38 = vrot.slane %v11286_v27, %v11221_v3  ;;  %v2486_v20 = vsel %vm2485_vm7, %v2484_v41, %v2479_v36 }
 0x4ea   : > { %v2491_v48 = vrot.slane %v11262_v46, %v11227_v59  ;;  %v2541_v53 = vsel %vm2450_vm2, %v2540_v1, %v2536_v33  ;;  %v2550_v13 = vrot.slane %v11310_v28, %v11215_v57  ;;  %v2526_v35 = vrot.slane %v11290_v8, %v11224_v42 }
 0x4eb   : > { %v2522_v49 = vsel %vm2478_vm6, %v2521_v38, %v2517_v30  ;;  %v2546_v6 = vsel %vm2457_vm3, %v2545_v12, %v2541_v53  ;;  %v2555_v2 = vrot.slane %v11314_v50, %v11218_v7  ;;  %v2531_v41 = vrot.slane %v11294_v18, %v11227_v59 }
 0x4ec   : > { %v2551_v36 = vsel %vm2464_vm4, %v2550_v13, %v2546_v6  ;;  %v2575_v33 = vrot.slane %v11330_v22, %v15204_v10  ;;  %v2579_v1 = vrot.slane %v11334_v34, %v11209_v56  ;;  %v11545_v25 = vsel %vm2492_vm8, %v2491_v48, %v2486_v20 }
 0x4ed   : > { %v2556_v30 = vsel %vm2471_vm5, %v2555_v2, %v2551_v36  ;;  %v2560_v12 = vrot.slane %v11318_v51, %v11221_v3  ;;  %v2584_v38 = vrot.slane %v11338_v16, %v11212_v32  ;;  %v2527_v53 = vsel %vm2485_vm7, %v2526_v35, %v2522_v49 }
 0x4ee   : > { %v2565_v13 = vrot.slane %v11322_v47, %v11224_v42  ;;  %v2580_v6 = vsel %vm2450_vm2, %v2579_v1, %v2575_v33  ;;  %v2589_v22 = vrot.slane %v11342_v43, %v11215_v57  ;;  %v2594_v2 = vrot.slane %v11346_v60, %v11218_v7 }
 0x4ef   : > { %v2561_v20 = vsel %vm2478_vm6, %v2560_v12, %v2556_v30  ;;  %v2585_v48 = vsel %vm2457_vm3, %v2584_v38, %v2580_v6  ;;  %v2614_v36 = vrot.slane %v11362_v29, %v15204_v10  ;;  %v2570_v49 = vrot.slane %v11326_v62, %v11227_v59 }
 0x4f0   : > { %v2590_v35 = vsel %vm2464_vm4, %v2589_v22, %v2585_v48  ;;  %v2618_v33 = vrot.slane %v11366_v61, %v11209_v56  ;;  %v2623_v1 = vrot.slane %v11370_v54, %v11212_v32  ;;  %v11572_v30 = vsel %vm2492_vm8, %v2531_v41, %v2527_v53 }
 0x4f1   : > { %v2595_v12 = vsel %vm2471_vm5, %v2594_v2, %v2590_v35  ;;  %v2599_v38 = vrot.slane %v11350_v63, %v11221_v3  ;;  %v2604_v6 = vrot.slane %v11354_v39, %v11224_v42  ;;  %v2566_v60 = vsel %vm2485_vm7, %v2565_v13, %v2561_v20  ;;  %v15218_v63 = vld [vmem:[#allocation173_spill] sm:$0xff] }
 0x4f2   : > { %v2619_v22 = vsel %vm2450_vm2, %v2618_v33, %v2614_v36  ;;  %v2628_v48 = vrot.slane %v11374_v26, %v11215_v57  ;;  %v2633_v61 = vrot.slane %v11378_v23, %v11218_v7  ;;  %v2653_v2 = vrot.slane %v11394_v52, %v15204_v10 }
 0x4f3   : > { %v2600_v41 = vsel %vm2478_vm6, %v2599_v38, %v2595_v12  ;;  %v2624_v53 = vsel %vm2457_vm3, %v2623_v1, %v2619_v22  ;;  %v2657_v35 = vrot.slane %v11398_v5, %v11209_v56  ;;  %v2609_v13 = vrot.slane %v11358_v15, %v11227_v59 }
 0x4f4   : > { %v2629_v20 = vsel %vm2464_vm4, %v2628_v48, %v2624_v53  ;;  %v2638_v36 = vrot.slane %v11382_v44, %v11221_v3  ;;  %v2662_v33 = vrot.slane %v11402_v11, %v11212_v32  ;;  %v2571_v1 = vsel %vm2492_vm8, %v2570_v49, %v2566_v60 }
 0x4f5   : > { %v2634_v12 = vsel %vm2471_vm5, %v2633_v61, %v2629_v20  ;;  %v2658_v38 = vsel %vm2450_vm2, %v2657_v35, %v2653_v2  ;;  %v2667_v22 = vrot.slane %v11406_v37, %v11215_v57  ;;  %v2605_v39 = vsel %vm2485_vm7, %v2604_v6, %v2600_v41  ;;  %v15212_v2 = vld [vmem:[#allocation168_spill] sm:$0xff]  ;;  %v15213_v6 = vld [vmem:[#allocation209_spill] sm:$0xff] }
 0x4f6   : > { %v2639_v48 = vsel %vm2478_vm6, %v2638_v36, %v2634_v12  ;;  %v2663_v53 = vsel %vm2457_vm3, %v2662_v33, %v2658_v38  ;;  %v2672_v15 = vrot.slane %v11410_v0, %v11218_v7  ;;  %v2643_v60 = vrot.slane %v11386_v31, %v11224_v42  ;;  %v15214_v36 = vld [vmem:[#allocation212_spill] sm:$0xff]  ;;  %v15215_v12 = vld [vmem:[#allocation171_spill] sm:$0xff]  ;;  %v15216_v0 = vld [vmem:[#allocation170_spill] sm:$0xff] }
 0x4f7   : > { %v2668_v61 = vsel %vm2464_vm4, %v2667_v22, %v2663_v53  ;;  %v2692_v49 = vrot.slane %v11426_v21, %v15204_v10  ;;  %v2696_v35 = vrot.slane %v15212_v2, %v11209_v56  ;;  %v2648_v41 = vrot.slane %v15213_v6, %v11227_v59 }
 0x4f8   : > { %v2673_v20 = vsel %vm2471_vm5, %v2672_v15, %v2668_v61  ;;  %v2677_v33 = vrot.slane %v15214_v36, %v11221_v3  ;;  %v2701_v38 = vrot.slane %v15215_v12, %v11212_v32  ;;  %v2610_v22 = vsel %vm2492_vm8, %v2609_v13, %v2605_v39  ;;  %v15217_v15 = vld [vmem:[#allocation213_spill] sm:$0xff]  ;;  %v15219_v13 = vld [vmem:[#allocation172_spill] sm:$0xff] }
 0x4f9   : > { %v2644_v53 = vsel %vm2485_vm7, %v2643_v60, %v2639_v48  ;;  %v2697_v31 = vsel %vm2450_vm2, %v2696_v35, %v2692_v49  ;;  %v2706_v37 = vrot.slane %v15216_v0, %v11215_v57  ;;  %v2682_v61 = vrot.slane %v15217_v15, %v11224_v42  ;;  %v15220_v60 = vld [vmem:[#allocation177_spill] sm:$0xff] }
 0x4fa   : > { %v2678_v6 = vsel %vm2478_vm6, %v2677_v33, %v2673_v20  ;;  %v2702_v36 = vsel %vm2457_vm3, %v2701_v38, %v2697_v31  ;;  %v2711_v21 = vrot.slane %v15218_v63, %v11218_v7  ;;  %v2716_v48 = vrot.slane %v15219_v13, %v11221_v3  ;;  %v15221_v33 = vld [vmem:[#allocation167_spill] sm:$0xff]  ;;  %v15222_v38 = vld [vmem:[#allocation176_spill] sm:$0xff] }
 0x4fb   : > { %v2707_v39 = vsel %vm2464_vm4, %v2706_v37, %v2702_v36  ;;  %v2731_v49 = vrot.slane %v15220_v60, %v15204_v10  ;;  %v2735_v35 = vrot.slane %v11468_v9, %v11209_v56  ;;  %v2649_v20 = vsel %vm2492_vm8, %v2648_v41, %v2644_v53  ;;  %v15223_v36 = vld [vmem:[#allocation175_spill] sm:$0xff] }
 0x4fc   : > { %v2687_v15 = vrot.slane %v15221_v33, %v11227_v59  ;;  %v2712_v31 = vsel %vm2471_vm5, %v2711_v21, %v2707_v39  ;;  %v2740_v63 = vrot.slane %v15222_v38, %v11212_v32  ;;  %v2721_v13 = vrot.slane %v15223_v36, %v11224_v42 }
 0x4fd   : > { %v2717_v37 = vsel %vm2478_vm6, %v2716_v48, %v2712_v31  ;;  %v2736_v10 = vsel %vm2450_vm2, %v2735_v35, %v2731_v49  ;;  %v2745_v56 = vrot.slane %v11476_v40, %v11215_v57  ;;  %v2683_v41 = vsel %vm2485_vm7, %v2682_v61, %v2678_v6  ;;  %v15224_v6 = vld [vmem:[#allocation174_spill] sm:$0xff] }
 0x4fe   : > { %v2741_v53 = vsel %vm2457_vm3, %v2740_v63, %v2736_v10  ;;  %v2750_v21 = vrot.slane %v11480_v45, %v11218_v7  ;;  %v2768_v39 = vsel %vm2767_vm9, %v11572_v30, %v11545_v25  ;;  %v2722_v48 = vsel %vm2485_vm7, %v2721_v13, %v2717_v37  ;;  %v15225_v25 = vld [vmem:[#allocation191_spill] sm:$0xff] }
 0x4ff   : > { %v2746_v31 = vsel %vm2464_vm4, %v2745_v56, %v2741_v53  ;;  %v2755_v49 = vrot.slane %v11516_v14, %v11221_v3  ;;  %v2770_v35 = vsel %vm2769_vm10, %v2571_v1, %v2768_v39  ;;  %v2726_v61 = vrot.slane %v15224_v6, %v11227_v59 }
 0x500   : > { %v2751_v63 = vsel %vm2471_vm5, %v2750_v21, %v2746_v31  ;;  %v2760_v10 = vrot.slane %v11520_v24, %v11224_v42  ;;  %v2772_v7 = vsel %vm2771_vm11, %v2610_v22, %v2770_v35  ;;  %v2765_v30 = vrot.slane %v15225_v25, %v11227_v59 }
 0x501   : > { %v2688_v56 = vsel %vm2492_vm8, %v2687_v15, %v2683_v41  ;;  %v2756_v13 = vsel %vm2478_vm6, %v2755_v49, %v2751_v63  ;;  %v2774_v37 = vsel %vm2773_vm12, %v2649_v20, %v2772_v7  ;;  %v2727_v1 = vsel %vm2492_vm8, %v2726_v61, %v2722_v48  ;;  %v15226_v15 = vld [vmem:[#allocation100_spill] sm:$0xff]  ;;  %v15228_v20 = vld [vmem:[#allocation102_spill] sm:$0xff] }
 0x502   : > { %v2761_v53 = vsel %vm2485_vm7, %v2760_v10, %v2756_v13  ;;  %v2776_v21 = vsel %vm2775_vm13, %v2688_v56, %v2774_v37  ;;  %v11683_v41 = vsub.s32 1, %v15226_v15  ;;  %v15229_v63 = vld [vmem:[#allocation192_spill] sm:$0xff]  ;;  %v15230_v56 = vld [vmem:[#allocation193_spill] sm:$0xff] }
 0x503   : > { %v2766_v39 = vsel %vm2492_vm8, %v2765_v30, %v2761_v53  ;;  %v2778_v22 = vsel %vm2777_vm14, %v2727_v1, %v2776_v21  ;;  %v15231_v21 = vld [vmem:[#allocation199_spill] sm:$0xff] }
 0x504   : > { %v2780_v31 = vsel %vm2779_vm15, %v2766_v39, %v2778_v22  ;;  %15227 = vst [vmem:[#allocation179_spill] sm:$0xff] %v11683_v41 }
 0x505   : > { %v2783_v35 = vsel %vm2782_vm0, %v2780_v31, -inf  ;;  %v15232_v31 = vld [vmem:[#allocation194_spill] sm:$0xff] }
 0x506   : > { %2784 = vmax.xlane.f32.xlu1 %v2783_v35 }
 0x593   : > { %v11685_v7 = vpop.xlane.xlu1 %2784 }
 0x594   : > { %v2790_v48 = vrot.slane %v11685_v7, %v15228_v20  ;;  %v11691_v49 = vrot.slane %v11685_v7, %v11683_v41 }
 0x596   : > { %v2832_v61 = vsub.f32 %v11254_v55, %v2790_v48  ;;  %v2827_v10 = vsub.f32 %v15229_v63, %v2790_v48  ;;  %v2834_v30 = vsub.f32 %v11262_v46, %v2790_v48  ;;  %v2828_v13 = vsub.f32 %v15230_v56, %v2790_v48  ;;  %v15233_v63 = vld [vmem:[#allocation195_spill] sm:$0xff] }
 0x597   : > { %v2836_v39 = vsub.f32 %v15231_v21, %v11691_v49  ;;  %v2829_v35 = vsub.f32 %v15232_v31, %v2790_v48  ;;  %v2838_v55 = vsub.f32 %v11278_v58, %v11691_v49  ;;  %v2830_v56 = vsub.f32 %v15233_v63, %v2790_v48 }
 0x598   : > { %v2901_v37 = vmul.f32 1.442695, %v2832_v61  ;;  %v2891_v1 = vmul.f32 1.442695, %v2827_v10  ;;  %v2905_v53 = vmul.f32 1.442695, %v2834_v30  ;;  %v2840_v30 = vsub.f32 %v11286_v27, %v11691_v49 }
 0x599   : > { %v2893_v22 = vmul.f32 1.442695, %v2828_v13  ;;  %v2909_v41 = vmul.f32 1.442695, %v2836_v39  ;;  %v2895_v46 = vmul.f32 1.442695, %v2829_v35  ;;  %v2842_v27 = vsub.f32 %v11294_v18, %v11691_v49 }
 0x59a   : > { %8686 = vpow2.f32 %v2901_v37  ;;  %v11704_v61 = vsub.s32 2, %v15226_v15  ;;  %v2913_v10 = vmul.f32 1.442695, %v2838_v55  ;;  %v2897_v13 = vmul.f32 1.442695, %v2830_v56  ;;  %v15235_v37 = vld [vmem:[#allocation196_spill] sm:$0xff] }
 0x59b   : > { %8688 = vpow2.f32 %v2891_v1  ;;  %v2831_v1 = vsub.f32 %v15235_v37, %v2790_v48  ;;  %v15241_v18 = vld [vmem:[#allocation198_spill] sm:$0xff] }
 0x59c   : > { %8690 = vpow2.f32 %v2905_v53  ;;  %15234 = vst [vmem:[#allocation178_spill] sm:$0xff] %v11704_v61  ;;  %v11716_v58 = vrot.slane %v11685_v7, %v11704_v61 }
 0x59d   : > { %8692 = vpow2.f32 %v2893_v22  ;;  %v2899_v39 = vmul.f32 1.442695, %v2831_v1  ;;  %v15238_v22 = vld [vmem:[#allocation197_spill] sm:$0xff]  ;;  %v15244_v1 = vld [vmem:[#allocation200_spill] sm:$0xff] }
 0x59e   : > { %8694 = vpow2.f32 %v2909_v41  ;;  %v2917_v41 = vmul.f32 1.442695, %v2840_v30  ;;  %v2833_v31 = vsub.f32 %v15238_v22, %v2790_v48  ;;  %v2844_v63 = vsub.f32 %v11302_v17, %v11716_v58 }
 0x59f   : > { %8696 = vpow2.f32 %v2895_v46  ;;  %v2921_v46 = vmul.f32 1.442695, %v2842_v27  ;;  %v2846_v37 = vsub.f32 %v11310_v28, %v11716_v58  ;;  %v11748_v22 = vsub.s32 3, %v15226_v15 }
 0x5a0   : > { %8698 = vpow2.f32 %v2913_v10  ;;  %v2903_v56 = vmul.f32 1.442695, %v2833_v31  ;;  %v2835_v10 = vsub.f32 %v15241_v18, %v11691_v49  ;;  %v2848_v28 = vsub.f32 %v11318_v51, %v11716_v58 }
 0x5a1   : > { %8700 = vpow2.f32 %v2897_v13  ;;  %v2925_v13 = vmul.f32 1.442695, %v2844_v63  ;;  %15247 = vst [vmem:[#allocation176_spill] sm:$0xff] %v11748_v22  ;;  %v2929_v31 = vmul.f32 1.442695, %v2846_v37  ;;  %v2839_v63 = vsub.f32 %v11282_v4, %v11691_v49 }
 0x5a2   : > { %8702 = vpow2.f32 %v2917_v41  ;;  %v2907_v17 = vmul.f32 1.442695, %v2835_v10  ;;  %v2837_v41 = vsub.f32 %v15244_v1, %v11691_v49  ;;  %v11762_v10 = vrot.slane %v11685_v7, %v11748_v22 }
 0x5a3   : > { %8704 = vpow2.f32 %v2899_v39  ;;  %v2850_v51 = vsub.f32 %v11326_v62, %v11716_v58  ;;  %v2915_v37 = vmul.f32 1.442695, %v2839_v63  ;;  %v2841_v4 = vsub.f32 %v11290_v8, %v11691_v49 }
 0x5a4   : > { %v11709_v53 = vpop.eup %8686  ;;  %8706 = vpow2.f32 %v2921_v46  ;;  %v2911_v46 = vmul.f32 1.442695, %v2837_v41  ;;  %v11775_v41 = vsub.s32 4, %v15226_v15  ;;  %v2852_v62 = vsub.f32 %v11334_v34, %v11762_v10 }
 0x5a5   : > { %15236 = vst [vmem:[#allocation181_spill] sm:$0xff] %v11709_v53  ;;  %v11711_v21 = vpop.eup %8688  ;;  %3099 = vperm.xlu0 %8556, %v11709_v53   ;;  %8708 = vpow2.f32 %v2903_v56  ;;  %v2843_v8 = vsub.f32 %v11298_v19, %v11716_v58  ;;  %v2854_v34 = vsub.f32 %v11342_v43, %v11762_v10  ;;  %v15255_v19 = vld [vmem:[#allocation201_spill] sm:$0xff] }
 0x5a6   : > { %15237 = vst [vmem:[#allocation180_spill] sm:$0xff] %v11711_v21  ;;  %3084 = vperm.xlu1 %8557, %v11711_v21   ;;  %v11722_v35 = vpop.eup %8690  ;;  %8710 = vpow2.f32 %v2925_v13  ;;  %v2933_v13 = vmul.f32 1.442695, %v2848_v28  ;;  %15252 = vst [vmem:[#allocation192_spill] sm:$0xff] %v11775_v41  ;;  %v2919_v28 = vmul.f32 1.442695, %v2841_v4  ;;  %v11789_v63 = vrot.slane %v11685_v7, %v11775_v41 }
 0x5a7   : > { %15239 = vst [vmem:[#allocation182_spill] sm:$0xff] %v11722_v35  ;;  %v11724_v55 = vpop.eup %8692  ;;  %8712 = vpow2.f32 %v2907_v17 }
 0x5a8   : > { %15240 = vst [vmem:[#allocation168_spill] sm:$0xff] %v11724_v55  ;;  %v11732_v30 = vpop.eup %8694  ;;  %8714 = vpow2.f32 %v2929_v31  ;;  %v2937_v31 = vmul.f32 1.442695, %v2850_v51  ;;  %v2923_v51 = vmul.f32 1.442695, %v2843_v8  ;;  %v2859_v43 = vsub.f32 %v11362_v29, %v11789_v63 }
 0x5a9   : > { %3105 = vperm.xlu0 %8556, %v11722_v35   ;;  %15242 = vst [vmem:[#allocation171_spill] sm:$0xff] %v11732_v30  ;;  %v11734_v48 = vpop.eup %8696  ;;  %8716 = vpow2.f32 %v2911_v46  ;;  %v2861_v29 = vsub.f32 %v11370_v54, %v11789_v63 }
 0x5aa   : > { %3087 = vperm.xlu1 %8557, %v11724_v55   ;;  %15243 = vst [vmem:[#allocation170_spill] sm:$0xff] %v11734_v48  ;;  %v11742_v27 = vpop.eup %8698  ;;  %8718 = vpow2.f32 %v2933_v13  ;;  %v2941_v13 = vmul.f32 1.442695, %v2852_v62 }
 0x5ab   : > { %15245 = vst [vmem:[#allocation177_spill] sm:$0xff] %v11742_v27  ;;  %v11744_v39 = vpop.eup %8700  ;;  %8720 = vpow2.f32 %v2915_v37  ;;  %v2845_v37 = vsub.f32 %v15255_v19, %v11716_v58 }
 0x5ac   : > { %15246 = vst [vmem:[#allocation167_spill] sm:$0xff] %v11744_v39  ;;  %v11755_v56 = vpop.eup %8702  ;;  %8722 = vpow2.f32 %v2937_v31  ;;  %v2945_v31 = vmul.f32 1.442695, %v2854_v34 }
 0x5ad   : > { %3111 = vperm.xlu0 %8556, %v11732_v30   ;;  %15248 = vst [vmem:[#allocation175_spill] sm:$0xff] %v11755_v56  ;;  %v11757_v18 = vpop.eup %8704  ;;  %8724 = vpow2.f32 %v2919_v28  ;;  %v2927_v62 = vmul.f32 1.442695, %v2845_v37  ;;  %v2847_v28 = vsub.f32 %v11314_v50, %v11716_v58  ;;  %v2849_v50 = vsub.f32 %v11322_v47, %v11716_v58  ;;  %v15264_v47 = vld [vmem:[#allocation202_spill] sm:$0xff]  ;;  %v15328_v30 = vld [vmem:[#allocation184_spill] sm:$0xff] }
 0x5ae   : > { %3090 = vperm.xlu1 %8557, %v11734_v48   ;;  %15249 = vst [vmem:[#allocation174_spill] sm:$0xff] %v11757_v18  ;;  %v11769_v17 = vpop.eup %8706  ;;  %8726 = vpow2.f32 %v2941_v13  ;;  %v2955_v13 = vmul.f32 1.442695, %v2859_v43  ;;  %v2851_v58 = vsub.f32 %v15264_v47, %v11762_v10 }
 0x5af   : > { %15250 = vst [vmem:[#allocation191_spill] sm:$0xff] %v11769_v17  ;;  %v11771_v1 = vpop.eup %8708  ;;  %8728 = vpow2.f32 %v2923_v51  ;;  %v2931_v34 = vmul.f32 1.442695, %v2847_v28  ;;  %v2935_v43 = vmul.f32 1.442695, %v2849_v50 }
 0x5b0   : > { %15251 = vst [vmem:[#allocation100_spill] sm:$0xff] %v11771_v1  ;;  %v11782_v49 = vpop.eup %8710  ;;  %8730 = vpow2.f32 %v2945_v31  ;;  %v2959_v31 = vmul.f32 1.442695, %v2861_v29  ;;  %v2939_v29 = vmul.f32 1.442695, %v2851_v58 }
 0x5b1   : > { %3117 = vperm.xlu0 %8556, %v11742_v27   ;;  %15253 = vst [vmem:[#allocation193_spill] sm:$0xff] %v11782_v49  ;;  %v11784_v46 = vpop.eup %8712  ;;  %8732 = vpow2.f32 %v2927_v62 }
 0x5b2   : > { %3093 = vperm.xlu1 %8557, %v11744_v39   ;;  %15254 = vst [vmem:[#allocation199_spill] sm:$0xff] %v11784_v46  ;;  %v11796_v4 = vpop.eup %8714  ;;  %8734 = vpow2.f32 %v2955_v13 }
 0x5b3   : > { %15256 = vst [vmem:[#allocation194_spill] sm:$0xff] %v11796_v4  ;;  %8736 = vpow2.f32 %v2931_v34  ;;  %v2853_v34 = vsub.f32 %v11338_v16, %v11762_v10 }
 0x5b4   : > { %8738 = vpow2.f32 %v2959_v31 }
 0x5b5   : > { %3123 = vperm.xlu0 %8556, %v11755_v56   ;;  %v11802_v56 = vsub.s32 5, %v15226_v15  ;;  %8740 = vpow2.f32 %v2935_v43 }
 0x5b6   : > { %3096 = vperm.xlu1 %8557, %v11757_v18  }
 0x5b7   : > { %15258 = vst [vmem:[#allocation196_spill] sm:$0xff] %v11802_v56  ;;  %v11816_v35 = vrot.slane %v11685_v7, %v11802_v56  ;;  %v15329_v56 = vld [vmem:[#allocation183_spill] sm:$0xff] }
 0x5b9   : > { %3129 = vperm.xlu0 %8556, %v11769_v17   ;;  %v11798_v17 = vpop.eup %8716  ;;  %v2868_v54 = vsub.f32 %v11398_v5, %v11816_v35  ;;  %v2869_v5 = vsub.f32 %v11402_v11, %v11816_v35  ;;  %v2943_v11 = vmul.f32 1.442695, %v2853_v34 }
 0x5ba   : > { %3102 = vperm.xlu1 %8557, %v11771_v1   ;;  %15257 = vst [vmem:[#allocation195_spill] sm:$0xff] %v11798_v17  ;;  %v11809_v8 = vpop.eup %8718 }
 0x5bb   : > { %15259 = vst [vmem:[#allocation197_spill] sm:$0xff] %v11809_v8  ;;  %v11811_v19 = vpop.eup %8720  ;;  %v2973_v13 = vmul.f32 1.442695, %v2868_v54  ;;  %v15269_v54 = vld [vmem:[#allocation203_spill] sm:$0xff] }
 0x5bc   : > { %15260 = vst [vmem:[#allocation198_spill] sm:$0xff] %v11811_v19  ;;  %v11823_v51 = vpop.eup %8722  ;;  %v2855_v43 = vsub.f32 %v15269_v54, %v11762_v10 }
 0x5bd   : > { %3135 = vperm.xlu0 %8556, %v11782_v49   ;;  %15261 = vst [vmem:[#allocation200_spill] sm:$0xff] %v11823_v51  ;;  %v11825_v37 = vpop.eup %8724  ;;  %8742 = vpow2.f32 %v2973_v13 }
 0x5be   : > { %3108 = vperm.xlu1 %8557, %v11784_v46   ;;  %15262 = vst [vmem:[#allocation201_spill] sm:$0xff] %v11825_v37  ;;  %v11836_v62 = vpop.eup %8726  ;;  %8744 = vpow2.f32 %v2939_v29  ;;  %v15273_v29 = vld [vmem:[#allocation207_spill] sm:$0xff] }
 0x5bf   : > { %15265 = vst [vmem:[#allocation202_spill] sm:$0xff] %v11836_v62  ;;  %v11838_v28 = vpop.eup %8728  ;;  %v2860_v34 = vsub.f32 %v15273_v29, %v11789_v63 }
 0x5c0   : > { %15266 = vst [vmem:[#allocation215_spill] sm:$0xff] %v11838_v28  ;;  %v11850_v50 = vpop.eup %8730 }
 0x5c1   : > { %3141 = vperm.xlu0 %8556, %v11796_v4   ;;  %15267 = vst [vmem:[#allocation216_spill] sm:$0xff] %v11850_v50  ;;  %v11852_v47 = vpop.eup %8732 }
 0x5c2   : > { %3114 = vperm.xlu1 %8557, %v11798_v17   ;;  %15268 = vst [vmem:[#allocation217_spill] sm:$0xff] %v11852_v47  ;;  %v11860_v58 = vpop.eup %8734 }
 0x5c3   : > { %15270 = vst [vmem:[#allocation203_spill] sm:$0xff] %v11860_v58  ;;  %v11862_v16 = vpop.eup %8736 }
 0x5c4   : > { %15271 = vst [vmem:[#allocation218_spill] sm:$0xff] %v11862_v16  ;;  %v11873_v54 = vpop.eup %8738 }
 0x5c5   : > { %3147 = vperm.xlu0 %8556, %v11809_v8   ;;  %v11829_v8 = vsub.s32 6, %v15226_v15  ;;  %15274 = vst [vmem:[#allocation207_spill] sm:$0xff] %v11873_v54  ;;  %v11875_v1 = vpop.eup %8740 }
 0x5c6   : > { %3120 = vperm.xlu1 %8557, %v11811_v19   ;;  %15275 = vst [vmem:[#allocation220_spill] sm:$0xff] %v11875_v1 }
 0x5c7   : > { %15263 = vst [vmem:[#allocation214_spill] sm:$0xff] %v11829_v8 }
 0x5c9   : > { %3153 = vperm.xlu0 %8556, %v11823_v51   ;;  %v11843_v51 = vrot.slane %v11685_v7, %v11829_v8 }
 0x5ca   : > { %3126 = vperm.xlu1 %8557, %v11825_v37   ;;  %v2975_v37 = vmul.f32 1.442695, %v2869_v5  ;;  %v2947_v5 = vmul.f32 1.442695, %v2855_v43  ;;  %v11887_v43 = vpop.eup %8742 }
 0x5cb   : > { %v2876_v31 = vsub.f32 %v15212_v2, %v11843_v51  ;;  %v2863_v2 = vsub.f32 %v11378_v23, %v11789_v63  ;;  %v2877_v23 = vsub.f32 %v15215_v12, %v11843_v51  ;;  %15276 = vst [vmem:[#allocation221_spill] sm:$0xff] %v11887_v43  ;;  %v11889_v29 = vpop.eup %8744 }
 0x5cc   : > { %8746 = vpow2.f32 %v2975_v37  ;;  %15277 = vst [vmem:[#allocation222_spill] sm:$0xff] %v11889_v29 }
 0x5cd   : > { %3159 = vperm.xlu0 %8556, %v11836_v62   ;;  %v2989_v13 = vmul.f32 1.442695, %v2876_v31  ;;  %8748 = vpow2.f32 %v2943_v11  ;;  %v2963_v37 = vmul.f32 1.442695, %v2863_v2  ;;  %v2957_v31 = vmul.f32 1.442695, %v2860_v34 }
 0x5ce   : > { %3132 = vperm.xlu1 %8557, %v11838_v28   ;;  %v2867_v11 = vsub.f32 %v11394_v52, %v11816_v35  ;;  %v2862_v2 = vsub.f32 %v11374_v26, %v11789_v63 }
 0x5cf   : > { %8750 = vpow2.f32 %v2989_v13 }
 0x5d0   : > { %8752 = vpow2.f32 %v2947_v5  ;;  %v2971_v12 = vmul.f32 1.442695, %v2867_v11 }
 0x5d1   : > { %3165 = vperm.xlu0 %8556, %v11850_v50   ;;  %v11866_v50 = vsub.s32 7, %v15226_v15  ;;  %8754 = vpow2.f32 %v2963_v37  ;;  %v2864_v37 = vsub.f32 %v11382_v44, %v11789_v63 }
 0x5d2   : > { %3138 = vperm.xlu1 %8557, %v11852_v47   ;;  %8756 = vpow2.f32 %v2957_v31 }
 0x5d3   : > { %15272 = vst [vmem:[#allocation219_spill] sm:$0xff] %v11866_v50  ;;  %v11880_v15 = vrot.slane %v11685_v7, %v11866_v50  ;;  %v2991_v7 = vmul.f32 1.442695, %v2877_v23  ;;  %v15280_v23 = vld [vmem:[#allocation169_spill] sm:$0xff] }
 0x5d4   : > { %v2875_v31 = vsub.f32 %v15280_v23, %v11843_v51 }
 0x5d5   : > { %3180 = vperm.xlu0 %8556, %v11860_v58   ;;  %v2884_v13 = vsub.f32 %v11468_v9, %v11880_v15  ;;  %8758 = vpow2.f32 %v2991_v7  ;;  %v2961_v9 = vmul.f32 1.442695, %v2862_v2  ;;  %v2878_v7 = vsub.f32 %v15216_v0, %v11843_v51 }
 0x5d6   : > { %3144 = vperm.xlu1 %8557, %v11862_v16   ;;  %v11897_v5 = vpop.eup %8746  ;;  %8760 = vpow2.f32 %v2971_v12  ;;  %v2987_v44 = vmul.f32 1.442695, %v2875_v31 }
 0x5d7   : > { %15278 = vst [vmem:[#allocation223_spill] sm:$0xff] %v11897_v5  ;;  %v11899_v52 = vpop.eup %8748  ;;  %v3005_v34 = vmul.f32 1.442695, %v2884_v13  ;;  %v15283_v13 = vld [vmem:[#allocation204_spill] sm:$0xff]  ;;  %v2993_v16 = vmul.f32 1.442695, %v2878_v7 }
 0x5d8   : > { %15279 = vst [vmem:[#allocation224_spill] sm:$0xff] %v11899_v52  ;;  %v2856_v12 = vsub.f32 %v15283_v13, %v11762_v10 }
 0x5d9   : > { %3186 = vperm.xlu0 %8556, %v11873_v54   ;;  %v11907_v11 = vpop.eup %8750  ;;  %8762 = vpow2.f32 %v3005_v34  ;;  %v15286_v34 = vld [vmem:[#allocation206_spill] sm:$0xff] }
 0x5da   : > { %3150 = vperm.xlu1 %8557, %v11875_v1   ;;  %15281 = vst [vmem:[#allocation169_spill] sm:$0xff] %v11907_v11  ;;  %v11909_v26 = vpop.eup %8752  ;;  %v2965_v1 = vmul.f32 1.442695, %v2864_v37  ;;  %8764 = vpow2.f32 %v2961_v9  ;;  %v2858_v37 = vsub.f32 %v15286_v34, %v11762_v10  ;;  %v2949_v0 = vmul.f32 1.442695, %v2856_v12  ;;  %v15287_v9 = vld [vmem:[#allocation210_spill] sm:$0xff] }
 0x5db   : > { %15282 = vst [vmem:[#allocation225_spill] sm:$0xff] %v11909_v26  ;;  %v11917_v2 = vpop.eup %8754  ;;  %v2870_v31 = vsub.f32 %v15287_v9, %v11816_v35 }
 0x5dc   : > { %15284 = vst [vmem:[#allocation204_spill] sm:$0xff] %v11917_v2  ;;  %v11919_v23 = vpop.eup %8756  ;;  %8766 = vpow2.f32 %v2965_v1  ;;  %v2953_v4 = vmul.f32 1.442695, %v2858_v37  ;;  %v15290_v1 = vld [vmem:[#allocation212_spill] sm:$0xff] }
 0x5dd   : > { %3207 = vperm.xlu0 %8556, %v11887_v43   ;;  %15285 = vst [vmem:[#allocation226_spill] sm:$0xff] %v11919_v23  ;;  %8768 = vpow2.f32 %v2987_v44  ;;  %v2872_v7 = vsub.f32 %v15290_v1, %v11816_v35  ;;  %v2977_v34 = vmul.f32 1.442695, %v2870_v31  ;;  %v2883_v44 = vsub.f32 %v15220_v60, %v11880_v15 }
 0x5de   : > { %3156 = vperm.xlu1 %8557, %v11889_v29   ;;  %8770 = vpow2.f32 %v2993_v16  ;;  %v2886_v16 = vsub.f32 %v11476_v40, %v11880_v15 }
 0x5df   : > { %v11927_v39 = vpop.eup %8758  ;;  %8772 = vpow2.f32 %v2949_v0  ;;  %v3003_v37 = vmul.f32 1.442695, %v2883_v44  ;;  %v15293_v0 = vld [vmem:[#allocation205_spill] sm:$0xff] }
 0x5e0   : > { %15288 = vst [vmem:[#allocation206_spill] sm:$0xff] %v11927_v39  ;;  %v11929_v13 = vpop.eup %8760  ;;  %8774 = vpow2.f32 %v2953_v4  ;;  %v2857_v31 = vsub.f32 %v15293_v0, %v11762_v10  ;;  %v15296_v4 = vld [vmem:[#allocation213_spill] sm:$0xff] }
 0x5e1   : > { %3210 = vperm.xlu0 %8556, %v11897_v5   ;;  %15289 = vst [vmem:[#allocation210_spill] sm:$0xff] %v11929_v13  ;;  %8776 = vpow2.f32 %v2977_v34  ;;  %v15297_v34 = vld [vmem:[#allocation211_spill] sm:$0xff] }
 0x5e2   : > { %3162 = vperm.xlu1 %8557, %v11899_v52   ;;  %v2951_v40 = vmul.f32 1.442695, %v2857_v31  ;;  %v2871_v44 = vsub.f32 %v15297_v34, %v11816_v35 }
 0x5e3   : > { %v11937_v12 = vpop.eup %8762 }
 0x5e4   : > { %15291 = vst [vmem:[#allocation212_spill] sm:$0xff] %v11937_v12  ;;  %v11939_v9 = vpop.eup %8764 }
 0x5e5   : > { %3231 = vperm.xlu0 %8556, %v11907_v11   ;;  %15292 = vst [vmem:[#allocation227_spill] sm:$0xff] %v11939_v9 }
 0x5e6   : > { %3168 = vperm.xlu1 %8557, %v11909_v26   ;;  %v11947_v1 = vpop.eup %8766 }
 0x5e7   : > { %15294 = vst [vmem:[#allocation205_spill] sm:$0xff] %v11947_v1  ;;  %v11949_v60 = vpop.eup %8768 }
 0x5e8   : > { %15295 = vst [vmem:[#allocation228_spill] sm:$0xff] %v11949_v60  ;;  %v11957_v53 = vpop.eup %8770 }
 0x5e9   : > { %3192 = vperm.xlu0 %8556, %v11917_v2   ;;  %15298 = vst [vmem:[#allocation213_spill] sm:$0xff] %v11957_v53  ;;  %v11959_v10 = vpop.eup %8772 }
 0x5ea   : > { %3183 = vperm.xlu1 %8557, %v11919_v23   ;;  %15299 = vst [vmem:[#allocation211_spill] sm:$0xff] %v11959_v10  ;;  %v11967_v31 = vpop.eup %8774 }
 0x5eb   : > { %15300 = vst [vmem:[#allocation229_spill] sm:$0xff] %v11967_v31 }
 0x5ed   : > { %3234 = vperm.xlu0 %8556, %v11927_v39   ;;  %v2981_v39 = vmul.f32 1.442695, %v2872_v7  ;;  %v2873_v7 = vsub.f32 %v15296_v4, %v11816_v35  ;;  %v11969_v4 = vpop.eup %8776 }
 0x5ee   : > { %3204 = vperm.xlu1 %8557, %v11929_v13   ;;  %v3009_v13 = vmul.f32 1.442695, %v2886_v16  ;;  %v2979_v16 = vmul.f32 1.442695, %v2871_v44  ;;  %15301 = vst [vmem:[#allocation230_spill] sm:$0xff] %v11969_v4 }
 0x5ef   : > { %8778 = vpow2.f32 %v2981_v39  ;;  %v2983_v0 = vmul.f32 1.442695, %v2873_v7  ;;  %v2887_v39 = vsub.f32 %v11480_v45, %v11880_v15  ;;  %v15302_v7 = vld [vmem:[#allocation208_spill] sm:$0xff] }
 0x5f0   : > { %8780 = vpow2.f32 %v3003_v37  ;;  %v2885_v37 = vsub.f32 %v15222_v38, %v11880_v15 }
 0x5f1   : > { %3255 = vperm.xlu0 %8556, %v11937_v12   ;;  %8782 = vpow2.f32 %v3009_v13  ;;  %v3011_v34 = vmul.f32 1.442695, %v2887_v39  ;;  %v2881_v13 = vsub.f32 %v15223_v36, %v11843_v51  ;;  %v15305_v39 = vld [vmem:[#allocation173_spill] sm:$0xff] }
 0x5f2   : > { %3189 = vperm.xlu1 %8557, %v11939_v9   ;;  %8784 = vpow2.f32 %v2951_v40  ;;  %v3007_v45 = vmul.f32 1.442695, %v2885_v37  ;;  %v2865_v40 = vsub.f32 %v15302_v7, %v11789_v63 }
 0x5f3   : > { %8786 = vpow2.f32 %v2983_v0  ;;  %v2882_v0 = vsub.f32 %v15224_v6, %v11843_v51 }
 0x5f4   : > { %8788 = vpow2.f32 %v2979_v16  ;;  %v2967_v36 = vmul.f32 1.442695, %v2865_v40  ;;  %v2879_v16 = vsub.f32 %v15305_v39, %v11843_v51 }
 0x5f5   : > { %3195 = vperm.xlu0 %8556, %v11947_v1   ;;  %8790 = vpow2.f32 %v3011_v34  ;;  %v2890_v34 = vsub.f32 %v15225_v25, %v11880_v15 }
 0x5f6   : > { %3228 = vperm.xlu1 %8557, %v11949_v60   ;;  %8792 = vpow2.f32 %v3007_v45  ;;  %v2995_v6 = vmul.f32 1.442695, %v2879_v16 }
 0x5f9   : > { %3237 = vperm.xlu0 %8556, %v11957_v53   ;;  %v11977_v44 = vpop.eup %8778  ;;  %v3017_v53 = vmul.f32 1.442695, %v2890_v34 }
 0x5fa   : > { %3171 = vperm.xlu1 %8557, %v11959_v10   ;;  %15303 = vst [vmem:[#allocation208_spill] sm:$0xff] %v11977_v44  ;;  %v11979_v38 = vpop.eup %8780 }
 0x5fb   : > { %15304 = vst [vmem:[#allocation231_spill] sm:$0xff] %v11979_v38  ;;  %v11987_v37 = vpop.eup %8782 }
 0x5fc   : > { %15306 = vst [vmem:[#allocation173_spill] sm:$0xff] %v11987_v37  ;;  %v11989_v7 = vpop.eup %8784 }
 0x5fd   : > { %3177 = vperm.xlu0 %8556, %v11967_v31   ;;  %v2999_v31 = vmul.f32 1.442695, %v2881_v13  ;;  %15307 = vst [vmem:[#allocation232_spill] sm:$0xff] %v11989_v7  ;;  %v15308_v13 = vld [vmem:[#allocation209_spill] sm:$0xff]  ;;  %v11997_v40 = vpop.eup %8786 }
 0x5fe   : > { %3213 = vperm.xlu1 %8557, %v11969_v4   ;;  %v2866_v45 = vsub.f32 %v15308_v13, %v11789_v63  ;;  %15309 = vst [vmem:[#allocation209_spill] sm:$0xff] %v11997_v40  ;;  %v11999_v39 = vpop.eup %8788  ;;  %v2888_v13 = vsub.f32 %v11516_v14, %v11880_v15 }
 0x5ff   : > { %8794 = vpow2.f32 %v2999_v31  ;;  %15310 = vst [vmem:[#allocation233_spill] sm:$0xff] %v11999_v39 }
 0x600   : > { %8796 = vpow2.f32 %v2967_v36  ;;  %v2969_v31 = vmul.f32 1.442695, %v2866_v45  ;;  %v12005_v36 = vpop.eup %8790 }
 0x601   : > { %3219 = vperm.xlu0 %8556, %v11977_v44   ;;  %v3001_v44 = vmul.f32 1.442695, %v2882_v0  ;;  %v15311_v0 = vld [vmem:[#allocation172_spill] sm:$0xff]  ;;  %v12007_v16 = vpop.eup %8792 }
 0x602   : > { %3252 = vperm.xlu1 %8557, %v11979_v38   ;;  %v2880_v25 = vsub.f32 %v15311_v0, %v11843_v51  ;;  %15312 = vst [vmem:[#allocation172_spill] sm:$0xff] %v12005_v36  ;;  %15313 = vst [vmem:[#allocation234_spill] sm:$0xff] %v12007_v16 }
 0x603   : > { %8798 = vpow2.f32 %v3001_v44  ;;  %v2874_v44 = vsub.f32 %v15221_v33, %v11816_v35  ;;  %v3013_v33 = vmul.f32 1.442695, %v2888_v13  ;;  %v2889_v35 = vsub.f32 %v11520_v24, %v11880_v15 }
 0x604   : > { %8800 = vpow2.f32 %v2995_v6  ;;  %v2997_v63 = vmul.f32 1.442695, %v2880_v25 }
 0x605   : > { %3261 = vperm.xlu0 %8556, %v11987_v37   ;;  %8802 = vpow2.f32 %v3017_v53  ;;  %v2985_v51 = vmul.f32 1.442695, %v2874_v44  ;;  %v3015_v14 = vmul.f32 1.442695, %v2889_v35 }
 0x606   : > { %3174 = vperm.xlu1 %8557, %v11989_v7   ;;  %8804 = vpow2.f32 %v2969_v31 }
 0x607   : > { %8806 = vpow2.f32 %v2997_v63 }
 0x608   : > { %8808 = vpow2.f32 %v2985_v51 }
 0x609   : > { %3222 = vperm.xlu0 %8556, %v11997_v40   ;;  %v12013_v34 = vpop.eup %8794  ;;  %8810 = vpow2.f32 %v3013_v33 }
 0x60a   : > { %3216 = vperm.xlu1 %8557, %v11999_v39   ;;  %15314 = vst [vmem:[#allocation235_spill] sm:$0xff] %v12013_v34  ;;  %v12015_v6 = vpop.eup %8796  ;;  %8812 = vpow2.f32 %v3015_v14 }
 0x60b   : > { %15315 = vst [vmem:[#allocation236_spill] sm:$0xff] %v12015_v6 }
 0x60d   : > { %3264 = vperm.xlu0 %8556, %v12005_v36   ;;  %v12021_v45 = vpop.eup %8798 }
 0x60e   : > { %3258 = vperm.xlu1 %8557, %v12007_v16   ;;  %15316 = vst [vmem:[#allocation237_spill] sm:$0xff] %v12021_v45  ;;  %v12023_v53 = vpop.eup %8800 }
 0x60f   : > { %15317 = vst [vmem:[#allocation238_spill] sm:$0xff] %v12023_v53  ;;  %v12029_v31 = vpop.eup %8802 }
 0x610   : > { %15318 = vst [vmem:[#allocation239_spill] sm:$0xff] %v12029_v31  ;;  %v12031_v0 = vpop.eup %8804 }
 0x611   : > { %3246 = vperm.xlu0 %8556, %v12013_v34   ;;  %15319 = vst [vmem:[#allocation240_spill] sm:$0xff] %v12031_v0  ;;  %v12035_v25 = vpop.eup %8806 }
 0x612   : > { %3198 = vperm.xlu1 %8557, %v12015_v6   ;;  %15320 = vst [vmem:[#allocation241_spill] sm:$0xff] %v12035_v25  ;;  %v12038_v63 = vpop.eup %8808 }
 0x613   : > { %15321 = vst [vmem:[#allocation242_spill] sm:$0xff] %v12038_v63  ;;  %v12043_v15 = vpop.eup %8810 }
 0x614   : > { %15322 = vst [vmem:[#allocation243_spill] sm:$0xff] %v12043_v15  ;;  %v12050_v13 = vpop.eup %8812 }
 0x615   : > { %3249 = vperm.xlu0 %8556, %v12021_v45   ;;  %15323 = vst [vmem:[#allocation244_spill] sm:$0xff] %v12050_v13 }
 0x616   : > { %3240 = vperm.xlu1 %8557, %v12023_v53  }
 0x619   : > { %3273 = vperm.xlu0 %8556, %v12029_v31  }
 0x61a   : > { %3201 = vperm.xlu1 %8557, %v12031_v0  }
 0x61e   : > { %3243 = vperm.xlu1 %8557, %v12035_v25  }
 0x622   : > { %3225 = vperm.xlu1 %8557, %v12038_v63  }
 0x624   : > { %v12041_v24 = vpop.permute.xlu0 %3099 }
 0x625   : > { %v12045_v44 = vpop.permute.xlu1 %3084 }
 0x626   : > { %3267 = vperm.xlu1 %8557, %v12043_v15   ;;  %v3278_v21 = vrot.slane %v12045_v44, %v15329_v56 }
 0x628   : > { %v12048_v51 = vpop.permute.xlu0 %3105 }
 0x629   : > { %v3088_v33 = vpop.permute.xlu1 %3087 }
 0x62a   : > { %3270 = vperm.xlu1 %8557, %v12050_v13   ;;  %v3282_v43 = vrot.slane %v3088_v33, %v15328_v30 }
 0x62c   : > { %v3112_v35 = vpop.permute.xlu0 %3111 }
 0x62d   : > { %v3091_v14 = vpop.permute.xlu1 %3090  ;;  %v3321_v47 = vrot.slane %v3112_v35, %v15328_v30 }
 0x62e   : > { %v3287_v52 = vrot.slane %v3091_v14, %v11212_v32  ;;  %v3283_v14 = vsel %vm2450_vm2, %v3282_v43, %v3278_v21 }
 0x630   : > { %v12053_v31 = vpop.permute.xlu0 %3117  ;;  %v3288_v35 = vsel %vm2457_vm3, %v3287_v52, %v3283_v14 }
 0x631   : > { %v12055_v34 = vpop.permute.xlu1 %3093 }
 0x632   : > { %v3292_v20 = vrot.slane %v12055_v34, %v11215_v57 }
 0x634   : > { %v12057_v25 = vpop.permute.xlu0 %3123 }
 0x635   : > { %v12059_v53 = vpop.permute.xlu1 %3096 }
 0x638   : > { %v12061_v39 = vpop.permute.xlu0 %3129 }
 0x639   : > { %v12063_v15 = vpop.permute.xlu1 %3102 }
 0x63c   : > { %v3136_v45 = vpop.permute.xlu0 %3135 }
 0x63d   : > { %v3109_v63 = vpop.permute.xlu1 %3108 }
 0x63e   : > { %v3317_v46 = vrot.slane %v3109_v63, %v15329_v56 }
 0x640   : > { %v12065_v0 = vpop.permute.xlu0 %3141 }
 0x641   : > { %v3115_v4 = vpop.permute.xlu1 %3114 }
 0x642   : > { %v3326_v22 = vrot.slane %v3115_v4, %v11212_v32  ;;  %v3322_v4 = vsel %vm2450_vm2, %v3321_v47, %v3317_v46  ;;  %v3307_v47 = vrot.slane %v12063_v15, %v11224_v42 }
 0x644   : > { %v12067_v13 = vpop.permute.xlu0 %3147  ;;  %v3327_v34 = vsel %vm2457_vm3, %v3326_v22, %v3322_v4 }
 0x645   : > { %v12069_v40 = vpop.permute.xlu1 %3120 }
 0x648   : > { %v12071_v6 = vpop.permute.xlu0 %3153 }
 0x649   : > { %v12073_v36 = vpop.permute.xlu1 %3126 }
 0x64c   : > { %v12075_v38 = vpop.permute.xlu0 %3159 }
 0x64d   : > { %v3133_v7 = vpop.permute.xlu1 %3132 }
 0x64e   : > { %v3356_v33 = vrot.slane %v3133_v7, %v15329_v56  ;;  %v3331_v7 = vrot.slane %v12053_v31, %v11215_v57 }
 0x650   : > { %v12077_v1 = vpop.permute.xlu0 %3165  ;;  %v3332_v43 = vsel %vm2464_vm4, %v3331_v7, %v3327_v34 }
 0x651   : > { %v3139_v60 = vpop.permute.xlu1 %3138 }
 0x652   : > { %v3365_v44 = vrot.slane %v3139_v60, %v11212_v32  ;;  %v3302_v60 = vrot.slane %v12041_v24, %v11221_v3 }
 0x654   : > { %v12079_v37 = vpop.permute.xlu0 %3180 }
 0x655   : > { %v12081_v10 = vpop.permute.xlu1 %3144 }
 0x658   : > { %v12083_v27 = vpop.permute.xlu0 %3186 }
 0x659   : > { %v12085_v2 = vpop.permute.xlu1 %3150 }
 0x65c   : > { %v12087_v48 = vpop.permute.xlu0 %3207 }
 0x65d   : > { %v12089_v16 = vpop.permute.xlu1 %3156 }
 0x65e   : > { %v3395_v14 = vrot.slane %v12089_v16, %v15329_v56  ;;  %v3434_v16 = vrot.slane %v12079_v37, %v15329_v56 }
 0x660   : > { %v12091_v23 = vpop.permute.xlu0 %3210 }
 0x661   : > { %v12093_v26 = vpop.permute.xlu1 %3162 }
 0x664   : > { %v12095_v58 = vpop.permute.xlu0 %3231 }
 0x665   : > { %v12097_v18 = vpop.permute.xlu1 %3168 }
 0x668   : > { %v12099_v62 = vpop.permute.xlu0 %3192 }
 0x669   : > { %v12101_v9 = vpop.permute.xlu1 %3183 }
 0x66a   : > { %v3438_v4 = vrot.slane %v12101_v9, %v15328_v30 }
 0x66c   : > { %v12103_v29 = vpop.permute.xlu0 %3234  ;;  %v3439_v37 = vsel %vm2450_vm2, %v3438_v4, %v3434_v16 }
 0x66d   : > { %v12105_v12 = vpop.permute.xlu1 %3204 }
 0x670   : > { %v12107_v50 = vpop.permute.xlu0 %3255 }
 0x671   : > { %v12109_v17 = vpop.permute.xlu1 %3189 }
 0x674   : > { %v12111_v5 = vpop.permute.xlu0 %3195 }
 0x675   : > { %15324 = vst [vmem:[#allocation245_spill] sm:$0xff] %v12111_v5  ;;  %v12113_v55 = vpop.permute.xlu1 %3228 }
 0x678   : > { %v12115_v19 = vpop.permute.xlu0 %3237 }
 0x679   : > { %15325 = vst [vmem:[#allocation246_spill] sm:$0xff] %v12115_v19  ;;  %v12117_v49 = vpop.permute.xlu1 %3171  ;;  %v3360_v19 = vrot.slane %v3136_v45, %v15328_v30  ;;  %v3341_v45 = vrot.slane %v12057_v25, %v11221_v3 }
 0x67b   : > { %v3361_v46 = vsel %vm2450_vm2, %v3360_v19, %v3356_v33  ;;  %v3346_v19 = vrot.slane %v12073_v36, %v11224_v42  ;;  %v3385_v36 = vrot.slane %v12085_v2, %v11224_v42  ;;  %v3380_v33 = vrot.slane %v12067_v13, %v11221_v3 }
 0x67c   : > { %v12121_v8 = vpop.permute.xlu0 %3177  ;;  %v3366_v22 = vsel %vm2457_vm3, %v3365_v44, %v3361_v46  ;;  %v3312_v44 = vrot.slane %v12048_v51, %v11227_v59  ;;  %v3404_v2 = vrot.slane %v12093_v26, %v11212_v32  ;;  %v3399_v13 = vrot.slane %v12075_v38, %v15328_v30 }
 0x67d   : > { %v12119_v11 = vpop.permute.xlu1 %3213  ;;  %15326 = vst [vmem:[#allocation247_spill] sm:$0xff] %v12121_v8  ;;  %v15330_v8 = vld [vmem:[#allocation187_spill] sm:$0xff]  ;;  %v3473_v26 = vrot.slane %v12105_v12, %v15329_v56  ;;  %v3448_v46 = vrot.slane %v12109_v17, %v11215_v57 }
 0x67e   : > { %v3336_v5 = vrot.slane %v12069_v40, %v15330_v8  ;;  %v3375_v52 = vrot.slane %v12081_v10, %v15330_v8  ;;  %v3400_v38 = vsel %vm2450_vm2, %v3399_v13, %v3395_v14  ;;  %v3414_v12 = vrot.slane %v12097_v18, %v15330_v8 }
 0x67f   : > { %v3482_v18 = vrot.slane %v12091_v23, %v11212_v32 }
 0x680   : > { %v12125_v54 = vpop.permute.xlu0 %3219  ;;  %v15333_v14 = vld [vmem:[#allocation246_spill] sm:$0xff] }
 0x681   : > { %v12123_v28 = vpop.permute.xlu1 %3252  ;;  %15327 = vst [vmem:[#allocation248_spill] sm:$0xff] %v12125_v54  ;;  %v3297_v54 = vrot.slane %v12059_v53, %v15330_v8  ;;  %v3293_v53 = vsel %vm2464_vm4, %v3292_v20, %v3288_v35  ;;  %v3370_v20 = vrot.slane %v12065_v0, %v11215_v57  ;;  %v3351_v35 = vrot.slane %v12061_v39, %v11227_v59 }
 0x683   : > { %v3298_v21 = vsel %vm2471_vm5, %v3297_v54, %v3293_v53  ;;  %v3337_v54 = vsel %vm2471_vm5, %v3336_v5, %v3332_v43  ;;  %v3371_v15 = vsel %vm2464_vm4, %v3370_v20, %v3366_v22  ;;  %v3477_v43 = vrot.slane %v12087_v48, %v15328_v30 }
 0x684   : > { %v12143_v63 = vpop.permute.xlu0 %3261  ;;  %v3303_v10 = vsel %vm2478_vm6, %v3302_v60, %v3298_v21  ;;  %v3342_v0 = vsel %vm2478_vm6, %v3341_v45, %v3337_v54  ;;  %v3376_v5 = vsel %vm2471_vm5, %v3375_v52, %v3371_v15  ;;  %v3390_v21 = vrot.slane %v12071_v6, %v11227_v59 }
 0x685   : > { %v12127_v41 = vpop.permute.xlu1 %3174  ;;  %15331 = vst [vmem:[#allocation249_spill] sm:$0xff] %v12143_v63  ;;  %v3308_v24 = vsel %vm2485_vm7, %v3307_v47, %v3303_v10  ;;  %v3347_v25 = vsel %vm2485_vm7, %v3346_v19, %v3342_v0  ;;  %v3381_v7 = vsel %vm2478_vm6, %v3380_v33, %v3376_v5  ;;  %v3443_v47 = vrot.slane %v12083_v27, %v11212_v32 }
 0x686   : > { %v3313_v51 = vsel %vm2492_vm8, %v3312_v44, %v3308_v24  ;;  %v3352_v53 = vsel %vm2492_vm8, %v3351_v35, %v3347_v25  ;;  %v3386_v39 = vsel %vm2485_vm7, %v3385_v36, %v3381_v7  ;;  %v3405_v22 = vsel %vm2457_vm3, %v3404_v2, %v3400_v38  ;;  %v15332_v25 = vld [vmem:[#allocation245_spill] sm:$0xff] }
 0x687   : > { %v3587_v6 = vsel %vm2767_vm9, %v3352_v53, %v3313_v51  ;;  %v3409_v60 = vrot.slane %v12077_v1, %v11215_v57  ;;  %v3391_v20 = vsel %vm2492_vm8, %v3390_v21, %v3386_v39  ;;  %v3478_v17 = vsel %vm2450_vm2, %v3477_v43, %v3473_v26  ;;  %v15335_v26 = vld [vmem:[#allocation247_spill] sm:$0xff] }
 0x688   : > { %v12173_v40 = vpop.permute.xlu0 %3222  ;;  %v3444_v27 = vsel %vm2457_vm3, %v3443_v47, %v3439_v37  ;;  %v3512_v48 = vrot.slane %v12113_v55, %v15329_v56  ;;  %v3487_v54 = vrot.slane %v12119_v11, %v11215_v57  ;;  %v3516_v15 = vrot.slane %v12095_v58, %v15328_v30  ;;  %v15334_v35 = vld [vmem:[#allocation248_spill] sm:$0xff] }
 0x689   : > { %v12138_v61 = vpop.permute.xlu1 %3216  ;;  %v3410_v19 = vsel %vm2464_vm4, %v3409_v60, %v3405_v22  ;;  %v3449_v45 = vsel %vm2464_vm4, %v3448_v46, %v3444_v27  ;;  %v3453_v55 = vrot.slane %v12099_v62, %v15330_v8  ;;  %v3419_v11 = vrot.slane %v12117_v49, %v11221_v3 }
 0x68a   : > { %v3492_v1 = vrot.slane %v12138_v61, %v15330_v8  ;;  %v3415_v24 = vsel %vm2471_vm5, %v3414_v12, %v3410_v19  ;;  %v3521_v0 = vrot.slane %v12103_v29, %v11212_v32  ;;  %v3555_v5 = vrot.slane %v12107_v50, %v15328_v30 }
 0x68b   : > { %v3483_v61 = vsel %vm2457_vm3, %v3482_v18, %v3478_v17  ;;  %v3424_v58 = vrot.slane %v12127_v41, %v11224_v42  ;;  %v3454_v36 = vsel %vm2471_vm5, %v3453_v55, %v3449_v45  ;;  %v3517_v33 = vsel %vm2450_vm2, %v3516_v15, %v3512_v48 }
 0x68c   : > { %v12206_v9 = vpop.permute.xlu0 %3264  ;;  %v3488_v62 = vsel %vm2464_vm4, %v3487_v54, %v3483_v61  ;;  %v3551_v49 = vrot.slane %v12123_v28, %v15329_v56  ;;  %v3458_v29 = vrot.slane %v15332_v25, %v11221_v3  ;;  %v3526_v50 = vrot.slane %v15333_v14, %v11215_v57  ;;  %v15336_v22 = vld [vmem:[#allocation249_spill] sm:$0xff]  ;;  %v15422_v56 = vld [vmem:[#allocation68_spill] sm:$0xff] }
 0x68d   : > { %v12156_v63 = vpop.permute.xlu1 %3258  ;;  %v3493_v4 = vsel %vm2471_vm5, %v3492_v1, %v3488_v62  ;;  %v3420_v44 = vsel %vm2478_vm6, %v3419_v11, %v3415_v24  ;;  %v3497_v2 = vrot.slane %v15334_v35, %v11221_v3  ;;  %v3522_v7 = vsel %vm2457_vm3, %v3521_v0, %v3517_v33 }
 0x68e   : > { %v3560_v41 = vrot.slane %v12156_v63, %v11212_v32  ;;  %v3425_v51 = vsel %vm2485_vm7, %v3424_v58, %v3420_v44  ;;  %v3429_v21 = vrot.slane %v15335_v26, %v11227_v59  ;;  %v3556_v38 = vsel %vm2450_vm2, %v3555_v5, %v3551_v49  ;;  %v15338_v44 = vld [vmem:[#allocation102_spill] sm:$0xff]  ;;  %v15421_v32 = vld [vmem:[#allocation36_spill] sm:$0xff] }
 0x68f   : > { %v3527_v46 = vsel %vm2464_vm4, %v3526_v50, %v3522_v7  ;;  %v3502_v47 = vrot.slane %v12173_v40, %v11224_v42  ;;  %v3565_v12 = vrot.slane %v15336_v22, %v11215_v57  ;;  %v3588_v48 = vsel %vm2769_vm10, %v3391_v20, %v3587_v6  ;;  %v15341_v7 = vld [vmem:[#allocation176_spill] sm:$0xff] }
 0x690   : > { %v3247_v10 = vpop.permute.xlu0 %3246  ;;  %v3561_v43 = vsel %vm2457_vm3, %v3560_v41, %v3556_v38  ;;  %v3570_v24 = vrot.slane %v12206_v9, %v15330_v8  ;;  %v15348_v22 = vld [vmem:[#allocation192_spill] sm:$0xff] }
 0x691   : > { %v12177_v31 = vpop.permute.xlu1 %3198  ;;  %v3566_v19 = vsel %vm2464_vm4, %v3565_v12, %v3561_v43  ;;  %v3541_v45 = vrot.slane %v3247_v10, %v11224_v42 }
 0x692   : > { %v3463_v13 = vrot.slane %v12177_v31, %v11224_v42  ;;  %v3498_v31 = vsel %vm2478_vm6, %v3497_v2, %v3493_v4  ;;  %v3571_v5 = vsel %vm2471_vm5, %v3570_v24, %v3566_v19  ;;  %v15337_v4 = vld [vmem:[#allocation178_spill] sm:$0xff]  ;;  %v15339_v2 = vld [vmem:[#allocation217_spill] sm:$0xff]  ;;  %v15355_v24 = vld [vmem:[#allocation168_spill] sm:$0xff] }
 0x693   : > { %v3503_v40 = vsel %vm2485_vm7, %v3502_v47, %v3498_v31  ;;  %v15345_v31 = vld [vmem:[#allocation196_spill] sm:$0xff]  ;;  %v15347_v47 = vld [vmem:[#allocation171_spill] sm:$0xff]  ;;  %v15353_v19 = vld [vmem:[#allocation193_spill] sm:$0xff] }
 0x694   : > { %v3250_v53 = vpop.permute.xlu0 %3249 }
 0x695   : > { %v12199_v34 = vpop.permute.xlu1 %3240  ;;  %v3546_v0 = vrot.slane %v3250_v53, %v11227_v59  ;;  %v15342_v53 = vld [vmem:[#allocation179_spill] sm:$0xff] }
 0x696   : > { %v3531_v28 = vrot.slane %v12199_v34, %v15330_v8  ;;  %v3459_v34 = vsel %vm2478_vm6, %v3458_v29, %v3454_v36  ;;  %v15420_v8 = vld [vmem:[#allocation46_spill] sm:$0xff] }
 0x697   : > { %v3464_v60 = vsel %vm2485_vm7, %v3463_v13, %v3459_v34  ;;  %v15346_v34 = vld [vmem:[#allocation221_spill] sm:$0xff] }
 0x698   : > { %v3532_v17 = vsel %vm2471_vm5, %v3531_v28, %v3527_v46  ;;  %v3274_v55 = vpop.permute.xlu0 %3273  ;;  %v15340_v28 = vld [vmem:[#allocation180_spill] sm:$0xff] }
 0x699   : > { %v3202_v52 = vpop.permute.xlu1 %3201  ;;  %v3585_v58 = vrot.slane %v3274_v55, %v11227_v59 }
 0x69a   : > { %v3468_v39 = vrot.slane %v3202_v52, %v11227_v59  ;;  %v3430_v52 = vsel %vm2492_vm8, %v3429_v21, %v3425_v51  ;;  %v15344_v21 = vld [vmem:[#allocation199_spill] sm:$0xff] }
 0x69b   : > { %v3589_v6 = vsel %vm2771_vm11, %v3430_v52, %v3588_v48  ;;  %v15349_v52 = vld [vmem:[#allocation207_spill] sm:$0xff]  ;;  %v15351_v48 = vld [vmem:[#allocation214_spill] sm:$0xff] }
 0x69c   : > { %v3469_v54 = vsel %vm2492_vm8, %v3468_v39, %v3464_v60 }
 0x69d   : > { %v3244_v23 = vpop.permute.xlu1 %3243  ;;  %v3590_v20 = vsel %vm2773_vm12, %v3469_v54, %v3589_v6  ;;  %v15356_v6 = vld [vmem:[#allocation223_spill] sm:$0xff] }
 0x69e   : > { %v3536_v63 = vrot.slane %v3244_v23, %v11221_v3 }
 0x6a0   : > { %v3537_v18 = vsel %vm2478_vm6, %v3536_v63, %v3532_v17  ;;  %v15343_v63 = vld [vmem:[#allocation224_spill] sm:$0xff]  ;;  %v15350_v17 = vld [vmem:[#allocation215_spill] sm:$0xff] }
 0x6a1   : > { %v3226_v16 = vpop.permute.xlu1 %3225  ;;  %v3542_v11 = vsel %vm2485_vm7, %v3541_v45, %v3537_v18  ;;  %v15352_v18 = vld [vmem:[#allocation169_spill] sm:$0xff] }
 0x6a2   : > { %v3507_v37 = vrot.slane %v3226_v16, %v11227_v59  ;;  %v3547_v33 = vsel %vm2492_vm8, %v3546_v0, %v3542_v11  ;;  %v15357_v11 = vld [vmem:[#allocation195_spill] sm:$0xff]  ;;  %v15419_v59 = vld [vmem:[#allocation52_spill] sm:$0xff] }
 0x6a3   : > { %v15358_v0 = vld [vmem:[#allocation219_spill] sm:$0xff] }
 0x6a4   : > { %v3508_v1 = vsel %vm2492_vm8, %v3507_v37, %v3503_v40 }
 0x6a5   : > { %v3268_v27 = vpop.permute.xlu1 %3267  ;;  %v3591_v61 = vsel %vm2775_vm13, %v3508_v1, %v3590_v20  ;;  %v15354_v1 = vld [vmem:[#allocation198_spill] sm:$0xff] }
 0x6a6   : > { %v3575_v15 = vrot.slane %v3268_v27, %v11221_v3  ;;  %v3592_v49 = vsel %vm2777_vm14, %v3547_v33, %v3591_v61 }
 0x6a8   : > { %v3576_v9 = vsel %vm2478_vm6, %v3575_v15, %v3571_v5 }
 0x6a9   : > { %v3271_v23 = vpop.permute.xlu1 %3270 }
 0x6aa   : > { %v3580_v10 = vrot.slane %v3271_v23, %v11224_v42 }
 0x6ac   : > { %v3581_v36 = vsel %vm2485_vm7, %v3580_v10, %v3576_v9  ;;  %v15359_v10 = vld [vmem:[#allocation212_spill] sm:$0xff] }
 0x6ad   : > { %v3586_v62 = vsel %vm2492_vm8, %v3585_v58, %v3581_v36  ;;  %v15360_v58 = vld [vmem:[#allocation222_spill] sm:$0xff]  ;;  %v15361_v36 = vld [vmem:[#allocation227_spill] sm:$0xff] }
 0x6ae   : > { %v3593_v25 = vsel %vm2779_vm15, %v3586_v62, %v3592_v49  ;;  %v15362_v62 = vld [vmem:[#allocation202_spill] sm:$0xff] }
 0x6af   : > { %v3595_v29 = vsel %vm2782_vm0, %v3593_v25, 0.0  ;;  %v15363_v25 = vld [vmem:[#allocation174_spill] sm:$0xff] }
 0x6b0   : > { %3596 = vadd.xlane.f32.xlu1 %v3595_v29 }
 0x73d   : > { %v3597_v14 = vpop.xlane.xlu1 %3596 }
 0x73e   : > { %8814 = vrcp.f32 %v3597_v14  ;;  %v15364_v14 = vld [vmem:[#allocation203_spill] sm:$0xff] }
 0x748   : > { %v8815_v50 = vpop.eup %8814 }
 0x749   : > { %v12320_v41 = vrot.slane %v8815_v50, %v15337_v4  ;;  %v12323_v35 = vrot.slane %v8815_v50, %v15338_v44  ;;  %v12330_v51 = vrot.slane %v8815_v50, %v15341_v7  ;;  %v12333_v39 = vrot.slane %v8815_v50, %v15342_v53  ;;  %v15417_v7 = vld [vmem:[#allocation35_spill] sm:$0xff]  ;;  %v15418_v53 = vld [vmem:[#allocation44_spill] sm:$0xff] }
 0x74a   : > { %v12340_v37 = vrot.slane %v8815_v50, %v15345_v31  ;;  %v12347_v12 = vrot.slane %v8815_v50, %v15348_v22  ;;  %v12354_v54 = vrot.slane %v8815_v50, %v15351_v48  ;;  %v12369_v5 = vrot.slane %v8815_v50, %v15358_v0  ;;  %v15415_v0 = vld [vmem:[#allocation43_spill] sm:$0xff] }
 0x74b   : > { %v3658_v13 = vmul.f32 %v15339_v2, %v12320_v41  ;;  %v3640_v16 = vmul.f32 %v15340_v28, %v12323_v35  ;;  %v3666_v26 = vmul.f32 %v15343_v63, %v12330_v51  ;;  %v3648_v38 = vmul.f32 %v15344_v21, %v12333_v39  ;;  %v15365_v2 = vld [vmem:[#allocation225_spill] sm:$0xff]  ;;  %v15366_v28 = vld [vmem:[#allocation226_spill] sm:$0xff]  ;;  %v15416_v31 = vld [vmem:[#allocation51_spill] sm:$0xff] }
 0x74c   : > { %v3681_v46 = vmul.f32 %v15346_v34, %v12340_v37  ;;  %v3649_v43 = vmul.f32 %v15347_v47, %v12333_v39  ;;  %v3674_v60 = vmul.f32 %v15349_v52, %v12347_v12  ;;  %v3656_v27 = vmul.f32 %v15350_v17, %v12320_v41  ;;  %v15367_v63 = vld [vmem:[#allocation234_spill] sm:$0xff]  ;;  %v4619_v34 = vld [vmem:[#allocation14 + $0x80] sm:$0xff] }
 0x74d   : > { %3796 = vperm.xlu1 %8557, %v3658_v13   ;;  %3706 = vperm.xlu0 %8556, %v3640_v16   ;;  %v3689_v40 = vmul.f32 %v15352_v18, %v12354_v54  ;;  %v3657_v45 = vmul.f32 %v15353_v19, %v12320_v41  ;;  %v3652_v15 = vmul.f32 %v15354_v1, %v12333_v39  ;;  %v15368_v21 = vld [vmem:[#allocation170_spill] sm:$0xff]  ;;  %v15372_v18 = vld [vmem:[#allocation181_spill] sm:$0xff]  ;;  %v15374_v1 = vld [vmem:[#allocation211_spill] sm:$0xff] }
 0x74e   : > { %v3641_v55 = vmul.f32 %v15355_v24, %v12323_v35  ;;  %v3682_v20 = vmul.f32 %v15356_v6, %v12340_v37  ;;  %v3650_v23 = vmul.f32 %v15357_v11, %v12333_v39  ;;  %v3697_v61 = vmul.f32 %v15359_v10, %v12369_v5  ;;  %v15373_v19 = vld [vmem:[#allocation210_spill] sm:$0xff]  ;;  %v15376_v6 = vld [vmem:[#allocation173_spill] sm:$0xff]  ;;  %v15377_v11 = vld [vmem:[#allocation228_spill] sm:$0xff] }
 0x74f   : > { %v3664_v9 = vmul.f32 %v15360_v58, %v12330_v51  ;;  %v3675_v33 = vmul.f32 %v15361_v36, %v12347_v12  ;;  %v3665_v49 = vmul.f32 %v15362_v62, %v12330_v51  ;;  %v3644_v29 = vmul.f32 %v15363_v25, %v12323_v35  ;;  %v15375_v24 = vld [vmem:[#allocation194_spill] sm:$0xff] }
 0x750   : > { %v3672_v50 = vmul.f32 %v15364_v14, %v12347_v12  ;;  %v3668_v13 = vmul.f32 %v15365_v2, %v12330_v51  ;;  %v3673_v16 = vmul.f32 %v15366_v28, %v12347_v12  ;;  %v4621_v10 = vld [vmem:[#allocation14 + $0x90] sm:$0xff] }
 0x751   : > { %3836 = vperm.xlu1 %8557, %v3666_v26   ;;  %3746 = vperm.xlu0 %8556, %v3648_v38   ;;  %v3698_v26 = vmul.f32 %v15367_v63, %v12369_v5  ;;  %v3642_v38 = vmul.f32 %v15368_v21, %v12323_v35 }
 0x755   : > { %3911 = vperm.xlu1 %8557, %v3681_v46   ;;  %3751 = vperm.xlu0 %8556, %v3649_v43   ;;  %v4620_v46 = vld [vmem:[#allocation14 + $0x88] sm:$0xff]  ;;  %v15369_v43 = vld [vmem:[#allocation204_spill] sm:$0xff] }
 0x756   : > { %v8334_v47 = vpack.c.bf16 %v4620_v46, %v4619_v34  ;;  %v3676_v52 = vmul.f32 %v15369_v43, %v12347_v12  ;;  %v4624_v34 = vld [vmem:[#allocation14 + $0xa8] sm:$0xff] }
 0x758   : > { %8335 = vmatpush3.bf16.msra.mxu1 %v8334_v47  ;;  %v15386_v47 = vld [vmem:[#allocation236_spill] sm:$0xff] }
 0x759   : > { %3876 = vperm.xlu1 %8557, %v3674_v60   ;;  %3786 = vperm.xlu0 %8556, %v3656_v27   ;;  %v15370_v60 = vld [vmem:[#allocation177_spill] sm:$0xff]  ;;  %v15371_v27 = vmov 0.0|0.0   ;;  %v3678_v43 = vmul.f32 %v15386_v47, %v12347_v12 }
 0x75a   : > { %v3651_v17 = vmul.f32 %v15370_v60, %v12333_v39  ;;  %8336 = vmatprep.subr.bf16.mxu1 %v15371_v27 }
 0x75d   : > { %3951 = vperm.xlu1 %8557, %v3689_v40   ;;  %3791 = vperm.xlu0 %8556, %v3657_v45   ;;  %v3645_v40 = vmul.f32 %v15372_v18, %v12323_v35  ;;  %v3680_v45 = vmul.f32 %v15373_v19, %v12340_v37 }
 0x761   : > { %3766 = vperm.xlu1 %8557, %v3652_v15   ;;  %3711 = vperm.xlu0 %8556, %v3641_v55   ;;  %v3669_v15 = vmul.f32 %v15374_v1, %v12330_v51  ;;  %v3659_v55 = vmul.f32 %v15375_v24, %v12320_v41 }
 0x765   : > { %3916 = vperm.xlu1 %8557, %v3682_v20   ;;  %3756 = vperm.xlu0 %8556, %v3650_v23   ;;  %v3699_v20 = vmul.f32 %v15376_v6, %v12369_v5  ;;  %v3688_v23 = vmul.f32 %v15377_v11, %v12354_v54 }
 0x769   : > { %3991 = vperm.xlu1 %8557, %v3697_v61   ;;  %3826 = vperm.xlu0 %8556, %v3664_v9   ;;  %v4622_v61 = vld [vmem:[#allocation14 + $0x98] sm:$0xff]  ;;  %v15378_v9 = vld [vmem:[#allocation205_spill] sm:$0xff] }
 0x76a   : > { %v8337_v58 = vpack.c.bf16 %v4622_v61, %v4621_v10  ;;  %v3677_v36 = vmul.f32 %v15378_v9, %v12347_v12  ;;  %v15395_v10 = vld [vmem:[#allocation213_spill] sm:$0xff] }
 0x76b   : > { %v3691_v61 = vmul.f32 %v15395_v10, %v12354_v54 }
 0x76c   : > { %8338 = vmatpush3.bf16.msra.mxu1 %v8337_v58  ;;  %v15396_v58 = vld [vmem:[#allocation237_spill] sm:$0xff] }
 0x76d   : > { %3881 = vperm.xlu1 %8557, %v3675_v33   ;;  %3831 = vperm.xlu0 %8556, %v3665_v49   ;;  %v15379_v33 = vld [vmem:[#allocation167_spill] sm:$0xff]  ;;  %v15380_v49 = vld [vmem:[#allocation100_spill] sm:$0xff]  ;;  %v3695_v9 = vmul.f32 %v15396_v58, %v12354_v54 }
 0x76e   : > { %v3643_v62 = vmul.f32 %v15379_v33, %v12323_v35  ;;  %8339 = vmatprep.subr.bf16.mxu1 %v15371_v27  ;;  %v3646_v25 = vmul.f32 %v15380_v49, %v12323_v35 }
 0x771   : > { %3726 = vperm.xlu1 %8557, %v3644_v29   ;;  %3866 = vperm.xlu0 %8556, %v3672_v50   ;;  %v15381_v29 = vld [vmem:[#allocation216_spill] sm:$0xff] }
 0x772   : > { %v3667_v14 = vmul.f32 %v15381_v29, %v12330_v51  ;;  %v15382_v50 = vld [vmem:[#allocation232_spill] sm:$0xff] }
 0x773   : > { %v3670_v2 = vmul.f32 %v15382_v50, %v12330_v51 }
 0x775   : > { %3846 = vperm.xlu1 %8557, %v3668_v13   ;;  %3871 = vperm.xlu0 %8556, %v3673_v16   ;;  %v15383_v13 = vld [vmem:[#allocation231_spill] sm:$0xff]  ;;  %v15384_v16 = vld [vmem:[#allocation172_spill] sm:$0xff] }
 0x776   : > { %v3696_v28 = vmul.f32 %v15383_v13, %v12369_v5  ;;  %v3700_v63 = vmul.f32 %v15384_v16, %v12369_v5  ;;  %v4628_v16 = vld [vmem:[#allocation14 + $0xc8] sm:$0xff] }
 0x779   : > { %3996 = vperm.xlu1 %8557, %v3698_v26   ;;  %3716 = vperm.xlu0 %8556, %v3642_v38   ;;  %v15385_v26 = vld [vmem:[#allocation218_spill] sm:$0xff]  ;;  %v4623_v38 = vld [vmem:[#allocation14 + $0xa0] sm:$0xff] }
 0x77a   : > { %v3660_v21 = vmul.f32 %v15385_v26, %v12320_v41  ;;  %v8340_v46 = vpack.c.bf16 %v4624_v34, %v4623_v38  ;;  %v15401_v26 = vld [vmem:[#allocation191_spill] sm:$0xff]  ;;  %v15402_v38 = vld [vmem:[#allocation208_spill] sm:$0xff] }
 0x77b   : > { %v3685_v34 = vmul.f32 %v15402_v38, %v12340_v37 }
 0x77c   : > { %8341 = vmatpush3.bf16.msra.mxu1 %v8340_v46  ;;  %v15403_v46 = vld [vmem:[#allocation200_spill] sm:$0xff] }
 0x77d   : > { %3886 = vperm.xlu1 %8557, %v3676_v52   ;;  %3761 = vperm.xlu0 %8556, %v3651_v17   ;;  %v15387_v52 = vld [vmem:[#allocation206_spill] sm:$0xff]  ;;  %v3663_v47 = vmul.f32 %v15403_v46, %v12320_v41 }
 0x77e   : > { %v3690_v60 = vmul.f32 %v15387_v52, %v12354_v54  ;;  %8342 = vmatprep.subr.bf16.mxu1 %v15371_v27  ;;  %v15388_v17 = vld [vmem:[#allocation182_spill] sm:$0xff] }
 0x77f   : > { %v3647_v18 = vmul.f32 %v15388_v17, %v12323_v35  ;;  %v15394_v35 = vld [vmem:[#allocation242_spill] sm:$0xff] }
 0x781   : > { %3731 = vperm.xlu1 %8557, %v3645_v40   ;;  %3906 = vperm.xlu0 %8556, %v3680_v45   ;;  %v15389_v40 = vld [vmem:[#allocation175_spill] sm:$0xff]  ;;  %v15390_v45 = vld [vmem:[#allocation209_spill] sm:$0xff] }
 0x782   : > { %v3653_v19 = vmul.f32 %v15389_v40, %v12333_v39  ;;  %v3686_v1 = vmul.f32 %v15390_v45, %v12340_v37 }
 0x785   : > { %3851 = vperm.xlu1 %8557, %v3669_v15   ;;  %3801 = vperm.xlu0 %8556, %v3659_v55   ;;  %v15391_v15 = vld [vmem:[#allocation230_spill] sm:$0xff]  ;;  %v15392_v55 = vld [vmem:[#allocation240_spill] sm:$0xff] }
 0x786   : > { %v3683_v24 = vmul.f32 %v15391_v15, %v12340_v37  ;;  %v3679_v6 = vmul.f32 %v15392_v55, %v12347_v12  ;;  %v4625_v12 = vld [vmem:[#allocation14 + $0xb0] sm:$0xff]  ;;  %v15407_v15 = vld [vmem:[#allocation235_spill] sm:$0xff] }
 0x789   : > { %4001 = vperm.xlu1 %8557, %v3699_v20   ;;  %3946 = vperm.xlu0 %8556, %v3688_v23   ;;  %v15393_v20 = vld [vmem:[#allocation197_spill] sm:$0xff]  ;;  %v3687_v23 = vmul.f32 %v15394_v35, %v12340_v37  ;;  %v15408_v35 = vld [vmem:[#allocation244_spill] sm:$0xff] }
 0x78a   : > { %v3661_v11 = vmul.f32 %v15393_v20, %v12320_v41  ;;  %v4630_v20 = vld [vmem:[#allocation14 + $0xd8] sm:$0xff] }
 0x78d   : > { %3891 = vperm.xlu1 %8557, %v3677_v36   ;;  %3721 = vperm.xlu0 %8556, %v3643_v62   ;;  %v15397_v36 = vld [vmem:[#allocation201_spill] sm:$0xff]  ;;  %v4626_v62 = vld [vmem:[#allocation14 + $0xb8] sm:$0xff] }
 0x78e   : > { %v3654_v33 = vmul.f32 %v15397_v36, %v12333_v39  ;;  %v8343_v49 = vpack.c.bf16 %v4626_v62, %v4625_v12  ;;  %v4631_v12 = vld [vmem:[#allocation14 + $0xe0] sm:$0xff]  ;;  %v4632_v62 = vld [vmem:[#allocation14 + $0xe8] sm:$0xff] }
 0x790   : > { %8344 = vmatpush3.bf16.msra.mxu1 %v8343_v49 }
 0x791   : > { %3736 = vperm.xlu1 %8557, %v3646_v25   ;;  %3841 = vperm.xlu0 %8556, %v3667_v14   ;;  %v15398_v25 = vld [vmem:[#allocation233_spill] sm:$0xff]  ;;  %v15399_v14 = vld [vmem:[#allocation220_spill] sm:$0xff] }
 0x792   : > { %v3684_v29 = vmul.f32 %v15398_v25, %v12340_v37  ;;  %8345 = vmatprep.subr.bf16.mxu1 %v15371_v27  ;;  %v3662_v50 = vmul.f32 %v15399_v14, %v12320_v41  ;;  %v15406_v37 = vld [vmem:[#allocation243_spill] sm:$0xff] }
 0x793   : > { %v3701_v41 = vmul.f32 %v15406_v37, %v12369_v5 }
 0x795   : > { %3856 = vperm.xlu1 %8557, %v3670_v2   ;;  %3986 = vperm.xlu0 %8556, %v3696_v28   ;;  %v15400_v2 = vld [vmem:[#allocation238_spill] sm:$0xff]  ;;  %v4627_v28 = vld [vmem:[#allocation14 + $0xc0] sm:$0xff] }
 0x796   : > { %v3692_v13 = vmul.f32 %v15400_v2, %v12354_v54 }
 0x799   : > { %4006 = vperm.xlu1 %8557, %v3700_v63   ;;  %3806 = vperm.xlu0 %8556, %v3660_v21   ;;  %v8346_v63 = vpack.c.bf16 %v4628_v16, %v4627_v28  ;;  %v3655_v21 = vmul.f32 %v15401_v26, %v12333_v39  ;;  %v15405_v39 = vld [vmem:[#allocation229_spill] sm:$0xff]  ;;  %v4633_v16 = vld [vmem:[#allocation14 + $0xf0] sm:$0xff] }
 0x79b   : > { %8347 = vmatpush3.bf16.msra.mxu1 %v8346_v63  ;;  %v4634_v63 = vld [vmem:[#allocation14 + $0xf8] sm:$0xff] }
 0x79c   : > { %8348 = vmatprep.subr.bf16.mxu1 %v15371_v27  ;;  %v8355_v26 = vpack.c.bf16 %v4634_v63, %v4633_v16 }
 0x79d   : > { %3896 = vperm.xlu1 %8557, %v3678_v43   ;;  %3956 = vperm.xlu0 %8556, %v3690_v60   ;;  %v15404_v43 = vld [vmem:[#allocation241_spill] sm:$0xff] }
 0x79e   : > { %v3693_v52 = vmul.f32 %v15404_v43, %v12354_v54 }
 0x7a1   : > { %3741 = vperm.xlu1 %8557, %v3647_v18   ;;  %3771 = vperm.xlu0 %8556, %v3653_v19   ;;  %v3671_v18 = vmul.f32 %v15405_v39, %v12330_v51  ;;  %v4629_v51 = vld [vmem:[#allocation14 + $0xd0] sm:$0xff] }
 0x7a5   : > { %3936 = vperm.xlu1 %8557, %v3686_v1   ;;  %3921 = vperm.xlu0 %8556, %v3683_v24   ;;  %v3694_v24 = vmul.f32 %v15407_v15, %v12354_v54  ;;  %v15409_v54 = vld [vmem:[#allocation239_spill] sm:$0xff] }
 0x7a6   : > { %v3703_v58 = vmul.f32 %v15409_v54, %v12369_v5 }
 0x7a9   : > { %3901 = vperm.xlu1 %8557, %v3679_v6   ;;  %3811 = vperm.xlu0 %8556, %v3661_v11   ;;  %v8349_v11 = vpack.c.bf16 %v4630_v20, %v4629_v51 }
 0x7ab   : > { %8350 = vmatpush3.bf16.msra.mxu1 %v8349_v11 }
 0x7ac   : > { %8351 = vmatprep.subr.bf16.mxu1 %v15371_v27 }
 0x7ad   : > { %3941 = vperm.xlu1 %8557, %v3687_v23   ;;  %3961 = vperm.xlu0 %8556, %v3691_v61   ;;  %v3702_v23 = vmul.f32 %v15408_v35, %v12369_v5 }
 0x7b1   : > { %3981 = vperm.xlu1 %8557, %v3695_v9   ;;  %3776 = vperm.xlu0 %8556, %v3654_v33   ;;  %v7463_v33 = vld [vmem:[#allocation19 + $0x1] ss:$0 sm:$0xff] }
 0x7b5   : > { %3926 = vperm.xlu0 %8556, %v3684_v29   ;;  %v8352_v29 = vpack.c.bf16 %v4632_v62, %v4631_v12 }
 0x7b7   : > { %8353 = vmatpush3.bf16.msra.mxu1 %v8352_v29 }
 0x7b8   : > { %8354 = vmatprep.subr.bf16.mxu1 %v15371_v27 }
 0x7b9   : > { %3816 = vperm.xlu0 %8556, %v3662_v50  }
 0x7bb   : > { %8356 = vmatpush3.bf16.msra.mxu1 %v8355_v26 }
 0x7bc   : > { %8357 = vmatprep.subr.bf16.mxu1 %v15371_v27 }
 0x7bd   : > { %3966 = vperm.xlu0 %8556, %v3692_v13  }
 0x7c1   : > { %3781 = vperm.xlu0 %8556, %v3655_v21  }
 0x7c5   : > { %3931 = vperm.xlu0 %8556, %v3685_v34  }
 0x7c9   : > { %3821 = vperm.xlu0 %8556, %v3663_v47  }
 0x7cc   : > { %v12466_v60 = vpop.permute.xlu1 %3796  ;;  %v12468_v17 = vpop.permute.xlu0 %3706 }
 0x7cd   : > { %3971 = vperm.xlu0 %8556, %v3693_v52   ;;  %v4024_v30 = vmul.f32 %v12468_v17, %v15421_v32  ;;  %v15429_v32 = vld [vmem:[#allocation61_spill] sm:$0xff] }
 0x7d0   : > { %v12472_v40 = vpop.permute.xlu1 %3836  ;;  %v12474_v19 = vpop.permute.xlu0 %3746 }
 0x7d1   : > { %3861 = vperm.xlu0 %8556, %v3671_v18   ;;  %v4032_v42 = vmul.f32 %v12474_v19, %v15418_v53 }
 0x7d4   : > { %v12478_v45 = vpop.permute.xlu1 %3911  ;;  %v12480_v1 = vpop.permute.xlu0 %3751 }
 0x7d5   : > { %4011 = vperm.xlu0 %8556, %v3701_v41   ;;  %v4033_v48 = vmul.f32 %v12480_v1, %v15415_v0 }
 0x7d7   : > { %v4101_v0 = vadd.f32 %v4033_v48, %v4032_v42  ;;  %v15431_v42 = vld [vmem:[#allocation76_spill] sm:$0xff] }
 0x7d8   : > { %v12484_v55 = vpop.permute.xlu1 %3876  ;;  %v12486_v6 = vpop.permute.xlu0 %3786 }
 0x7d9   : > { %3976 = vperm.xlu0 %8556, %v3694_v24   ;;  %v4040_v3 = vmul.f32 %v12486_v6, %v15419_v59  ;;  %v15427_v59 = vld [vmem:[#allocation77_spill] sm:$0xff] }
 0x7dc   : > { %v12490_v10 = vpop.permute.xlu1 %3951  ;;  %v3792_v61 = vpop.permute.xlu0 %3791 }
 0x7dd   : > { %4016 = vperm.xlu0 %8556, %v3702_v23   ;;  %v4041_v22 = vmul.f32 %v3792_v61, %v15416_v31  ;;  %v15424_v31 = vld [vmem:[#allocation60_spill] sm:$0xff] }
 0x7df   : > { %v4114_v61 = vadd.f32 %v4041_v22, %v4040_v3  ;;  %v4065_v3 = vmul.f32 %v12478_v45, %v15431_v42 }
 0x7e0   : > { %v12495_v9 = vpop.permute.xlu1 %3766  ;;  %v3712_v36 = vpop.permute.xlu0 %3711 }
 0x7e1   : > { %4021 = vperm.xlu0 %8556, %v3703_v58   ;;  %v4025_v4 = vmul.f32 %v3712_v36, %v15417_v7  ;;  %v15425_v7 = vld [vmem:[#allocation45_spill] sm:$0xff] }
 0x7e3   : > { %v4088_v53 = vadd.f32 %v4025_v4, %v4024_v30  ;;  %v15432_v30 = vld [vmem:[#allocation63_spill] sm:$0xff] }
 0x7e4   : > { %v12497_v49 = vpop.permute.xlu1 %3916  ;;  %v3757_v25 = vpop.permute.xlu0 %3756  ;;  %v4050_v4 = vmul.f32 %v12472_v40, %v15432_v30  ;;  %v15438_v40 = vld [vmem:[#allocation47_spill] sm:$0xff] }
 0x7e5   : > { %5160 = vperm.xlu0 %8556, %v7463_v33   ;;  %v4034_v57 = vmul.f32 %v3757_v25, %v15420_v8  ;;  %v15428_v8 = vld [vmem:[#allocation37_spill] sm:$0xff] }
 0x7e7   : > { %v4102_v17 = vadd.f32 %v4101_v0, %v4034_v57  ;;  %v15434_v0 = vld [vmem:[#allocation48_spill] sm:$0xff] }
 0x7e8   : > { %v12500_v14 = vpop.permute.xlu1 %3991  ;;  %v3827_v50 = vpop.permute.xlu0 %3826 }
 0x7ec   : > { %v12502_v2 = vpop.permute.xlu1 %3881  ;;  %v3832_v5 = vpop.permute.xlu0 %3831 }
 0x7ed   : > { %v4049_v36 = vmul.f32 %v3832_v5, %v15424_v31 }
 0x7f0   : > { %v3867_v13 = vpop.permute.xlu0 %3866  ;;  %v12504_v28 = vpop.permute.xlu1 %3726 }
 0x7f4   : > { %v3872_v21 = vpop.permute.xlu0 %3871  ;;  %v12507_v38 = vpop.permute.xlu1 %3846 }
 0x7f5   : > { %v4057_v44 = vmul.f32 %v3872_v21, %v15422_v56  ;;  %v4048_v21 = vmul.f32 %v3827_v50, %v15429_v32  ;;  %v15430_v56 = vld [vmem:[#allocation54_spill] sm:$0xff]  ;;  %v4036_v50 = vmul.f32 %v12495_v9, %v15434_v0 }
 0x7f8   : > { %v3717_v34 = vpop.permute.xlu0 %3716  ;;  %v12509_v47 = vpop.permute.xlu1 %3996 }
 0x7f9   : > { %15410 = vst [vmem:[#allocation245_spill] sm:$0xff] %v12509_v47 }
 0x7fc   : > { %v3762_v46 = vpop.permute.xlu0 %3761  ;;  %v12511_v52 = vpop.permute.xlu1 %3886 }
 0x7fd   : > { %v4035_v47 = vmul.f32 %v3762_v46, %v15425_v7 }
 0x7ff   : > { %v4103_v57 = vadd.f32 %v4102_v17, %v4035_v47  ;;  %v15440_v17 = vld [vmem:[#allocation62_spill] sm:$0xff] }
 0x800   : > { %v3907_v43 = vpop.permute.xlu0 %3906  ;;  %v12515_v37 = vpop.permute.xlu1 %3731 }
 0x801   : > { %v4064_v25 = vmul.f32 %v3907_v43, %v15427_v59  ;;  %v4127_v43 = vadd.f32 %v4049_v36, %v4048_v21  ;;  %v15435_v59 = vld [vmem:[#allocation78_spill] sm:$0xff] }
 0x803   : > { %v4128_v21 = vadd.f32 %v4127_v43, %v4050_v4  ;;  %v15448_v4 = vld [vmem:[#allocation39_spill] sm:$0xff] }
 0x804   : > { %v3802_v39 = vpop.permute.xlu0 %3801  ;;  %v12517_v15 = vpop.permute.xlu1 %3851 }
 0x808   : > { %v12513_v18 = vpop.permute.xlu0 %3946  ;;  %v12521_v20 = vpop.permute.xlu1 %4001 }
 0x809   : > { %15411 = vst [vmem:[#allocation246_spill] sm:$0xff] %v12521_v20 }
 0x80c   : > { %v3722_v41 = vpop.permute.xlu0 %3721  ;;  %v12523_v35 = vpop.permute.xlu1 %3891 }
 0x810   : > { %v3842_v24 = vpop.permute.xlu0 %3841  ;;  %v12527_v58 = vpop.permute.xlu1 %3736 }
 0x811   : > { %v4051_v9 = vmul.f32 %v3842_v24, %v15440_v17  ;;  %v15554_v17 = vld [vmem:[#allocation159_spill] sm:$0xff] }
 0x813   : > { %v4129_v43 = vadd.f32 %v4128_v21, %v4051_v9 }
 0x814   : > { %v12519_v51 = vpop.permute.xlu0 %3986  ;;  %v12529_v12 = vpop.permute.xlu1 %3856 }
 0x818   : > { %v3807_v11 = vpop.permute.xlu0 %3806  ;;  %v12533_v16 = vpop.permute.xlu1 %4006 }
 0x819   : > { %15414 = vst [vmem:[#allocation249_spill] sm:$0xff] %v12533_v16  ;;  %v15423_v16 = vld [vmem:[#allocation38_spill] sm:$0xff] }
 0x81a   : > { %v4026_v20 = vmul.f32 %v3717_v34, %v15423_v16  ;;  %v4042_v34 = vmul.f32 %v12466_v60, %v15430_v56  ;;  %v15570_v56 = vld [vmem:[#allocation186_spill] sm:$0xff] }
 0x81c   : > { %v12525_v23 = vpop.permute.xlu0 %3956  ;;  %v12535_v26 = vpop.permute.xlu1 %3896  ;;  %v4089_v48 = vadd.f32 %v4088_v53, %v4026_v20  ;;  %v4115_v60 = vadd.f32 %v4114_v61, %v4042_v34  ;;  %v15436_v53 = vld [vmem:[#allocation70_spill] sm:$0xff]  ;;  %v15437_v20 = vld [vmem:[#allocation53_spill] sm:$0xff]  ;;  %v15442_v34 = vld [vmem:[#allocation56_spill] sm:$0xff] }
 0x81d   : > { %15412 = vst [vmem:[#allocation248_spill] sm:$0xff] %v12525_v23  ;;  %v4027_v23 = vmul.f32 %v3722_v41, %v15428_v8  ;;  %v4153_v41 = vadd.f32 %v4065_v3, %v4064_v25  ;;  %v4059_v45 = vmul.f32 %v12502_v2, %v15436_v53  ;;  %v15441_v25 = vld [vmem:[#allocation79_spill] sm:$0xff]  ;;  %v4104_v3 = vadd.f32 %v4103_v57, %v4036_v50  ;;  %v15444_v53 = vld [vmem:[#allocation73_spill] sm:$0xff] }
 0x81f   : > { %v4090_v8 = vadd.f32 %v4089_v48, %v4027_v23  ;;  %v15443_v48 = vld [vmem:[#allocation50_spill] sm:$0xff] }
 0x820   : > { %v3772_v54 = vpop.permute.xlu0 %3771  ;;  %v3742_v19 = vpop.permute.xlu1 %3741 }
 0x821   : > { %v4037_v42 = vmul.f32 %v3772_v54, %v15438_v40 }
 0x824   : > { %v3922_v33 = vpop.permute.xlu0 %3921  ;;  %v3937_v7 = vpop.permute.xlu1 %3936 }
 0x825   : > { %v4067_v61 = vmul.f32 %v3922_v33, %v15441_v25 }
 0x828   : > { %v3812_v62 = vpop.permute.xlu0 %3811 }
 0x82c   : > { %v12531_v29 = vpop.permute.xlu0 %3961 }
 0x82d   : > { %15413 = vst [vmem:[#allocation247_spill] sm:$0xff] %v12531_v29  ;;  %v15426_v29 = vld [vmem:[#allocation69_spill] sm:$0xff] }
 0x82e   : > { %v4056_v6 = vmul.f32 %v3867_v13, %v15426_v29  ;;  %v15433_v13 = vld [vmem:[#allocation71_spill] sm:$0xff] }
 0x82f   : > { %v4058_v46 = vmul.f32 %v12484_v55, %v15433_v13  ;;  %v15439_v55 = vld [vmem:[#allocation40_spill] sm:$0xff] }
 0x830   : > { %v3777_v63 = vpop.permute.xlu0 %3776  ;;  %v4140_v22 = vadd.f32 %v4057_v44, %v4056_v6  ;;  %v4066_v44 = vmul.f32 %v12497_v49, %v15435_v59  ;;  %v4043_v6 = vmul.f32 %v3802_v39, %v15437_v20  ;;  %v4028_v47 = vmul.f32 %v12504_v28, %v15439_v55  ;;  %v15445_v20 = vld [vmem:[#allocation80_spill] sm:$0xff]  ;;  %v15447_v55 = vld [vmem:[#allocation49_spill] sm:$0xff] }
 0x831   : > { %v4044_v49 = vmul.f32 %v3807_v11, %v15442_v34  ;;  %v4038_v2 = vmul.f32 %v3777_v63, %v15443_v48  ;;  %v4060_v39 = vmul.f32 %v12511_v52, %v15444_v53  ;;  %v4029_v11 = vmul.f32 %v12515_v37, %v15448_v4  ;;  %v3902_v34 = vpop.permute.xlu1 %3901  ;;  %v15552_v4 = vld [vmem:[#allocation158_spill] sm:$0xff] }
 0x832   : > { %v4141_v36 = vadd.f32 %v4140_v22, %v4058_v46  ;;  %v4091_v54 = vadd.f32 %v4090_v8, %v4028_v47  ;;  %v4154_v40 = vadd.f32 %v4153_v41, %v4066_v44  ;;  %v4116_v28 = vadd.f32 %v4115_v60, %v4043_v6  ;;  %v15446_v46 = vld [vmem:[#allocation55_spill] sm:$0xff]  ;;  %v15450_v44 = vld [vmem:[#allocation81_spill] sm:$0xff]  ;;  %v15451_v60 = vld [vmem:[#allocation72_spill] sm:$0xff] }
 0x833   : > { %v4105_v22 = vadd.f32 %v4104_v3, %v4037_v42  ;;  %v4045_v24 = vmul.f32 %v3812_v62, %v15446_v46  ;;  %v15449_v8 = vld [vmem:[#allocation59_spill] sm:$0xff]  ;;  %v4061_v42 = vmul.f32 %v12523_v35, %v15451_v60  ;;  %v15452_v47 = vld [vmem:[#allocation65_spill] sm:$0xff] }
 0x834   : > { %v3927_v27 = vpop.permute.xlu0 %3926  ;;  %v4142_v25 = vadd.f32 %v4141_v36, %v4059_v45  ;;  %v4155_v57 = vadd.f32 %v4154_v40, %v4067_v61  ;;  %v4117_v50 = vadd.f32 %v4116_v28, %v4044_v49  ;;  %v4092_v62 = vadd.f32 %v4091_v54, %v4029_v11  ;;  %v15453_v40 = vld [vmem:[#allocation42_spill] sm:$0xff]  ;;  %v15456_v54 = vld [vmem:[#allocation57_spill] sm:$0xff] }
 0x835   : > { %v4068_v59 = vmul.f32 %v3927_v27, %v15445_v20  ;;  %v4106_v52 = vadd.f32 %v4105_v22, %v4038_v2  ;;  %v4052_v45 = vmul.f32 %v12507_v38, %v15452_v47  ;;  %v4030_v61 = vmul.f32 %v12527_v58, %v15453_v40  ;;  %v15457_v38 = vld [vmem:[#allocation82_spill] sm:$0xff]  ;;  %v15539_v20 = vld [vmem:[#allocation151_spill] sm:$0xff] }
 0x836   : > { %v4143_v36 = vadd.f32 %v4142_v25, %v4060_v39  ;;  %v4118_v37 = vadd.f32 %v4117_v50, %v4045_v24  ;;  %v4070_v25 = vmul.f32 %v3937_v7, %v15457_v38  ;;  %v15458_v39 = vld [vmem:[#allocation74_spill] sm:$0xff]  ;;  %v15460_v50 = vld [vmem:[#allocation84_spill] sm:$0xff] }
 0x837   : > { %v4156_v6 = vadd.f32 %v4155_v57, %v4068_v59  ;;  %v4130_v28 = vadd.f32 %v4129_v43, %v4052_v45  ;;  %v4093_v11 = vadd.f32 %v4092_v62, %v4030_v61  ;;  %v4063_v24 = vmul.f32 %v3902_v34, %v15458_v39  ;;  %v3942_v57 = vpop.permute.xlu1 %3941  ;;  %v15462_v45 = vld [vmem:[#allocation85_spill] sm:$0xff] }
 0x838   : > { %v3817_v1 = vpop.permute.xlu0 %3816  ;;  %v4144_v22 = vadd.f32 %v4143_v36, %v4061_v42  ;;  %v15461_v42 = vld [vmem:[#allocation92_spill] sm:$0xff]  ;;  %v4073_v34 = vmul.f32 %v12490_v10, %v15462_v45  ;;  %v15464_v61 = vld [vmem:[#allocation93_spill] sm:$0xff] }
 0x839   : > { %v4046_v41 = vmul.f32 %v3817_v1, %v15449_v8  ;;  %v15455_v1 = vld [vmem:[#allocation41_spill] sm:$0xff]  ;;  %v4080_v62 = vmul.f32 %v12519_v51, %v15461_v42  ;;  %v15470_v42 = vld [vmem:[#allocation66_spill] sm:$0xff] }
 0x83a   : > { %v4031_v49 = vmul.f32 %v3742_v19, %v15455_v1  ;;  %v4072_v19 = vmul.f32 %v12513_v18, %v15460_v50 }
 0x83b   : > { %v4119_v35 = vadd.f32 %v4118_v37, %v4046_v41 }
 0x83c   : > { %v12560_v5 = vpop.permute.xlu0 %3966  ;;  %v4094_v43 = vadd.f32 %v4093_v11, %v4031_v49  ;;  %v15467_v49 = vld [vmem:[#allocation248_spill] sm:$0xff] }
 0x840   : > { %v3782_v23 = vpop.permute.xlu0 %3781 }
 0x841   : > { %v4039_v33 = vmul.f32 %v3782_v23, %v15447_v55  ;;  %v15454_v23 = vld [vmem:[#allocation75_spill] sm:$0xff] }
 0x842   : > { %v4062_v21 = vmul.f32 %v12535_v26, %v15454_v23 }
 0x843   : > { %v4107_v9 = vadd.f32 %v4106_v52, %v4039_v33  ;;  %v15459_v33 = vld [vmem:[#allocation64_spill] sm:$0xff] }
 0x844   : > { %v3932_v63 = vpop.permute.xlu0 %3931  ;;  %v4053_v58 = vmul.f32 %v12517_v15, %v15459_v33  ;;  %v4145_v52 = vadd.f32 %v4144_v22, %v4062_v21  ;;  %v15463_v15 = vld [vmem:[#allocation83_spill] sm:$0xff]  ;;  %v15466_v21 = vld [vmem:[#allocation86_spill] sm:$0xff]  ;;  %v4095_v22 = vrot.slane %v4094_v43, 4 }
 0x845   : > { %v4069_v27 = vmul.f32 %v3932_v63, %v15450_v44  ;;  %v4108_v63 = vrot.slane %v4107_v9, 4  ;;  %v4071_v37 = vmul.f32 %v3942_v57, %v15463_v15  ;;  %v15473_v15 = vld [vmem:[#allocation88_spill] sm:$0xff]  ;;  %v15533_v44 = vld [vmem:[#allocation134_spill] sm:$0xff] }
 0x846   : > { %v4146_v36 = vadd.f32 %v4145_v52, %v4063_v24  ;;  %v15468_v24 = vld [vmem:[#allocation87_spill] sm:$0xff] }
 0x847   : > { %v4157_v3 = vadd.f32 %v4156_v6, %v4069_v27  ;;  %v4131_v6 = vadd.f32 %v4130_v28, %v4053_v58  ;;  %v4109_v28 = vadd.f32 %v4108_v63, %v4107_v9  ;;  %v15469_v52 = vld [vmem:[#allocation247_spill] sm:$0xff]  ;;  %v4076_v9 = vmul.f32 %v12560_v5, %v15473_v15 }
 0x848   : > { %v3822_v2 = vpop.permute.xlu0 %3821  ;;  %v4075_v57 = vmul.f32 %v15469_v52, %v15468_v24  ;;  %v15476_v52 = vld [vmem:[#allocation246_spill] sm:$0xff] }
 0x849   : > { %v4047_v59 = vmul.f32 %v3822_v2, %v15456_v54  ;;  %v4158_v41 = vadd.f32 %v4157_v3, %v4070_v25  ;;  %v4081_v2 = vmul.f32 %v12500_v14, %v15464_v61  ;;  %v4074_v3 = vmul.f32 %v15467_v49, %v15466_v21  ;;  %v15471_v14 = vld [vmem:[#allocation94_spill] sm:$0xff]  ;;  %v15472_v61 = vld [vmem:[#allocation245_spill] sm:$0xff] }
 0x84a   : > { %v4082_v54 = vmul.f32 %v15472_v61, %v15471_v14  ;;  %v4110_v63 = vrot.slane %v4109_v28, 2  ;;  %v3982_v14 = vpop.permute.xlu1 %3981 }
 0x84b   : > { %v4120_v26 = vadd.f32 %v4119_v35, %v4047_v59  ;;  %v15465_v35 = vld [vmem:[#allocation67_spill] sm:$0xff]  ;;  %v4166_v59 = vadd.f32 %v4073_v34, %v4072_v19  ;;  %v4159_v51 = vadd.f32 %v4158_v41, %v4071_v37  ;;  %v4179_v10 = vadd.f32 %v4081_v2, %v4080_v62  ;;  %v15474_v37 = vld [vmem:[#allocation89_spill] sm:$0xff] }
 0x84c   : > { %v3972_v27 = vpop.permute.xlu0 %3971  ;;  %v4054_v18 = vmul.f32 %v12529_v12, %v15465_v35  ;;  %v4147_v12 = vrot.slane %v4146_v36, 4  ;;  %v4096_v41 = vadd.f32 %v4095_v22, %v4094_v43 }
 0x84d   : > { %v4121_v7 = vrot.slane %v4120_v26, 4  ;;  %v4167_v35 = vadd.f32 %v4166_v59, %v4074_v3  ;;  %v4180_v62 = vadd.f32 %v4179_v10, %v4082_v54  ;;  %v4077_v2 = vmul.f32 %v3972_v27, %v15474_v37  ;;  %v15477_v54 = vld [vmem:[#allocation90_spill] sm:$0xff]  ;;  %v15478_v10 = vld [vmem:[#allocation96_spill] sm:$0xff]  ;;  %v15479_v27 = vld [vmem:[#allocation249_spill] sm:$0xff] }
 0x84e   : > { %v4132_v58 = vadd.f32 %v4131_v6, %v4054_v18  ;;  %v4148_v49 = vadd.f32 %v4147_v12, %v4146_v36  ;;  %v4111_v59 = vadd.f32 %v4110_v63, %v4109_v28  ;;  %v4097_v5 = vrot.slane %v4096_v41, 2  ;;  %v15480_v12 = vld [vmem:[#allocation91_spill] sm:$0xff] }
 0x84f   : > { %v4122_v11 = vadd.f32 %v4121_v7, %v4120_v26  ;;  %v4160_v26 = vrot.slane %v4159_v51, 4  ;;  %v4168_v34 = vadd.f32 %v4167_v35, %v4075_v57  ;;  %v4084_v57 = vmul.f32 %v15479_v27, %v15478_v10 }
 0x850   : > { %v3862_v25 = vpop.permute.xlu0 %3861  ;;  %v4149_v36 = vrot.slane %v4148_v49, 2  ;;  %v4079_v37 = vmul.f32 %v3982_v14, %v15480_v12  ;;  %v15483_v14 = vld [vmem:[#allocation58_spill] sm:$0xff] }
 0x851   : > { %v4055_v33 = vmul.f32 %v3862_v25, %v15470_v42  ;;  %v4123_v7 = vrot.slane %v4122_v11, 2  ;;  %v15475_v25 = vld [vmem:[#allocation95_spill] sm:$0xff]  ;;  %v4169_v3 = vadd.f32 %v4168_v34, %v4076_v9  ;;  %v4161_v15 = vadd.f32 %v4160_v26, %v4159_v51  ;;  %v15481_v9 = vld [vmem:[#allocation97_spill] sm:$0xff] }
 0x852   : > { %v4083_v61 = vmul.f32 %v15476_v52, %v15475_v25  ;;  %v4112_v52 = vrot.slane %v4111_v59, 1  ;;  %v4193_v12 = vrot.slane %v15483_v14, 1 }
 0x853   : > { %v4133_v19 = vadd.f32 %v4132_v58, %v4055_v33  ;;  %v4124_v33 = vadd.f32 %v4123_v7, %v4122_v11  ;;  %v4170_v58 = vadd.f32 %v4169_v3, %v4077_v2  ;;  %v4162_v51 = vrot.slane %v4161_v15, 2  ;;  %v15482_v2 = vld [vmem:[#allocation98_spill] sm:$0xff] }
 0x854   : > { %v4012_v6 = vpop.permute.xlu0 %4011  ;;  %v4181_v22 = vadd.f32 %v4180_v62, %v4083_v61  ;;  %v4150_v61 = vadd.f32 %v4149_v36, %v4148_v49  ;;  %v4113_v3 = vadd.f32 %v4112_v52, %v4111_v59  ;;  %v4195_v49 = vrot.slane %v15483_v14, 3 }
 0x855   : > { %v4134_v18 = vrot.slane %v4133_v19, 4  ;;  %v4085_v28 = vmul.f32 %v4012_v6, %v15481_v9  ;;  %v4125_v11 = vrot.slane %v4124_v33, 1 }
 0x856   : > { %v4182_v7 = vadd.f32 %v4181_v22, %v4084_v57  ;;  %v4151_v22 = vrot.slane %v4150_v61, 1  ;;  %v12635_v57 = vadd.f32 %v4193_v12, %v4113_v3 }
 0x857   : > { %v4135_v42 = vadd.f32 %v4134_v18, %v4133_v19  ;;  %v4098_v19 = vadd.f32 %v4097_v5, %v4096_v41 }
 0x858   : > { %v3977_v43 = vpop.permute.xlu0 %3976  ;;  %15485 = vst [vmem:[#allocation217_spill] sm:$0xff] %v12635_v57 }
 0x859   : > { %v4136_v24 = vrot.slane %v4135_v42, 2  ;;  %v4078_v35 = vmul.f32 %v3977_v43, %v15477_v54  ;;  %v4183_v43 = vadd.f32 %v4182_v7, %v4085_v28  ;;  %v4099_v10 = vrot.slane %v4098_v19, 1 }
 0x85b   : > { %v4137_v25 = vadd.f32 %v4136_v24, %v4135_v42  ;;  %v4171_v63 = vadd.f32 %v4170_v58, %v4078_v35  ;;  %v4163_v42 = vadd.f32 %v4162_v51, %v4161_v15  ;;  %v4126_v24 = vadd.f32 %v4125_v11, %v4124_v33  ;;  %v15484_v35 = vld [vmem:[#allocation99_spill] sm:$0xff] }
 0x85c   : > { %v4017_v26 = vpop.permute.xlu0 %4016  ;;  %v4100_v52 = vadd.f32 %v4099_v10, %v4098_v19  ;;  %v4152_v51 = vadd.f32 %v4151_v22, %v4150_v61  ;;  %v4651_v11 = vrot.slane %v12635_v57, 7  ;;  %v4198_v61 = vrot.slane %v15483_v14, 6 }
 0x85d   : > { %v4138_v62 = vrot.slane %v4137_v25, 1  ;;  %v4172_v34 = vadd.f32 %v4171_v63, %v4079_v37  ;;  %v4086_v18 = vmul.f32 %v4017_v26, %v15482_v2  ;;  %v4194_v37 = vrot.slane %v15483_v14, 2 }
 0x85e   : > { %v4164_v15 = vrot.slane %v4163_v42, 1  ;;  %v12644_v12 = vadd.f32 %v4100_v52, %v15483_v14 }
 0x85f   : > { %v4173_v27 = vrot.slane %v4172_v34, 4  ;;  %v4139_v58 = vadd.f32 %v4138_v62, %v4137_v25  ;;  %v4184_v5 = vadd.f32 %v4183_v43, %v4086_v18  ;;  %v12638_v28 = vadd.f32 %v4194_v37, %v4126_v24 }
 0x860   : > { %v4022_v6 = vpop.permute.xlu0 %4021  ;;  %15488 = vst [vmem:[#allocation199_spill] sm:$0xff] %v12644_v12  ;;  %v4196_v62 = vrot.slane %v15483_v14, 4  ;;  %v4165_v10 = vadd.f32 %v4164_v15, %v4163_v42  ;;  %v4652_v43 = vsel %vm2767_vm9, %v4651_v11, %v12644_v12  ;;  %v4199_v37 = vrot.slane %v15483_v14, 7 }
 0x861   : > { %v4174_v41 = vadd.f32 %v4173_v27, %v4172_v34  ;;  %v4087_v9 = vmul.f32 %v4022_v6, %v15484_v35  ;;  %15486 = vst [vmem:[#allocation180_spill] sm:$0xff] %v12638_v28  ;;  %v12640_v33 = vadd.f32 %v4195_v49, %v4139_v58  ;;  %v4197_v27 = vrot.slane %v15483_v14, 5  ;;  %v7461_v14 = vld [vmem:[#allocation16 + $0x1] ss:$0 sm:$0xff]  ;;  %v15508_v35 = vld [vmem:[#allocation115_spill] sm:$0xff] }
 0x862   : > { %v12649_v3 = vadd.f32 %v4196_v62, %v4152_v51 }
 0x863   : > { %v4175_v59 = vrot.slane %v4174_v41, 2  ;;  %v4185_v36 = vadd.f32 %v4184_v5, %v4087_v9  ;;  %15487 = vst [vmem:[#allocation224_spill] sm:$0xff] %v12640_v33  ;;  %v4653_v9 = vrot.slane %v12638_v28, 6  ;;  %v4655_v19 = vrot.slane %v12640_v33, 5 }
 0x864   : > { %15489 = vst [vmem:[#allocation221_spill] sm:$0xff] %v12649_v3  ;;  %v4657_v22 = vrot.slane %v12649_v3, 4 }
 0x865   : > { %v4176_v25 = vadd.f32 %v4175_v59, %v4174_v41  ;;  %v4186_v63 = vrot.slane %v4185_v36, 4  ;;  %v4654_v58 = vsel %vm2769_vm10, %v4653_v9, %v4652_v43  ;;  %v12658_v41 = vadd.f32 %v4197_v27, %v4165_v10 }
 0x866   : > { %v4656_v5 = vsel %vm2771_vm11, %v4655_v19, %v4654_v58  ;;  %v15494_v19 = vld [vmem:[#allocation101_spill] sm:$0xff] }
 0x867   : > { %v4177_v26 = vrot.slane %v4176_v25, 1  ;;  %v4187_v7 = vadd.f32 %v4186_v63, %v4185_v36  ;;  %15491 = vst [vmem:[#allocation207_spill] sm:$0xff] %v12658_v41  ;;  %v4658_v59 = vsel %vm2773_vm12, %v4657_v22, %v4656_v5  ;;  %v4659_v15 = vrot.slane %v12658_v41, 3  ;;  %v15495_v5 = vld [vmem:[#allocation102_spill] sm:$0xff] }
 0x869   : > { %v4178_v34 = vadd.f32 %v4177_v26, %v4176_v25  ;;  %v4188_v18 = vrot.slane %v4187_v7, 2  ;;  %v4660_v25 = vsel %vm2775_vm13, %v4659_v15, %v4658_v59  ;;  %v15493_v26 = vmov 0.0  }
 0x86b   : > { %v4189_v24 = vadd.f32 %v4188_v18, %v4187_v7  ;;  %v12655_v6 = vadd.f32 %v4198_v61, %v4178_v34 }
 0x86d   : > { %15490 = vst [vmem:[#allocation171_spill] sm:$0xff] %v12655_v6  ;;  %v4190_v42 = vrot.slane %v4189_v24, 1  ;;  %v4661_v36 = vrot.slane %v12655_v6, 2  ;;  %v15507_v6 = vld [vmem:[#allocation114_spill] sm:$0xff] }
 0x86f   : > { %v4191_v49 = vadd.f32 %v4190_v42, %v4189_v24  ;;  %v4662_v51 = vsel %vm2777_vm14, %v4661_v36, %v4660_v25  ;;  %v15496_v25 = vld [vmem:[#allocation103_spill] sm:$0xff] }
 0x871   : > { %v12665_v52 = vadd.f32 %v4199_v37, %v4191_v49 }
 0x873   : > { %15492 = vst [vmem:[#allocation215_spill] sm:$0xff] %v12665_v52  ;;  %v4663_v63 = vrot.slane %v12665_v52, 1 }
 0x875   : > { %v4664_v11 = vsel %vm2779_vm15, %v4663_v63, %v4662_v51  ;;  %v15497_v51 = vld [vmem:[#allocation104_spill] sm:$0xff] }
 0x876   : > { %8194 = vmatmul.mubr.f32.vlgmr.msra.gmra.mrb[88].mxu1 %v4664_v11 }
 0x877   : > { %8228 = vmatprep.mubr.msk.f32.mxu1 %vm9556_vm1, %v15493_v26 }
 0x949   : > { %v4732_v7 = vpop.f32.mrb[88].mxu1 }
 0x94a   : > { %v4733_v62 = vadd.f32 %v7461_v14, %v4732_v7  ;;  %v8195_v9 = vpop.f32.mrb[89].mxu1 }
 0x94b   : > { %v15498_v9 = vld [vmem:[#allocation106_spill] sm:$0xff] }
 0x94c   : > { %v4737_v10 = vcombine.high %v4733_v62, %v4733_v62  ;;  %v4744_v34 = vrot.slane %v4733_v62, %v15494_v19 }
 0x94e   : > { %v4751_v18 = vrot.slane %v4737_v10, %v15494_v19  ;;  %v4752_v61 = vcombine.high %v4744_v34, %v4744_v34  ;;  %v4760_v43 = vrot.slane %v4744_v34, %v15494_v19 }
 0x950   : > { %v4753_v27 = vcombine.high %v4751_v18, %v4751_v18  ;;  %v4767_v24 = vrot.slane %v4751_v18, %v15494_v19  ;;  %v4774_v58 = vrot.slane %v4752_v61, %v15494_v19  ;;  %v4782_v42 = vcombine.high %v4760_v43, %v4760_v43  ;;  %v15500_v18 = vld [vmem:[#allocation108_spill] sm:$0xff] }
 0x951   : > { %v4789_v22 = vrot.slane %v4760_v43, %v15495_v5 }
 0x952   : > { %v12681_v37 = vrot.slane %v4753_v27, %v15494_v19  ;;  %v4783_v49 = vcombine.high %v4767_v24, %v4767_v24  ;;  %v4784_v59 = vcombine.high %v4774_v58, %v4774_v58  ;;  %v4793_v36 = vrot.slane %v4774_v58, %v15495_v5  ;;  %v15499_v19 = vld [vmem:[#allocation105_spill] sm:$0xff]  ;;  %v15501_v27 = vld [vmem:[#allocation107_spill] sm:$0xff] }
 0x953   : > { %v4797_v15 = vrot.slane %v4782_v42, %v15495_v5  ;;  %v4827_v63 = vadd.f32 %v15496_v25, %v4789_v22  ;;  %v4826_v11 = vadd.f32 %v4789_v22, %v15497_v51  ;;  %v4805_v7 = vrot.slane %v4767_v24, %v15495_v5  ;;  %v15502_v42 = vld [vmem:[#allocation110_spill] sm:$0xff]  ;;  %v15503_v24 = vld [vmem:[#allocation109_spill] sm:$0xff]  ;;  %v15504_v51 = vld [vmem:[#allocation111_spill] sm:$0xff] }
 0x954   : > { %v12690_v14 = vrot.slane %v4784_v59, %v15495_v5  ;;  %v12695_v62 = vrot.slane %v12681_v37, %v15495_v5  ;;  %v4828_v10 = vadd.f32 %v4789_v22, %v15498_v9  ;;  %v4829_v34 = vadd.f32 %v15499_v19, %v4789_v22  ;;  %v15506_v9 = vld [vmem:[#allocation113_spill] sm:$0xff] }
 0x955   : > { %8816 = vtanh.f32 %v4827_v63  ;;  %v4830_v61 = vadd.f32 %v4789_v22, %v15500_v18  ;;  %v12701_v43 = vrot.slane %v4783_v49, %v15495_v5  ;;  %v4831_v58 = vadd.f32 %v15501_v27, %v4789_v22  ;;  %v15505_v63 = vld [vmem:[#allocation112_spill] sm:$0xff]  ;;  %v15510_v27 = vld [vmem:[#allocation117_spill] sm:$0xff] }
 0x956   : > { %8818 = vtanh.f32 %v4826_v11  ;;  %v4832_v59 = vadd.f32 %v4789_v22, %v15502_v42  ;;  %v4833_v25 = vadd.f32 %v15503_v24, %v4789_v22  ;;  %v4835_v26 = vadd.f32 %v15504_v51, %v4793_v36  ;;  %v15509_v11 = vld [vmem:[#allocation116_spill] sm:$0xff]  ;;  %v15511_v42 = vld [vmem:[#allocation118_spill] sm:$0xff]  ;;  %v15512_v22 = vld [vmem:[#allocation119_spill] sm:$0xff] }
 0x957   : > { %8820 = vtanh.f32 %v4828_v10  ;;  %v4834_v52 = vadd.f32 %v4793_v36, %v15505_v63  ;;  %v4837_v19 = vadd.f32 %v15506_v9, %v4793_v36  ;;  %v4836_v18 = vadd.f32 %v4793_v36, %v15507_v6  ;;  %v15513_v51 = vld [vmem:[#allocation120_spill] sm:$0xff]  ;;  %v15514_v63 = vld [vmem:[#allocation121_spill] sm:$0xff]  ;;  %v15515_v9 = vld [vmem:[#allocation122_spill] sm:$0xff] }
 0x958   : > { %8822 = vtanh.f32 %v4829_v34  ;;  %v4839_v49 = vadd.f32 %v15508_v35, %v4793_v36  ;;  %v4838_v33 = vadd.f32 %v4793_v36, %v15509_v11  ;;  %v4841_v41 = vadd.f32 %v15510_v27, %v4793_v36  ;;  %v15516_v6 = vld [vmem:[#allocation123_spill] sm:$0xff]  ;;  %v15518_v27 = vld [vmem:[#allocation125_spill] sm:$0xff] }
 0x959   : > { %8824 = vtanh.f32 %v4830_v61  ;;  %v4840_v10 = vadd.f32 %v4793_v36, %v15511_v42  ;;  %v4843_v24 = vadd.f32 %v15512_v22, %v4797_v15  ;;  %v4842_v3 = vadd.f32 %v4797_v15, %v15513_v51  ;;  %v15517_v61 = vld [vmem:[#allocation124_spill] sm:$0xff]  ;;  %v15520_v22 = vld [vmem:[#allocation135_spill] sm:$0xff] }
 0x95a   : > { %8826 = vtanh.f32 %v4831_v58  ;;  %v4845_v34 = vadd.f32 %v15514_v63, %v4797_v15  ;;  %v12718_v2 = vadd.f32 %v4797_v15, %v15515_v9  ;;  %v12721_v35 = vadd.f32 %v15516_v6, %v4797_v15  ;;  %v15519_v58 = vld [vmem:[#allocation126_spill] sm:$0xff]  ;;  %v15521_v63 = vld [vmem:[#allocation136_spill] sm:$0xff]  ;;  %v15522_v6 = vld [vmem:[#allocation137_spill] sm:$0xff] }
 0x95b   : > { %8828 = vtanh.f32 %v4832_v59  ;;  %v12724_v11 = vadd.f32 %v4797_v15, %v15517_v61  ;;  %v12727_v36 = vadd.f32 %v15518_v27, %v4797_v15  ;;  %v12730_v42 = vadd.f32 %v4797_v15, %v15519_v58  ;;  %v12735_v59 = vld [vmem:[#allocation17 + $0x1] ss:$0 sm:$0xff]  ;;  %v15523_v61 = vld [vmem:[#allocation138_spill] sm:$0xff]  ;;  %v15525_v15 = vld [vmem:[#allocation139_spill] sm:$0xff] }
 0x95c   : > { %8830 = vtanh.f32 %v4833_v25  ;;  %v12733_v51 = vadd.f32 %v15520_v22, %v4805_v7  ;;  %v12738_v9 = vadd.f32 %v4805_v7, %v15521_v63  ;;  %v12741_v54 = vadd.f32 %v15522_v6, %v4805_v7  ;;  %v15524_v27 = vld [vmem:[#allocation140_spill] sm:$0xff]  ;;  %v15526_v22 = vld [vmem:[#allocation142_spill] sm:$0xff]  ;;  %v15528_v6 = vld [vmem:[#allocation141_spill] sm:$0xff] }
 0x95d   : > { %8832 = vtanh.f32 %v4835_v26  ;;  %v12744_v25 = vadd.f32 %v4805_v7, %v15523_v61  ;;  %v12747_v28 = vadd.f32 %v4805_v7, %v15524_v27  ;;  %v12750_v58 = vadd.f32 %v15525_v15, %v4805_v7  ;;  %v15527_v63 = vld [vmem:[#allocation128_spill] sm:$0xff]  ;;  %v15529_v61 = vld [vmem:[#allocation130_spill] sm:$0xff] }
 0x95e   : > { %8834 = vtanh.f32 %v4834_v52  ;;  %v12753_v12 = vadd.f32 %v4805_v7, %v15526_v22  ;;  %v12757_v57 = vadd.f32 %v12690_v14, %v15527_v63  ;;  %v12760_v21 = vadd.f32 %v15528_v6, %v4805_v7  ;;  %v15530_v22 = vld [vmem:[#allocation127_spill] sm:$0xff]  ;;  %v15532_v6 = vld [vmem:[#allocation129_spill] sm:$0xff] }
 0x95f   : > { %v8817_v26 = vpop.eup %8816  ;;  %8836 = vtanh.f32 %v4837_v19  ;;  %v12764_v52 = vadd.f32 %v12690_v14, %v15529_v61  ;;  %v12769_v38 = vadd.f32 %v15530_v22, %v12690_v14  ;;  %v15531_v19 = vld [vmem:[#allocation132_spill] sm:$0xff]  ;;  %v12778_v61 = vadd.f32 %v15532_v6, %v12690_v14  ;;  %v15534_v22 = vld [vmem:[#allocation131_spill] sm:$0xff] }
 0x960   : > { %v8819_v27 = vpop.eup %8818  ;;  %v4961_v15 = vmul.f32 %v8817_v26, %v12735_v59  ;;  %8838 = vtanh.f32 %v4836_v18  ;;  %v12773_v47 = vadd.f32 %v12690_v14, %v15531_v19  ;;  %v12782_v26 = vadd.f32 %v12690_v14, %v15533_v44  ;;  %v15535_v19 = vld [vmem:[#allocation143_spill] sm:$0xff]  ;;  %v15537_v44 = vld [vmem:[#allocation133_spill] sm:$0xff] }
 0x961   : > { %v8821_v63 = vpop.eup %8820  ;;  %v4960_v7 = vmul.f32 %v8819_v27, %v12735_v59  ;;  %8840 = vtanh.f32 %v4839_v49  ;;  %v12786_v8 = vadd.f32 %v15534_v22, %v12690_v14  ;;  %v12790_v46 = vadd.f32 %v15535_v19, %v12695_v62 }
 0x962   : > { %v8823_v18 = vpop.eup %8822  ;;  %5026 = vadd.xlane.f32.xlu0 %v4961_v15  ;;  %8842 = vtanh.f32 %v4838_v33  ;;  %v15536_v27 = vcombine.high %v12681_v37, %v12681_v37  ;;  %v12798_v15 = vadd.f32 %v15537_v44, %v12690_v14  ;;  %v15538_v33 = vld [vmem:[#allocation146_spill] sm:$0xff]  ;;  %v4962_v19 = vmul.f32 %v8821_v63, %v12735_v59  ;;  %v15540_v37 = vld [vmem:[#allocation144_spill] sm:$0xff] }
 0x963   : > { %v8825_v49 = vpop.eup %8824  ;;  %5024 = vadd.xlane.f32.xlu1 %v4960_v7  ;;  %8844 = vtanh.f32 %v4841_v41  ;;  %v12802_v22 = vadd.f32 %v12695_v62, %v15538_v33  ;;  %v12807_v39 = vadd.f32 %v15539_v20, %v12701_v43  ;;  %v12811_v7 = vadd.f32 %v12695_v62, %v15540_v37  ;;  %v15542_v33 = vld [vmem:[#allocation152_spill] sm:$0xff]  ;;  %v15543_v20 = vld [vmem:[#allocation153_spill] sm:$0xff]  ;;  %v15544_v37 = vld [vmem:[#allocation154_spill] sm:$0xff] }
 0x964   : > { %v4817_v6 = vrot.slane %v15536_v27, %v15495_v5  ;;  %v8827_v55 = vpop.eup %8826  ;;  %8846 = vtanh.f32 %v4840_v10  ;;  %v4963_v14 = vmul.f32 %v8823_v18, %v12735_v59  ;;  %v15541_v27 = vld [vmem:[#allocation145_spill] sm:$0xff]  ;;  %v12820_v63 = vadd.f32 %v12701_v43, %v15542_v33  ;;  %v15545_v18 = vld [vmem:[#allocation148_spill] sm:$0xff] }
 0x965   : > { %v8829_v41 = vpop.eup %8828  ;;  %8848 = vtanh.f32 %v4843_v24  ;;  %v12816_v44 = vadd.f32 %v15541_v27, %v12695_v62  ;;  %v12824_v23 = vadd.f32 %v15543_v20, %v12701_v43  ;;  %v12828_v48 = vadd.f32 %v12701_v43, %v15544_v37  ;;  %v15546_v33 = vld [vmem:[#allocation160_spill] sm:$0xff]  ;;  %v15547_v20 = vld [vmem:[#allocation147_spill] sm:$0xff]  ;;  %v15548_v37 = vld [vmem:[#allocation150_spill] sm:$0xff] }
 0x966   : > { %v8831_v10 = vpop.eup %8830  ;;  %5028 = vadd.xlane.f32.xlu0 %v4962_v19  ;;  %8850 = vtanh.f32 %v4842_v3  ;;  %v12832_v27 = vadd.f32 %v12695_v62, %v15545_v18  ;;  %v12835_v60 = vadd.f32 %v4817_v6, %v15546_v33  ;;  %v4964_v3 = vmul.f32 %v8825_v49, %v12735_v59  ;;  %v15549_v33 = vld [vmem:[#allocation156_spill] sm:$0xff]  ;;  %v15550_v49 = vld [vmem:[#allocation155_spill] sm:$0xff] }
 0x967   : > { %v8833_v24 = vpop.eup %8832  ;;  %5030 = vadd.xlane.f32.xlu1 %v4963_v14  ;;  %8852 = vtanh.f32 %v4845_v34  ;;  %v12841_v53 = vadd.f32 %v15547_v20, %v12695_v62  ;;  %v12845_v14 = vadd.f32 %v12695_v62, %v15548_v37  ;;  %v4965_v18 = vmul.f32 %v8827_v55, %v12735_v59  ;;  %v15551_v20 = vld [vmem:[#allocation149_spill] sm:$0xff] }
 0x968   : > { %v8835_v19 = vpop.eup %8834  ;;  %8854 = vtanh.f32 %v12718_v2  ;;  %v12851_v1 = vadd.f32 %v12701_v43, %v15549_v33  ;;  %v12855_v2 = vadd.f32 %v15550_v49, %v12701_v43  ;;  %v12860_v37 = vadd.f32 %v15551_v20, %v12695_v62  ;;  %v15553_v33 = vld [vmem:[#allocation157_spill] sm:$0xff]  ;;  %v15555_v62 = vld [vmem:[#allocation162_spill] sm:$0xff] }
 0x969   : > { %v8837_v34 = vpop.eup %8836  ;;  %8856 = vtanh.f32 %v12721_v35  ;;  %v12864_v55 = vadd.f32 %v12701_v43, %v15552_v4  ;;  %v12869_v49 = vadd.f32 %v15553_v33, %v12701_v43  ;;  %v4966_v50 = vmul.f32 %v8829_v41, %v12735_v59  ;;  %v15556_v4 = vld [vmem:[#allocation161_spill] sm:$0xff]  ;;  %v15557_v43 = vld [vmem:[#allocation164_spill] sm:$0xff] }
 0x96a   : > { %v8839_v40 = vpop.eup %8838  ;;  %5032 = vadd.xlane.f32.xlu0 %v4964_v3  ;;  %8858 = vtanh.f32 %v12724_v11  ;;  %v12872_v3 = vadd.f32 %v15554_v17, %v4817_v6  ;;  %v12877_v20 = vadd.f32 %v4817_v6, %v15555_v62  ;;  %v12880_v45 = vadd.f32 %v15556_v4, %v4817_v6  ;;  %v15558_v17 = vld [vmem:[#allocation163_spill] sm:$0xff]  ;;  %v15560_v4 = vld [vmem:[#allocation165_spill] sm:$0xff] }
 0x96b   : > { %v8841_v35 = vpop.eup %8840  ;;  %5034 = vadd.xlane.f32.xlu1 %v4965_v18  ;;  %8860 = vtanh.f32 %v12727_v36  ;;  %v4967_v36 = vmul.f32 %v8831_v10, %v12735_v59  ;;  %v12885_v33 = vadd.f32 %v4817_v6, %v15557_v43  ;;  %v12888_v0 = vadd.f32 %v15558_v17, %v4817_v6 }
 0x96c   : > { %v8843_v11 = vpop.eup %8842  ;;  %8862 = vtanh.f32 %v12730_v42  ;;  %v15559_v42 = vld [vmem:[#allocation166_spill] sm:$0xff]  ;;  %v12895_v16 = vadd.f32 %v15560_v4, %v4817_v6  ;;  %v4968_v10 = vmul.f32 %v8835_v19, %v12735_v59  ;;  %v4970_v19 = vmul.f32 %v8839_v40, %v12735_v59 }
 0x96d   : > { %v8845_v18 = vpop.eup %8844  ;;  %8864 = vtanh.f32 %v12733_v51  ;;  %v12892_v62 = vadd.f32 %v4817_v6, %v15559_v42  ;;  %v4972_v40 = vmul.f32 %v8843_v11, %v12735_v59 }
 0x96e   : > { %v8847_v41 = vpop.eup %8846  ;;  %5036 = vadd.xlane.f32.xlu0 %v4966_v50  ;;  %8866 = vtanh.f32 %v12738_v9  ;;  %v4969_v50 = vmul.f32 %v8833_v24, %v12735_v59  ;;  %v4971_v24 = vmul.f32 %v8837_v34, %v12735_v59 }
 0x96f   : > { %v8849_v13 = vpop.eup %8848  ;;  %5038 = vadd.xlane.f32.xlu1 %v4967_v36  ;;  %8868 = vtanh.f32 %v12741_v54 }
 0x970   : > { %v8851_v51 = vpop.eup %8850  ;;  %8870 = vtanh.f32 %v12744_v25 }
 0x971   : > { %v12900_v43 = vpop.eup %8852  ;;  %8872 = vtanh.f32 %v12747_v28  ;;  %v4976_v36 = vmul.f32 %v8851_v51, %v12735_v59 }
 0x972   : > { %v8855_v9 = vpop.eup %8854  ;;  %5040 = vadd.xlane.f32.xlu0 %v4968_v10  ;;  %8874 = vtanh.f32 %v12750_v58  ;;  %v4979_v51 = vmul.f32 %v12900_v43, %v12735_v59 }
 0x973   : > { %v12905_v6 = vpop.eup %8856  ;;  %5042 = vadd.xlane.f32.xlu1 %v4969_v50  ;;  %8876 = vtanh.f32 %v12753_v12 }
 0x974   : > { %v12908_v54 = vpop.eup %8858  ;;  %8878 = vtanh.f32 %v12757_v57 }
 0x975   : > { %v12912_v25 = vpop.eup %8860  ;;  %8880 = vtanh.f32 %v12760_v21  ;;  %v4973_v21 = vmul.f32 %v8841_v35, %v12735_v59 }
 0x976   : > { %v12916_v28 = vpop.eup %8862  ;;  %5044 = vadd.xlane.f32.xlu0 %v4970_v19  ;;  %8882 = vtanh.f32 %v12764_v52 }
 0x977   : > { %v12919_v58 = vpop.eup %8864  ;;  %5046 = vadd.xlane.f32.xlu1 %v4971_v24  ;;  %8884 = vtanh.f32 %v12769_v38 }
 0x978   : > { %v12922_v12 = vpop.eup %8866  ;;  %8886 = vtanh.f32 %v12773_v47  ;;  %v4974_v47 = vmul.f32 %v8847_v41, %v12735_v59 }
 0x979   : > { %v12926_v57 = vpop.eup %8868  ;;  %8888 = vtanh.f32 %v12778_v61  ;;  %v4975_v61 = vmul.f32 %v8845_v18, %v12735_v59 }
 0x97a   : > { %v12930_v34 = vpop.eup %8870  ;;  %5048 = vadd.xlane.f32.xlu0 %v4972_v40  ;;  %8890 = vtanh.f32 %v12782_v26 }
 0x97b   : > { %v12933_v52 = vpop.eup %8872  ;;  %5050 = vadd.xlane.f32.xlu1 %v4973_v21  ;;  %8892 = vtanh.f32 %v12786_v8  ;;  %v4982_v21 = vmul.f32 %v12916_v28, %v12735_v59 }
 0x97c   : > { %v12936_v38 = vpop.eup %8874  ;;  %8894 = vtanh.f32 %v12790_v46 }
 0x97d   : > { %v12940_v11 = vpop.eup %8876  ;;  %8896 = vtanh.f32 %v12798_v15  ;;  %v4977_v15 = vmul.f32 %v8849_v13, %v12735_v59 }
 0x97e   : > { %v12944_v35 = vpop.eup %8878  ;;  %5052 = vadd.xlane.f32.xlu0 %v4974_v47  ;;  %8898 = vtanh.f32 %v12802_v22 }
 0x97f   : > { %v8881_v26 = vpop.eup %8880  ;;  %5054 = vadd.xlane.f32.xlu1 %v4975_v61  ;;  %8900 = vtanh.f32 %v12807_v39 }
 0x980   : > { %v8883_v8 = vpop.eup %8882  ;;  %v12950_v46 = vmul.f32 %v8881_v26, %v12735_v59  ;;  %8902 = vtanh.f32 %v12811_v7  ;;  %v4978_v7 = vmul.f32 %v8855_v9, %v12735_v59  ;;  %v4980_v9 = vmul.f32 %v12908_v54, %v12735_v59 }
 0x981   : > { %v8885_v18 = vpop.eup %8884  ;;  %v12955_v17 = vmul.f32 %v8883_v8, %v12735_v59  ;;  %8904 = vtanh.f32 %v12816_v44  ;;  %v4992_v8 = vmul.f32 %v12922_v12, %v12735_v59 }
 0x982   : > { %v8887_v22 = vpop.eup %8886  ;;  %5056 = vadd.xlane.f32.xlu0 %v4976_v36  ;;  %v12959_v39 = vmul.f32 %v8885_v18, %v12735_v59  ;;  %8906 = vtanh.f32 %v12820_v63 }
 0x983   : > { %v8889_v41 = vpop.eup %8888  ;;  %5058 = vadd.xlane.f32.xlu1 %v4977_v15  ;;  %v12963_v42 = vmul.f32 %v8887_v22, %v12735_v59  ;;  %8908 = vtanh.f32 %v12824_v23 }
 0x984   : > { %v8891_v13 = vpop.eup %8890  ;;  %v12968_v4 = vmul.f32 %v8889_v41, %v12735_v59  ;;  %8910 = vtanh.f32 %v12828_v48 }
 0x985   : > { %v8893_v44 = vpop.eup %8892  ;;  %v12974_v63 = vmul.f32 %v8891_v13, %v12735_v59  ;;  %8912 = vtanh.f32 %v12832_v27  ;;  %v4995_v13 = vmul.f32 %v12926_v57, %v12735_v59  ;;  %v4996_v57 = vmul.f32 %v12933_v52, %v12735_v59 }
 0x986   : > { %v8895_v10 = vpop.eup %8894  ;;  %5060 = vadd.xlane.f32.xlu0 %v4978_v7  ;;  %v12978_v23 = vmul.f32 %v8893_v44, %v12735_v59  ;;  %8914 = vtanh.f32 %v12835_v60  ;;  %v4981_v60 = vmul.f32 %v12905_v6, %v12735_v59  ;;  %v4998_v52 = vmul.f32 %v12940_v11, %v12735_v59 }
 0x987   : > { %v8897_v50 = vpop.eup %8896  ;;  %5062 = vadd.xlane.f32.xlu1 %v4979_v51  ;;  %v12982_v48 = vmul.f32 %v8895_v10, %v12735_v59  ;;  %8916 = vtanh.f32 %v12841_v53 }
 0x988   : > { %v8899_v43 = vpop.eup %8898  ;;  %v12988_v27 = vmul.f32 %v8897_v50, %v12735_v59  ;;  %8918 = vtanh.f32 %v12845_v14 }
 0x989   : > { %v8901_v19 = vpop.eup %8900  ;;  %v12994_v24 = vmul.f32 %v8899_v43, %v12735_v59  ;;  %8920 = vtanh.f32 %v12851_v1 }
 0x98a   : > { %v8903_v40 = vpop.eup %8902  ;;  %5064 = vadd.xlane.f32.xlu0 %v4980_v9  ;;  %v12998_v53 = vmul.f32 %v8901_v19, %v12735_v59  ;;  %8922 = vtanh.f32 %v12855_v2  ;;  %v4983_v2 = vmul.f32 %v12912_v25, %v12735_v59 }
 0x98b   : > { %v8905_v54 = vpop.eup %8904  ;;  %5066 = vadd.xlane.f32.xlu1 %v4981_v60  ;;  %v13002_v14 = vmul.f32 %v8903_v40, %v12735_v59  ;;  %8924 = vtanh.f32 %v12860_v37 }
 0x98c   : > { %v8907_v6 = vpop.eup %8906  ;;  %v13008_v1 = vmul.f32 %v8905_v54, %v12735_v59  ;;  %8926 = vtanh.f32 %v12864_v55 }
 0x98d   : > { %v8909_v47 = vpop.eup %8908  ;;  %v13014_v61 = vmul.f32 %v8907_v6, %v12735_v59  ;;  %8928 = vtanh.f32 %v12869_v49 }
 0x98e   : > { %v8911_v26 = vpop.eup %8910  ;;  %5068 = vadd.xlane.f32.xlu0 %v4982_v21  ;;  %v13018_v37 = vmul.f32 %v8909_v47, %v12735_v59  ;;  %8930 = vtanh.f32 %v12872_v3  ;;  %v4993_v3 = vmul.f32 %v12919_v58, %v12735_v59  ;;  %v4994_v58 = vmul.f32 %v12930_v34, %v12735_v59 }
 0x98f   : > { %v8913_v28 = vpop.eup %8912  ;;  %5070 = vadd.xlane.f32.xlu1 %v4983_v2  ;;  %v13022_v55 = vmul.f32 %v8911_v26, %v12735_v59  ;;  %8932 = vtanh.f32 %v12877_v20  ;;  %v4997_v34 = vmul.f32 %v12936_v38, %v12735_v59  ;;  %v4984_v38 = vmul.f32 %v12944_v35, %v12735_v59 }
 0x990   : > { %v8915_v25 = vpop.eup %8914  ;;  %v13028_v49 = vmul.f32 %v8913_v28, %v12735_v59  ;;  %8934 = vtanh.f32 %v12880_v45 }
 0x991   : > { %v8917_v36 = vpop.eup %8916  ;;  %v5016_v18 = vmul.f32 %v8915_v25, %v12735_v59  ;;  %8936 = vtanh.f32 %v12885_v33 }
 0x992   : > { %v8919_v15 = vpop.eup %8918  ;;  %5088 = vadd.xlane.f32.xlu0 %v4992_v8  ;;  %v5005_v20 = vmul.f32 %v8917_v36, %v12735_v59  ;;  %8938 = vtanh.f32 %v12888_v0 }
 0x993   : > { %v8921_v12 = vpop.eup %8920  ;;  %5090 = vadd.xlane.f32.xlu1 %v4993_v3  ;;  %v5006_v22 = vmul.f32 %v8919_v15, %v12735_v59  ;;  %8940 = vtanh.f32 %v12892_v62 }
 0x994   : > { %v8923_v45 = vpop.eup %8922  ;;  %v5012_v41 = vmul.f32 %v8921_v12, %v12735_v59  ;;  %8942 = vtanh.f32 %v12895_v16 }
 0x995   : > { %v8925_v33 = vpop.eup %8924  ;;  %v5013_v0 = vmul.f32 %v8923_v45, %v12735_v59 }
 0x996   : > { %v8927_v7 = vpop.eup %8926  ;;  %5092 = vadd.xlane.f32.xlu0 %v4994_v58  ;;  %v5007_v44 = vmul.f32 %v8925_v33, %v12735_v59 }
 0x997   : > { %v8929_v51 = vpop.eup %8928  ;;  %5094 = vadd.xlane.f32.xlu1 %v4995_v13  ;;  %v5014_v62 = vmul.f32 %v8927_v7, %v12735_v59 }
 0x998   : > { %v8931_v10 = vpop.eup %8930  ;;  %v5015_v16 = vmul.f32 %v8929_v51, %v12735_v59 }
 0x999   : > { %v8933_v50 = vpop.eup %8932  ;;  %v5017_v43 = vmul.f32 %v8931_v10, %v12735_v59 }
 0x99a   : > { %v8935_v9 = vpop.eup %8934  ;;  %5098 = vadd.xlane.f32.xlu0 %v4997_v34  ;;  %v5018_v19 = vmul.f32 %v8933_v50, %v12735_v59 }
 0x99b   : > { %v8937_v60 = vpop.eup %8936  ;;  %5096 = vadd.xlane.f32.xlu1 %v4996_v57  ;;  %v5019_v40 = vmul.f32 %v8935_v9, %v12735_v59 }
 0x99c   : > { %v8939_v54 = vpop.eup %8938  ;;  %v5020_v6 = vmul.f32 %v8937_v60, %v12735_v59 }
 0x99d   : > { %v8941_v21 = vpop.eup %8940  ;;  %v5021_v47 = vmul.f32 %v8939_v54, %v12735_v59 }
 0x99e   : > { %v8943_v2 = vpop.eup %8942  ;;  %5072 = vadd.xlane.f32.xlu0 %v4984_v38  ;;  %v5022_v26 = vmul.f32 %v8941_v21, %v12735_v59  ;;  %v15562_v38 = vld [vmem:[#allocation183_spill] sm:$0xff]  ;;  %v15563_v21 = vld [vmem:[#allocation184_spill] sm:$0xff] }
 0x99f   : > { %5100 = vadd.xlane.f32.xlu1 %v4998_v52  ;;  %v5023_v28 = vmul.f32 %v8943_v2, %v12735_v59  ;;  %v13081_v59 = vpop.permute.xlu0 %5160  ;;  %v15565_v2 = vld [vmem:[#allocation185_spill] sm:$0xff] }
 0x9a2   : > { %5076 = vadd.xlane.f32.xlu0 %v12955_v17 }
 0x9a3   : > { %5102 = vadd.xlane.f32.xlu1 %v12950_v46 }
 0x9a6   : > { %5080 = vadd.xlane.f32.xlu0 %v12963_v42 }
 0x9a7   : > { %5074 = vadd.xlane.f32.xlu1 %v12959_v39 }
 0x9aa   : > { %5084 = vadd.xlane.f32.xlu0 %v12974_v63 }
 0x9ab   : > { %5078 = vadd.xlane.f32.xlu1 %v12968_v4 }
 0x9ae   : > { %5106 = vadd.xlane.f32.xlu0 %v12982_v48 }
 0x9af   : > { %5082 = vadd.xlane.f32.xlu1 %v12978_v23 }
 0x9b2   : > { %5108 = vadd.xlane.f32.xlu0 %v12994_v24 }
 0x9b3   : > { %5086 = vadd.xlane.f32.xlu1 %v12988_v27 }
 0x9b6   : > { %5122 = vadd.xlane.f32.xlu0 %v12998_v53 }
 0x9b7   : > { %5104 = vadd.xlane.f32.xlu1 %v13002_v14 }
 0x9ba   : > { %5110 = vadd.xlane.f32.xlu0 %v13008_v1 }
 0x9bb   : > { %5120 = vadd.xlane.f32.xlu1 %v13014_v61 }
 0x9be   : > { %5126 = vadd.xlane.f32.xlu0 %v13018_v37 }
 0x9bf   : > { %5124 = vadd.xlane.f32.xlu1 %v13022_v55 }
 0x9c2   : > { %5136 = vadd.xlane.f32.xlu0 %v5016_v18 }
 0x9c3   : > { %5112 = vadd.xlane.f32.xlu1 %v13028_v49 }
 0x9c6   : > { %5116 = vadd.xlane.f32.xlu0 %v5006_v22 }
 0x9c7   : > { %5114 = vadd.xlane.f32.xlu1 %v5005_v20 }
 0x9cb   : > { %5128 = vadd.xlane.f32.xlu1 %v5012_v41 }
 0x9cf   : > { %5130 = vadd.xlane.f32.xlu1 %v5013_v0 }
 0x9d3   : > { %5118 = vadd.xlane.f32.xlu1 %v5007_v44 }
 0x9d7   : > { %5132 = vadd.xlane.f32.xlu1 %v5014_v62 }
 0x9db   : > { %5134 = vadd.xlane.f32.xlu1 %v5015_v16 }
 0x9df   : > { %5138 = vadd.xlane.f32.xlu1 %v5017_v43 }
 0x9e3   : > { %5140 = vadd.xlane.f32.xlu1 %v5018_v19 }
 0x9e7   : > { %5142 = vadd.xlane.f32.xlu1 %v5019_v40 }
 0x9eb   : > { %5144 = vadd.xlane.f32.xlu1 %v5020_v6 }
 0x9ef   : > { %5146 = vadd.xlane.f32.xlu1 %v5021_v47  ;;  %v5027_v11 = vpop.xlane.xlu0 %5026 }
 0x9f0   : > { %v5025_v35 = vpop.xlane.xlu1 %5024  ;;  %v13147_v19 = vadd.f32 %v13081_v59, %v5027_v11 }
 0x9f1   : > { %v13144_v9 = vadd.f32 %v13081_v59, %v5025_v35 }
 0x9f2   : > { %v5298_v52 = vrot.slane %v13147_v19, %v15563_v21 }
 0x9f3   : > { %5148 = vadd.xlane.f32.xlu1 %v5022_v26  ;;  %v5029_v46 = vpop.xlane.xlu0 %5028  ;;  %v5294_v6 = vrot.slane %v13144_v9, %v15562_v38 }
 0x9f4   : > { %v5031_v17 = vpop.xlane.xlu1 %5030  ;;  %v13150_v60 = vadd.f32 %v13081_v59, %v5029_v46 }
 0x9f5   : > { %v13161_v47 = vadd.f32 %v13081_v59, %v5031_v17  ;;  %v5299_v17 = vsel %vm2450_vm2, %v5298_v52, %v5294_v6 }
 0x9f6   : > { %15561 = vst [vmem:[#allocation169_spill] sm:$0xff] %v13150_v60  ;;  %v5303_v26 = vrot.slane %v13150_v60, %v15565_v2 }
 0x9f7   : > { %5150 = vadd.xlane.f32.xlu1 %v5023_v28  ;;  %v5033_v39 = vpop.xlane.xlu0 %5032  ;;  %15564 = vst [vmem:[#allocation193_spill] sm:$0xff] %v13161_v47  ;;  %v5308_v30 = vrot.slane %v13161_v47, %v15570_v56 }
 0x9f8   : > { %v5035_v42 = vpop.xlane.xlu1 %5034  ;;  %v13166_v28 = vadd.f32 %v13081_v59, %v5033_v39  ;;  %v5304_v39 = vsel %vm2457_vm3, %v5303_v26, %v5299_v17 }
 0x9f9   : > { %v13183_v32 = vadd.f32 %v13081_v59, %v5035_v42 }
 0x9fa   : > { %15566 = vst [vmem:[#allocation198_spill] sm:$0xff] %v13166_v28 }
 0x9fb   : > { %v13083_v4 = vpop.xlane.xlu0 %5036  ;;  %15571 = vst [vmem:[#allocation212_spill] sm:$0xff] %v13183_v32 }
 0x9fc   : > { %v13085_v63 = vpop.xlane.xlu1 %5038 }
 0x9ff   : > { %v5041_v23 = vpop.xlane.xlu0 %5040 }
 0xa00   : > { %v5043_v48 = vpop.xlane.xlu1 %5042  ;;  %v13172_v35 = vadd.f32 %v13081_v59, %v5041_v23 }
 0xa01   : > { %v13169_v11 = vadd.f32 %v13081_v59, %v5043_v48  ;;  %v15572_v48 = vld [vmem:[#allocation187_spill] sm:$0xff] }
 0xa02   : > { %15568 = vst [vmem:[#allocation223_spill] sm:$0xff] %v13172_v35  ;;  %v5313_v31 = vrot.slane %v13166_v28, %v15572_v48 }
 0xa03   : > { %v5045_v27 = vpop.xlane.xlu0 %5044  ;;  %15567 = vst [vmem:[#allocation168_spill] sm:$0xff] %v13169_v11  ;;  %v5337_v23 = vrot.slane %v13169_v11, %v15563_v21 }
 0xa04   : > { %v5047_v24 = vpop.xlane.xlu1 %5046  ;;  %v13175_v46 = vadd.f32 %v13081_v59, %v5045_v27  ;;  %v5333_v27 = vrot.slane %v13172_v35, %v15562_v38  ;;  %v15577_v35 = vld [vmem:[#allocation188_spill] sm:$0xff] }
 0xa05   : > { %v13195_v6 = vadd.f32 %v13081_v59, %v5047_v24  ;;  %v5318_v47 = vrot.slane %v13183_v32, %v15577_v35  ;;  %v5309_v24 = vsel %vm2464_vm4, %v5308_v30, %v5304_v39 }
 0xa06   : > { %15569 = vst [vmem:[#allocation195_spill] sm:$0xff] %v13175_v46  ;;  %v5342_v42 = vrot.slane %v13175_v46, %v15565_v2  ;;  %v5314_v46 = vsel %vm2471_vm5, %v5313_v31, %v5309_v24 }
 0xa07   : > { %v5049_v53 = vpop.xlane.xlu0 %5048  ;;  %15573 = vst [vmem:[#allocation222_spill] sm:$0xff] %v13195_v6  ;;  %v5347_v32 = vrot.slane %v13195_v6, %v15570_v56  ;;  %v15582_v6 = vld [vmem:[#allocation189_spill] sm:$0xff] }
 0xa08   : > { %v13087_v14 = vpop.xlane.xlu1 %5050  ;;  %v13202_v26 = vadd.f32 %v13081_v59, %v5049_v53  ;;  %v13219_v53 = vadd.f32 %v13081_v59, %v13085_v63 }
 0xa0a   : > { %15574 = vst [vmem:[#allocation227_spill] sm:$0xff] %v13202_v26  ;;  %v5352_v63 = vrot.slane %v13202_v26, %v15572_v48 }
 0xa0b   : > { %v13091_v61 = vpop.xlane.xlu0 %5052 }
 0xa0c   : > { %v13089_v1 = vpop.xlane.xlu1 %5054 }
 0xa0f   : > { %v5057_v55 = vpop.xlane.xlu0 %5056 }
 0xa10   : > { %v5059_v37 = vpop.xlane.xlu1 %5058  ;;  %v13208_v11 = vadd.f32 %v13081_v59, %v5057_v55  ;;  %v5338_v55 = vsel %vm2450_vm2, %v5337_v23, %v5333_v27 }
 0xa11   : > { %v13205_v17 = vadd.f32 %v13081_v59, %v5059_v37  ;;  %v13223_v37 = vadd.f32 %v13081_v59, %v13083_v4  ;;  %v5343_v30 = vsel %vm2457_vm3, %v5342_v42, %v5338_v55  ;;  %v15581_v55 = vld [vmem:[#allocation190_spill] sm:$0xff] }
 0xa12   : > { %15576 = vst [vmem:[#allocation174_spill] sm:$0xff] %v13208_v11  ;;  %v5372_v39 = vrot.slane %v13208_v11, %v15562_v38 }
 0xa13   : > { %v5061_v49 = vpop.xlane.xlu0 %5060  ;;  %15575 = vst [vmem:[#allocation202_spill] sm:$0xff] %v13205_v17  ;;  %15579 = vst [vmem:[#allocation225_spill] sm:$0xff] %v13223_v37  ;;  %v5376_v4 = vrot.slane %v13205_v17, %v15563_v21  ;;  %v5323_v11 = vrot.slane %v13223_v37, %v15582_v6 }
 0xa14   : > { %v13093_v25 = vpop.xlane.xlu1 %5062  ;;  %v13214_v28 = vadd.f32 %v13081_v59, %v5061_v49  ;;  %v13231_v49 = vadd.f32 %v13081_v59, %v13087_v14  ;;  %v5319_v14 = vsel %vm2478_vm6, %v5318_v47, %v5314_v46 }
 0xa15   : > { %v13243_v23 = vadd.f32 %v13081_v59, %v13093_v25 }
 0xa16   : > { %15578 = vst [vmem:[#allocation203_spill] sm:$0xff] %v13214_v28  ;;  %v5381_v42 = vrot.slane %v13214_v28, %v15565_v2  ;;  %v5357_v46 = vrot.slane %v13231_v49, %v15577_v35  ;;  %v13271_v28 = vadd.f32 %v13081_v59, %v13091_v61  ;;  %v13289_v61 = vadd.f32 %v13081_v59, %v13089_v1 }
 0xa17   : > { %v13099_v3 = vpop.xlane.xlu0 %5064  ;;  %v5386_v37 = vrot.slane %v13243_v23, %v15570_v56 }
 0xa18   : > { %v13095_v8 = vpop.xlane.xlu1 %5066  ;;  %v13252_v24 = vadd.f32 %v13081_v59, %v13099_v3  ;;  %v5348_v3 = vsel %vm2464_vm4, %v5347_v32, %v5343_v30  ;;  %15586 = vst [vmem:[#allocation177_spill] sm:$0xff] %v13289_v61 }
 0xa19   : > { %v13294_v30 = vadd.f32 %v13081_v59, %v13095_v8 }
 0xa1a   : > { %15580 = vst [vmem:[#allocation226_spill] sm:$0xff] %v13252_v24 }
 0xa1b   : > { %v13105_v20 = vpop.xlane.xlu0 %5068  ;;  %15587 = vst [vmem:[#allocation181_spill] sm:$0xff] %v13294_v30 }
 0xa1c   : > { %v13097_v36 = vpop.xlane.xlu1 %5070 }
 0xa1f   : > { %v13109_v22 = vpop.xlane.xlu0 %5088 }
 0xa20   : > { %v13101_v18 = vpop.xlane.xlu1 %5090  ;;  %v13264_v47 = vadd.f32 %v13081_v59, %v13109_v22  ;;  %v5377_v22 = vsel %vm2450_vm2, %v5376_v4, %v5372_v39  ;;  %v13300_v4 = vadd.f32 %v13081_v59, %v13105_v20 }
 0xa21   : > { %v13260_v25 = vadd.f32 %v13081_v59, %v13101_v18  ;;  %v5353_v18 = vsel %vm2471_vm5, %v5352_v63, %v5348_v3  ;;  %v5391_v63 = vrot.slane %v13252_v24, %v15572_v48  ;;  %v5362_v3 = vrot.slane %v13271_v28, %v15582_v6 }
 0xa22   : > { %15584 = vst [vmem:[#allocation170_spill] sm:$0xff] %v13264_v47  ;;  %15588 = vst [vmem:[#allocation210_spill] sm:$0xff] %v13300_v4  ;;  %v5450_v1 = vrot.slane %v13264_v47, %v15562_v38  ;;  %v5358_v8 = vsel %vm2478_vm6, %v5357_v46, %v5353_v18 }
 0xa23   : > { %v13115_v41 = vpop.xlane.xlu0 %5092  ;;  %15583 = vst [vmem:[#allocation234_spill] sm:$0xff] %v13260_v25 }
 0xa24   : > { %v13103_v15 = vpop.xlane.xlu1 %5094  ;;  %v13275_v17 = vadd.f32 %v13081_v59, %v13115_v41  ;;  %v5382_v41 = vsel %vm2457_vm3, %v5381_v42, %v5377_v22 }
 0xa25   : > { %v13315_v20 = vadd.f32 %v13081_v59, %v13103_v15  ;;  %v5387_v24 = vsel %vm2464_vm4, %v5386_v37, %v5382_v41  ;;  %v5367_v15 = vrot.slane %v13289_v61, %v15581_v55 }
 0xa26   : > { %15585 = vst [vmem:[#allocation204_spill] sm:$0xff] %v13275_v17  ;;  %v5459_v22 = vrot.slane %v13275_v17, %v15565_v2  ;;  %v5396_v17 = vrot.slane %v13294_v30, %v15577_v35  ;;  %v5392_v47 = vsel %vm2471_vm5, %v5391_v63, %v5387_v24  ;;  %v5363_v30 = vsel %vm2485_vm7, %v5362_v3, %v5358_v8 }
 0xa27   : > { %v13119_v13 = vpop.xlane.xlu0 %5098  ;;  %15589 = vst [vmem:[#allocation211_spill] sm:$0xff] %v13315_v20  ;;  %v5464_v24 = vrot.slane %v13315_v20, %v15570_v56 }
 0xa28   : > { %v13107_v12 = vpop.xlane.xlu1 %5096  ;;  %v13356_v63 = vadd.f32 %v13081_v59, %v13119_v13 }
 0xa2a   : > { %15591 = vst [vmem:[#allocation173_spill] sm:$0xff] %v13356_v63 }
 0xa2b   : > { %v13125_v44 = vpop.xlane.xlu0 %5072 }
 0xa2c   : > { %v13111_v45 = vpop.xlane.xlu1 %5100  ;;  %v13308_v39 = vadd.f32 %v13081_v59, %v13125_v44  ;;  %v13324_v44 = vadd.f32 %v13081_v59, %v13107_v12  ;;  %v13343_v12 = vadd.f32 %v13081_v59, %v13097_v36 }
 0xa2d   : > { %v13388_v20 = vadd.f32 %v13081_v59, %v13111_v45 }
 0xa2e   : > { %15590 = vst [vmem:[#allocation194_spill] sm:$0xff] %v13324_v44  ;;  %v5411_v61 = vrot.slane %v13308_v39, %v15562_v38 }
 0xa2f   : > { %v13129_v62 = vpop.xlane.xlu0 %5076 }
 0xa30   : > { %v13113_v58 = vpop.xlane.xlu1 %5102  ;;  %v13339_v37 = vadd.f32 %v13081_v59, %v13129_v62 }
 0xa32   : > { %v5420_v13 = vrot.slane %v13339_v37, %v15565_v2 }
 0xa33   : > { %v13135_v16 = vpop.xlane.xlu0 %5080 }
 0xa34   : > { %v13117_v33 = vpop.xlane.xlu1 %5074 }
 0xa35   : > { %v13285_v32 = vadd.f32 %v13081_v59, %v13117_v33  ;;  %v5454_v33 = vrot.slane %v13260_v25, %v15563_v21 }
 0xa37   : > { %v13139_v57 = vpop.xlane.xlu0 %5084  ;;  %v5415_v46 = vrot.slane %v13285_v32, %v15563_v21  ;;  %v5455_v41 = vsel %vm2450_vm2, %v5454_v33, %v5450_v1 }
 0xa38   : > { %v13121_v0 = vpop.xlane.xlu1 %5078  ;;  %v5460_v62 = vsel %vm2457_vm3, %v5459_v22, %v5455_v41  ;;  %v5397_v22 = vsel %vm2478_vm6, %v5396_v17, %v5392_v47  ;;  %v13374_v41 = vadd.f32 %v13081_v59, %v13135_v16 }
 0xa39   : > { %v13330_v18 = vadd.f32 %v13081_v59, %v13121_v0  ;;  %v5401_v0 = vrot.slane %v13300_v4, %v15582_v6  ;;  %v5469_v4 = vrot.slane %v13324_v44, %v15572_v48  ;;  %v5416_v33 = vsel %vm2450_vm2, %v5415_v46, %v5411_v61 }
 0xa3a   : > { %v5324_v46 = vsel %vm2485_vm7, %v5323_v11, %v5319_v14  ;;  %v5368_v44 = vsel %vm2492_vm8, %v5367_v15, %v5363_v30  ;;  %v5465_v47 = vsel %vm2464_vm4, %v5464_v24, %v5460_v62  ;;  %v5421_v16 = vsel %vm2457_vm3, %v5420_v13, %v5416_v33 }
 0xa3b   : > { %v13154_v54 = vpop.xlane.xlu0 %5106  ;;  %v5425_v1 = vrot.slane %v13330_v18, %v15570_v56  ;;  %v5402_v17 = vsel %vm2485_vm7, %v5401_v0, %v5397_v22  ;;  %v5470_v14 = vsel %vm2471_vm5, %v5469_v4, %v5465_v47  ;;  %v5474_v30 = vrot.slane %v13356_v63, %v15577_v35 }
 0xa3c   : > { %v13123_v7 = vpop.xlane.xlu1 %5082  ;;  %v5430_v45 = vrot.slane %v13374_v41, %v15572_v48  ;;  %v15593_v62 = vrot.slane %v13219_v53, %v15581_v55  ;;  %v5479_v47 = vrot.slane %v13388_v20, %v15582_v6 }
 0xa3d   : > { %v13367_v8 = vadd.f32 %v13081_v59, %v13123_v7  ;;  %v5406_v7 = vrot.slane %v13343_v12, %v15581_v55  ;;  %v5426_v15 = vsel %vm2464_vm4, %v5425_v1, %v5421_v16  ;;  %v13418_v1 = vadd.f32 %v13081_v59, %v13139_v57 }
 0xa3e   : > { %v5329_v33 = vsel %vm2492_vm8, %v15593_v62, %v5324_v46  ;;  %v5431_v46 = vsel %vm2471_vm5, %v5430_v45, %v5426_v15 }
 0xa3f   : > { %v13192_v60 = vpop.xlane.xlu0 %5108  ;;  %v5435_v0 = vrot.slane %v13367_v8, %v15577_v35  ;;  %v5407_v62 = vsel %vm2492_vm8, %v5406_v7, %v5402_v17  ;;  %v5440_v7 = vrot.slane %v13418_v1, %v15582_v6 }
 0xa40   : > { %v13127_v51 = vpop.xlane.xlu1 %5086  ;;  %v13422_v22 = vadd.f32 %v13081_v59, %v13192_v60  ;;  %v5475_v60 = vsel %vm2478_vm6, %v5474_v30, %v5470_v14 }
 0xa41   : > { %v13405_v24 = vadd.f32 %v13081_v59, %v13127_v51  ;;  %v5436_v63 = vsel %vm2478_vm6, %v5435_v0, %v5431_v46  ;;  %v5480_v30 = vsel %vm2485_vm7, %v5479_v47, %v5475_v60  ;;  %v13463_v0 = vadd.f32 %v13081_v59, %v13113_v58 }
 0xa42   : > { %v5498_v17 = vrot.slane %v13422_v22, %v15565_v2 }
 0xa43   : > { %v13245_v27 = vpop.xlane.xlu0 %5122  ;;  %15592 = vst [vmem:[#allocation228_spill] sm:$0xff] %v13405_v24 }
 0xa44   : > { %v13131_v10 = vpop.xlane.xlu1 %5104 }
 0xa45   : > { %v13378_v61 = vadd.f32 %v13081_v59, %v13131_v10  ;;  %v13393_v10 = vadd.f32 %v13081_v59, %v13154_v54 }
 0xa47   : > { %v5111_v42 = vpop.xlane.xlu0 %5110  ;;  %v5489_v54 = vrot.slane %v13378_v61, %v15562_v38  ;;  %v5493_v57 = vrot.slane %v13393_v10, %v15563_v21 }
 0xa48   : > { %v13133_v34 = vpop.xlane.xlu1 %5120  ;;  %v13410_v4 = vadd.f32 %v13081_v59, %v5111_v42  ;;  %v5603_v42 = vsel %vm2767_vm9, %v5368_v44, %v5329_v33  ;;  %v5445_v44 = vrot.slane %v13405_v24, %v15581_v55 }
 0xa49   : > { %v13426_v51 = vadd.f32 %v13081_v59, %v13133_v34  ;;  %v13439_v34 = vadd.f32 %v13081_v59, %v13245_v27  ;;  %v5494_v33 = vsel %vm2450_vm2, %v5493_v57, %v5489_v54  ;;  %v5441_v57 = vsel %vm2485_vm7, %v5440_v7, %v5436_v63 }
 0xa4a   : > { %v5503_v15 = vrot.slane %v13410_v4, %v15570_v56  ;;  %v5446_v58 = vsel %vm2492_vm8, %v5445_v44, %v5441_v57 }
 0xa4b   : > { %v5127_v3 = vpop.xlane.xlu0 %5126  ;;  %v5528_v27 = vrot.slane %v13426_v51, %v15562_v38  ;;  %v5532_v24 = vrot.slane %v13439_v34, %v15563_v21 }
 0xa4c   : > { %v13137_v50 = vpop.xlane.xlu1 %5124  ;;  %v13475_v47 = vadd.f32 %v13081_v59, %v5127_v3 }
 0xa4d   : > { %v13448_v45 = vadd.f32 %v13081_v59, %v13137_v50  ;;  %v5604_v50 = vsel %vm2769_vm10, %v5407_v62, %v5603_v42  ;;  %v5533_v63 = vsel %vm2450_vm2, %v5532_v24, %v5528_v27 }
 0xa4f   : > { %v5137_v13 = vpop.xlane.xlu0 %5136 }
 0xa50   : > { %v13141_v43 = vpop.xlane.xlu1 %5112  ;;  %v13482_v62 = vadd.f32 %v13081_v59, %v5137_v13 }
 0xa51   : > { %v13458_v14 = vadd.f32 %v13081_v59, %v13141_v43  ;;  %v5499_v43 = vsel %vm2457_vm3, %v5498_v17, %v5494_v33 }
 0xa52   : > { %v5504_v42 = vsel %vm2464_vm4, %v5503_v15, %v5499_v43 }
 0xa53   : > { %v5117_v60 = vpop.xlane.xlu0 %5116  ;;  %v5508_v7 = vrot.slane %v13458_v14, %v15572_v48 }
 0xa54   : > { %v13152_v40 = vpop.xlane.xlu1 %5114  ;;  %v13498_v15 = vadd.f32 %v13081_v59, %v5117_v60 }
 0xa55   : > { %v13468_v54 = vadd.f32 %v13081_v59, %v13152_v40  ;;  %v5537_v40 = vrot.slane %v13448_v45, %v15565_v2 }
 0xa56   : > { %15595 = vst [vmem:[#allocation167_spill] sm:$0xff] %v13498_v15 }
 0xa57   : > { %15594 = vst [vmem:[#allocation205_spill] sm:$0xff] %v13468_v54  ;;  %v5513_v33 = vrot.slane %v13468_v54, %v15577_v35 }
 0xa58   : > { %v13177_v29 = vpop.xlane.xlu1 %5128 }
 0xa59   : > { %v13489_v3 = vadd.f32 %v13081_v59, %v13177_v29  ;;  %v5542_v29 = vrot.slane %v13475_v47, %v15570_v56 }
 0xa5c   : > { %v13199_v52 = vpop.xlane.xlu1 %5130 }
 0xa5d   : > { %v13502_v24 = vadd.f32 %v13081_v59, %v13199_v52  ;;  %v5538_v52 = vsel %vm2457_vm3, %v5537_v40, %v5533_v63 }
 0xa5f   : > { %15596 = vst [vmem:[#allocation100_spill] sm:$0xff] %v13502_v24 }
 0xa60   : > { %v13233_v31 = vpop.xlane.xlu1 %5118 }
 0xa64   : > { %v13277_v26 = vpop.xlane.xlu1 %5132 }
 0xa65   : > { %v13515_v27 = vadd.f32 %v13081_v59, %v13277_v26  ;;  %v5547_v26 = vrot.slane %v13489_v3, %v15572_v48 }
 0xa67   : > { %15598 = vst [vmem:[#allocation232_spill] sm:$0xff] %v13515_v27 }
 0xa68   : > { %v13319_v25 = vpop.xlane.xlu1 %5134 }
 0xa69   : > { %v13525_v43 = vadd.f32 %v13081_v59, %v13319_v25  ;;  %v5518_v25 = vrot.slane %v13498_v15, %v15582_v6  ;;  %v5543_v15 = vsel %vm2464_vm4, %v5542_v29, %v5538_v52 }
 0xa6b   : > { %15600 = vst [vmem:[#allocation172_spill] sm:$0xff] %v13525_v43 }
 0xa6c   : > { %v13358_v36 = vpop.xlane.xlu1 %5138 }
 0xa6d   : > { %v13493_v44 = vadd.f32 %v13081_v59, %v13358_v36  ;;  %v13511_v36 = vadd.f32 %v13081_v59, %v13233_v31  ;;  %v5509_v31 = vsel %vm2471_vm5, %v5508_v7, %v5504_v42 }
 0xa6e   : > { %v5514_v63 = vsel %vm2478_vm6, %v5513_v33, %v5509_v31  ;;  %v5484_v31 = vrot.slane %v13463_v0, %v15581_v55 }
 0xa6f   : > { %15597 = vst [vmem:[#allocation216_spill] sm:$0xff] %v13511_v36 }
 0xa70   : > { %v5141_v11 = vpop.xlane.xlu1 %5140 }
 0xa71   : > { %v13505_v13 = vadd.f32 %v13081_v59, %v5141_v11  ;;  %v5567_v11 = vrot.slane %v13482_v62, %v15562_v38  ;;  %v5523_v38 = vrot.slane %v13511_v36, %v15581_v55 }
 0xa73   : > { %v5576_v42 = vrot.slane %v13505_v13, %v15565_v2  ;;  %v5562_v2 = vrot.slane %v13525_v43, %v15581_v55 }
 0xa74   : > { %v5143_v16 = vpop.xlane.xlu1 %5142 }
 0xa75   : > { %v13518_v57 = vadd.f32 %v13081_v59, %v5143_v16  ;;  %v5571_v16 = vrot.slane %v13493_v44, %v15563_v21  ;;  %v5557_v21 = vrot.slane %v13515_v27, %v15582_v6  ;;  %v5548_v27 = vsel %vm2471_vm5, %v5547_v26, %v5543_v15 }
 0xa77   : > { %15599 = vst [vmem:[#allocation231_spill] sm:$0xff] %v13518_v57 }
 0xa78   : > { %v5145_v46 = vpop.xlane.xlu1 %5144 }
 0xa79   : > { %v13528_v60 = vadd.f32 %v13081_v59, %v5145_v46  ;;  %v5552_v46 = vrot.slane %v13502_v24, %v15577_v35  ;;  %v5605_v24 = vsel %vm2771_vm11, %v5446_v58, %v5604_v50 }
 0xa7b   : > { %v5586_v36 = vrot.slane %v13528_v60, %v15572_v48  ;;  %v5553_v54 = vsel %vm2478_vm6, %v5552_v46, %v5548_v27  ;;  %v15602_v46 = vld [vmem:[#allocation169_spill] sm:$0xff] }
 0xa7c   : > { %v5147_v17 = vpop.xlane.xlu1 %5146  ;;  %v5558_v50 = vsel %vm2485_vm7, %v5557_v21, %v5553_v54 }
 0xa7d   : > { %v13536_v40 = vadd.f32 %v13081_v59, %v5147_v17  ;;  %v5581_v17 = vrot.slane %v13518_v57, %v15570_v56  ;;  %v5572_v56 = vsel %vm2450_vm2, %v5571_v16, %v5567_v11  ;;  %v5519_v57 = vsel %vm2485_vm7, %v5518_v25, %v5514_v63  ;;  %v15601_v25 = vld [vmem:[#allocation198_spill] sm:$0xff] }
 0xa7e   : > { %v5577_v29 = vsel %vm2457_vm3, %v5576_v42, %v5572_v56  ;;  %v5524_v48 = vsel %vm2492_vm8, %v5523_v38, %v5519_v57  ;;  %v5485_v11 = vsel %vm2492_vm8, %v5484_v31, %v5480_v30  ;;  %v5563_v27 = vsel %vm2492_vm8, %v5562_v2, %v5558_v50  ;;  %v15604_v50 = vld [vmem:[#allocation225_spill] sm:$0xff] }
 0xa7f   : > { %v5582_v58 = vsel %vm2464_vm4, %v5581_v17, %v5577_v29  ;;  %v5606_v38 = vsel %vm2773_vm12, %v5485_v11, %v5605_v24 }
 0xa80   : > { %v5149_v7 = vpop.xlane.xlu1 %5148  ;;  %v5587_v26 = vsel %vm2471_vm5, %v5586_v36, %v5582_v58  ;;  %v5607_v54 = vsel %vm2775_vm13, %v5524_v48, %v5606_v38  ;;  %v15607_v38 = vld [vmem:[#allocation212_spill] sm:$0xff] }
 0xa81   : > { %v13552_v33 = vadd.f32 %v13081_v59, %v5149_v7  ;;  %v5591_v7 = vrot.slane %v13536_v40, %v15577_v35  ;;  %v5608_v57 = vsel %vm2777_vm14, %v5563_v27, %v5607_v54  ;;  %v15606_v27 = vld [vmem:[#allocation223_spill] sm:$0xff] }
 0xa83   : > { %v5596_v52 = vrot.slane %v13552_v33, %v15582_v6  ;;  %v5592_v56 = vsel %vm2478_vm6, %v5591_v7, %v5587_v26  ;;  %v15603_v7 = vld [vmem:[#allocation179_spill] sm:$0xff]  ;;  %v15605_v26 = vld [vmem:[#allocation193_spill] sm:$0xff] }
 0xa84   : > { %v5151_v43 = vpop.xlane.xlu1 %5150 }
 0xa85   : > { %v13575_v15 = vadd.f32 %v13081_v59, %v5151_v43  ;;  %v5597_v21 = vsel %vm2485_vm7, %v5596_v52, %v5592_v56 }
 0xa87   : > { %v5601_v16 = vrot.slane %v13575_v15, %v15581_v55 }
 0xa89   : > { %v5602_v59 = vsel %vm2492_vm8, %v5601_v16, %v5597_v21 }
 0xa8a   : > { %v5609_v30 = vsel %vm2779_vm15, %v5602_v59, %v5608_v57  ;;  %v15608_v59 = vld [vmem:[#allocation195_spill] sm:$0xff] }
 0xa8b   : > { %v5611_v36 = vsel %vm2782_vm0, %v5609_v30, -inf }
 0xa8c   : > { %5612 = vmax.xlane.f32.xlu0 %v5611_v36 }
 0xb19   : > { %v13590_v2 = vpop.xlane.xlu0 %5612 }
 0xb1a   : > { %v5618_v43 = vrot.slane %v13590_v2, %v15495_v5  ;;  %v13600_v29 = vrot.slane %v13590_v2, %v15603_v7 }
 0xb1c   : > { %v5656_v24 = vsub.f32 %v13147_v19, %v5618_v43  ;;  %v5655_v63 = vsub.f32 %v13144_v9, %v5618_v43  ;;  %v5659_v48 = vsub.f32 %v15601_v25, %v5618_v43  ;;  %v5657_v42 = vsub.f32 %v15602_v46, %v5618_v43 }
 0xb1d   : > { %v5661_v58 = vsub.f32 %v15604_v50, %v5618_v43  ;;  %v5658_v19 = vsub.f32 %v15605_v26, %v5618_v43  ;;  %v5663_v56 = vsub.f32 %v15606_v27, %v13600_v29  ;;  %v5660_v21 = vsub.f32 %v15607_v38, %v5618_v43 }
 0xb1e   : > { %v5721_v17 = vmul.f32 1.442695, %v5656_v24  ;;  %v5719_v31 = vmul.f32 1.442695, %v5655_v63  ;;  %v5727_v52 = vmul.f32 1.442695, %v5659_v48  ;;  %v5665_v57 = vsub.f32 %v15608_v59, %v13600_v29 }
 0xb1f   : > { %v5723_v11 = vmul.f32 1.442695, %v5657_v42  ;;  %v5731_v9 = vmul.f32 1.442695, %v5661_v58  ;;  %v5725_v16 = vmul.f32 1.442695, %v5658_v19  ;;  %v5662_v36 = vsub.f32 %v13219_v53, %v5618_v43 }
 0xb20   : > { %8944 = vpow2.f32 %v5721_v17  ;;  %v5735_v54 = vmul.f32 1.442695, %v5663_v56  ;;  %v5729_v30 = vmul.f32 1.442695, %v5660_v21  ;;  %v5739_v25 = vmul.f32 1.442695, %v5665_v57 }
 0xb21   : > { %8946 = vpow2.f32 %v5719_v31  ;;  %v15611_v48 = vld [vmem:[#allocation227_spill] sm:$0xff]  ;;  %v5733_v42 = vmul.f32 1.442695, %v5662_v36  ;;  %v15612_v17 = vld [vmem:[#allocation168_spill] sm:$0xff]  ;;  %v15615_v43 = vld [vmem:[#allocation178_spill] sm:$0xff]  ;;  %v5668_v57 = vsub.f32 %v13231_v49, %v13600_v29 }
 0xb22   : > { %8948 = vpow2.f32 %v5727_v52  ;;  %v5667_v46 = vsub.f32 %v15611_v48, %v13600_v29  ;;  %v5664_v31 = vsub.f32 %v15612_v17, %v13600_v29  ;;  %v13627_v50 = vrot.slane %v13590_v2, %v15615_v43  ;;  %v15616_v19 = vld [vmem:[#allocation222_spill] sm:$0xff] }
 0xb23   : > { %8950 = vpow2.f32 %v5723_v11  ;;  %v5669_v11 = vsub.f32 %v13271_v28, %v13600_v29  ;;  %v15620_v28 = vld [vmem:[#allocation202_spill] sm:$0xff] }
 0xb24   : > { %8952 = vpow2.f32 %v5731_v9  ;;  %v5743_v58 = vmul.f32 1.442695, %v5667_v46  ;;  %v5737_v26 = vmul.f32 1.442695, %v5664_v31  ;;  %v5666_v9 = vsub.f32 %v15616_v19, %v13600_v29 }
 0xb25   : > { %8954 = vpow2.f32 %v5725_v16  ;;  %v15619_v16 = vld [vmem:[#allocation176_spill] sm:$0xff]  ;;  %v5747_v21 = vmul.f32 1.442695, %v5669_v11  ;;  %v5745_v46 = vmul.f32 1.442695, %v5668_v57  ;;  %v15628_v57 = vld [vmem:[#allocation170_spill] sm:$0xff] }
 0xb26   : > { %8956 = vpow2.f32 %v5735_v54  ;;  %v13641_v38 = vrot.slane %v13590_v2, %v15619_v16  ;;  %v5672_v54 = vsub.f32 %v15620_v28, %v13627_v50  ;;  %v5741_v59 = vmul.f32 1.442695, %v5666_v9  ;;  %v15626_v9 = vld [vmem:[#allocation203_spill] sm:$0xff] }
 0xb27   : > { %8958 = vpow2.f32 %v5729_v30 }
 0xb28   : > { %8960 = vpow2.f32 %v5739_v25  ;;  %v5753_v25 = vmul.f32 1.442695, %v5672_v54  ;;  %v5679_v48 = vsub.f32 %v13308_v39, %v13641_v38  ;;  %v5674_v39 = vsub.f32 %v13243_v23, %v13627_v50 }
 0xb29   : > { %8962 = vpow2.f32 %v5733_v42  ;;  %v15622_v42 = vld [vmem:[#allocation174_spill] sm:$0xff] }
 0xb2a   : > { %v13610_v24 = vpop.eup %8944  ;;  %8964 = vpow2.f32 %v5743_v58  ;;  %v5671_v17 = vsub.f32 %v15622_v42, %v13627_v50  ;;  %v15625_v58 = vld [vmem:[#allocation192_spill] sm:$0xff] }
 0xb2b   : > { %15609 = vst [vmem:[#allocation218_spill] sm:$0xff] %v13610_v24  ;;  %v13612_v63 = vpop.eup %8946  ;;  %5915 = vperm.xlu0 %8556, %v13610_v24   ;;  %8966 = vpow2.f32 %v5737_v26  ;;  %v13665_v11 = vrot.slane %v13590_v2, %v15625_v58  ;;  %v5767_v26 = vmul.f32 1.442695, %v5679_v48  ;;  %v5680_v48 = vsub.f32 %v13285_v32, %v13641_v38 }
 0xb2c   : > { %15610 = vst [vmem:[#allocation236_spill] sm:$0xff] %v13612_v63  ;;  %5912 = vperm.xlu1 %8557, %v13612_v63   ;;  %v13620_v52 = vpop.eup %8948  ;;  %8968 = vpow2.f32 %v5747_v21  ;;  %v5751_v19 = vmul.f32 1.442695, %v5671_v17  ;;  %v5673_v21 = vsub.f32 %v15626_v9, %v13627_v50 }
 0xb2d   : > { %15613 = vst [vmem:[#allocation206_spill] sm:$0xff] %v13620_v52  ;;  %v13622_v53 = vpop.eup %8950  ;;  %8970 = vpow2.f32 %v5741_v59  ;;  %v5757_v59 = vmul.f32 1.442695, %v5674_v39  ;;  %v5769_v9 = vmul.f32 1.442695, %v5680_v48 }
 0xb2e   : > { %15614 = vst [vmem:[#allocation182_spill] sm:$0xff] %v13622_v53  ;;  %v13634_v27 = vpop.eup %8952  ;;  %8972 = vpow2.f32 %v5753_v25  ;;  %v5687_v25 = vsub.f32 %v15628_v57, %v13665_v11  ;;  %v5755_v23 = vmul.f32 1.442695, %v5673_v21  ;;  %v15634_v57 = vld [vmem:[#allocation196_spill] sm:$0xff] }
 0xb2f   : > { %5924 = vperm.xlu0 %8556, %v13620_v52   ;;  %15617 = vst [vmem:[#allocation175_spill] sm:$0xff] %v13634_v27  ;;  %v13636_v56 = vpop.eup %8954  ;;  %8974 = vpow2.f32 %v5745_v46 }
 0xb30   : > { %5918 = vperm.xlu1 %8557, %v13622_v53   ;;  %15618 = vst [vmem:[#allocation209_spill] sm:$0xff] %v13636_v56  ;;  %v13648_v30 = vpop.eup %8956  ;;  %8976 = vpow2.f32 %v5767_v26  ;;  %v5783_v17 = vmul.f32 1.442695, %v5687_v25  ;;  %v15631_v26 = vld [vmem:[#allocation226_spill] sm:$0xff]  ;;  %v15635_v25 = vld [vmem:[#allocation204_spill] sm:$0xff] }
 0xb31   : > { %v13650_v36 = vpop.eup %8958  ;;  %8978 = vpow2.f32 %v5751_v19  ;;  %v5675_v39 = vsub.f32 %v15631_v26, %v13627_v50  ;;  %v5681_v19 = vsub.f32 %v13339_v37, %v13641_v38  ;;  %v15636_v37 = vld [vmem:[#allocation234_spill] sm:$0xff] }
 0xb32   : > { %15621 = vst [vmem:[#allocation230_spill] sm:$0xff] %v13650_v36  ;;  %v13658_v31 = vpop.eup %8960  ;;  %8980 = vpow2.f32 %v5757_v59  ;;  %v5688_v26 = vsub.f32 %v15636_v37, %v13665_v11 }
 0xb33   : > { %5930 = vperm.xlu0 %8556, %v13634_v27   ;;  %15623 = vst [vmem:[#allocation240_spill] sm:$0xff] %v13658_v31  ;;  %v13660_v49 = vpop.eup %8962  ;;  %8982 = vpow2.f32 %v5755_v23  ;;  %v5759_v59 = vmul.f32 1.442695, %v5675_v39  ;;  %v5689_v23 = vsub.f32 %v15635_v25, %v13665_v11  ;;  %v5771_v48 = vmul.f32 1.442695, %v5681_v19 }
 0xb34   : > { %5921 = vperm.xlu1 %8557, %v13636_v56   ;;  %15624 = vst [vmem:[#allocation197_spill] sm:$0xff] %v13660_v49  ;;  %v13672_v28 = vpop.eup %8964  ;;  %8984 = vpow2.f32 %v5783_v17  ;;  %v5785_v39 = vmul.f32 1.442695, %v5688_v26  ;;  %v15642_v26 = vld [vmem:[#allocation214_spill] sm:$0xff] }
 0xb35   : > { %15627 = vst [vmem:[#allocation242_spill] sm:$0xff] %v13672_v28  ;;  %v13674_v54 = vpop.eup %8966  ;;  %8986 = vpow2.f32 %v5769_v9  ;;  %v5682_v9 = vsub.f32 %v13330_v18, %v13641_v38  ;;  %v13733_v56 = vrot.slane %v13590_v2, %v15642_v26 }
 0xb36   : > { %v13682_v46 = vpop.eup %8968  ;;  %8988 = vpow2.f32 %v5759_v59  ;;  %v5683_v59 = vsub.f32 %v13374_v41, %v13641_v38 }
 0xb37   : > { %5936 = vperm.xlu0 %8556, %v13648_v30   ;;  %15629 = vst [vmem:[#allocation213_spill] sm:$0xff] %v13682_v46  ;;  %v13684_v42 = vpop.eup %8970  ;;  %8990 = vpow2.f32 %v5771_v48 }
 0xb38   : > { %5927 = vperm.xlu1 %8557, %v13650_v36   ;;  %15630 = vst [vmem:[#allocation237_spill] sm:$0xff] %v13684_v42  ;;  %v13692_v21 = vpop.eup %8972 }
 0xb39   : > { %15632 = vst [vmem:[#allocation201_spill] sm:$0xff] %v13692_v21  ;;  %v13694_v32 = vpop.eup %8974 }
 0xb3a   : > { %15633 = vst [vmem:[#allocation233_spill] sm:$0xff] %v13694_v32 }
 0xb3b   : > { %5942 = vperm.xlu0 %8556, %v13658_v31  }
 0xb3c   : > { %5933 = vperm.xlu1 %8557, %v13660_v49   ;;  %v13706_v49 = vpop.eup %8976 }
 0xb3d   : > { %15637 = vst [vmem:[#allocation220_spill] sm:$0xff] %v13706_v49  ;;  %v13708_v27 = vpop.eup %8978 }
 0xb3e   : > { %15638 = vst [vmem:[#allocation238_spill] sm:$0xff] %v13708_v27  ;;  %v13716_v19 = vpop.eup %8980 }
 0xb3f   : > { %5948 = vperm.xlu0 %8556, %v13672_v28   ;;  %15639 = vst [vmem:[#allocation191_spill] sm:$0xff] %v13716_v19  ;;  %v13718_v25 = vpop.eup %8982 }
 0xb40   : > { %5939 = vperm.xlu1 %8557, %v13674_v54   ;;  %15640 = vst [vmem:[#allocation208_spill] sm:$0xff] %v13718_v25  ;;  %v13726_v48 = vpop.eup %8984 }
 0xb41   : > { %15641 = vst [vmem:[#allocation200_spill] sm:$0xff] %v13726_v48  ;;  %v13728_v18 = vpop.eup %8986 }
 0xb43   : > { %5954 = vperm.xlu0 %8556, %v13682_v46   ;;  %v13699_v46 = vrot.slane %v13590_v2, %v15634_v57 }
 0xb44   : > { %5945 = vperm.xlu1 %8557, %v13684_v42  }
 0xb45   : > { %v5696_v17 = vsub.f32 %v13393_v10, %v13699_v46  ;;  %v5773_v10 = vmul.f32 1.442695, %v5682_v9  ;;  %v5697_v41 = vsub.f32 %v13422_v22, %v13699_v46  ;;  %v13740_v9 = vpop.eup %8988 }
 0xb46   : > { %15644 = vst [vmem:[#allocation241_spill] sm:$0xff] %v13740_v9 }
 0xb47   : > { %5963 = vperm.xlu0 %8556, %v13692_v21   ;;  %v5801_v37 = vmul.f32 1.442695, %v5696_v17  ;;  %v5803_v36 = vmul.f32 1.442695, %v5697_v41 }
 0xb48   : > { %5951 = vperm.xlu1 %8557, %v13694_v32   ;;  %v5787_v32 = vmul.f32 1.442695, %v5689_v23  ;;  %v5695_v23 = vsub.f32 %v13378_v61, %v13699_v46  ;;  %v15643_v61 = vld [vmem:[#allocation181_spill] sm:$0xff] }
 0xb4a   : > { %8992 = vpow2.f32 %v5787_v32  ;;  %v5775_v32 = vmul.f32 1.442695, %v5683_v59  ;;  %v5799_v17 = vmul.f32 1.442695, %v5695_v23  ;;  %v15645_v59 = vld [vmem:[#allocation211_spill] sm:$0xff] }
 0xb4b   : > { %5984 = vperm.xlu0 %8556, %v13706_v49   ;;  %8994 = vpow2.f32 %v5785_v39  ;;  %v5676_v39 = vsub.f32 %v15643_v61, %v13627_v50 }
 0xb4c   : > { %5960 = vperm.xlu1 %8557, %v13708_v27   ;;  %8996 = vpow2.f32 %v5801_v37  ;;  %v5704_v37 = vsub.f32 %v13439_v34, %v13733_v56 }
 0xb4d   : > { %8998 = vpow2.f32 %v5773_v10  ;;  %v5761_v22 = vmul.f32 1.442695, %v5676_v39  ;;  %v5690_v10 = vsub.f32 %v15645_v59, %v13665_v11 }
 0xb4e   : > { %9000 = vpow2.f32 %v5775_v32  ;;  %v15648_v32 = vld [vmem:[#allocation210_spill] sm:$0xff] }
 0xb4f   : > { %5969 = vperm.xlu0 %8556, %v13716_v19   ;;  %v13742_v19 = vpop.eup %8990  ;;  %9002 = vpow2.f32 %v5799_v17  ;;  %v5677_v41 = vsub.f32 %v15648_v32, %v13627_v50  ;;  %v5789_v34 = vmul.f32 1.442695, %v5690_v10  ;;  %v5703_v17 = vsub.f32 %v13426_v51, %v13733_v56 }
 0xb50   : > { %5966 = vperm.xlu1 %8557, %v13718_v25   ;;  %9004 = vpow2.f32 %v5803_v36  ;;  %v15651_v36 = vld [vmem:[#allocation194_spill] sm:$0xff] }
 0xb51   : > { %9006 = vpow2.f32 %v5761_v22  ;;  %v5763_v42 = vmul.f32 1.442695, %v5677_v41  ;;  %v5815_v32 = vmul.f32 1.442695, %v5703_v17  ;;  %v15652_v22 = vld [vmem:[#allocation177_spill] sm:$0xff]  ;;  %v5705_v41 = vsub.f32 %v13448_v45, %v13733_v56 }
 0xb52   : > { %v5670_v10 = vsub.f32 %v15652_v22, %v13600_v29  ;;  %v5684_v29 = vsub.f32 %v13367_v8, %v13641_v38 }
 0xb53   : > { %6008 = vperm.xlu0 %8556, %v13726_v48  }
 0xb54   : > { %5987 = vperm.xlu1 %8557, %v13728_v18   ;;  %v13750_v23 = vpop.eup %8992  ;;  %v5777_v45 = vmul.f32 1.442695, %v5684_v29  ;;  %v5699_v29 = vsub.f32 %v13458_v14, %v13699_v46 }
 0xb55   : > { %15646 = vst [vmem:[#allocation229_spill] sm:$0xff] %v13750_v23  ;;  %v13752_v61 = vpop.eup %8994 }
 0xb56   : > { %15647 = vst [vmem:[#allocation243_spill] sm:$0xff] %v13752_v61  ;;  %v13760_v39 = vpop.eup %8996 }
 0xb57   : > { %5972 = vperm.xlu0 %8556, %v13740_v9   ;;  %v5817_v9 = vmul.f32 1.442695, %v5704_v37  ;;  %15649 = vst [vmem:[#allocation235_spill] sm:$0xff] %v13760_v39  ;;  %v13762_v59 = vpop.eup %8998  ;;  %v5691_v37 = vsub.f32 %v15651_v36, %v13665_v11 }
 0xb58   : > { %5990 = vperm.xlu1 %8557, %v13742_v19   ;;  %15650 = vst [vmem:[#allocation244_spill] sm:$0xff] %v13762_v59  ;;  %v13770_v53 = vpop.eup %9000 }
 0xb59   : > { %9008 = vpow2.f32 %v5817_v9  ;;  %15653 = vst [vmem:[#allocation239_spill] sm:$0xff] %v13770_v53  ;;  %v13772_v51 = vpop.eup %9002  ;;  %v5791_v9 = vmul.f32 1.442695, %v5691_v37  ;;  %v5698_v37 = vsub.f32 %v13410_v4, %v13699_v46 }
 0xb5a   : > { %9010 = vpow2.f32 %v5789_v34  ;;  %15654 = vst [vmem:[#allocation248_spill] sm:$0xff] %v13772_v51  ;;  %v5749_v34 = vmul.f32 1.442695, %v5670_v10  ;;  %v13784_v17 = vpop.eup %9004  ;;  %v5685_v10 = vsub.f32 %v13418_v1, %v13641_v38 }
 0xb5b   : > { %6014 = vperm.xlu0 %8556, %v13750_v23   ;;  %9012 = vpow2.f32 %v5763_v42  ;;  %15656 = vst [vmem:[#allocation247_spill] sm:$0xff] %v13784_v17  ;;  %v13786_v36 = vpop.eup %9006 }
 0xb5c   : > { %6011 = vperm.xlu1 %8557, %v13752_v61   ;;  %v15655_v61 = vld [vmem:[#allocation219_spill] sm:$0xff]  ;;  %9014 = vpow2.f32 %v5815_v32  ;;  %15657 = vst [vmem:[#allocation245_spill] sm:$0xff] %v13786_v36 }
 0xb5d   : > { %v13777_v48 = vrot.slane %v13590_v2, %v15655_v61  ;;  %9016 = vpow2.f32 %v5791_v9  ;;  %v5819_v2 = vmul.f32 1.442695, %v5705_v41 }
 0xb5e   : > { %9018 = vpow2.f32 %v5749_v34  ;;  %v5779_v34 = vmul.f32 1.442695, %v5685_v10 }
 0xb5f   : > { %6035 = vperm.xlu0 %8556, %v13760_v39   ;;  %v5712_v42 = vsub.f32 %v13493_v44, %v13777_v48  ;;  %9020 = vpow2.f32 %v5819_v2  ;;  %v5805_v44 = vmul.f32 1.442695, %v5698_v37  ;;  %v5711_v9 = vsub.f32 %v13482_v62, %v13777_v48 }
 0xb60   : > { %5993 = vperm.xlu1 %8557, %v13762_v59   ;;  %9022 = vpow2.f32 %v5777_v45  ;;  %v5678_v2 = vsub.f32 %v13343_v12, %v13627_v50  ;;  %v5807_v45 = vmul.f32 1.442695, %v5699_v29  ;;  %v5713_v37 = vsub.f32 %v13505_v13, %v13777_v48 }
 0xb61   : > { %v5833_v22 = vmul.f32 1.442695, %v5712_v42  ;;  %v5831_v1 = vmul.f32 1.442695, %v5711_v9  ;;  %v5693_v9 = vsub.f32 %v13388_v20, %v13665_v11 }
 0xb62   : > { %v5765_v14 = vmul.f32 1.442695, %v5678_v2  ;;  %v5835_v50 = vmul.f32 1.442695, %v5713_v37  ;;  %v15669_v37 = vld [vmem:[#allocation228_spill] sm:$0xff] }
 0xb63   : > { %5996 = vperm.xlu0 %8556, %v13770_v53   ;;  %v13794_v32 = vpop.eup %9008  ;;  %9024 = vpow2.f32 %v5833_v22  ;;  %v15664_v22 = vld [vmem:[#allocation173_spill] sm:$0xff]  ;;  %v5795_v2 = vmul.f32 1.442695, %v5693_v9  ;;  %v15703_v53 = vld [vmem:[#allocation187_spill] sm:$0xff] }
 0xb64   : > { %6032 = vperm.xlu1 %8557, %v13772_v51   ;;  %15658 = vst [vmem:[#allocation246_spill] sm:$0xff] %v13794_v32  ;;  %v13796_v8 = vpop.eup %9010  ;;  %9026 = vpow2.f32 %v5805_v44  ;;  %v5692_v10 = vsub.f32 %v15664_v22, %v13665_v11  ;;  %v15672_v9 = vld [vmem:[#allocation205_spill] sm:$0xff] }
 0xb65   : > { %15659 = vst [vmem:[#allocation249_spill] sm:$0xff] %v13796_v8  ;;  %v13804_v41 = vpop.eup %9012  ;;  %9028 = vpow2.f32 %v5779_v34  ;;  %v5706_v34 = vsub.f32 %v13475_v47, %v13733_v56 }
 0xb66   : > { %15660 = vst [vmem:[#allocation58_spill] sm:$0xff] %v13804_v41  ;;  %v13806_v4 = vpop.eup %9014  ;;  %9030 = vpow2.f32 %v5831_v1  ;;  %v5793_v13 = vmul.f32 1.442695, %v5692_v10 }
 0xb67   : > { %6038 = vperm.xlu0 %8556, %v13784_v17   ;;  %15661 = vst [vmem:[#allocation101_spill] sm:$0xff] %v13806_v4  ;;  %v13814_v42 = vpop.eup %9016  ;;  %9032 = vpow2.f32 %v5807_v45  ;;  %v5707_v45 = vsub.f32 %v13489_v3, %v13733_v56  ;;  %v5821_v20 = vmul.f32 1.442695, %v5706_v34 }
 0xb68   : > { %5975 = vperm.xlu1 %8557, %v13786_v36   ;;  %15662 = vst [vmem:[#allocation103_spill] sm:$0xff] %v13814_v42  ;;  %v13816_v62 = vpop.eup %9018  ;;  %9034 = vpow2.f32 %v5765_v14  ;;  %v5686_v14 = vsub.f32 %v15669_v37, %v13641_v38 }
 0xb69   : > { %15663 = vst [vmem:[#allocation104_spill] sm:$0xff] %v13816_v62  ;;  %v13824_v44 = vpop.eup %9020  ;;  %9036 = vpow2.f32 %v5835_v50  ;;  %v5823_v10 = vmul.f32 1.442695, %v5707_v45  ;;  %v5694_v50 = vsub.f32 %v13463_v0, %v13665_v11  ;;  %v15676_v11 = vld [vmem:[#allocation231_spill] sm:$0xff] }
 0xb6a   : > { %15665 = vst [vmem:[#allocation106_spill] sm:$0xff] %v13824_v44  ;;  %v13826_v12 = vpop.eup %9022  ;;  %9038 = vpow2.f32 %v5793_v13  ;;  %v5781_v3 = vmul.f32 1.442695, %v5686_v14  ;;  %v5700_v13 = vsub.f32 %v15672_v9, %v13699_v46 }
 0xb6b   : > { %6059 = vperm.xlu0 %8556, %v13794_v32   ;;  %15666 = vst [vmem:[#allocation105_spill] sm:$0xff] %v13826_v12  ;;  %9040 = vpow2.f32 %v5795_v2  ;;  %v5797_v37 = vmul.f32 1.442695, %v5694_v50  ;;  %v15675_v2 = vld [vmem:[#allocation100_spill] sm:$0xff] }
 0xb6c   : > { %6017 = vperm.xlu1 %8557, %v13796_v8   ;;  %9042 = vpow2.f32 %v5821_v20  ;;  %v5708_v45 = vsub.f32 %v15675_v2, %v13733_v56  ;;  %v5809_v0 = vmul.f32 1.442695, %v5700_v13  ;;  %v5714_v20 = vsub.f32 %v15676_v11, %v13777_v48 }
 0xb6d   : > { %v13834_v29 = vpop.eup %9024  ;;  %9044 = vpow2.f32 %v5823_v10  ;;  %v15679_v10 = vld [vmem:[#allocation216_spill] sm:$0xff] }
 0xb6e   : > { %15667 = vst [vmem:[#allocation108_spill] sm:$0xff] %v13834_v29  ;;  %v13836_v1 = vpop.eup %9026  ;;  %9046 = vpow2.f32 %v5781_v3  ;;  %v5702_v50 = vsub.f32 %v15679_v10, %v13699_v46  ;;  %v5837_v2 = vmul.f32 1.442695, %v5714_v20  ;;  %v15680_v3 = vld [vmem:[#allocation167_spill] sm:$0xff] }
 0xb6f   : > { %5978 = vperm.xlu0 %8556, %v13804_v41   ;;  %15668 = vst [vmem:[#allocation107_spill] sm:$0xff] %v13836_v1  ;;  %v13844_v22 = vpop.eup %9028  ;;  %9048 = vpow2.f32 %v5797_v37  ;;  %v5701_v13 = vsub.f32 %v15680_v3, %v13699_v46  ;;  %v5716_v37 = vsub.f32 %v13536_v40, %v13777_v48 }
 0xb70   : > { %6056 = vperm.xlu1 %8557, %v13806_v4   ;;  %15670 = vst [vmem:[#allocation110_spill] sm:$0xff] %v13844_v22  ;;  %v13846_v47 = vpop.eup %9030  ;;  %9050 = vpow2.f32 %v5809_v0  ;;  %v5813_v41 = vmul.f32 1.442695, %v5702_v50  ;;  %v5715_v0 = vsub.f32 %v13528_v60, %v13777_v48  ;;  %v15685_v50 = vld [vmem:[#allocation232_spill] sm:$0xff] }
 0xb71   : > { %15671 = vst [vmem:[#allocation109_spill] sm:$0xff] %v13846_v47  ;;  %v13854_v34 = vpop.eup %9032  ;;  %v5841_v10 = vmul.f32 1.442695, %v5716_v37  ;;  %v15688_v37 = vld [vmem:[#allocation172_spill] sm:$0xff] }
 0xb72   : > { %15673 = vst [vmem:[#allocation111_spill] sm:$0xff] %v13854_v34  ;;  %v13856_v38 = vpop.eup %9034  ;;  %v5839_v40 = vmul.f32 1.442695, %v5715_v0 }
 0xb73   : > { %6020 = vperm.xlu0 %8556, %v13814_v42   ;;  %15674 = vst [vmem:[#allocation112_spill] sm:$0xff] %v13856_v38  ;;  %v13864_v14 = vpop.eup %9036 }
 0xb74   : > { %5957 = vperm.xlu1 %8557, %v13816_v62   ;;  %15677 = vst [vmem:[#allocation113_spill] sm:$0xff] %v13864_v14  ;;  %v13866_v9 = vpop.eup %9038 }
 0xb75   : > { %15678 = vst [vmem:[#allocation114_spill] sm:$0xff] %v13866_v9  ;;  %v13874_v62 = vpop.eup %9040 }
 0xb76   : > { %15681 = vst [vmem:[#allocation115_spill] sm:$0xff] %v13874_v62  ;;  %v13876_v11 = vpop.eup %9042 }
 0xb77   : > { %6062 = vperm.xlu0 %8556, %v13824_v44   ;;  %15682 = vst [vmem:[#allocation116_spill] sm:$0xff] %v13876_v11  ;;  %v13884_v20 = vpop.eup %9044  ;;  %v15699_v44 = vld [vmem:[#allocation183_spill] sm:$0xff] }
 0xb78   : > { %5999 = vperm.xlu1 %8557, %v13826_v12   ;;  %15683 = vst [vmem:[#allocation117_spill] sm:$0xff] %v13884_v20  ;;  %v13886_v46 = vpop.eup %9046  ;;  %v15702_v12 = vld [vmem:[#allocation186_spill] sm:$0xff] }
 0xb79   : > { %15684 = vst [vmem:[#allocation118_spill] sm:$0xff] %v13886_v46  ;;  %v13894_v3 = vpop.eup %9048 }
 0xb7a   : > { %15686 = vst [vmem:[#allocation119_spill] sm:$0xff] %v13894_v3  ;;  %v13896_v60 = vpop.eup %9050 }
 0xb7b   : > { %6083 = vperm.xlu0 %8556, %v13834_v29   ;;  %15687 = vst [vmem:[#allocation120_spill] sm:$0xff] %v13896_v60 }
 0xb7c   : > { %6041 = vperm.xlu1 %8557, %v13836_v1  }
 0xb7f   : > { %6002 = vperm.xlu0 %8556, %v13844_v22   ;;  %v15701_v22 = vld [vmem:[#allocation184_spill] sm:$0xff] }
 0xb80   : > { %6080 = vperm.xlu1 %8557, %v13846_v47  }
 0xb83   : > { %6044 = vperm.xlu0 %8556, %v13854_v34  }
 0xb84   : > { %5981 = vperm.xlu1 %8557, %v13856_v38   ;;  %v5825_v38 = vmul.f32 1.442695, %v5708_v45  ;;  %v5811_v45 = vmul.f32 1.442695, %v5701_v13 }
 0xb86   : > { %9052 = vpow2.f32 %v5825_v38  ;;  %v5717_v38 = vsub.f32 %v13552_v33, %v13777_v48  ;;  %v5710_v33 = vsub.f32 %v15688_v37, %v13733_v56 }
 0xb87   : > { %6086 = vperm.xlu0 %8556, %v13864_v14   ;;  %9054 = vpow2.f32 %v5837_v2  ;;  %v5709_v2 = vsub.f32 %v15685_v50, %v13733_v56 }
 0xb88   : > { %6023 = vperm.xlu1 %8557, %v13866_v9   ;;  %9056 = vpow2.f32 %v5813_v41  ;;  %v5843_v13 = vmul.f32 1.442695, %v5717_v38  ;;  %v5829_v50 = vmul.f32 1.442695, %v5710_v33 }
 0xb89   : > { %9058 = vpow2.f32 %v5811_v45  ;;  %v5827_v41 = vmul.f32 1.442695, %v5709_v2 }
 0xb8a   : > { %9060 = vpow2.f32 %v5841_v10  ;;  %v5718_v10 = vsub.f32 %v13575_v15, %v13777_v48 }
 0xb8b   : > { %6026 = vperm.xlu0 %8556, %v13874_v62   ;;  %9062 = vpow2.f32 %v5839_v40 }
 0xb8c   : > { %6065 = vperm.xlu1 %8557, %v13876_v11   ;;  %9064 = vpow2.f32 %v5843_v13  ;;  %v5845_v56 = vmul.f32 1.442695, %v5718_v10 }
 0xb8d   : > { %9066 = vpow2.f32 %v5827_v41 }
 0xb8e   : > { %9068 = vpow2.f32 %v5829_v50 }
 0xb8f   : > { %6068 = vperm.xlu0 %8556, %v13884_v20   ;;  %9070 = vpow2.f32 %v5845_v56 }
 0xb90   : > { %6005 = vperm.xlu1 %8557, %v13886_v46   ;;  %v13902_v45 = vpop.eup %9052 }
 0xb91   : > { %15689 = vst [vmem:[#allocation121_spill] sm:$0xff] %v13902_v45  ;;  %v13904_v0 = vpop.eup %9054 }
 0xb92   : > { %15690 = vst [vmem:[#allocation122_spill] sm:$0xff] %v13904_v0  ;;  %v13910_v38 = vpop.eup %9056 }
 0xb93   : > { %6029 = vperm.xlu0 %8556, %v13894_v3   ;;  %15691 = vst [vmem:[#allocation123_spill] sm:$0xff] %v13910_v38  ;;  %v13912_v40 = vpop.eup %9058 }
 0xb94   : > { %6047 = vperm.xlu1 %8557, %v13896_v60   ;;  %15692 = vst [vmem:[#allocation124_spill] sm:$0xff] %v13912_v40  ;;  %v13916_v2 = vpop.eup %9060 }
 0xb95   : > { %15693 = vst [vmem:[#allocation125_spill] sm:$0xff] %v13916_v2  ;;  %v13918_v37 = vpop.eup %9062 }
 0xb96   : > { %15694 = vst [vmem:[#allocation126_spill] sm:$0xff] %v13918_v37  ;;  %v13922_v15 = vpop.eup %9064 }
 0xb97   : > { %6071 = vperm.xlu0 %8556, %v13902_v45   ;;  %15695 = vst [vmem:[#allocation135_spill] sm:$0xff] %v13922_v15  ;;  %v13924_v48 = vpop.eup %9066 }
 0xb98   : > { %6089 = vperm.xlu1 %8557, %v13904_v0   ;;  %15696 = vst [vmem:[#allocation136_spill] sm:$0xff] %v13924_v48  ;;  %v13928_v13 = vpop.eup %9068 }
 0xb99   : > { %15697 = vst [vmem:[#allocation137_spill] sm:$0xff] %v13928_v13  ;;  %v13933_v33 = vpop.eup %9070 }
 0xb9a   : > { %15698 = vst [vmem:[#allocation138_spill] sm:$0xff] %v13933_v33 }
 0xb9b   : > { %6053 = vperm.xlu0 %8556, %v13910_v38  }
 0xb9c   : > { %6050 = vperm.xlu1 %8557, %v13912_v40  }
 0xb9f   : > { %6095 = vperm.xlu0 %8556, %v13916_v2  }
 0xba0   : > { %6092 = vperm.xlu1 %8557, %v13918_v37   ;;  %v15700_v37 = vld [vmem:[#allocation185_spill] sm:$0xff] }
 0xba3   : > { %6098 = vperm.xlu0 %8556, %v13922_v15  }
 0xba4   : > { %6074 = vperm.xlu1 %8557, %v13924_v48  }
 0xba8   : > { %6077 = vperm.xlu1 %8557, %v13928_v13  }
 0xbaa   : > { %v13931_v41 = vpop.permute.xlu0 %5915 }
 0xbab   : > { %v13935_v50 = vpop.permute.xlu1 %5912  ;;  %v6110_v28 = vrot.slane %v13931_v41, %v15701_v22 }
 0xbac   : > { %6101 = vperm.xlu1 %8557, %v13933_v33   ;;  %v6106_v63 = vrot.slane %v13935_v50, %v15699_v44 }
 0xbae   : > { %v13938_v10 = vpop.permute.xlu0 %5924  ;;  %v6111_v27 = vsel %vm2450_vm2, %v6110_v28, %v6106_v63 }
 0xbaf   : > { %v13940_v56 = vpop.permute.xlu1 %5918  ;;  %v6125_v63 = vrot.slane %v13938_v10, %v15703_v53 }
 0xbb0   : > { %v6115_v5 = vrot.slane %v13940_v56, %v15700_v37 }
 0xbb2   : > { %v13942_v2 = vpop.permute.xlu0 %5930 }
 0xbb3   : > { %v13944_v15 = vpop.permute.xlu1 %5921 }
 0xbb4   : > { %v6120_v26 = vrot.slane %v13944_v15, %v15702_v12 }
 0xbb6   : > { %v13946_v48 = vpop.permute.xlu0 %5936 }
 0xbb7   : > { %v13948_v46 = vpop.permute.xlu1 %5927  ;;  %v6145_v21 = vrot.slane %v13946_v48, %v15699_v44 }
 0xbb8   : > { %v6130_v48 = vrot.slane %v13948_v46, %v15577_v35 }
 0xbba   : > { %v13950_v45 = vpop.permute.xlu0 %5942 }
 0xbbb   : > { %v13952_v60 = vpop.permute.xlu1 %5933  ;;  %v6154_v56 = vrot.slane %v13950_v45, %v15700_v37 }
 0xbbe   : > { %v13954_v20 = vpop.permute.xlu0 %5948 }
 0xbbf   : > { %v5940_v34 = vpop.permute.xlu1 %5939  ;;  %v6164_v45 = vrot.slane %v13954_v20, %v15703_v53 }
 0xbc0   : > { %v6149_v32 = vrot.slane %v5940_v34, %v15701_v22  ;;  %v6116_v34 = vsel %vm2457_vm3, %v6115_v5, %v6111_v27 }
 0xbc1   : > { %v6121_v15 = vsel %vm2464_vm4, %v6120_v26, %v6116_v34  ;;  %v6135_v26 = vrot.slane %v13942_v2, %v15582_v6 }
 0xbc2   : > { %v13956_v33 = vpop.permute.xlu0 %5954  ;;  %v6150_v41 = vsel %vm2450_vm2, %v6149_v32, %v6145_v21  ;;  %v6126_v46 = vsel %vm2471_vm5, %v6125_v63, %v6121_v15  ;;  %v6140_v63 = vrot.slane %v13952_v60, %v15581_v55 }
 0xbc3   : > { %v13958_v13 = vpop.permute.xlu1 %5945  ;;  %v6155_v28 = vsel %vm2457_vm3, %v6154_v56, %v6150_v41  ;;  %v6131_v10 = vsel %vm2478_vm6, %v6130_v48, %v6126_v46  ;;  %v6174_v2 = vrot.slane %v13956_v33, %v15582_v6 }
 0xbc4   : > { %v6159_v50 = vrot.slane %v13958_v13, %v15702_v12 }
 0xbc6   : > { %v5964_v11 = vpop.permute.xlu0 %5963  ;;  %v6160_v32 = vsel %vm2464_vm4, %v6159_v50, %v6155_v28 }
 0xbc7   : > { %v13960_v38 = vpop.permute.xlu1 %5951  ;;  %v6188_v59 = vrot.slane %v5964_v11, %v15701_v22  ;;  %v6165_v34 = vsel %vm2471_vm5, %v6164_v45, %v6160_v32 }
 0xbc8   : > { %v6169_v5 = vrot.slane %v13960_v38, %v15577_v35 }
 0xbca   : > { %v13962_v36 = vpop.permute.xlu0 %5984 }
 0xbcb   : > { %v5961_v3 = vpop.permute.xlu1 %5960  ;;  %v6223_v41 = vrot.slane %v13962_v36, %v15699_v44  ;;  %v6170_v36 = vsel %vm2478_vm6, %v6169_v5, %v6165_v34 }
 0xbcc   : > { %v6184_v62 = vrot.slane %v5961_v3, %v15699_v44 }
 0xbce   : > { %v5970_v1 = vpop.permute.xlu0 %5969  ;;  %v6189_v0 = vsel %vm2450_vm2, %v6188_v59, %v6184_v62 }
 0xbcf   : > { %v5967_v40 = vpop.permute.xlu1 %5966  ;;  %v6198_v51 = vrot.slane %v5970_v1, %v15702_v12 }
 0xbd0   : > { %v6193_v47 = vrot.slane %v5967_v40, %v15700_v37 }
 0xbd2   : > { %v6009_v9 = vpop.permute.xlu0 %6008  ;;  %v6194_v42 = vsel %vm2457_vm3, %v6193_v47, %v6189_v0 }
 0xbd3   : > { %v13967_v4 = vpop.permute.xlu1 %5987  ;;  %v6199_v3 = vsel %vm2464_vm4, %v6198_v51, %v6194_v42  ;;  %v6262_v59 = vrot.slane %v6009_v9, %v15699_v44 }
 0xbd4   : > { %v6227_v27 = vrot.slane %v13967_v4, %v15701_v22 }
 0xbd6   : > { %v5973_v14 = vpop.permute.xlu0 %5972  ;;  %v6228_v15 = vsel %vm2450_vm2, %v6227_v27, %v6223_v41 }
 0xbd7   : > { %v6203_v52 = vrot.slane %v5973_v14, %v15703_v53  ;;  %v13973_v25 = vpop.permute.xlu1 %5990 }
 0xbd8   : > { %v6232_v13 = vrot.slane %v13973_v25, %v15700_v37 }
 0xbd9   : > { %v13977_v40 = vsel %vm2471_vm5, %v6203_v52, %v6199_v3 }
 0xbda   : > { %v6015_v11 = vpop.permute.xlu0 %6014  ;;  %v6233_v33 = vsel %vm2457_vm3, %v6232_v13, %v6228_v15 }
 0xbdb   : > { %v6271_v8 = vrot.slane %v6015_v11, %v15700_v37  ;;  %v6012_v49 = vpop.permute.xlu1 %6011 }
 0xbdc   : > { %v6266_v62 = vrot.slane %v6012_v49, %v15701_v22 }
 0xbde   : > { %v6267_v1 = vsel %vm2450_vm2, %v6266_v62, %v6262_v59  ;;  %v13983_v47 = vpop.permute.xlu0 %6035 }
 0xbdf   : > { %v13985_v14 = vpop.permute.xlu1 %5993  ;;  %v13988_v0 = vsel %vm2457_vm3, %v6271_v8, %v6267_v1 }
 0xbe0   : > { %v6237_v38 = vrot.slane %v13985_v14, %v15702_v12 }
 0xbe2   : > { %v13990_v51 = vpop.permute.xlu0 %5996  ;;  %v6238_v28 = vsel %vm2464_vm4, %v6237_v38, %v6233_v33 }
 0xbe3   : > { %v13992_v52 = vpop.permute.xlu1 %6032  ;;  %v6242_v20 = vrot.slane %v13990_v51, %v15703_v53 }
 0xbe6   : > { %v13994_v42 = vpop.permute.xlu0 %6038 }
 0xbe7   : > { %v5976_v3 = vpop.permute.xlu1 %5975 }
 0xbe8   : > { %v6208_v4 = vrot.slane %v5976_v3, %v15577_v35 }
 0xbea   : > { %v13996_v11 = vpop.permute.xlu0 %6059 }
 0xbeb   : > { %v13998_v9 = vpop.permute.xlu1 %6017 }
 0xbec   : > { %v6276_v48 = vrot.slane %v13998_v9, %v15702_v12  ;;  %v6243_v9 = vsel %vm2471_vm5, %v6242_v20, %v6238_v28  ;;  %v6305_v28 = vrot.slane %v13983_v47, %v15701_v22 }
 0xbee   : > { %v5979_v49 = vpop.permute.xlu0 %5978  ;;  %v6277_v13 = vsel %vm2464_vm4, %v6276_v48, %v13988_v0 }
 0xbef   : > { %v14000_v59 = vpop.permute.xlu1 %6056  ;;  %v6213_v25 = vrot.slane %v5979_v49, %v15582_v6 }
 0xbf2   : > { %v14002_v62 = vpop.permute.xlu0 %6020 }
 0xbf3   : > { %v14004_v29 = vpop.permute.xlu1 %5957 }
 0xbf4   : > { %v6179_v14 = vrot.slane %v14004_v29, %v15581_v55  ;;  %v6209_v29 = vsel %vm2478_vm6, %v6208_v4, %v13977_v40 }
 0xbf5   : > { %v6214_v5 = vsel %vm2485_vm7, %v6213_v25, %v6209_v29  ;;  %v6340_v29 = vrot.slane %v14000_v59, %v15699_v44 }
 0xbf6   : > { %v14006_v8 = vpop.permute.xlu0 %6062 }
 0xbf7   : > { %v6000_v1 = vpop.permute.xlu1 %5999 }
 0xbf8   : > { %v6247_v3 = vrot.slane %v6000_v1, %v15577_v35  ;;  %v6281_v1 = vrot.slane %v14002_v62, %v15703_v53  ;;  %v6136_v62 = vsel %vm2485_vm7, %v6135_v26, %v6131_v10 }
 0xbfa   : > { %v14008_v61 = vpop.permute.xlu0 %6083  ;;  %v6248_v46 = vsel %vm2478_vm6, %v6247_v3, %v6243_v9  ;;  %v6282_v4 = vsel %vm2471_vm5, %v6281_v1, %v6277_v13 }
 0xbfb   : > { %v14010_v31 = vpop.permute.xlu1 %6041 }
 0xbfc   : > { %v6315_v9 = vrot.slane %v14010_v31, %v15702_v12 }
 0xbfe   : > { %v14012_v17 = vpop.permute.xlu0 %6002 }
 0xbff   : > { %v14014_v24 = vpop.permute.xlu1 %6080  ;;  %v6252_v51 = vrot.slane %v14012_v17, %v15582_v6  ;;  %v6175_v17 = vsel %vm2485_vm7, %v6174_v2, %v6170_v36 }
 0xc00   : > { %v6180_v60 = vsel %vm2492_vm8, %v6179_v14, %v6175_v17  ;;  %v6379_v59 = vrot.slane %v14014_v24, %v15699_v44 }
 0xc01   : > { %v6253_v41 = vsel %vm2485_vm7, %v6252_v51, %v6248_v46 }
 0xc02   : > { %v14027_v23 = vpop.permute.xlu0 %6044 }
 0xc03   : > { %v5982_v58 = vpop.permute.xlu1 %5981 }
 0xc04   : > { %v6218_v49 = vrot.slane %v5982_v58, %v15581_v55 }
 0xc06   : > { %v14039_v39 = vpop.permute.xlu0 %6086  ;;  %v6219_v38 = vsel %vm2492_vm8, %v6218_v49, %v6214_v5  ;;  %v6301_v49 = vrot.slane %v13992_v52, %v15699_v44  ;;  %v6349_v52 = vrot.slane %v14006_v8, %v15700_v37 }
 0xc07   : > { %v6024_v21 = vpop.permute.xlu1 %6023 }
 0xc08   : > { %v6286_v58 = vrot.slane %v6024_v21, %v15577_v35  ;;  %v6141_v21 = vsel %vm2492_vm8, %v6140_v63, %v6136_v62  ;;  %v6310_v63 = vrot.slane %v13994_v42, %v15700_v37  ;;  %v6306_v17 = vsel %vm2450_vm2, %v6305_v28, %v6301_v49 }
 0xc09   : > { %v6320_v42 = vrot.slane %v14027_v23, %v15703_v53  ;;  %v6383_v23 = vrot.slane %v14008_v61, %v15701_v22 }
 0xc0a   : > { %v6027_v50 = vpop.permute.xlu0 %6026  ;;  %v6287_v20 = vsel %vm2478_vm6, %v6286_v58, %v6282_v4  ;;  %v6344_v58 = vrot.slane %v13996_v11, %v15701_v22  ;;  %v6311_v47 = vsel %vm2457_vm3, %v6310_v63, %v6306_v17 }
 0xc0b   : > { %v14068_v56 = vpop.permute.xlu1 %6065  ;;  %v6291_v40 = vrot.slane %v6027_v50, %v15582_v6  ;;  %v6415_v50 = vsel %vm2767_vm9, %v6180_v60, %v6141_v21  ;;  %v6388_v60 = vrot.slane %v14039_v39, %v15700_v37  ;;  %v6384_v62 = vsel %vm2450_vm2, %v6383_v23, %v6379_v59  ;;  %v15713_v23 = vld [vmem:[#allocation242_spill] sm:$0xff] }
 0xc0c   : > { %v6416_v0 = vsel %vm2769_vm10, %v6219_v38, %v6415_v50  ;;  %v6345_v31 = vsel %vm2450_vm2, %v6344_v58, %v6340_v29  ;;  %v6354_v11 = vrot.slane %v14068_v56, %v15702_v12 }
 0xc0d   : > { %v6292_v25 = vsel %vm2485_vm7, %v6291_v40, %v6287_v20  ;;  %v6316_v40 = vsel %vm2464_vm4, %v6315_v9, %v6311_v47  ;;  %v15709_v47 = vld [vmem:[#allocation214_spill] sm:$0xff] }
 0xc0e   : > { %v14088_v32 = vpop.permute.xlu0 %6068  ;;  %v6321_v39 = vsel %vm2471_vm5, %v6320_v42, %v6316_v40 }
 0xc0f   : > { %v6006_v27 = vpop.permute.xlu1 %6005  ;;  %v6359_v24 = vrot.slane %v14088_v32, %v15703_v53  ;;  %v6389_v32 = vsel %vm2457_vm3, %v6388_v60, %v6384_v62  ;;  %v15711_v60 = vld [vmem:[#allocation246_spill] sm:$0xff]  ;;  %v15717_v62 = vld [vmem:[#allocation219_spill] sm:$0xff] }
 0xc10   : > { %v6257_v45 = vrot.slane %v6006_v27, %v15581_v55 }
 0xc12   : > { %v6258_v2 = vsel %vm2492_vm8, %v6257_v45, %v6253_v41  ;;  %v6030_v34 = vpop.permute.xlu0 %6029  ;;  %v6350_v45 = vsel %vm2457_vm3, %v6349_v52, %v6345_v31  ;;  %v15706_v52 = vld [vmem:[#allocation192_spill] sm:$0xff] }
 0xc13   : > { %v6296_v26 = vrot.slane %v6030_v34, %v15581_v55  ;;  %v6048_v10 = vpop.permute.xlu1 %6047  ;;  %v6417_v36 = vsel %vm2771_vm11, %v6258_v2, %v6416_v0 }
 0xc14   : > { %v6325_v27 = vrot.slane %v6048_v10, %v15577_v35 }
 0xc15   : > { %v6297_v15 = vsel %vm2492_vm8, %v6296_v26, %v6292_v25 }
 0xc16   : > { %v6418_v14 = vsel %vm2773_vm12, %v6297_v15, %v6417_v36  ;;  %v6072_v3 = vpop.permute.xlu0 %6071  ;;  %v6326_v13 = vsel %vm2478_vm6, %v6325_v27, %v6321_v39  ;;  %v15710_v27 = vld [vmem:[#allocation102_spill] sm:$0xff] }
 0xc17   : > { %v6090_v33 = vpop.permute.xlu1 %6089  ;;  %v6364_v37 = vrot.slane %v6072_v3, %v15577_v35 }
 0xc18   : > { %v6393_v44 = vrot.slane %v6090_v33, %v15702_v12  ;;  %v6355_v12 = vsel %vm2464_vm4, %v6354_v11, %v6350_v45  ;;  %v15715_v45 = vld [vmem:[#allocation247_spill] sm:$0xff] }
 0xc19   : > { %v6360_v4 = vsel %vm2471_vm5, %v6359_v24, %v6355_v12  ;;  %v15714_v24 = vld [vmem:[#allocation218_spill] sm:$0xff]  ;;  %v15720_v12 = vld [vmem:[#allocation249_spill] sm:$0xff] }
 0xc1a   : > { %v6054_v48 = vpop.permute.xlu0 %6053  ;;  %v6365_v50 = vsel %vm2478_vm6, %v6364_v37, %v6360_v4  ;;  %v15716_v37 = vld [vmem:[#allocation240_spill] sm:$0xff] }
 0xc1b   : > { %v6051_v51 = vpop.permute.xlu1 %6050  ;;  %v6335_v61 = vrot.slane %v6054_v48, %v15581_v55 }
 0xc1c   : > { %v6330_v8 = vrot.slane %v6051_v51, %v15582_v6 }
 0xc1e   : > { %v6096_v5 = vpop.permute.xlu0 %6095  ;;  %v6331_v38 = vsel %vm2485_vm7, %v6330_v8, %v6326_v13  ;;  %v15712_v8 = vld [vmem:[#allocation236_spill] sm:$0xff] }
 0xc1f   : > { %v6093_v1 = vpop.permute.xlu1 %6092  ;;  %v6403_v2 = vrot.slane %v6096_v5, %v15577_v35  ;;  %v6336_v10 = vsel %vm2492_vm8, %v6335_v61, %v6331_v38  ;;  %v15718_v61 = vld [vmem:[#allocation108_spill] sm:$0xff] }
 0xc20   : > { %v6398_v56 = vrot.slane %v6093_v1, %v15703_v53  ;;  %v6394_v53 = vsel %vm2464_vm4, %v6393_v44, %v6389_v32  ;;  %v6419_v33 = vsel %vm2775_vm13, %v6336_v10, %v6418_v14  ;;  %v15725_v10 = vld [vmem:[#allocation243_spill] sm:$0xff] }
 0xc22   : > { %v6099_v22 = vpop.permute.xlu0 %6098  ;;  %v6399_v20 = vsel %vm2471_vm5, %v6398_v56, %v6394_v53  ;;  %v15722_v53 = vld [vmem:[#allocation206_spill] sm:$0xff] }
 0xc23   : > { %v6075_v46 = vpop.permute.xlu1 %6074  ;;  %v6408_v26 = vrot.slane %v6099_v22, %v15582_v6  ;;  %v6404_v15 = vsel %vm2478_vm6, %v6403_v2, %v6399_v20  ;;  %v15724_v20 = vld [vmem:[#allocation239_spill] sm:$0xff] }
 0xc24   : > { %v6369_v41 = vrot.slane %v6075_v46, %v15582_v6 }
 0xc25   : > { %v6409_v35 = vsel %vm2485_vm7, %v6408_v26, %v6404_v15  ;;  %v15727_v15 = vld [vmem:[#allocation182_spill] sm:$0xff] }
 0xc26   : > { %v6370_v0 = vsel %vm2485_vm7, %v6369_v41, %v6365_v50  ;;  %v15719_v41 = vld [vmem:[#allocation220_spill] sm:$0xff] }
 0xc27   : > { %v6078_v21 = vpop.permute.xlu1 %6077 }
 0xc28   : > { %v6374_v34 = vrot.slane %v6078_v21, %v15581_v55  ;;  %v15721_v21 = vld [vmem:[#allocation208_spill] sm:$0xff] }
 0xc2a   : > { %v6375_v25 = vsel %vm2492_vm8, %v6374_v34, %v6370_v0  ;;  %v15723_v34 = vld [vmem:[#allocation200_spill] sm:$0xff] }
 0xc2b   : > { %v6102_v36 = vpop.permute.xlu1 %6101  ;;  %v6420_v51 = vsel %vm2777_vm14, %v6375_v25, %v6419_v33  ;;  %v15726_v25 = vld [vmem:[#allocation113_spill] sm:$0xff] }
 0xc2c   : > { %v6413_v3 = vrot.slane %v6102_v36, %v15581_v55 }
 0xc2e   : > { %v6414_v48 = vsel %vm2492_vm8, %v6413_v3, %v6409_v35  ;;  %v15728_v35 = vld [vmem:[#allocation103_spill] sm:$0xff] }
 0xc2f   : > { %v6421_v6 = vsel %vm2779_vm15, %v6414_v48, %v6420_v51  ;;  %v15729_v48 = vld [vmem:[#allocation237_spill] sm:$0xff] }
 0xc30   : > { %v6423_v49 = vsel %vm2782_vm0, %v6421_v6, 0.0  ;;  %v15730_v6 = vld [vmem:[#allocation230_spill] sm:$0xff] }
 0xc31   : > { %6424 = vadd.xlane.f32.xlu0 %v6423_v49 }
 0xcbe   : > { %v6425_v63 = vpop.xlane.xlu0 %6424 }
 0xcbf   : > { %9072 = vrcp.f32 %v6425_v63  ;;  %v15731_v63 = vld [vmem:[#allocation248_spill] sm:$0xff] }
 0xcc9   : > { %v9073_v28 = vpop.eup %9072 }
 0xcca   : > { %v14177_v29 = vrot.slane %v9073_v28, %v15619_v16  ;;  %v14180_v55 = vrot.slane %v9073_v28, %v15603_v7  ;;  %v14191_v16 = vrot.slane %v9073_v28, %v15634_v57  ;;  %v14194_v7 = vrot.slane %v9073_v28, %v15615_v43 }
 0xccb   : > { %v14201_v42 = vrot.slane %v9073_v28, %v15706_v52  ;;  %v14208_v59 = vrot.slane %v9073_v28, %v15709_v47  ;;  %v14211_v31 = vrot.slane %v9073_v28, %v15710_v27  ;;  %v14226_v13 = vrot.slane %v9073_v28, %v15717_v62  ;;  %v15736_v52 = vld [vmem:[#allocation114_spill] sm:$0xff]  ;;  %v15739_v27 = vld [vmem:[#allocation244_spill] sm:$0xff] }
 0xccc   : > { %v6493_v14 = vmul.f32 %v13728_v18, %v14177_v29  ;;  %v6476_v1 = vmul.f32 %v13648_v30, %v14180_v55  ;;  %v6494_v9 = vmul.f32 %v13742_v19, %v14177_v29  ;;  %v6477_v5 = vmul.f32 %v13674_v54, %v14180_v55  ;;  %v15704_v18 = vld [vmem:[#allocation235_spill] sm:$0xff]  ;;  %v15705_v30 = vld [vmem:[#allocation238_spill] sm:$0xff]  ;;  %v15707_v54 = vld [vmem:[#allocation229_spill] sm:$0xff] }
 0xccd   : > { %v6509_v17 = vmul.f32 %v15704_v18, %v14191_v16  ;;  %v6484_v58 = vmul.f32 %v15705_v30, %v14194_v7  ;;  %v6502_v57 = vmul.f32 %v15707_v54, %v14201_v42  ;;  %v15708_v19 = vld [vmem:[#allocation201_spill] sm:$0xff]  ;;  %v6517_v11 = vmul.f32 %v15711_v60, %v14208_v59  ;;  %v15734_v18 = vld [vmem:[#allocation122_spill] sm:$0xff] }
 0xcce   : > { %6659 = vperm.xlu0 %8556, %v6493_v14   ;;  %6574 = vperm.xlu1 %8557, %v6476_v1   ;;  %v6485_v43 = vmul.f32 %v15708_v19, %v14194_v7  ;;  %v6468_v46 = vmul.f32 %v15712_v8, %v14211_v31  ;;  %v6480_v40 = vmul.f32 %v15713_v23, %v14180_v55  ;;  %v15732_v14 = vld [vmem:[#allocation105_spill] sm:$0xff] }
 0xccf   : > { %v6469_v44 = vmul.f32 %v15714_v24, %v14211_v31  ;;  %v6510_v39 = vmul.f32 %v15715_v45, %v14191_v16  ;;  %v6478_v56 = vmul.f32 %v15716_v37, %v14180_v55  ;;  %v6525_v22 = vmul.f32 %v15718_v61, %v14226_v13  ;;  %v15735_v30 = vld [vmem:[#allocation101_spill] sm:$0xff] }
 0xcd0   : > { %v6492_v32 = vmul.f32 %v15719_v41, %v14177_v29  ;;  %v6503_v38 = vmul.f32 %v15720_v12, %v14201_v42  ;;  %v6486_v4 = vmul.f32 %v15721_v21, %v14194_v7  ;;  %v6472_v2 = vmul.f32 %v15722_v53, %v14211_v31  ;;  %v15746_v61 = vld [vmem:[#allocation197_spill] sm:$0xff]  ;;  %v15748_v12 = vld [vmem:[#allocation124_spill] sm:$0xff]  ;;  %v15749_v21 = vld [vmem:[#allocation107_spill] sm:$0xff] }
 0xcd1   : > { %v6500_v50 = vmul.f32 %v15723_v34, %v14201_v42  ;;  %v6496_v26 = vmul.f32 %v15724_v20, %v14177_v29  ;;  %v6501_v0 = vmul.f32 %v15725_v10, %v14201_v42  ;;  %v6526_v36 = vmul.f32 %v15726_v25, %v14226_v13  ;;  %v15747_v41 = vld [vmem:[#allocation233_spill] sm:$0xff]  ;;  %v15750_v53 = vld [vmem:[#allocation119_spill] sm:$0xff] }
 0xcd2   : > { %6664 = vperm.xlu0 %8556, %v6494_v9   ;;  %6579 = vperm.xlu1 %8557, %v6477_v5   ;;  %v6470_v3 = vmul.f32 %v15727_v15, %v14211_v31  ;;  %v6504_v33 = vmul.f32 %v15728_v35, %v14201_v42  ;;  %v6479_v51 = vmul.f32 %v15729_v48, %v14180_v55  ;;  %v15733_v9 = vld [vmem:[#allocation191_spill] sm:$0xff]  ;;  %v15751_v34 = vld [vmem:[#allocation245_spill] sm:$0xff]  ;;  %v15757_v35 = vld [vmem:[#allocation58_spill] sm:$0xff] }
 0xcd3   : > { %v6473_v49 = vmul.f32 %v15730_v6, %v14211_v31  ;;  %v6508_v28 = vmul.f32 %v15731_v63, %v14191_v16  ;;  %v6497_v1 = vmul.f32 %v15732_v14, %v14177_v29  ;;  %v6487_v5 = vmul.f32 %v15733_v9, %v14194_v7  ;;  %v15758_v48 = vld [vmem:[#allocation117_spill] sm:$0xff]  ;;  %v15759_v6 = vld [vmem:[#allocation104_spill] sm:$0xff] }
 0xcd4   : > { %v6505_v54 = vmul.f32 %v15736_v52, %v14201_v42  ;;  %v6495_v60 = vmul.f32 %v15739_v27, %v14177_v29  ;;  %v15760_v63 = vld [vmem:[#allocation120_spill] sm:$0xff]  ;;  %v15762_v9 = vld [vmem:[#allocation121_spill] sm:$0xff] }
 0xcd5   : > { %v15761_v14 = vld [vmem:[#allocation112_spill] sm:$0xff] }
 0xcd6   : > { %6739 = vperm.xlu0 %8556, %v6509_v17   ;;  %6614 = vperm.xlu1 %8557, %v6484_v58   ;;  %v6527_v17 = vmul.f32 %v15734_v18, %v14226_v13  ;;  %v6516_v58 = vmul.f32 %v15735_v30, %v14208_v59  ;;  %v15763_v30 = vld [vmem:[#allocation118_spill] sm:$0xff] }
 0xcda   : > { %6704 = vperm.xlu0 %8556, %v6502_v57   ;;  %6619 = vperm.xlu1 %8557, %v6485_v43   ;;  %v15737_v57 = vld [vmem:[#allocation209_spill] sm:$0xff]  ;;  %v15738_v43 = vld [vmem:[#allocation175_spill] sm:$0xff] }
 0xcdb   : > { %v6471_v19 = vmul.f32 %v15737_v57, %v14211_v31  ;;  %v6474_v47 = vmul.f32 %v15738_v43, %v14211_v31 }
 0xcde   : > { %6779 = vperm.xlu0 %8556, %v6517_v11   ;;  %6534 = vperm.xlu1 %8557, %v6468_v46   ;;  %v15740_v11 = vld [vmem:[#allocation110_spill] sm:$0xff]  ;;  %v15741_v46 = vld [vmem:[#allocation109_spill] sm:$0xff] }
 0xcdf   : > { %v6498_v8 = vmul.f32 %v15740_v11, %v14177_v29  ;;  %v6524_v23 = vmul.f32 %v15741_v46, %v14226_v13  ;;  %v15767_v11 = vld [vmem:[#allocation136_spill] sm:$0xff] }
 0xce2   : > { %6594 = vperm.xlu0 %8556, %v6480_v40   ;;  %6539 = vperm.xlu1 %8557, %v6469_v44   ;;  %v15742_v40 = vld [vmem:[#allocation126_spill] sm:$0xff]  ;;  %v15743_v44 = vld [vmem:[#allocation241_spill] sm:$0xff] }
 0xce3   : > { %v6528_v24 = vmul.f32 %v15742_v40, %v14226_v13  ;;  %v6488_v45 = vmul.f32 %v15743_v44, %v14194_v7 }
 0xce6   : > { %6744 = vperm.xlu0 %8556, %v6510_v39   ;;  %6584 = vperm.xlu1 %8557, %v6478_v56   ;;  %v15744_v39 = vld [vmem:[#allocation115_spill] sm:$0xff]  ;;  %v15745_v56 = vld [vmem:[#allocation106_spill] sm:$0xff] }
 0xce7   : > { %v6506_v37 = vmul.f32 %v15744_v39, %v14201_v42  ;;  %v6518_v62 = vmul.f32 %v15745_v56, %v14208_v59  ;;  %v15770_v39 = vld [vmem:[#allocation135_spill] sm:$0xff] }
 0xcea   : > { %6819 = vperm.xlu0 %8556, %v6525_v22   ;;  %6654 = vperm.xlu1 %8557, %v6492_v32   ;;  %v6475_v22 = vmul.f32 %v15746_v61, %v14211_v31  ;;  %v6481_v32 = vmul.f32 %v15747_v41, %v14180_v55  ;;  %v15752_v31 = vld [vmem:[#allocation123_spill] sm:$0xff]  ;;  %v15771_v61 = vld [vmem:[#allocation138_spill] sm:$0xff] }
 0xceb   : > { %v6515_v20 = vmul.f32 %v15752_v31, %v14191_v16 }
 0xcee   : > { %6709 = vperm.xlu0 %8556, %v6503_v38   ;;  %6624 = vperm.xlu1 %8557, %v6486_v4   ;;  %v6514_v38 = vmul.f32 %v15748_v12, %v14191_v16  ;;  %v6511_v4 = vmul.f32 %v15749_v21, %v14191_v16 }
 0xcf2   : > { %6554 = vperm.xlu0 %8556, %v6472_v2   ;;  %6694 = vperm.xlu1 %8557, %v6500_v50   ;;  %v6507_v2 = vmul.f32 %v15750_v53, %v14201_v42  ;;  %v6489_v50 = vmul.f32 %v15751_v34, %v14194_v7  ;;  %v15756_v42 = vld [vmem:[#allocation111_spill] sm:$0xff]  ;;  %v7028_v53 = vld [vmem:[#allocation20] sm:$0xff] }
 0xcf6   : > { %6674 = vperm.xlu0 %8556, %v6496_v26   ;;  %6699 = vperm.xlu1 %8557, %v6501_v0   ;;  %v15753_v26 = vld [vmem:[#allocation116_spill] sm:$0xff]  ;;  %v15754_v0 = vld [vmem:[#allocation137_spill] sm:$0xff] }
 0xcf7   : > { %v6519_v10 = vmul.f32 %v15753_v26, %v14208_v59  ;;  %v6523_v25 = vmul.f32 %v15754_v0, %v14208_v59 }
 0xcfa   : > { %6824 = vperm.xlu0 %8556, %v6526_v36   ;;  %6544 = vperm.xlu1 %8557, %v6470_v3   ;;  %v15755_v36 = vld [vmem:[#allocation213_spill] sm:$0xff]  ;;  %v6512_v3 = vmul.f32 %v15756_v42, %v14191_v16 }
 0xcfb   : > { %v6482_v15 = vmul.f32 %v15755_v36, %v14180_v55  ;;  %v15776_v36 = vld [vmem:[#allocation60_spill] sm:$0xff]  ;;  %v15777_v42 = vld [vmem:[#allocation61_spill] sm:$0xff] }
 0xcfe   : > { %6714 = vperm.xlu0 %8556, %v6504_v33   ;;  %6589 = vperm.xlu1 %8557, %v6479_v51   ;;  %v6490_v33 = vmul.f32 %v15757_v35, %v14194_v7  ;;  %v6520_v51 = vmul.f32 %v15758_v48, %v14208_v59  ;;  %v7030_v35 = vld [vmem:[#allocation20 + $0x10] sm:$0xff]  ;;  %v7032_v48 = vld [vmem:[#allocation20 + $0x20] sm:$0xff] }
 0xd02   : > { %6559 = vperm.xlu0 %8556, %v6473_v49   ;;  %6734 = vperm.xlu1 %8557, %v6508_v28   ;;  %v6483_v49 = vmul.f32 %v15759_v6, %v14180_v55  ;;  %v6513_v28 = vmul.f32 %v15760_v63, %v14191_v16  ;;  %v7033_v6 = vld [vmem:[#allocation20 + $0x28] sm:$0xff] }
 0xd06   : > { %6679 = vperm.xlu0 %8556, %v6497_v1   ;;  %6629 = vperm.xlu1 %8557, %v6487_v5   ;;  %v6491_v1 = vmul.f32 %v15761_v14, %v14194_v7  ;;  %v6521_v5 = vmul.f32 %v15762_v9, %v14208_v59  ;;  %v15766_v7 = vld [vmem:[#allocation125_spill] sm:$0xff]  ;;  %v8364_v9 = vpack.c.bf16 %v7033_v6, %v7032_v48  ;;  %v15788_v6 = vld [vmem:[#allocation78_spill] sm:$0xff] }
 0xd0a   : > { %6829 = vperm.xlu0 %8556, %v6527_v17   ;;  %6774 = vperm.xlu1 %8557, %v6516_v58   ;;  %v6499_v58 = vmul.f32 %v15763_v30, %v14177_v29 }
 0xd0e   : > { %6719 = vperm.xlu0 %8556, %v6505_v54   ;;  %6549 = vperm.xlu1 %8557, %v6471_v19   ;;  %v15764_v54 = vld [vmem:[#allocation44_spill] sm:$0xff]  ;;  %v15765_v19 = vld [vmem:[#allocation43_spill] sm:$0xff] }
 0xd12   : > { %6564 = vperm.xlu0 %8556, %v6474_v47   ;;  %6669 = vperm.xlu1 %8557, %v6495_v60   ;;  %v6529_v47 = vmul.f32 %v15766_v7, %v14226_v13 }
 0xd16   : > { %6684 = vperm.xlu0 %8556, %v6498_v8   ;;  %6814 = vperm.xlu1 %8557, %v6524_v23   ;;  %v6522_v8 = vmul.f32 %v15767_v11, %v14208_v59  ;;  %v15768_v23 = vld [vmem:[#allocation52_spill] sm:$0xff] }
 0xd1a   : > { %6834 = vperm.xlu0 %8556, %v6528_v24   ;;  %6634 = vperm.xlu1 %8557, %v6488_v45   ;;  %v15769_v24 = vld [vmem:[#allocation51_spill] sm:$0xff] }
 0xd1e   : > { %6724 = vperm.xlu0 %8556, %v6506_v37   ;;  %6784 = vperm.xlu1 %8557, %v6518_v62   ;;  %v6530_v37 = vmul.f32 %v15770_v39, %v14226_v13 }
 0xd22   : > { %6569 = vperm.xlu0 %8556, %v6475_v22   ;;  %6599 = vperm.xlu1 %8557, %v6481_v32   ;;  %v6531_v22 = vmul.f32 %v15771_v61, %v14226_v13  ;;  %v15772_v32 = vld [vmem:[#allocation36_spill] sm:$0xff]  ;;  %v15775_v13 = vmov 0.0|0.0  }
 0xd26   : > { %6764 = vperm.xlu0 %8556, %v6514_v38   ;;  %6749 = vperm.xlu1 %8557, %v6511_v4   ;;  %v15773_v38 = vld [vmem:[#allocation35_spill] sm:$0xff] }
 0xd2a   : > { %6729 = vperm.xlu0 %8556, %v6507_v2   ;;  %6639 = vperm.xlu1 %8557, %v6489_v50   ;;  %v7029_v2 = vld [vmem:[#allocation20 + $0x8] sm:$0xff] }
 0xd2b   : > { %v8358_v31 = vpack.c.bf16 %v7029_v2, %v7028_v53  ;;  %v15784_v2 = vld [vmem:[#allocation45_spill] sm:$0xff] }
 0xd2d   : > { %8359 = vmatpush3.bf16.msra.mxu1 %v8358_v31  ;;  %v7042_v31 = vld [vmem:[#allocation20 + $0x70] sm:$0xff] }
 0xd2e   : > { %6769 = vperm.xlu0 %8556, %v6515_v20   ;;  %6789 = vperm.xlu1 %8557, %v6519_v10   ;;  %v15774_v20 = vld [vmem:[#allocation46_spill] sm:$0xff] }
 0xd2f   : > { %8360 = vmatprep.subr.bf16.mxu1 %v15775_v13 }
 0xd32   : > { %6809 = vperm.xlu0 %8556, %v6523_v25   ;;  %6604 = vperm.xlu1 %8557, %v6482_v15  }
 0xd36   : > { %6754 = vperm.xlu1 %8557, %v6512_v3  }
 0xd3a   : > { %6644 = vperm.xlu1 %8557, %v6490_v33   ;;  %v7031_v33 = vld [vmem:[#allocation20 + $0x18] sm:$0xff] }
 0xd3e   : > { %6794 = vperm.xlu1 %8557, %v6520_v51   ;;  %v8361_v51 = vpack.c.bf16 %v7031_v33, %v7030_v35  ;;  %v15787_v33 = vld [vmem:[#allocation77_spill] sm:$0xff] }
 0xd40   : > { %8362 = vmatpush3.bf16.msra.mxu1 %v8361_v51 }
 0xd41   : > { %8363 = vmatprep.subr.bf16.mxu1 %v15775_v13 }
 0xd42   : > { %6609 = vperm.xlu1 %8557, %v6483_v49   ;;  %v15778_v49 = vld [vmem:[#allocation63_spill] sm:$0xff] }
 0xd44   : > { %8365 = vmatpush3.bf16.msra.mxu1 %v8364_v9 }
 0xd45   : > { %8366 = vmatprep.subr.bf16.mxu1 %v15775_v13 }
 0xd46   : > { %6759 = vperm.xlu1 %8557, %v6513_v28  }
 0xd4a   : > { %6649 = vperm.xlu1 %8557, %v6491_v1  }
 0xd4d   : > { %v6660_v18 = vpop.permute.xlu0 %6659  ;;  %v6575_v17 = vpop.permute.xlu1 %6574 }
 0xd4e   : > { %6799 = vperm.xlu1 %8557, %v6521_v5   ;;  %v6860_v57 = vmul.f32 %v6575_v17, %v15764_v54  ;;  %v6877_v15 = vmul.f32 %v6660_v18, %v15776_v36  ;;  %v15779_v5 = vld [vmem:[#allocation54_spill] sm:$0xff] }
 0xd51   : > { %v6665_v52 = vpop.permute.xlu0 %6664  ;;  %v6580_v55 = vpop.permute.xlu1 %6579 }
 0xd52   : > { %v6861_v16 = vmul.f32 %v6580_v55, %v15765_v19  ;;  %6689 = vperm.xlu1 %8557, %v6499_v58   ;;  %v6878_v63 = vmul.f32 %v6665_v52, %v15778_v49  ;;  %v7034_v58 = vld [vmem:[#allocation20 + $0x30] sm:$0xff]  ;;  %v7035_v55 = vld [vmem:[#allocation20 + $0x38] sm:$0xff]  ;;  %v7036_v19 = vld [vmem:[#allocation20 + $0x40] sm:$0xff] }
 0xd53   : > { %v8367_v52 = vpack.c.bf16 %v7035_v55, %v7034_v58  ;;  %v15791_v55 = vld [vmem:[#allocation84_spill] sm:$0xff] }
 0xd54   : > { %v6929_v43 = vadd.f32 %v6861_v16, %v6860_v57  ;;  %v7037_v16 = vld [vmem:[#allocation20 + $0x48] sm:$0xff] }
 0xd55   : > { %v14324_v27 = vpop.permute.xlu0 %6739  ;;  %v6615_v60 = vpop.permute.xlu1 %6614  ;;  %8368 = vmatpush3.bf16.msra.mxu1 %v8367_v52 }
 0xd56   : > { %6839 = vperm.xlu1 %8557, %v6529_v47   ;;  %v6868_v40 = vmul.f32 %v6615_v60, %v15768_v23  ;;  %v8370_v47 = vpack.c.bf16 %v7037_v16, %v7036_v19  ;;  %v15780_v60 = vld [vmem:[#allocation69_spill] sm:$0xff]  ;;  %8369 = vmatprep.subr.bf16.mxu1 %v15775_v13  ;;  %v7038_v23 = vld [vmem:[#allocation20 + $0x50] sm:$0xff] }
 0xd57   : > { %v15792_v19 = vld [vmem:[#allocation37_spill] sm:$0xff] }
 0xd59   : > { %v14328_v46 = vpop.permute.xlu0 %6704  ;;  %v6620_v29 = vpop.permute.xlu1 %6619  ;;  %8371 = vmatpush3.bf16.msra.mxu1 %v8370_v47 }
 0xd5a   : > { %v6869_v44 = vmul.f32 %v6620_v29, %v15769_v24  ;;  %6804 = vperm.xlu1 %8557, %v6522_v8   ;;  %v15781_v8 = vld [vmem:[#allocation68_spill] sm:$0xff]  ;;  %v15782_v24 = vld [vmem:[#allocation71_spill] sm:$0xff]  ;;  %8372 = vmatprep.subr.bf16.mxu1 %v15775_v13 }
 0xd5c   : > { %v6942_v45 = vadd.f32 %v6869_v44, %v6868_v40  ;;  %v7039_v40 = vld [vmem:[#allocation20 + $0x58] sm:$0xff]  ;;  %v6886_v44 = vmul.f32 %v14328_v46, %v15782_v24 }
 0xd5d   : > { %v14334_v56 = vpop.permute.xlu0 %6779  ;;  %v6535_v62 = vpop.permute.xlu1 %6534 }
 0xd5e   : > { %6844 = vperm.xlu1 %8557, %v6530_v37   ;;  %v6852_v12 = vmul.f32 %v6535_v62, %v15772_v32  ;;  %v8373_v62 = vpack.c.bf16 %v7039_v40, %v7038_v23  ;;  %v7040_v32 = vld [vmem:[#allocation20 + $0x60] sm:$0xff] }
 0xd60   : > { %8374 = vmatpush3.bf16.msra.mxu1 %v8373_v62 }
 0xd61   : > { %v14338_v59 = vpop.permute.xlu0 %6594  ;;  %v6540_v41 = vpop.permute.xlu1 %6539  ;;  %8375 = vmatprep.subr.bf16.mxu1 %v15775_v13 }
 0xd62   : > { %v6853_v21 = vmul.f32 %v6540_v41, %v15773_v38  ;;  %6849 = vperm.xlu1 %8557, %v6531_v22   ;;  %v15783_v22 = vld [vmem:[#allocation38_spill] sm:$0xff] }
 0xd64   : > { %v6916_v4 = vadd.f32 %v6853_v21, %v6852_v12  ;;  %v7041_v12 = vld [vmem:[#allocation20 + $0x68] sm:$0xff] }
 0xd65   : > { %v14342_v34 = vpop.permute.xlu0 %6744  ;;  %v6585_v50 = vpop.permute.xlu1 %6584  ;;  %v8376_v46 = vpack.c.bf16 %v7041_v12, %v7040_v32 }
 0xd66   : > { %v6862_v26 = vmul.f32 %v6585_v50, %v15774_v20  ;;  %v7043_v20 = vld [vmem:[#allocation20 + $0x78] sm:$0xff]  ;;  %v6894_v49 = vmul.f32 %v14342_v34, %v15788_v6 }
 0xd67   : > { %8377 = vmatpush3.bf16.msra.mxu1 %v8376_v46 }
 0xd68   : > { %v6930_v10 = vadd.f32 %v6929_v43, %v6862_v26  ;;  %v15785_v26 = vld [vmem:[#allocation48_spill] sm:$0xff]  ;;  %8378 = vmatprep.subr.bf16.mxu1 %v15775_v13 }
 0xd69   : > { %v14346_v0 = vpop.permute.xlu0 %6819  ;;  %v6655_v25 = vpop.permute.xlu1 %6654 }
 0xd6a   : > { %v6876_v3 = vmul.f32 %v6655_v25, %v15777_v42  ;;  %v6864_v25 = vmul.f32 %v14338_v59, %v15785_v26  ;;  %v15797_v26 = vld [vmem:[#allocation41_spill] sm:$0xff] }
 0xd6c   : > { %v6955_v28 = vadd.f32 %v6877_v15, %v6876_v3  ;;  %v8379_v3 = vpack.c.bf16 %v7043_v20, %v7042_v31  ;;  %v15796_v31 = vld [vmem:[#allocation42_spill] sm:$0xff] }
 0xd6d   : > { %v14351_v14 = vpop.permute.xlu0 %6709  ;;  %v6625_v1 = vpop.permute.xlu1 %6624 }
 0xd6e   : > { %v6870_v17 = vmul.f32 %v6625_v1, %v15779_v5  ;;  %v14354_v30 = vadd.f32 %v6955_v28, %v6878_v63  ;;  %8380 = vmatpush3.bf16.msra.mxu1 %v8379_v3 }
 0xd70   : > { %v6943_v18 = vadd.f32 %v6942_v45, %v6870_v17 }
 0xd71   : > { %v14357_v54 = vpop.permute.xlu0 %6554  ;;  %v6695_v57 = vpop.permute.xlu1 %6694 }
 0xd72   : > { %v6884_v11 = vmul.f32 %v6695_v57, %v15780_v60 }
 0xd75   : > { %v14360_v43 = vpop.permute.xlu0 %6674  ;;  %v6700_v7 = vpop.permute.xlu1 %6699 }
 0xd76   : > { %v6885_v29 = vmul.f32 %v6700_v7, %v15781_v8 }
 0xd78   : > { %v6968_v45 = vadd.f32 %v6885_v29, %v6884_v11  ;;  %v15793_v11 = vld [vmem:[#allocation62_spill] sm:$0xff] }
 0xd79   : > { %v14367_v39 = vpop.permute.xlu0 %6824  ;;  %v6545_v37 = vpop.permute.xlu1 %6544 }
 0xd7a   : > { %v14369_v61 = vadd.f32 %v6968_v45, %v6886_v44  ;;  %v6854_v41 = vmul.f32 %v6545_v37, %v15783_v22 }
 0xd7c   : > { %v6917_v38 = vadd.f32 %v6916_v4, %v6854_v41  ;;  %v15786_v4 = vld [vmem:[#allocation76_spill] sm:$0xff] }
 0xd7d   : > { %v14373_v21 = vpop.permute.xlu0 %6714  ;;  %v6590_v53 = vpop.permute.xlu1 %6589  ;;  %v6893_v35 = vmul.f32 %v14324_v27, %v15786_v4  ;;  %v15790_v27 = vld [vmem:[#allocation85_spill] sm:$0xff]  ;;  %v15794_v41 = vld [vmem:[#allocation40_spill] sm:$0xff] }
 0xd7e   : > { %v6863_v50 = vmul.f32 %v6590_v53, %v15784_v2  ;;  %v6901_v58 = vmul.f32 %v14334_v56, %v15790_v27  ;;  %v6856_v32 = vmul.f32 %v14357_v54, %v15794_v41 }
 0xd80   : > { %v6931_v36 = vadd.f32 %v6930_v10, %v6863_v50  ;;  %v15789_v10 = vld [vmem:[#allocation53_spill] sm:$0xff] }
 0xd81   : > { %v6560_v15 = vpop.permute.xlu0 %6559  ;;  %v6735_v42 = vpop.permute.xlu1 %6734 }
 0xd82   : > { %v6892_v48 = vmul.f32 %v6735_v42, %v15787_v33  ;;  %v6932_v51 = vadd.f32 %v6931_v36, %v6864_v25  ;;  %v15798_v33 = vld [vmem:[#allocation70_spill] sm:$0xff] }
 0xd83   : > { %v6887_v54 = vmul.f32 %v14351_v14, %v15798_v33  ;;  %v15811_v33 = vld [vmem:[#allocation81_spill] sm:$0xff] }
 0xd84   : > { %v6981_v63 = vadd.f32 %v6893_v35, %v6892_v48  ;;  %v15799_v48 = vld [vmem:[#allocation73_spill] sm:$0xff] }
 0xd85   : > { %v6630_v28 = vpop.permute.xlu1 %6629  ;;  %v14385_v59 = vpop.permute.xlu0 %6679  ;;  %v6888_v6 = vmul.f32 %v14373_v21, %v15799_v48 }
 0xd86   : > { %v6871_v1 = vmul.f32 %v6630_v28, %v15789_v10  ;;  %v6982_v9 = vadd.f32 %v6981_v63, %v6894_v49  ;;  %v6970_v28 = vadd.f32 %v14369_v61, %v6887_v54  ;;  %v15801_v10 = vld [vmem:[#allocation72_spill] sm:$0xff] }
 0xd88   : > { %v14388_v5 = vadd.f32 %v6943_v18, %v6871_v1 }
 0xd89   : > { %v6775_v17 = vpop.permute.xlu1 %6774  ;;  %v14393_v13 = vpop.permute.xlu0 %6829 }
 0xd8a   : > { %v6900_v57 = vmul.f32 %v6775_v17, %v15791_v55 }
 0xd8c   : > { %v14395_v52 = vadd.f32 %v6901_v58, %v6900_v57  ;;  %v15802_v58 = vld [vmem:[#allocation50_spill] sm:$0xff]  ;;  %v6971_v57 = vadd.f32 %v6970_v28, %v6888_v6 }
 0xd8d   : > { %v6550_v34 = vpop.permute.xlu1 %6549  ;;  %v6720_v60 = vpop.permute.xlu0 %6719 }
 0xd8e   : > { %v6855_v16 = vmul.f32 %v6550_v34, %v15792_v19  ;;  %v6889_v1 = vmul.f32 %v6720_v60, %v15801_v10  ;;  %v15803_v34 = vld [vmem:[#allocation75_spill] sm:$0xff]  ;;  %v15807_v60 = vld [vmem:[#allocation80_spill] sm:$0xff] }
 0xd8f   : > { %v15814_v10 = vld [vmem:[#allocation83_spill] sm:$0xff] }
 0xd90   : > { %v6918_v7 = vadd.f32 %v6917_v38, %v6855_v16  ;;  %v15795_v38 = vld [vmem:[#allocation39_spill] sm:$0xff]  ;;  %v6972_v21 = vadd.f32 %v6971_v57, %v6889_v1  ;;  %v15815_v57 = vld [vmem:[#allocation57_spill] sm:$0xff] }
 0xd91   : > { %v6670_v47 = vpop.permute.xlu1 %6669  ;;  %v6565_v56 = vpop.permute.xlu0 %6564  ;;  %v6857_v53 = vmul.f32 %v6560_v15, %v15795_v38  ;;  %v15800_v15 = vld [vmem:[#allocation47_spill] sm:$0xff] }
 0xd92   : > { %v6879_v8 = vmul.f32 %v6670_v47, %v15793_v11  ;;  %v6919_v12 = vadd.f32 %v6918_v7, %v6856_v32  ;;  %v6858_v20 = vmul.f32 %v6565_v56, %v15796_v31  ;;  %v15804_v7 = vld [vmem:[#allocation79_spill] sm:$0xff]  ;;  %v15805_v11 = vld [vmem:[#allocation56_spill] sm:$0xff]  ;;  %v15806_v56 = vld [vmem:[#allocation74_spill] sm:$0xff] }
 0xd94   : > { %v14400_v18 = vadd.f32 %v14354_v30, %v6879_v8  ;;  %v6920_v2 = vadd.f32 %v6919_v12, %v6857_v53  ;;  %v15808_v12 = vld [vmem:[#allocation49_spill] sm:$0xff] }
 0xd95   : > { %v14402_v29 = vpop.permute.xlu1 %6814  ;;  %v14406_v24 = vpop.permute.xlu0 %6684 }
 0xd96   : > { %v6921_v36 = vadd.f32 %v6920_v2, %v6858_v20 }
 0xd99   : > { %v6635_v23 = vpop.permute.xlu1 %6634  ;;  %v14408_v45 = vpop.permute.xlu0 %6834 }
 0xd9a   : > { %v6872_v8 = vmul.f32 %v6635_v23, %v15805_v11 }
 0xd9d   : > { %v14404_v40 = vpop.permute.xlu1 %6784  ;;  %v6725_v22 = vpop.permute.xlu0 %6724 }
 0xd9e   : > { %v6890_v19 = vmul.f32 %v6725_v22, %v15803_v34 }
 0xda0   : > { %v6973_v53 = vadd.f32 %v6972_v21, %v6890_v19  ;;  %v15816_v19 = vld [vmem:[#allocation64_spill] sm:$0xff] }
 0xda1   : > { %v6600_v44 = vpop.permute.xlu1 %6599  ;;  %v6570_v46 = vpop.permute.xlu0 %6569  ;;  %v15817_v21 = vld [vmem:[#allocation92_spill] sm:$0xff] }
 0xda2   : > { %v6859_v25 = vmul.f32 %v6570_v46, %v15797_v26  ;;  %v6865_v63 = vmul.f32 %v6600_v44, %v15800_v15 }
 0xda4   : > { %v6922_v3 = vadd.f32 %v6921_v36, %v6859_v25  ;;  %v6933_v14 = vadd.f32 %v6932_v51, %v6865_v63  ;;  %v6945_v51 = vadd.f32 %v14388_v5, %v6872_v8  ;;  %v15810_v25 = vld [vmem:[#allocation59_spill] sm:$0xff] }
 0xda5   : > { %v6750_v37 = vpop.permute.xlu1 %6749  ;;  %v6765_v4 = vpop.permute.xlu0 %6764 }
 0xda6   : > { %v6923_v49 = vrot.slane %v6922_v3, 4  ;;  %v6895_v47 = vmul.f32 %v6750_v37, %v15804_v7 }
 0xda8   : > { %v6924_v16 = vadd.f32 %v6923_v49, %v6922_v3  ;;  %v6983_v2 = vadd.f32 %v6982_v9, %v6895_v47  ;;  %v15813_v49 = vld [vmem:[#allocation82_spill] sm:$0xff] }
 0xda9   : > { %v6640_v62 = vpop.permute.xlu1 %6639  ;;  %v6730_v27 = vpop.permute.xlu0 %6729  ;;  %v6898_v9 = vmul.f32 %v6765_v4, %v15813_v49 }
 0xdaa   : > { %v6891_v44 = vmul.f32 %v6730_v27, %v15806_v56  ;;  %v6925_v46 = vrot.slane %v6924_v16, 2 }
 0xdac   : > { %v6974_v37 = vadd.f32 %v6973_v53, %v6891_v44  ;;  %v6926_v6 = vadd.f32 %v6925_v46, %v6924_v16 }
 0xdad   : > { %v14412_v30 = vpop.permute.xlu1 %6789  ;;  %v6770_v26 = vpop.permute.xlu0 %6769 }
 0xdae   : > { %v6975_v28 = vrot.slane %v6974_v37, 4  ;;  %v6899_v1 = vmul.f32 %v6770_v26, %v15814_v10  ;;  %v6927_v16 = vrot.slane %v6926_v6, 1  ;;  %v15822_v26 = vld [vmem:[#allocation217_spill] sm:$0xff] }
 0xdb0   : > { %v6976_v11 = vadd.f32 %v6975_v28, %v6974_v37  ;;  %v6928_v53 = vadd.f32 %v6927_v16, %v6926_v6 }
 0xdb1   : > { %v6605_v50 = vpop.permute.xlu1 %6604 }
 0xdb2   : > { %v6866_v55 = vmul.f32 %v6605_v50, %v15802_v58  ;;  %v15809_v50 = vld [vmem:[#allocation55_spill] sm:$0xff] }
 0xdb3   : > { %v6873_v22 = vmul.f32 %v6640_v62, %v15809_v50 }
 0xdb4   : > { %v6934_v41 = vadd.f32 %v6933_v14, %v6866_v55 }
 0xdb5   : > { %v6755_v42 = vpop.permute.xlu1 %6754  ;;  %v6946_v15 = vadd.f32 %v6945_v51, %v6873_v22  ;;  %v15821_v51 = vld [vmem:[#allocation87_spill] sm:$0xff] }
 0xdb6   : > { %v6896_v32 = vmul.f32 %v6755_v42, %v15807_v60  ;;  %v15812_v42 = vld [vmem:[#allocation65_spill] sm:$0xff]  ;;  %v6903_v37 = vmul.f32 %v14412_v30, %v15821_v51 }
 0xdb7   : > { %v6880_v48 = vmul.f32 %v14360_v43, %v15812_v42  ;;  %v6881_v43 = vmul.f32 %v14385_v59, %v15816_v19  ;;  %v15820_v59 = vld [vmem:[#allocation86_spill] sm:$0xff] }
 0xdb8   : > { %v6984_v23 = vadd.f32 %v6983_v2, %v6896_v32  ;;  %v15819_v32 = vld [vmem:[#allocation67_spill] sm:$0xff] }
 0xdb9   : > { %v6645_v35 = vpop.permute.xlu1 %6644  ;;  %v6958_v5 = vadd.f32 %v14400_v18, %v6880_v48  ;;  %v6908_v18 = vmul.f32 %v14402_v29, %v15817_v21  ;;  %v15826_v48 = vld [vmem:[#allocation88_spill] sm:$0xff] }
 0xdba   : > { %v6874_v36 = vmul.f32 %v6645_v35, %v15810_v25 }
 0xdbb   : > { %v6959_v47 = vadd.f32 %v6958_v5, %v6881_v43 }
 0xdbc   : > { %v6947_v58 = vadd.f32 %v6946_v15, %v6874_v36  ;;  %v15823_v36 = vld [vmem:[#allocation66_spill] sm:$0xff] }
 0xdbd   : > { %v14424_v17 = vpop.permute.xlu1 %6794 }
 0xdbe   : > { %v6904_v6 = vmul.f32 %v14424_v17, %v15826_v48 }
 0xdc1   : > { %v6610_v61 = vpop.permute.xlu1 %6609 }
 0xdc2   : > { %v6867_v38 = vmul.f32 %v6610_v61, %v15808_v12  ;;  %v6882_v12 = vmul.f32 %v14406_v24, %v15819_v32 }
 0xdc4   : > { %v6935_v31 = vadd.f32 %v6934_v41, %v6867_v38  ;;  %v15818_v41 = vld [vmem:[#allocation93_spill] sm:$0xff]  ;;  %v6902_v38 = vmul.f32 %v14404_v40, %v15820_v59  ;;  %v6960_v22 = vadd.f32 %v6959_v47, %v6882_v12 }
 0xdc5   : > { %v6760_v20 = vpop.permute.xlu1 %6759  ;;  %v6909_v60 = vmul.f32 %v14346_v0, %v15818_v41 }
 0xdc6   : > { %v6936_v3 = vrot.slane %v6935_v31, 4  ;;  %v6897_v54 = vmul.f32 %v6760_v20, %v15811_v33  ;;  %v6995_v33 = vadd.f32 %v14395_v52, %v6902_v38  ;;  %v15828_v52 = vld [vmem:[#allocation95_spill] sm:$0xff] }
 0xdc7   : > { %v7007_v29 = vadd.f32 %v6909_v60, %v6908_v18  ;;  %v15830_v18 = vld [vmem:[#allocation90_spill] sm:$0xff]  ;;  %v15833_v60 = vld [vmem:[#allocation97_spill] sm:$0xff] }
 0xdc8   : > { %v6937_v62 = vadd.f32 %v6936_v3, %v6935_v31  ;;  %v6985_v63 = vadd.f32 %v6984_v23, %v6897_v54  ;;  %v6977_v31 = vrot.slane %v6976_v11, 2  ;;  %v15824_v3 = vld [vmem:[#allocation94_spill] sm:$0xff]  ;;  %v15825_v54 = vld [vmem:[#allocation199_spill] sm:$0xff] }
 0xdc9   : > { %v6650_v27 = vpop.permute.xlu1 %6649  ;;  %v6910_v40 = vmul.f32 %v14367_v39, %v15824_v3  ;;  %v7020_v42 = vadd.f32 %v6928_v53, %v15825_v54 }
 0xdca   : > { %v6938_v35 = vrot.slane %v6937_v62, 2  ;;  %v6986_v55 = vadd.f32 %v6985_v63, %v6898_v9  ;;  %v6875_v34 = vmul.f32 %v6650_v27, %v15815_v57  ;;  %v6996_v63 = vadd.f32 %v6995_v33, %v6903_v37  ;;  %v15827_v27 = vld [vmem:[#allocation89_spill] sm:$0xff]  ;;  %v15838_v33 = vld [vmem:[#allocation99_spill] sm:$0xff] }
 0xdcb   : > { %v7008_v15 = vadd.f32 %v7007_v29, %v6910_v40 }
 0xdcc   : > { %v6939_v14 = vadd.f32 %v6938_v35, %v6937_v62  ;;  %v6987_v4 = vadd.f32 %v6986_v55, %v6899_v1  ;;  %v6948_v7 = vadd.f32 %v6947_v58, %v6875_v34  ;;  %v6978_v62 = vadd.f32 %v6977_v31, %v6976_v11  ;;  %v6810_v55 = vpop.permute.xlu0 %6809 }
 0xdcd   : > { %v6800_v8 = vpop.permute.xlu1 %6799  ;;  %v6911_v35 = vmul.f32 %v14393_v13, %v15828_v52  ;;  %v6997_v57 = vadd.f32 %v6996_v63, %v6904_v6 }
 0xdce   : > { %v6940_v56 = vrot.slane %v6939_v14, 1  ;;  %v6988_v44 = vrot.slane %v6987_v4, 4  ;;  %v6949_v61 = vrot.slane %v6948_v7, 4  ;;  %v6905_v39 = vmul.f32 %v6800_v8, %v15827_v27 }
 0xdcf   : > { %v7009_v19 = vadd.f32 %v7008_v15, %v6911_v35  ;;  %v6979_v43 = vrot.slane %v6978_v62, 1 }
 0xdd0   : > { %v6941_v46 = vadd.f32 %v6940_v56, %v6939_v14  ;;  %v6989_v2 = vadd.f32 %v6988_v44, %v6987_v4  ;;  %v6950_v50 = vadd.f32 %v6949_v61, %v6948_v7  ;;  %v15829_v4 = vld [vmem:[#allocation180_spill] sm:$0xff]  ;;  %v6998_v47 = vadd.f32 %v6997_v57, %v6905_v39  ;;  %v15832_v44 = vld [vmem:[#allocation91_spill] sm:$0xff] }
 0xdd1   : > { %v6690_v20 = vpop.permute.xlu1 %6689  ;;  %v15831_v56 = vld [vmem:[#allocation96_spill] sm:$0xff]  ;;  %v6907_v61 = vmul.f32 %v6810_v55, %v15832_v44  ;;  %v6980_v38 = vadd.f32 %v6979_v43, %v6978_v62 }
 0xdd2   : > { %v7021_v23 = vadd.f32 %v6941_v46, %v15822_v26  ;;  %v6990_v0 = vrot.slane %v6989_v2, 2  ;;  %v6951_v25 = vrot.slane %v6950_v50, 2  ;;  %v6883_v24 = vmul.f32 %v6690_v20, %v15823_v36  ;;  %v15835_v20 = vld [vmem:[#allocation221_spill] sm:$0xff]  ;;  %v15837_v36 = vld [vmem:[#allocation224_spill] sm:$0xff] }
 0xdd3   : > { %v6912_v8 = vmul.f32 %v14408_v45, %v15831_v56  ;;  %v7024_v26 = vadd.f32 %v6980_v38, %v15835_v20 }
 0xdd4   : > { %v7059_v49 = vrot.slane %v7021_v23, 7  ;;  %v6952_v9 = vadd.f32 %v6951_v25, %v6950_v50  ;;  %v6961_v30 = vadd.f32 %v6960_v22, %v6883_v24  ;;  %v6991_v5 = vadd.f32 %v6990_v0, %v6989_v2  ;;  %v15834_v22 = vld [vmem:[#allocation98_spill] sm:$0xff]  ;;  %v15836_v0 = vld [vmem:[#allocation207_spill] sm:$0xff] }
 0xdd5   : > { %v6840_v28 = vpop.permute.xlu1 %6839  ;;  %v7010_v59 = vadd.f32 %v7009_v19, %v6912_v8 }
 0xdd6   : > { %v7060_v10 = vsel %vm2767_vm9, %v7059_v49, %v7020_v42  ;;  %v6953_v1 = vrot.slane %v6952_v9, 1  ;;  %v6962_v58 = vrot.slane %v6961_v30, 4  ;;  %v6992_v16 = vrot.slane %v6991_v5, 1 }
 0xdd7   : > { %v6913_v32 = vmul.f32 %v6840_v28, %v15833_v60  ;;  %v7065_v49 = vrot.slane %v7024_v26, 4 }
 0xdd8   : > { %v6954_v17 = vadd.f32 %v6953_v1, %v6952_v9  ;;  %v6963_v34 = vadd.f32 %v6962_v58, %v6961_v30  ;;  %v6993_v53 = vadd.f32 %v6992_v16, %v6991_v5  ;;  %v15839_v58 = vld [vmem:[#allocation171_spill] sm:$0xff] }
 0xdd9   : > { %v6805_v14 = vpop.permute.xlu1 %6804  ;;  %v7011_v37 = vadd.f32 %v7010_v59, %v6913_v32 }
 0xdda   : > { %v7022_v7 = vadd.f32 %v6954_v17, %v15829_v4  ;;  %v6964_v21 = vrot.slane %v6963_v34, 2  ;;  %v6906_v11 = vmul.f32 %v6805_v14, %v15830_v18  ;;  %v7025_v25 = vadd.f32 %v6993_v53, %v15836_v0  ;;  %v7464_v14 = vld [vmem:[#allocation22] ss:$0 sm:$0xff] }
 0xddc   : > { %v7061_v13 = vrot.slane %v7022_v7, 6  ;;  %v6965_v41 = vadd.f32 %v6964_v21, %v6963_v34  ;;  %v6999_v12 = vadd.f32 %v6998_v47, %v6906_v11  ;;  %v7067_v62 = vrot.slane %v7025_v25, 3  ;;  %v15840_v34 = vld [vmem:[#allocation215_spill] sm:$0xff] }
 0xddd   : > { %v6845_v46 = vpop.permute.xlu1 %6844 }
 0xdde   : > { %v6966_v2 = vrot.slane %v6965_v41, 1  ;;  %v7000_v50 = vadd.f32 %v6999_v12, %v6907_v61  ;;  %v6914_v29 = vmul.f32 %v6845_v46, %v15834_v22  ;;  %v7062_v31 = vsel %vm2769_vm10, %v7061_v13, %v7060_v10 }
 0xde0   : > { %v6967_v51 = vadd.f32 %v6966_v2, %v6965_v41  ;;  %v7001_v45 = vrot.slane %v7000_v50, 4  ;;  %v7012_v40 = vadd.f32 %v7011_v37, %v6914_v29 }
 0xde1   : > { %v6850_v23 = vpop.permute.xlu1 %6849 }
 0xde2   : > { %v7023_v24 = vadd.f32 %v6967_v51, %v15837_v36  ;;  %v7002_v3 = vadd.f32 %v7001_v45, %v7000_v50  ;;  %v6915_v54 = vmul.f32 %v6850_v23, %v15838_v33 }
 0xde4   : > { %v7063_v42 = vrot.slane %v7023_v24, 5  ;;  %v7003_v48 = vrot.slane %v7002_v3, 2  ;;  %v7013_v6 = vadd.f32 %v7012_v40, %v6915_v54 }
 0xde6   : > { %v7004_v9 = vadd.f32 %v7003_v48, %v7002_v3  ;;  %v7014_v30 = vrot.slane %v7013_v6, 4  ;;  %v7064_v15 = vsel %vm2771_vm11, %v7063_v42, %v7062_v31 }
 0xde7   : > { %v7066_v63 = vsel %vm2773_vm12, %v7065_v49, %v7064_v15 }
 0xde8   : > { %v7005_v5 = vrot.slane %v7004_v9, 1  ;;  %v7015_v28 = vadd.f32 %v7014_v30, %v7013_v6  ;;  %v7068_v10 = vsel %vm2775_vm13, %v7067_v62, %v7066_v63 }
 0xdea   : > { %v7006_v1 = vadd.f32 %v7005_v5, %v7004_v9  ;;  %v7016_v27 = vrot.slane %v7015_v28, 2 }
 0xdec   : > { %v7017_v39 = vadd.f32 %v7016_v27, %v7015_v28  ;;  %v7026_v52 = vadd.f32 %v7006_v1, %v15839_v58 }
 0xdee   : > { %v7018_v35 = vrot.slane %v7017_v39, 1  ;;  %v7069_v55 = vrot.slane %v7026_v52, 2 }
 0xdf0   : > { %v7019_v57 = vadd.f32 %v7018_v35, %v7017_v39  ;;  %v7070_v17 = vsel %vm2777_vm14, %v7069_v55, %v7068_v10 }
 0xdf2   : > { %v7027_v19 = vadd.f32 %v7019_v57, %v15840_v34 }
 0xdf4   : > { %v7071_v43 = vrot.slane %v7027_v19, 1 }
 0xdf6   : > { %v7072_v16 = vsel %vm2779_vm15, %v7071_v43, %v7070_v17 }
 0xdf7   : > { %8229 = vmatmul.mubr.f32.vlgmr.msra.gmra.mrb[90].mxu1 %v7072_v16 }
 0xeca   : > { %v7140_v4 = vpop.f32.mrb[90].mxu1 }
 0xecb   : > { %v7141_v7 = vadd.f32 %v7464_v14, %v7140_v4  ;;  %v8230_v47 = vpop.f32.mrb[91].mxu1 }
 0xecd   : > { %7144 = vst [vmem:[%s649_s30] sm:$0xff] %v7141_v7 }
 0xece   : > { %9455 = shalt.err (!%p9452_p13)
}
 0xecf   : > { %s9456_s2 = scalar_lea.hbm %s14492_s4, 128  ;;  %s9460_s8 = scalar_lea.hbm %s15841_s7, 256 }
 0xed0   : > { %p9457_p0 = scmp.ne.s32.totalorder %s14492_s4, %s9456_s2  ;;  %p9461_p10 = scmp.lt.u32.totalorder %s14492_s4, %s15841_s7 }
 0xed1   : > { %p9462_p5 = scmp.lt.u32.totalorder %s9460_s8, %s9456_s2  ;;  %p9464_p3 = scmp.lt.u32.totalorder %s9456_s2, %s14492_s4 }
 0xed2   : > { %p9458_p2 = pnand %p9457_p0, %p15842_p7 }
 0xed3   : > { %p9463_p9 = por %p9462_p5, %p9461_p10 }
 0xed4   : > { %p9459_p6 = pneg %p9458_p2 }
 0xed5   : > { %p9465_p11 = por %p9464_p3, %p9463_p9 }
 0xed7   : > { %p9466_p8 = pnand %p9465_p11, %p9459_p6 }
 0xed9   : > { %9469 = shalt.err (!%p9466_p8)
}
 0xeda   : > { %8433 = dma.vmem_to_hbm [thread:$0]  (%p15842_p7), %s14494_s13, 128, %s14492_s4, %s7146_s23  }
 0xedb PF: > { %s7171_s21 = sand.u32 1, %s9524_s25   ;;  %p15843_p4 = scmp.ne.s32.totalorder %s14977_s0, 0 }
 0xedc   : > { %p15844_p12 = scmp.ge.s32.totalorder %s9536_s28, 2  ;;  %s7172_s30 = scalar_lea.sflag [#allocation4], %s7171_s21 }
 0xede   : > { %p8477_p1 = pnand %p15844_p12, %p15843_p4 }
 0xee0   : > { %9519 = dma.done.wait (!%p8477_p1), %s7172_s30, 128  }
 0xee1   : > { %9521 = vsyncadd (!%p8477_p1), %s7172_s30, 4294967168  ;;  %p34_p13 = scmp.ge.s32.totalorder %s9944_s18, 4   ;;  %s15845_s25 = smov %s9528_s26 }
 0xee2   : > { %s15846_s26 = smov %s9532_s27  ;;  %s15847_s27 = smov %s9956_s19 }
 0xee3   : > { %s15848_s28 = smov %s9944_s18  ;;  %36 = sbr.rel (!%p34_p13) target bundleno = 24 (0x18), region = 178 }
 0xeea   :  { %7177 = vsyncpa [#allocation3], 1 }
 0xeeb   :  { %7179 = vsyncpa [#allocation3 + $0x1], 1 }
 0xeec   :  { %7180 = vsyncpa [#allocation6], 1 }
 0xeed   :  { %7182 = vsyncpa [#allocation6 + $0x1], 1 }
 0xeee   :  { %7183 = vsyncpa [#allocation9], 1 }
 0xeef   :  { %7184 = vsyncpa [#allocation12], 1 }
 0xef0   :  { %7185 = vsyncpa [#allocation15], 1 }
 0xef1   :  { %7186 = vsyncpa [#allocation18], 1 }
 0xef2   :  { %7187 = vsyncpa [#allocation21], 1 }
 0xef3   :  { %7188 = vsyncpa [#allocation4], 1 }
 0xef4   :  { %7190 = vsyncpa [#allocation4 + $0x1], 1 }

</bundles_post_ra>
